<compile_context>
chip_gen: v6e
topology: v6e:2x2x1
jax: 0.10.0
libtpu: 0.0.40
codegen_flags: <defaults>
</compile_context>

<pallas_src>
import numpy as np
import jax
import jax.numpy as jnp
from jax import lax
from jax.experimental import pallas as pl
from jax.experimental.pallas import tpu as pltpu


def _evpi_kernel(lens_ref, inv_ref, x_ref,
                 wih0_ref, whh0_ref, b0_ref,
                 wih_ref, whh_ref, b_ref,
                 w1_ref, b1_ref, w2_ref, b2_ref,
                 w3_ref, b3_ref, w4_ref, b4_ref,
                 out_ref,
                 buf0, buf1, pregates):
    T, B, D = x_ref.shape            # B here is the per-block batch size
    H = buf0.shape[-1]
    G = 4 * H

    lens = lens_ref[...]                                    # (B, 1) int32

    def run_layer(src_ref, dst_ref, wihT, whhT, bias):
        last = dst_ref is None

        # ---- off-the-serial-path precompute: x_t @ W_ih + b for every t ----
        # Read the source sequence one timestep at a time so the whole (T,B,D)
        # slab is never materialized in vregs (would spill at production sizes).
        bias_b = jnp.broadcast_to(bias, (B, G))             # hoisted broadcast
        for t in range(T):                                  # independent matmuls
            pregates[t] = (jnp.dot(src_ref[t], wihT,
                                   preferred_element_type=jnp.float32) + bias_b)

        zeros = jnp.zeros((B, H), jnp.float32)

        # ---- serial recurrence: h, c live as loop-carried vregs ----
        def step(t, carry):
            if last:
                h, c, acc = carry
            else:
                h, c = carry
            gates = pregates[t] + jnp.dot(h, whhT,
                                          preferred_element_type=jnp.float32)
            # PyTorch gate order i, f, g, o.
            # (H-wide lane slices are not 128-aligned; acceptable at this size.)
            i = jax.nn.sigmoid(gates[:, 0 * H:1 * H])
            f = jax.nn.sigmoid(gates[:, 1 * H:2 * H])
            g = jnp.tanh(gates[:, 2 * H:3 * H])
            o = jax.nn.sigmoid(gates[:, 3 * H:4 * H])
            c = f * c + i * g
            h = o * jnp.tanh(c)
            if last:
                # Fused masked time-sum for the mean: no (T,B,H) writeback.
                return h, c, acc + jnp.where(t < lens, h, 0.0)
            dst_ref[t] = h                                  # single VMEM store/step
            return h, c

        init = (zeros, zeros, zeros) if last else (zeros, zeros)
        final = lax.fori_loop(0, T, step, init, unroll=True)
        return final[2] if last else None

    # Layer 0 reads the embedded tokens; layers 1..3 ping-pong buf0/buf1;
    # layer 4 accumulates the masked time-sum directly (never stores its seq).
    run_layer(x_ref, buf0, wih0_ref[...], whh0_ref[...], b0_ref[...])
    srcs = (buf0, buf1, buf0)
    dsts = (buf1, buf0, buf1)
    for l in range(3):
        run_layer(srcs[l], dsts[l], wih_ref[l], whh_ref[l], b_ref[l])
    acc = run_layer(buf1, None, wih_ref[3], whh_ref[3], b_ref[3])

    # pad_packed_sequence zero-pads past each length; .mean(dim=1) divides by
    # the padded length == max(lengths) over the whole batch (global scalar is
    # passed in so batch-blocking stays correct).
    p_mean = acc * inv_ref[...]                             # (B,H) * (1,1)

    x1 = jnp.maximum(jnp.dot(p_mean, w1_ref[...],
                             preferred_element_type=jnp.float32) + b1_ref[...], 0.0)
    x2 = jnp.maximum(jnp.dot(x1, w2_ref[...],
                             preferred_element_type=jnp.float32) + b2_ref[...], 0.0)
    x3 = jnp.maximum(jnp.dot(x2, w3_ref[...],
                             preferred_element_type=jnp.float32) + b3_ref[...], 0.0)
    out_ref[...] = (jnp.dot(x3, w4_ref[...],
                            preferred_element_type=jnp.float32) + b4_ref[...])


def evpi_forward(emb_w, params, post, post_lengths, *, b_block=None):
    # TODO(synk): embedding gather + time-major transpose stay outside the kernel;
    # an in-kernel DMA gather of scalar-prefetched token ids would remove one HBM
    # round trip at production sizes.
    emb = jnp.take(emb_w, post, axis=0).astype(jnp.float32)      # (B, T, D)
    B, T, D = emb.shape
    H = params['w1T'].shape[0]
    G = 4 * H

    if b_block is None:
        b_block = B                       # one batch block at toy sizes
    assert B % b_block == 0
    # NOTE: for large B, pick b_block as a multiple of 8 (sublane granularity)
    # so that (T,b_block,4H) pregates + 2x(T,b_block,H) buffers + weights fit
    # the VMEM budget (64 MiB on v7x; raise vmem_limit_bytes if needed).
    grid = (B // b_block,)

    x_tm = jnp.transpose(emb, (1, 0, 2))                         # (T, B, D)
    lens = post_lengths.astype(jnp.int32).reshape(B, 1)
    inv_max = (1.0 / jnp.max(post_lengths).astype(jnp.float32)).reshape(1, 1)

    weights = (params['wih0T'], params['whh0T'], params['b0'],
               params['wihT'], params['whhT'], params['b'],
               params['w1T'], params['b1'], params['w2T'], params['b2'],
               params['w3T'], params['b3'], params['w4T'], params['b4'])

    def full_spec(arr):
        zeros = (0,) * arr.ndim
        return pl.BlockSpec(arr.shape, lambda i, z=zeros: z)     # grid-invariant

    in_specs = ([pl.BlockSpec((b_block, 1), lambda i: (i, 0)),            # lengths
                 pl.BlockSpec((1, 1), lambda i: (0, 0)),                  # 1/max_len
                 pl.BlockSpec((T, b_block, D), lambda i: (0, i, 0))]      # x (time-major)
                + [full_spec(w) for w in weights])

    return pl.pallas_call(
        _evpi_kernel,
        out_shape=jax.ShapeDtypeStruct((B, D), jnp.float32),
        grid=grid,
        in_specs=in_specs,
        out_specs=pl.BlockSpec((b_block, D), lambda i: (i, 0)),
        scratch_shapes=[pltpu.VMEM((T, b_block, H), jnp.float32),   # layer output seq (ping)
                        pltpu.VMEM((T, b_block, H), jnp.float32),   # layer output seq (pong)
                        pltpu.VMEM((T, b_block, G), jnp.float32)],  # precomputed input gates
        compiler_params=pltpu.CompilerParams(
            dimension_semantics=("parallel",)),
    )(lens, inv_max, x_tm, *weights)


def init_params(key, vocab_size, emb_dim, hidden_dim):
    H, D = hidden_dim, emb_dim
    ks = iter(jax.random.split(key, 64))

    def u(shape, bound):
        return jax.random.uniform(next(ks), shape, jnp.float32, -bound, bound)

    emb_w = jax.random.normal(next(ks), (vocab_size, D), jnp.float32) * 0.5

    kH = 1.0 / np.sqrt(H)
    # PyTorch LSTM params: weight_ih (4H, in), weight_hh (4H, H), bias_ih/bias_hh (4H,)
    wih0 = u((4 * H, D), kH); whh0 = u((4 * H, H), kH)
    bih0 = u((4 * H,), kH);  bhh0 = u((4 * H,), kH)
    wih = jnp.stack([u((4 * H, H), kH) for _ in range(4)])
    whh = jnp.stack([u((4 * H, H), kH) for _ in range(4)])
    bih = jnp.stack([u((4 * H,), kH) for _ in range(4)])
    bhh = jnp.stack([u((4 * H,), kH) for _ in range(4)])
    # nn.Linear: y = x @ W.T + b, W is (out, in)
    w1 = u((H, H), kH); b1 = u((H,), kH)
    w2 = u((H, H), kH); b2 = u((H,), kH)
    w3 = u((D, H), kH); b3 = u((D,), kH)
    kD = 1.0 / np.sqrt(D)
    w4 = u((D, D), kD); b4 = u((D,), kD)

    params = dict(
        wih0T=wih0.T, whh0T=whh0.T, b0=(bih0 + bhh0).reshape(1, 4 * H),
        wihT=jnp.transpose(wih, (0, 2, 1)), whhT=jnp.transpose(whh, (0, 2, 1)),
        b=(bih + bhh).reshape(4, 1, 4 * H),
        w1T=w1.T, b1=b1.reshape(1, H), w2T=w2.T, b2=b2.reshape(1, H),
        w3T=w3.T, b3=b3.reshape(1, D), w4T=w4.T, b4=b4.reshape(1, D),
    )
    return emb_w, params


def reference_forward(emb_w, params, post, lengths):
    """Pure-JAX reference mirroring the PyTorch forward."""
    emb = emb_w[post]                                          # (B, T, D)
    B, T, D = emb.shape
    H = params['w1T'].shape[0]

    def lstm_layer(x_seq, wihT, whhT, b):
        def step(carry, xt):
            h, c = carry
            gates = xt @ wihT + h @ whhT + b
            i = jax.nn.sigmoid(gates[:, :H]); f = jax.nn.sigmoid(gates[:, H:2 * H])
            g = jnp.tanh(gates[:, 2 * H:3 * H]); o = jax.nn.sigmoid(gates[:, 3 * H:])
            c = f * c + i * g
            h = o * jnp.tanh(c)
            return (h, c), h
        init = (jnp.zeros((B, H), jnp.float32), jnp.zeros((B, H), jnp.float32))
        _, ys = lax.scan(step, init, jnp.transpose(x_seq, (1, 0, 2)))
        return jnp.transpose(ys, (1, 0, 2))

    y = lstm_layer(emb, params['wih0T'], params['whh0T'], params['b0'])
    for l in range(4):
        y = lstm_layer(y, params['wihT'][l], params['whhT'][l], params['b'][l])

    mask = (jnp.arange(T)[None, :] < lengths[:, None]).astype(jnp.float32)
    p_mean = (y * mask[:, :, None]).sum(axis=1) / jnp.max(lengths).astype(jnp.float32)

    x = jax.nn.relu(p_mean @ params['w1T'] + params['b1'])
    x = jax.nn.relu(x @ params['w2T'] + params['b2'])
    x = jax.nn.relu(x @ params['w3T'] + params['b3'])
    return x @ params['w4T'] + params['b4']


if __name__ == "__main__":
    B, T, vocab, emb_dim, hidden_dim = 2, 8, 20, 32, 32
    key = jax.random.PRNGKey(0)
    k_param, k_post = jax.random.split(key)

    emb_w, params = init_params(k_param, vocab, emb_dim, hidden_dim)
    post = jax.random.randint(k_post, (B, T), 0, vocab, dtype=jnp.int32)
    post_lengths = jnp.array([8, 5], dtype=jnp.int32)

    out = evpi_forward(emb_w, params, post, post_lengths)
    out = jax.block_until_ready(out)

    ref = reference_forward(emb_w, params, post, post_lengths)
    np.testing.assert_allclose(np.asarray(out), np.asarray(ref), rtol=2e-3, atol=2e-3)
    print("KERNEL_OK")
</pallas_src>

<mosaic_0001>
module attributes {stable_mosaic.version = 11 : i64} {
  func.func @_evpi_kernel(%arg0: i32, %arg1: memref<2x1xi32, #tpu.memory_space<vmem>>, %arg2: memref<1x1xf32, #tpu.memory_space<vmem>>, %arg3: memref<8x2x32xf32, #tpu.memory_space<vmem>>, %arg4: memref<32x128xf32, #tpu.memory_space<vmem>>, %arg5: memref<32x128xf32, #tpu.memory_space<vmem>>, %arg6: memref<1x128xf32, #tpu.memory_space<vmem>>, %arg7: memref<4x32x128xf32, #tpu.memory_space<vmem>>, %arg8: memref<4x32x128xf32, #tpu.memory_space<vmem>>, %arg9: memref<4x1x128xf32, #tpu.memory_space<vmem>>, %arg10: memref<32x32xf32, #tpu.memory_space<vmem>>, %arg11: memref<1x32xf32, #tpu.memory_space<vmem>>, %arg12: memref<32x32xf32, #tpu.memory_space<vmem>>, %arg13: memref<1x32xf32, #tpu.memory_space<vmem>>, %arg14: memref<32x32xf32, #tpu.memory_space<vmem>>, %arg15: memref<1x32xf32, #tpu.memory_space<vmem>>, %arg16: memref<32x32xf32, #tpu.memory_space<vmem>>, %arg17: memref<1x32xf32, #tpu.memory_space<vmem>>, %arg18: memref<2x32xf32, #tpu.memory_space<vmem>>, %arg19: memref<8x2x32xf32, #tpu.memory_space<vmem>>, %arg20: memref<8x2x32xf32, #tpu.memory_space<vmem>>, %arg21: memref<8x2x128xf32, #tpu.memory_space<vmem>>) attributes {dimension_semantics = [#tpu.dimension_semantics<parallel>], iteration_bounds = array<i64: 1>, scalar_prefetch = 0 : i64, scratch_operands = 3 : i64, tpu.core_type = #tpu.core_type<tc>, window_params = [{transform_indices = @transform_0, window_bounds = array<i64: 2, 1>}, {pipeline_mode = #tpu.pipeline_mode<synchronous>, transform_indices = @transform_1, window_bounds = array<i64: 1, 1>}, {transform_indices = @transform_2, window_bounds = array<i64: 8, 2, 32>}, {pipeline_mode = #tpu.pipeline_mode<synchronous>, transform_indices = @transform_3, window_bounds = array<i64: 32, 128>}, {pipeline_mode = #tpu.pipeline_mode<synchronous>, transform_indices = @transform_4, window_bounds = array<i64: 32, 128>}, {pipeline_mode = #tpu.pipeline_mode<synchronous>, transform_indices = @transform_5, window_bounds = array<i64: 1, 128>}, {pipeline_mode = #tpu.pipeline_mode<synchronous>, transform_indices = @transform_6, window_bounds = array<i64: 4, 32, 128>}, {pipeline_mode = #tpu.pipeline_mode<synchronous>, transform_indices = @transform_7, window_bounds = array<i64: 4, 32, 128>}, {pipeline_mode = #tpu.pipeline_mode<synchronous>, transform_indices = @transform_8, window_bounds = array<i64: 4, 1, 128>}, {pipeline_mode = #tpu.pipeline_mode<synchronous>, transform_indices = @transform_9, window_bounds = array<i64: 32, 32>}, {pipeline_mode = #tpu.pipeline_mode<synchronous>, transform_indices = @transform_10, window_bounds = array<i64: 1, 32>}, {pipeline_mode = #tpu.pipeline_mode<synchronous>, transform_indices = @transform_11, window_bounds = array<i64: 32, 32>}, {pipeline_mode = #tpu.pipeline_mode<synchronous>, transform_indices = @transform_12, window_bounds = array<i64: 1, 32>}, {pipeline_mode = #tpu.pipeline_mode<synchronous>, transform_indices = @transform_13, window_bounds = array<i64: 32, 32>}, {pipeline_mode = #tpu.pipeline_mode<synchronous>, transform_indices = @transform_14, window_bounds = array<i64: 1, 32>}, {pipeline_mode = #tpu.pipeline_mode<synchronous>, transform_indices = @transform_15, window_bounds = array<i64: 32, 32>}, {pipeline_mode = #tpu.pipeline_mode<synchronous>, transform_indices = @transform_16, window_bounds = array<i64: 1, 32>}, {transform_indices = @transform_17, window_bounds = array<i64: 2, 32>}]} {
    %c0 = arith.constant 0 : index
    %c0_0 = arith.constant 0 : index
    %0 = vector.load %arg1[%c0, %c0_0] : memref<2x1xi32, #tpu.memory_space<vmem>>, vector<2x1xi32>
    %c0_1 = arith.constant 0 : index
    %c0_2 = arith.constant 0 : index
    %1 = vector.load %arg4[%c0_1, %c0_2] : memref<32x128xf32, #tpu.memory_space<vmem>>, vector<32x128xf32>
    %c0_3 = arith.constant 0 : index
    %c0_4 = arith.constant 0 : index
    %2 = vector.load %arg5[%c0_3, %c0_4] : memref<32x128xf32, #tpu.memory_space<vmem>>, vector<32x128xf32>
    %c0_5 = arith.constant 0 : index
    %c0_6 = arith.constant 0 : index
    %3 = vector.load %arg6[%c0_5, %c0_6] : memref<1x128xf32, #tpu.memory_space<vmem>>, vector<1x128xf32>
    %4 = vector.shape_cast %3 : vector<1x128xf32> to vector<1x128xf32>
    %5 = vector.broadcast %4 : vector<1x128xf32> to vector<2x128xf32>
    %c0_7 = arith.constant 0 : index
    %c0_8 = arith.constant 0 : index
    %c0_9 = arith.constant 0 : index
    %6 = vector.load %arg3[%c0_7, %c0_8, %c0_9] : memref<8x2x32xf32, #tpu.memory_space<vmem>>, vector<1x2x32xf32>
    %7 = vector.shape_cast %6 : vector<1x2x32xf32> to vector<2x32xf32>
    %cst = arith.constant dense<0.000000e+00> : vector<2x128xf32>
    %8 = tpu.matmul %7, %1, %cst {dimension_numbers = #tpu.dot_dimension_numbers<[1], [0], [0], [1], [0, 0, 1, 1], [], []>} : vector<2x32xf32>, vector<32x128xf32>, vector<2x128xf32> -> vector<2x128xf32>
    %9 = arith.addf %8, %5 : vector<2x128xf32>
    %c0_10 = arith.constant 0 : index
    %c0_11 = arith.constant 0 : index
    %c0_12 = arith.constant 0 : index
    %10 = vector.load %arg21[%c0_10, %c0_11, %c0_12] : memref<8x2x128xf32, #tpu.memory_space<vmem>>, vector<1x2x128xf32>
    %11 = vector.shape_cast %10 : vector<1x2x128xf32> to vector<2x128xf32>
    %12 = vector.shape_cast %9 : vector<2x128xf32> to vector<1x2x128xf32>
    tpu.vector_store %arg21[%c0_10, %c0_11, %c0_12], %12 {strides = array<i32>} : memref<8x2x128xf32, #tpu.memory_space<vmem>>, vector<1x2x128xf32>,
    %c1 = arith.constant 1 : index
    %c0_13 = arith.constant 0 : index
    %c0_14 = arith.constant 0 : index
    %13 = vector.load %arg3[%c1, %c0_13, %c0_14] : memref<8x2x32xf32, #tpu.memory_space<vmem>>, vector<1x2x32xf32>
    %14 = vector.shape_cast %13 : vector<1x2x32xf32> to vector<2x32xf32>
    %cst_15 = arith.constant dense<0.000000e+00> : vector<2x128xf32>
    %15 = tpu.matmul %14, %1, %cst_15 {dimension_numbers = #tpu.dot_dimension_numbers<[1], [0], [0], [1], [0, 0, 1, 1], [], []>} : vector<2x32xf32>, vector<32x128xf32>, vector<2x128xf32> -> vector<2x128xf32>
    %16 = arith.addf %15, %5 : vector<2x128xf32>
    %c1_16 = arith.constant 1 : index
    %c0_17 = arith.constant 0 : index
    %c0_18 = arith.constant 0 : index
    %17 = vector.load %arg21[%c1_16, %c0_17, %c0_18] : memref<8x2x128xf32, #tpu.memory_space<vmem>>, vector<1x2x128xf32>
    %18 = vector.shape_cast %17 : vector<1x2x128xf32> to vector<2x128xf32>
    %19 = vector.shape_cast %16 : vector<2x128xf32> to vector<1x2x128xf32>
    tpu.vector_store %arg21[%c1_16, %c0_17, %c0_18], %19 {strides = array<i32>} : memref<8x2x128xf32, #tpu.memory_space<vmem>>, vector<1x2x128xf32>,
    %c2 = arith.constant 2 : index
    %c0_19 = arith.constant 0 : index
    %c0_20 = arith.constant 0 : index
    %20 = vector.load %arg3[%c2, %c0_19, %c0_20] : memref<8x2x32xf32, #tpu.memory_space<vmem>>, vector<1x2x32xf32>
    %21 = vector.shape_cast %20 : vector<1x2x32xf32> to vector<2x32xf32>
    %cst_21 = arith.constant dense<0.000000e+00> : vector<2x128xf32>
    %22 = tpu.matmul %21, %1, %cst_21 {dimension_numbers = #tpu.dot_dimension_numbers<[1], [0], [0], [1], [0, 0, 1, 1], [], []>} : vector<2x32xf32>, vector<32x128xf32>, vector<2x128xf32> -> vector<2x128xf32>
    %23 = arith.addf %22, %5 : vector<2x128xf32>
    %c2_22 = arith.constant 2 : index
    %c0_23 = arith.constant 0 : index
    %c0_24 = arith.constant 0 : index
    %24 = vector.load %arg21[%c2_22, %c0_23, %c0_24] : memref<8x2x128xf32, #tpu.memory_space<vmem>>, vector<1x2x128xf32>
    %25 = vector.shape_cast %24 : vector<1x2x128xf32> to vector<2x128xf32>
    %26 = vector.shape_cast %23 : vector<2x128xf32> to vector<1x2x128xf32>
    tpu.vector_store %arg21[%c2_22, %c0_23, %c0_24], %26 {strides = array<i32>} : memref<8x2x128xf32, #tpu.memory_space<vmem>>, vector<1x2x128xf32>,
    %c3 = arith.constant 3 : index
    %c0_25 = arith.constant 0 : index
    %c0_26 = arith.constant 0 : index
    %27 = vector.load %arg3[%c3, %c0_25, %c0_26] : memref<8x2x32xf32, #tpu.memory_space<vmem>>, vector<1x2x32xf32>
    %28 = vector.shape_cast %27 : vector<1x2x32xf32> to vector<2x32xf32>
    %cst_27 = arith.constant dense<0.000000e+00> : vector<2x128xf32>
    %29 = tpu.matmul %28, %1, %cst_27 {dimension_numbers = #tpu.dot_dimension_numbers<[1], [0], [0], [1], [0, 0, 1, 1], [], []>} : vector<2x32xf32>, vector<32x128xf32>, vector<2x128xf32> -> vector<2x128xf32>
    %30 = arith.addf %29, %5 : vector<2x128xf32>
    %c3_28 = arith.constant 3 : index
    %c0_29 = arith.constant 0 : index
    %c0_30 = arith.constant 0 : index
    %31 = vector.load %arg21[%c3_28, %c0_29, %c0_30] : memref<8x2x128xf32, #tpu.memory_space<vmem>>, vector<1x2x128xf32>
    %32 = vector.shape_cast %31 : vector<1x2x128xf32> to vector<2x128xf32>
    %33 = vector.shape_cast %30 : vector<2x128xf32> to vector<1x2x128xf32>
    tpu.vector_store %arg21[%c3_28, %c0_29, %c0_30], %33 {strides = array<i32>} : memref<8x2x128xf32, #tpu.memory_space<vmem>>, vector<1x2x128xf32>,
    %c4 = arith.constant 4 : index
    %c0_31 = arith.constant 0 : index
    %c0_32 = arith.constant 0 : index
    %34 = vector.load %arg3[%c4, %c0_31, %c0_32] : memref<8x2x32xf32, #tpu.memory_space<vmem>>, vector<1x2x32xf32>
    %35 = vector.shape_cast %34 : vector<1x2x32xf32> to vector<2x32xf32>
    %cst_33 = arith.constant dense<0.000000e+00> : vector<2x128xf32>
    %36 = tpu.matmul %35, %1, %cst_33 {dimension_numbers = #tpu.dot_dimension_numbers<[1], [0], [0], [1], [0, 0, 1, 1], [], []>} : vector<2x32xf32>, vector<32x128xf32>, vector<2x128xf32> -> vector<2x128xf32>
    %37 = arith.addf %36, %5 : vector<2x128xf32>
    %c4_34 = arith.constant 4 : index
    %c0_35 = arith.constant 0 : index
    %c0_36 = arith.constant 0 : index
    %38 = vector.load %arg21[%c4_34, %c0_35, %c0_36] : memref<8x2x128xf32, #tpu.memory_space<vmem>>, vector<1x2x128xf32>
    %39 = vector.shape_cast %38 : vector<1x2x128xf32> to vector<2x128xf32>
    %40 = vector.shape_cast %37 : vector<2x128xf32> to vector<1x2x128xf32>
    tpu.vector_store %arg21[%c4_34, %c0_35, %c0_36], %40 {strides = array<i32>} : memref<8x2x128xf32, #tpu.memory_space<vmem>>, vector<1x2x128xf32>,
    %c5 = arith.constant 5 : index
    %c0_37 = arith.constant 0 : index
    %c0_38 = arith.constant 0 : index
    %41 = vector.load %arg3[%c5, %c0_37, %c0_38] : memref<8x2x32xf32, #tpu.memory_space<vmem>>, vector<1x2x32xf32>
    %42 = vector.shape_cast %41 : vector<1x2x32xf32> to vector<2x32xf32>
    %cst_39 = arith.constant dense<0.000000e+00> : vector<2x128xf32>
    %43 = tpu.matmul %42, %1, %cst_39 {dimension_numbers = #tpu.dot_dimension_numbers<[1], [0], [0], [1], [0, 0, 1, 1], [], []>} : vector<2x32xf32>, vector<32x128xf32>, vector<2x128xf32> -> vector<2x128xf32>
    %44 = arith.addf %43, %5 : vector<2x128xf32>
    %c5_40 = arith.constant 5 : index
    %c0_41 = arith.constant 0 : index
    %c0_42 = arith.constant 0 : index
    %45 = vector.load %arg21[%c5_40, %c0_41, %c0_42] : memref<8x2x128xf32, #tpu.memory_space<vmem>>, vector<1x2x128xf32>
    %46 = vector.shape_cast %45 : vector<1x2x128xf32> to vector<2x128xf32>
    %47 = vector.shape_cast %44 : vector<2x128xf32> to vector<1x2x128xf32>
    tpu.vector_store %arg21[%c5_40, %c0_41, %c0_42], %47 {strides = array<i32>} : memref<8x2x128xf32, #tpu.memory_space<vmem>>, vector<1x2x128xf32>,
    %c6 = arith.constant 6 : index
    %c0_43 = arith.constant 0 : index
    %c0_44 = arith.constant 0 : index
    %48 = vector.load %arg3[%c6, %c0_43, %c0_44] : memref<8x2x32xf32, #tpu.memory_space<vmem>>, vector<1x2x32xf32>
    %49 = vector.shape_cast %48 : vector<1x2x32xf32> to vector<2x32xf32>
    %cst_45 = arith.constant dense<0.000000e+00> : vector<2x128xf32>
    %50 = tpu.matmul %49, %1, %cst_45 {dimension_numbers = #tpu.dot_dimension_numbers<[1], [0], [0], [1], [0, 0, 1, 1], [], []>} : vector<2x32xf32>, vector<32x128xf32>, vector<2x128xf32> -> vector<2x128xf32>
    %51 = arith.addf %50, %5 : vector<2x128xf32>
    %c6_46 = arith.constant 6 : index
    %c0_47 = arith.constant 0 : index
    %c0_48 = arith.constant 0 : index
    %52 = vector.load %arg21[%c6_46, %c0_47, %c0_48] : memref<8x2x128xf32, #tpu.memory_space<vmem>>, vector<1x2x128xf32>
    %53 = vector.shape_cast %52 : vector<1x2x128xf32> to vector<2x128xf32>
    %54 = vector.shape_cast %51 : vector<2x128xf32> to vector<1x2x128xf32>
    tpu.vector_store %arg21[%c6_46, %c0_47, %c0_48], %54 {strides = array<i32>} : memref<8x2x128xf32, #tpu.memory_space<vmem>>, vector<1x2x128xf32>,
    %c7 = arith.constant 7 : index
    %c0_49 = arith.constant 0 : index
    %c0_50 = arith.constant 0 : index
    %55 = vector.load %arg3[%c7, %c0_49, %c0_50] : memref<8x2x32xf32, #tpu.memory_space<vmem>>, vector<1x2x32xf32>
    %56 = vector.shape_cast %55 : vector<1x2x32xf32> to vector<2x32xf32>
    %cst_51 = arith.constant dense<0.000000e+00> : vector<2x128xf32>
    %57 = tpu.matmul %56, %1, %cst_51 {dimension_numbers = #tpu.dot_dimension_numbers<[1], [0], [0], [1], [0, 0, 1, 1], [], []>} : vector<2x32xf32>, vector<32x128xf32>, vector<2x128xf32> -> vector<2x128xf32>
    %58 = arith.addf %57, %5 : vector<2x128xf32>
    %c7_52 = arith.constant 7 : index
    %c0_53 = arith.constant 0 : index
    %c0_54 = arith.constant 0 : index
    %59 = vector.load %arg21[%c7_52, %c0_53, %c0_54] : memref<8x2x128xf32, #tpu.memory_space<vmem>>, vector<1x2x128xf32>
    %60 = vector.shape_cast %59 : vector<1x2x128xf32> to vector<2x128xf32>
    %61 = vector.shape_cast %58 : vector<2x128xf32> to vector<1x2x128xf32>
    tpu.vector_store %arg21[%c7_52, %c0_53, %c0_54], %61 {strides = array<i32>} : memref<8x2x128xf32, #tpu.memory_space<vmem>>, vector<1x2x128xf32>,
    %cst_55 = arith.constant 0.000000e+00 : f32
    %62 = vector.broadcast %cst_55 : f32 to vector<2x32xf32>
    %c0_i32 = arith.constant 0 : i32
    %63 = arith.index_cast %c0_i32 : i32 to index
    %c0_56 = arith.constant 0 : index
    %c0_57 = arith.constant 0 : index
    %64 = vector.load %arg21[%63, %c0_56, %c0_57] : memref<8x2x128xf32, #tpu.memory_space<vmem>>, vector<1x2x128xf32>
    %65 = vector.shape_cast %64 : vector<1x2x128xf32> to vector<2x128xf32>
    %cst_58 = arith.constant dense<0.000000e+00> : vector<2x128xf32>
    %66 = tpu.matmul %62, %2, %cst_58 {dimension_numbers = #tpu.dot_dimension_numbers<[1], [0], [0], [1], [0, 0, 1, 1], [], []>} : vector<2x32xf32>, vector<32x128xf32>, vector<2x128xf32> -> vector<2x128xf32>
    %67 = arith.addf %65, %66 : vector<2x128xf32>
    %68 = vector.extract_strided_slice %67 {offsets = [0, 0], sizes = [2, 32], strides = [1, 1]} : vector<2x128xf32> to vector<2x32xf32>
    %69 = arith.negf %68 : vector<2x32xf32>
    %70 = math.exp %69 : vector<2x32xf32>
    %cst_59 = arith.constant 1.000000e+00 : f32
    %71 = vector.broadcast %cst_59 : f32 to vector<2x32xf32>
    %72 = arith.addf %71, %70 : vector<2x32xf32>
    %73 = arith.divf %71, %72 : vector<2x32xf32>
    %74 = vector.extract_strided_slice %67 {offsets = [0, 32], sizes = [2, 32], strides = [1, 1]} : vector<2x128xf32> to vector<2x32xf32>
    %75 = arith.negf %74 : vector<2x32xf32>
    %76 = math.exp %75 : vector<2x32xf32>
    %cst_60 = arith.constant 1.000000e+00 : f32
    %77 = vector.broadcast %cst_60 : f32 to vector<2x32xf32>
    %78 = arith.addf %77, %76 : vector<2x32xf32>
    %79 = arith.divf %77, %78 : vector<2x32xf32>
    %80 = vector.extract_strided_slice %67 {offsets = [0, 64], sizes = [2, 32], strides = [1, 1]} : vector<2x128xf32> to vector<2x32xf32>
    %81 = math.tanh %80 : vector<2x32xf32>
    %82 = vector.extract_strided_slice %67 {offsets = [0, 96], sizes = [2, 32], strides = [1, 1]} : vector<2x128xf32> to vector<2x32xf32>
    %83 = arith.negf %82 : vector<2x32xf32>
    %84 = math.exp %83 : vector<2x32xf32>
    %cst_61 = arith.constant 1.000000e+00 : f32
    %85 = vector.broadcast %cst_61 : f32 to vector<2x32xf32>
    %86 = arith.addf %85, %84 : vector<2x32xf32>
    %87 = arith.divf %85, %86 : vector<2x32xf32>
    %88 = arith.mulf %79, %62 : vector<2x32xf32>
    %89 = arith.mulf %73, %81 : vector<2x32xf32>
    %90 = arith.addf %88, %89 : vector<2x32xf32>
    %91 = math.tanh %90 : vector<2x32xf32>
    %92 = arith.mulf %87, %91 : vector<2x32xf32>
    %93 = arith.index_cast %c0_i32 : i32 to index
    %c0_62 = arith.constant 0 : index
    %c0_63 = arith.constant 0 : index
    %94 = vector.load %arg19[%93, %c0_62, %c0_63] : memref<8x2x32xf32, #tpu.memory_space<vmem>>, vector<1x2x32xf32>
    %95 = vector.shape_cast %94 : vector<1x2x32xf32> to vector<2x32xf32>
    %96 = vector.shape_cast %92 : vector<2x32xf32> to vector<1x2x32xf32>
    tpu.vector_store %arg19[%93, %c0_62, %c0_63], %96 {strides = array<i32>} : memref<8x2x32xf32, #tpu.memory_space<vmem>>, vector<1x2x32xf32>,
    %c1_i32 = arith.constant 1 : i32
    %97 = arith.index_cast %c1_i32 : i32 to index
    %c0_64 = arith.constant 0 : index
    %c0_65 = arith.constant 0 : index
    %98 = vector.load %arg21[%97, %c0_64, %c0_65] : memref<8x2x128xf32, #tpu.memory_space<vmem>>, vector<1x2x128xf32>
    %99 = vector.shape_cast %98 : vector<1x2x128xf32> to vector<2x128xf32>
    %cst_66 = arith.constant dense<0.000000e+00> : vector<2x128xf32>
    %100 = tpu.matmul %92, %2, %cst_66 {dimension_numbers = #tpu.dot_dimension_numbers<[1], [0], [0], [1], [0, 0, 1, 1], [], []>} : vector<2x32xf32>, vector<32x128xf32>, vector<2x128xf32> -> vector<2x128xf32>
    %101 = arith.addf %99, %100 : vector<2x128xf32>
    %102 = vector.extract_strided_slice %101 {offsets = [0, 0], sizes = [2, 32], strides = [1, 1]} : vector<2x128xf32> to vector<2x32xf32>
    %103 = arith.negf %102 : vector<2x32xf32>
    %104 = math.exp %103 : vector<2x32xf32>
    %cst_67 = arith.constant 1.000000e+00 : f32
    %105 = vector.broadcast %cst_67 : f32 to vector<2x32xf32>
    %106 = arith.addf %105, %104 : vector<2x32xf32>
    %107 = arith.divf %105, %106 : vector<2x32xf32>
    %108 = vector.extract_strided_slice %101 {offsets = [0, 32], sizes = [2, 32], strides = [1, 1]} : vector<2x128xf32> to vector<2x32xf32>
    %109 = arith.negf %108 : vector<2x32xf32>
    %110 = math.exp %109 : vector<2x32xf32>
    %cst_68 = arith.constant 1.000000e+00 : f32
    %111 = vector.broadcast %cst_68 : f32 to vector<2x32xf32>
    %112 = arith.addf %111, %110 : vector<2x32xf32>
    %113 = arith.divf %111, %112 : vector<2x32xf32>
    %114 = vector.extract_strided_slice %101 {offsets = [0, 64], sizes = [2, 32], strides = [1, 1]} : vector<2x128xf32> to vector<2x32xf32>
    %115 = math.tanh %114 : vector<2x32xf32>
    %116 = vector.extract_strided_slice %101 {offsets = [0, 96], sizes = [2, 32], strides = [1, 1]} : vector<2x128xf32> to vector<2x32xf32>
    %117 = arith.negf %116 : vector<2x32xf32>
    %118 = math.exp %117 : vector<2x32xf32>
    %cst_69 = arith.constant 1.000000e+00 : f32
    %119 = vector.broadcast %cst_69 : f32 to vector<2x32xf32>
    %120 = arith.addf %119, %118 : vector<2x32xf32>
    %121 = arith.divf %119, %120 : vector<2x32xf32>
    %122 = arith.mulf %113, %90 : vector<2x32xf32>
    %123 = arith.mulf %107, %115 : vector<2x32xf32>
    %124 = arith.addf %122, %123 : vector<2x32xf32>
    %125 = math.tanh %124 : vector<2x32xf32>
    %126 = arith.mulf %121, %125 : vector<2x32xf32>
    %127 = arith.index_cast %c1_i32 : i32 to index
    %c0_70 = arith.constant 0 : index
    %c0_71 = arith.constant 0 : index
    %128 = vector.load %arg19[%127, %c0_70, %c0_71] : memref<8x2x32xf32, #tpu.memory_space<vmem>>, vector<1x2x32xf32>
    %129 = vector.shape_cast %128 : vector<1x2x32xf32> to vector<2x32xf32>
    %130 = vector.shape_cast %126 : vector<2x32xf32> to vector<1x2x32xf32>
    tpu.vector_store %arg19[%127, %c0_70, %c0_71], %130 {strides = array<i32>} : memref<8x2x32xf32, #tpu.memory_space<vmem>>, vector<1x2x32xf32>,
    %c2_i32 = arith.constant 2 : i32
    %131 = arith.index_cast %c2_i32 : i32 to index
    %c0_72 = arith.constant 0 : index
    %c0_73 = arith.constant 0 : index
    %132 = vector.load %arg21[%131, %c0_72, %c0_73] : memref<8x2x128xf32, #tpu.memory_space<vmem>>, vector<1x2x128xf32>
    %133 = vector.shape_cast %132 : vector<1x2x128xf32> to vector<2x128xf32>
    %cst_74 = arith.constant dense<0.000000e+00> : vector<2x128xf32>
    %134 = tpu.matmul %126, %2, %cst_74 {dimension_numbers = #tpu.dot_dimension_numbers<[1], [0], [0], [1], [0, 0, 1, 1], [], []>} : vector<2x32xf32>, vector<32x128xf32>, vector<2x128xf32> -> vector<2x128xf32>
    %135 = arith.addf %133, %134 : vector<2x128xf32>
    %136 = vector.extract_strided_slice %135 {offsets = [0, 0], sizes = [2, 32], strides = [1, 1]} : vector<2x128xf32> to vector<2x32xf32>
    %137 = arith.negf %136 : vector<2x32xf32>
    %138 = math.exp %137 : vector<2x32xf32>
    %cst_75 = arith.constant 1.000000e+00 : f32
    %139 = vector.broadcast %cst_75 : f32 to vector<2x32xf32>
    %140 = arith.addf %139, %138 : vector<2x32xf32>
    %141 = arith.divf %139, %140 : vector<2x32xf32>
    %142 = vector.extract_strided_slice %135 {offsets = [0, 32], sizes = [2, 32], strides = [1, 1]} : vector<2x128xf32> to vector<2x32xf32>
    %143 = arith.negf %142 : vector<2x32xf32>
    %144 = math.exp %143 : vector<2x32xf32>
    %cst_76 = arith.constant 1.000000e+00 : f32
    %145 = vector.broadcast %cst_76 : f32 to vector<2x32xf32>
    %146 = arith.addf %145, %144 : vector<2x32xf32>
    %147 = arith.divf %145, %146 : vector<2x32xf32>
    %148 = vector.extract_strided_slice %135 {offsets = [0, 64], sizes = [2, 32], strides = [1, 1]} : vector<2x128xf32> to vector<2x32xf32>
    %149 = math.tanh %148 : vector<2x32xf32>
    %150 = vector.extract_strided_slice %135 {offsets = [0, 96], sizes = [2, 32], strides = [1, 1]} : vector<2x128xf32> to vector<2x32xf32>
    %151 = arith.negf %150 : vector<2x32xf32>
    %152 = math.exp %151 : vector<2x32xf32>
    %cst_77 = arith.constant 1.000000e+00 : f32
    %153 = vector.broadcast %cst_77 : f32 to vector<2x32xf32>
    %154 = arith.addf %153, %152 : vector<2x32xf32>
    %155 = arith.divf %153, %154 : vector<2x32xf32>
    %156 = arith.mulf %147, %124 : vector<2x32xf32>
    %157 = arith.mulf %141, %149 : vector<2x32xf32>
    %158 = arith.addf %156, %157 : vector<2x32xf32>
    %159 = math.tanh %158 : vector<2x32xf32>
    %160 = arith.mulf %155, %159 : vector<2x32xf32>
    %161 = arith.index_cast %c2_i32 : i32 to index
    %c0_78 = arith.constant 0 : index
    %c0_79 = arith.constant 0 : index
    %162 = vector.load %arg19[%161, %c0_78, %c0_79] : memref<8x2x32xf32, #tpu.memory_space<vmem>>, vector<1x2x32xf32>
    %163 = vector.shape_cast %162 : vector<1x2x32xf32> to vector<2x32xf32>
    %164 = vector.shape_cast %160 : vector<2x32xf32> to vector<1x2x32xf32>
    tpu.vector_store %arg19[%161, %c0_78, %c0_79], %164 {strides = array<i32>} : memref<8x2x32xf32, #tpu.memory_space<vmem>>, vector<1x2x32xf32>,
    %c3_i32 = arith.constant 3 : i32
    %165 = arith.index_cast %c3_i32 : i32 to index
    %c0_80 = arith.constant 0 : index
    %c0_81 = arith.constant 0 : index
    %166 = vector.load %arg21[%165, %c0_80, %c0_81] : memref<8x2x128xf32, #tpu.memory_space<vmem>>, vector<1x2x128xf32>
    %167 = vector.shape_cast %166 : vector<1x2x128xf32> to vector<2x128xf32>
    %cst_82 = arith.constant dense<0.000000e+00> : vector<2x128xf32>
    %168 = tpu.matmul %160, %2, %cst_82 {dimension_numbers = #tpu.dot_dimension_numbers<[1], [0], [0], [1], [0, 0, 1, 1], [], []>} : vector<2x32xf32>, vector<32x128xf32>, vector<2x128xf32> -> vector<2x128xf32>
    %169 = arith.addf %167, %168 : vector<2x128xf32>
    %170 = vector.extract_strided_slice %169 {offsets = [0, 0], sizes = [2, 32], strides = [1, 1]} : vector<2x128xf32> to vector<2x32xf32>
    %171 = arith.negf %170 : vector<2x32xf32>
    %172 = math.exp %171 : vector<2x32xf32>
    %cst_83 = arith.constant 1.000000e+00 : f32
    %173 = vector.broadcast %cst_83 : f32 to vector<2x32xf32>
    %174 = arith.addf %173, %172 : vector<2x32xf32>
    %175 = arith.divf %173, %174 : vector<2x32xf32>
    %176 = vector.extract_strided_slice %169 {offsets = [0, 32], sizes = [2, 32], strides = [1, 1]} : vector<2x128xf32> to vector<2x32xf32>
    %177 = arith.negf %176 : vector<2x32xf32>
    %178 = math.exp %177 : vector<2x32xf32>
    %cst_84 = arith.constant 1.000000e+00 : f32
    %179 = vector.broadcast %cst_84 : f32 to vector<2x32xf32>
    %180 = arith.addf %179, %178 : vector<2x32xf32>
    %181 = arith.divf %179, %180 : vector<2x32xf32>
    %182 = vector.extract_strided_slice %169 {offsets = [0, 64], sizes = [2, 32], strides = [1, 1]} : vector<2x128xf32> to vector<2x32xf32>
    %183 = math.tanh %182 : vector<2x32xf32>
    %184 = vector.extract_strided_slice %169 {offsets = [0, 96], sizes = [2, 32], strides = [1, 1]} : vector<2x128xf32> to vector<2x32xf32>
    %185 = arith.negf %184 : vector<2x32xf32>
    %186 = math.exp %185 : vector<2x32xf32>
    %cst_85 = arith.constant 1.000000e+00 : f32
    %187 = vector.broadcast %cst_85 : f32 to vector<2x32xf32>
    %188 = arith.addf %187, %186 : vector<2x32xf32>
    %189 = arith.divf %187, %188 : vector<2x32xf32>
    %190 = arith.mulf %181, %158 : vector<2x32xf32>
    %191 = arith.mulf %175, %183 : vector<2x32xf32>
    %192 = arith.addf %190, %191 : vector<2x32xf32>
    %193 = math.tanh %192 : vector<2x32xf32>
    %194 = arith.mulf %189, %193 : vector<2x32xf32>
    %195 = arith.index_cast %c3_i32 : i32 to index
    %c0_86 = arith.constant 0 : index
    %c0_87 = arith.constant 0 : index
    %196 = vector.load %arg19[%195, %c0_86, %c0_87] : memref<8x2x32xf32, #tpu.memory_space<vmem>>, vector<1x2x32xf32>
    %197 = vector.shape_cast %196 : vector<1x2x32xf32> to vector<2x32xf32>
    %198 = vector.shape_cast %194 : vector<2x32xf32> to vector<1x2x32xf32>
    tpu.vector_store %arg19[%195, %c0_86, %c0_87], %198 {strides = array<i32>} : memref<8x2x32xf32, #tpu.memory_space<vmem>>, vector<1x2x32xf32>,
    %c4_i32 = arith.constant 4 : i32
    %199 = arith.index_cast %c4_i32 : i32 to index
    %c0_88 = arith.constant 0 : index
    %c0_89 = arith.constant 0 : index
    %200 = vector.load %arg21[%199, %c0_88, %c0_89] : memref<8x2x128xf32, #tpu.memory_space<vmem>>, vector<1x2x128xf32>
    %201 = vector.shape_cast %200 : vector<1x2x128xf32> to vector<2x128xf32>
    %cst_90 = arith.constant dense<0.000000e+00> : vector<2x128xf32>
    %202 = tpu.matmul %194, %2, %cst_90 {dimension_numbers = #tpu.dot_dimension_numbers<[1], [0], [0], [1], [0, 0, 1, 1], [], []>} : vector<2x32xf32>, vector<32x128xf32>, vector<2x128xf32> -> vector<2x128xf32>
    %203 = arith.addf %201, %202 : vector<2x128xf32>
    %204 = vector.extract_strided_slice %203 {offsets = [0, 0], sizes = [2, 32], strides = [1, 1]} : vector<2x128xf32> to vector<2x32xf32>
    %205 = arith.negf %204 : vector<2x32xf32>
    %206 = math.exp %205 : vector<2x32xf32>
    %cst_91 = arith.constant 1.000000e+00 : f32
    %207 = vector.broadcast %cst_91 : f32 to vector<2x32xf32>
    %208 = arith.addf %207, %206 : vector<2x32xf32>
    %209 = arith.divf %207, %208 : vector<2x32xf32>
    %210 = vector.extract_strided_slice %203 {offsets = [0, 32], sizes = [2, 32], strides = [1, 1]} : vector<2x128xf32> to vector<2x32xf32>
    %211 = arith.negf %210 : vector<2x32xf32>
    %212 = math.exp %211 : vector<2x32xf32>
    %cst_92 = arith.constant 1.000000e+00 : f32
    %213 = vector.broadcast %cst_92 : f32 to vector<2x32xf32>
    %214 = arith.addf %213, %212 : vector<2x32xf32>
    %215 = arith.divf %213, %214 : vector<2x32xf32>
    %216 = vector.extract_strided_slice %203 {offsets = [0, 64], sizes = [2, 32], strides = [1, 1]} : vector<2x128xf32> to vector<2x32xf32>
    %217 = math.tanh %216 : vector<2x32xf32>
    %218 = vector.extract_strided_slice %203 {offsets = [0, 96], sizes = [2, 32], strides = [1, 1]} : vector<2x128xf32> to vector<2x32xf32>
    %219 = arith.negf %218 : vector<2x32xf32>
    %220 = math.exp %219 : vector<2x32xf32>
    %cst_93 = arith.constant 1.000000e+00 : f32
    %221 = vector.broadcast %cst_93 : f32 to vector<2x32xf32>
    %222 = arith.addf %221, %220 : vector<2x32xf32>
    %223 = arith.divf %221, %222 : vector<2x32xf32>
    %224 = arith.mulf %215, %192 : vector<2x32xf32>
    %225 = arith.mulf %209, %217 : vector<2x32xf32>
    %226 = arith.addf %224, %225 : vector<2x32xf32>
    %227 = math.tanh %226 : vector<2x32xf32>
    %228 = arith.mulf %223, %227 : vector<2x32xf32>
    %229 = arith.index_cast %c4_i32 : i32 to index
    %c0_94 = arith.constant 0 : index
    %c0_95 = arith.constant 0 : index
    %230 = vector.load %arg19[%229, %c0_94, %c0_95] : memref<8x2x32xf32, #tpu.memory_space<vmem>>, vector<1x2x32xf32>
    %231 = vector.shape_cast %230 : vector<1x2x32xf32> to vector<2x32xf32>
    %232 = vector.shape_cast %228 : vector<2x32xf32> to vector<1x2x32xf32>
    tpu.vector_store %arg19[%229, %c0_94, %c0_95], %232 {strides = array<i32>} : memref<8x2x32xf32, #tpu.memory_space<vmem>>, vector<1x2x32xf32>,
    %c5_i32 = arith.constant 5 : i32
    %233 = arith.index_cast %c5_i32 : i32 to index
    %c0_96 = arith.constant 0 : index
    %c0_97 = arith.constant 0 : index
    %234 = vector.load %arg21[%233, %c0_96, %c0_97] : memref<8x2x128xf32, #tpu.memory_space<vmem>>, vector<1x2x128xf32>
    %235 = vector.shape_cast %234 : vector<1x2x128xf32> to vector<2x128xf32>
    %cst_98 = arith.constant dense<0.000000e+00> : vector<2x128xf32>
    %236 = tpu.matmul %228, %2, %cst_98 {dimension_numbers = #tpu.dot_dimension_numbers<[1], [0], [0], [1], [0, 0, 1, 1], [], []>} : vector<2x32xf32>, vector<32x128xf32>, vector<2x128xf32> -> vector<2x128xf32>
    %237 = arith.addf %235, %236 : vector<2x128xf32>
    %238 = vector.extract_strided_slice %237 {offsets = [0, 0], sizes = [2, 32], strides = [1, 1]} : vector<2x128xf32> to vector<2x32xf32>
    %239 = arith.negf %238 : vector<2x32xf32>
    %240 = math.exp %239 : vector<2x32xf32>
    %cst_99 = arith.constant 1.000000e+00 : f32
    %241 = vector.broadcast %cst_99 : f32 to vector<2x32xf32>
    %242 = arith.addf %241, %240 : vector<2x32xf32>
    %243 = arith.divf %241, %242 : vector<2x32xf32>
    %244 = vector.extract_strided_slice %237 {offsets = [0, 32], sizes = [2, 32], strides = [1, 1]} : vector<2x128xf32> to vector<2x32xf32>
    %245 = arith.negf %244 : vector<2x32xf32>
    %246 = math.exp %245 : vector<2x32xf32>
    %cst_100 = arith.constant 1.000000e+00 : f32
    %247 = vector.broadcast %cst_100 : f32 to vector<2x32xf32>
    %248 = arith.addf %247, %246 : vector<2x32xf32>
    %249 = arith.divf %247, %248 : vector<2x32xf32>
    %250 = vector.extract_strided_slice %237 {offsets = [0, 64], sizes = [2, 32], strides = [1, 1]} : vector<2x128xf32> to vector<2x32xf32>
    %251 = math.tanh %250 : vector<2x32xf32>
    %252 = vector.extract_strided_slice %237 {offsets = [0, 96], sizes = [2, 32], strides = [1, 1]} : vector<2x128xf32> to vector<2x32xf32>
    %253 = arith.negf %252 : vector<2x32xf32>
    %254 = math.exp %253 : vector<2x32xf32>
    %cst_101 = arith.constant 1.000000e+00 : f32
    %255 = vector.broadcast %cst_101 : f32 to vector<2x32xf32>
    %256 = arith.addf %255, %254 : vector<2x32xf32>
    %257 = arith.divf %255, %256 : vector<2x32xf32>
    %258 = arith.mulf %249, %226 : vector<2x32xf32>
    %259 = arith.mulf %243, %251 : vector<2x32xf32>
    %260 = arith.addf %258, %259 : vector<2x32xf32>
    %261 = math.tanh %260 : vector<2x32xf32>
    %262 = arith.mulf %257, %261 : vector<2x32xf32>
    %263 = arith.index_cast %c5_i32 : i32 to index
    %c0_102 = arith.constant 0 : index
    %c0_103 = arith.constant 0 : index
    %264 = vector.load %arg19[%263, %c0_102, %c0_103] : memref<8x2x32xf32, #tpu.memory_space<vmem>>, vector<1x2x32xf32>
    %265 = vector.shape_cast %264 : vector<1x2x32xf32> to vector<2x32xf32>
    %266 = vector.shape_cast %262 : vector<2x32xf32> to vector<1x2x32xf32>
    tpu.vector_store %arg19[%263, %c0_102, %c0_103], %266 {strides = array<i32>} : memref<8x2x32xf32, #tpu.memory_space<vmem>>, vector<1x2x32xf32>,
    %c6_i32 = arith.constant 6 : i32
    %267 = arith.index_cast %c6_i32 : i32 to index
    %c0_104 = arith.constant 0 : index
    %c0_105 = arith.constant 0 : index
    %268 = vector.load %arg21[%267, %c0_104, %c0_105] : memref<8x2x128xf32, #tpu.memory_space<vmem>>, vector<1x2x128xf32>
    %269 = vector.shape_cast %268 : vector<1x2x128xf32> to vector<2x128xf32>
    %cst_106 = arith.constant dense<0.000000e+00> : vector<2x128xf32>
    %270 = tpu.matmul %262, %2, %cst_106 {dimension_numbers = #tpu.dot_dimension_numbers<[1], [0], [0], [1], [0, 0, 1, 1], [], []>} : vector<2x32xf32>, vector<32x128xf32>, vector<2x128xf32> -> vector<2x128xf32>
    %271 = arith.addf %269, %270 : vector<2x128xf32>
    %272 = vector.extract_strided_slice %271 {offsets = [0, 0], sizes = [2, 32], strides = [1, 1]} : vector<2x128xf32> to vector<2x32xf32>
    %273 = arith.negf %272 : vector<2x32xf32>
    %274 = math.exp %273 : vector<2x32xf32>
    %cst_107 = arith.constant 1.000000e+00 : f32
    %275 = vector.broadcast %cst_107 : f32 to vector<2x32xf32>
    %276 = arith.addf %275, %274 : vector<2x32xf32>
    %277 = arith.divf %275, %276 : vector<2x32xf32>
    %278 = vector.extract_strided_slice %271 {offsets = [0, 32], sizes = [2, 32], strides = [1, 1]} : vector<2x128xf32> to vector<2x32xf32>
    %279 = arith.negf %278 : vector<2x32xf32>
    %280 = math.exp %279 : vector<2x32xf32>
    %cst_108 = arith.constant 1.000000e+00 : f32
    %281 = vector.broadcast %cst_108 : f32 to vector<2x32xf32>
    %282 = arith.addf %281, %280 : vector<2x32xf32>
    %283 = arith.divf %281, %282 : vector<2x32xf32>
    %284 = vector.extract_strided_slice %271 {offsets = [0, 64], sizes = [2, 32], strides = [1, 1]} : vector<2x128xf32> to vector<2x32xf32>
    %285 = math.tanh %284 : vector<2x32xf32>
    %286 = vector.extract_strided_slice %271 {offsets = [0, 96], sizes = [2, 32], strides = [1, 1]} : vector<2x128xf32> to vector<2x32xf32>
    %287 = arith.negf %286 : vector<2x32xf32>
    %288 = math.exp %287 : vector<2x32xf32>
    %cst_109 = arith.constant 1.000000e+00 : f32
    %289 = vector.broadcast %cst_109 : f32 to vector<2x32xf32>
    %290 = arith.addf %289, %288 : vector<2x32xf32>
    %291 = arith.divf %289, %290 : vector<2x32xf32>
    %292 = arith.mulf %283, %260 : vector<2x32xf32>
    %293 = arith.mulf %277, %285 : vector<2x32xf32>
    %294 = arith.addf %292, %293 : vector<2x32xf32>
    %295 = math.tanh %294 : vector<2x32xf32>
    %296 = arith.mulf %291, %295 : vector<2x32xf32>
    %297 = arith.index_cast %c6_i32 : i32 to index
    %c0_110 = arith.constant 0 : index
    %c0_111 = arith.constant 0 : index
    %298 = vector.load %arg19[%297, %c0_110, %c0_111] : memref<8x2x32xf32, #tpu.memory_space<vmem>>, vector<1x2x32xf32>
    %299 = vector.shape_cast %298 : vector<1x2x32xf32> to vector<2x32xf32>
    %300 = vector.shape_cast %296 : vector<2x32xf32> to vector<1x2x32xf32>
    tpu.vector_store %arg19[%297, %c0_110, %c0_111], %300 {strides = array<i32>} : memref<8x2x32xf32, #tpu.memory_space<vmem>>, vector<1x2x32xf32>,
    %c7_i32 = arith.constant 7 : i32
    %301 = arith.index_cast %c7_i32 : i32 to index
    %c0_112 = arith.constant 0 : index
    %c0_113 = arith.constant 0 : index
    %302 = vector.load %arg21[%301, %c0_112, %c0_113] : memref<8x2x128xf32, #tpu.memory_space<vmem>>, vector<1x2x128xf32>
    %303 = vector.shape_cast %302 : vector<1x2x128xf32> to vector<2x128xf32>
    %cst_114 = arith.constant dense<0.000000e+00> : vector<2x128xf32>
    %304 = tpu.matmul %296, %2, %cst_114 {dimension_numbers = #tpu.dot_dimension_numbers<[1], [0], [0], [1], [0, 0, 1, 1], [], []>} : vector<2x32xf32>, vector<32x128xf32>, vector<2x128xf32> -> vector<2x128xf32>
    %305 = arith.addf %303, %304 : vector<2x128xf32>
    %306 = vector.extract_strided_slice %305 {offsets = [0, 0], sizes = [2, 32], strides = [1, 1]} : vector<2x128xf32> to vector<2x32xf32>
    %307 = arith.negf %306 : vector<2x32xf32>
    %308 = math.exp %307 : vector<2x32xf32>
    %cst_115 = arith.constant 1.000000e+00 : f32
    %309 = vector.broadcast %cst_115 : f32 to vector<2x32xf32>
    %310 = arith.addf %309, %308 : vector<2x32xf32>
    %311 = arith.divf %309, %310 : vector<2x32xf32>
    %312 = vector.extract_strided_slice %305 {offsets = [0, 32], sizes = [2, 32], strides = [1, 1]} : vector<2x128xf32> to vector<2x32xf32>
    %313 = arith.negf %312 : vector<2x32xf32>
    %314 = math.exp %313 : vector<2x32xf32>
    %cst_116 = arith.constant 1.000000e+00 : f32
    %315 = vector.broadcast %cst_116 : f32 to vector<2x32xf32>
    %316 = arith.addf %315, %314 : vector<2x32xf32>
    %317 = arith.divf %315, %316 : vector<2x32xf32>
    %318 = vector.extract_strided_slice %305 {offsets = [0, 64], sizes = [2, 32], strides = [1, 1]} : vector<2x128xf32> to vector<2x32xf32>
    %319 = math.tanh %318 : vector<2x32xf32>
    %320 = vector.extract_strided_slice %305 {offsets = [0, 96], sizes = [2, 32], strides = [1, 1]} : vector<2x128xf32> to vector<2x32xf32>
    %321 = arith.negf %320 : vector<2x32xf32>
    %322 = math.exp %321 : vector<2x32xf32>
    %cst_117 = arith.constant 1.000000e+00 : f32
    %323 = vector.broadcast %cst_117 : f32 to vector<2x32xf32>
    %324 = arith.addf %323, %322 : vector<2x32xf32>
    %325 = arith.divf %323, %324 : vector<2x32xf32>
    %326 = arith.mulf %317, %294 : vector<2x32xf32>
    %327 = arith.mulf %311, %319 : vector<2x32xf32>
    %328 = arith.addf %326, %327 : vector<2x32xf32>
    %329 = math.tanh %328 : vector<2x32xf32>
    %330 = arith.mulf %325, %329 : vector<2x32xf32>
    %331 = arith.index_cast %c7_i32 : i32 to index
    %c0_118 = arith.constant 0 : index
    %c0_119 = arith.constant 0 : index
    %332 = vector.load %arg19[%331, %c0_118, %c0_119] : memref<8x2x32xf32, #tpu.memory_space<vmem>>, vector<1x2x32xf32>
    %333 = vector.shape_cast %332 : vector<1x2x32xf32> to vector<2x32xf32>
    %334 = vector.shape_cast %330 : vector<2x32xf32> to vector<1x2x32xf32>
    tpu.vector_store %arg19[%331, %c0_118, %c0_119], %334 {strides = array<i32>} : memref<8x2x32xf32, #tpu.memory_space<vmem>>, vector<1x2x32xf32>,
    %c8_i32 = arith.constant 8 : i32
    %c0_120 = arith.constant 0 : index
    %c0_121 = arith.constant 0 : index
    %c0_122 = arith.constant 0 : index
    %335 = vector.load %arg7[%c0_120, %c0_121, %c0_122] : memref<4x32x128xf32, #tpu.memory_space<vmem>>, vector<1x32x128xf32>
    %336 = vector.shape_cast %335 : vector<1x32x128xf32> to vector<32x128xf32>
    %c0_123 = arith.constant 0 : index
    %c0_124 = arith.constant 0 : index
    %c0_125 = arith.constant 0 : index
    %337 = vector.load %arg8[%c0_123, %c0_124, %c0_125] : memref<4x32x128xf32, #tpu.memory_space<vmem>>, vector<1x32x128xf32>
    %338 = vector.shape_cast %337 : vector<1x32x128xf32> to vector<32x128xf32>
    %c0_126 = arith.constant 0 : index
    %c0_127 = arith.constant 0 : index
    %c0_128 = arith.constant 0 : index
    %339 = vector.load %arg9[%c0_126, %c0_127, %c0_128] : memref<4x1x128xf32, #tpu.memory_space<vmem>>, vector<1x1x128xf32>
    %340 = vector.shape_cast %339 : vector<1x1x128xf32> to vector<1x128xf32>
    %341 = vector.shape_cast %340 : vector<1x128xf32> to vector<1x128xf32>
    %342 = vector.broadcast %341 : vector<1x128xf32> to vector<2x128xf32>
    %c0_129 = arith.constant 0 : index
    %c0_130 = arith.constant 0 : index
    %c0_131 = arith.constant 0 : index
    %343 = vector.load %arg19[%c0_129, %c0_130, %c0_131] : memref<8x2x32xf32, #tpu.memory_space<vmem>>, vector<1x2x32xf32>
    %344 = vector.shape_cast %343 : vector<1x2x32xf32> to vector<2x32xf32>
    %cst_132 = arith.constant dense<0.000000e+00> : vector<2x128xf32>
    %345 = tpu.matmul %344, %336, %cst_132 {dimension_numbers = #tpu.dot_dimension_numbers<[1], [0], [0], [1], [0, 0, 1, 1], [], []>} : vector<2x32xf32>, vector<32x128xf32>, vector<2x128xf32> -> vector<2x128xf32>
    %346 = arith.addf %345, %342 : vector<2x128xf32>
    %c0_133 = arith.constant 0 : index
    %c0_134 = arith.constant 0 : index
    %c0_135 = arith.constant 0 : index
    %347 = vector.load %arg21[%c0_133, %c0_134, %c0_135] : memref<8x2x128xf32, #tpu.memory_space<vmem>>, vector<1x2x128xf32>
    %348 = vector.shape_cast %347 : vector<1x2x128xf32> to vector<2x128xf32>
    %349 = vector.shape_cast %346 : vector<2x128xf32> to vector<1x2x128xf32>
    tpu.vector_store %arg21[%c0_133, %c0_134, %c0_135], %349 {strides = array<i32>} : memref<8x2x128xf32, #tpu.memory_space<vmem>>, vector<1x2x128xf32>,
    %c1_136 = arith.constant 1 : index
    %c0_137 = arith.constant 0 : index
    %c0_138 = arith.constant 0 : index
    %350 = vector.load %arg19[%c1_136, %c0_137, %c0_138] : memref<8x2x32xf32, #tpu.memory_space<vmem>>, vector<1x2x32xf32>
    %351 = vector.shape_cast %350 : vector<1x2x32xf32> to vector<2x32xf32>
    %cst_139 = arith.constant dense<0.000000e+00> : vector<2x128xf32>
    %352 = tpu.matmul %351, %336, %cst_139 {dimension_numbers = #tpu.dot_dimension_numbers<[1], [0], [0], [1], [0, 0, 1, 1], [], []>} : vector<2x32xf32>, vector<32x128xf32>, vector<2x128xf32> -> vector<2x128xf32>
    %353 = arith.addf %352, %342 : vector<2x128xf32>
    %c1_140 = arith.constant 1 : index
    %c0_141 = arith.constant 0 : index
    %c0_142 = arith.constant 0 : index
    %354 = vector.load %arg21[%c1_140, %c0_141, %c0_142] : memref<8x2x128xf32, #tpu.memory_space<vmem>>, vector<1x2x128xf32>
    %355 = vector.shape_cast %354 : vector<1x2x128xf32> to vector<2x128xf32>
    %356 = vector.shape_cast %353 : vector<2x128xf32> to vector<1x2x128xf32>
    tpu.vector_store %arg21[%c1_140, %c0_141, %c0_142], %356 {strides = array<i32>} : memref<8x2x128xf32, #tpu.memory_space<vmem>>, vector<1x2x128xf32>,
    %c2_143 = arith.constant 2 : index
    %c0_144 = arith.constant 0 : index
    %c0_145 = arith.constant 0 : index
    %357 = vector.load %arg19[%c2_143, %c0_144, %c0_145] : memref<8x2x32xf32, #tpu.memory_space<vmem>>, vector<1x2x32xf32>
    %358 = vector.shape_cast %357 : vector<1x2x32xf32> to vector<2x32xf32>
    %cst_146 = arith.constant dense<0.000000e+00> : vector<2x128xf32>
    %359 = tpu.matmul %358, %336, %cst_146 {dimension_numbers = #tpu.dot_dimension_numbers<[1], [0], [0], [1], [0, 0, 1, 1], [], []>} : vector<2x32xf32>, vector<32x128xf32>, vector<2x128xf32> -> vector<2x128xf32>
    %360 = arith.addf %359, %342 : vector<2x128xf32>
    %c2_147 = arith.constant 2 : index
    %c0_148 = arith.constant 0 : index
    %c0_149 = arith.constant 0 : index
    %361 = vector.load %arg21[%c2_147, %c0_148, %c0_149] : memref<8x2x128xf32, #tpu.memory_space<vmem>>, vector<1x2x128xf32>
    %362 = vector.shape_cast %361 : vector<1x2x128xf32> to vector<2x128xf32>
    %363 = vector.shape_cast %360 : vector<2x128xf32> to vector<1x2x128xf32>
    tpu.vector_store %arg21[%c2_147, %c0_148, %c0_149], %363 {strides = array<i32>} : memref<8x2x128xf32, #tpu.memory_space<vmem>>, vector<1x2x128xf32>,
    %c3_150 = arith.constant 3 : index
    %c0_151 = arith.constant 0 : index
    %c0_152 = arith.constant 0 : index
    %364 = vector.load %arg19[%c3_150, %c0_151, %c0_152] : memref<8x2x32xf32, #tpu.memory_space<vmem>>, vector<1x2x32xf32>
    %365 = vector.shape_cast %364 : vector<1x2x32xf32> to vector<2x32xf32>
    %cst_153 = arith.constant dense<0.000000e+00> : vector<2x128xf32>
    %366 = tpu.matmul %365, %336, %cst_153 {dimension_numbers = #tpu.dot_dimension_numbers<[1], [0], [0], [1], [0, 0, 1, 1], [], []>} : vector<2x32xf32>, vector<32x128xf32>, vector<2x128xf32> -> vector<2x128xf32>
    %367 = arith.addf %366, %342 : vector<2x128xf32>
    %c3_154 = arith.constant 3 : index
    %c0_155 = arith.constant 0 : index
    %c0_156 = arith.constant 0 : index
    %368 = vector.load %arg21[%c3_154, %c0_155, %c0_156] : memref<8x2x128xf32, #tpu.memory_space<vmem>>, vector<1x2x128xf32>
    %369 = vector.shape_cast %368 : vector<1x2x128xf32> to vector<2x128xf32>
    %370 = vector.shape_cast %367 : vector<2x128xf32> to vector<1x2x128xf32>
    tpu.vector_store %arg21[%c3_154, %c0_155, %c0_156], %370 {strides = array<i32>} : memref<8x2x128xf32, #tpu.memory_space<vmem>>, vector<1x2x128xf32>,
    %c4_157 = arith.constant 4 : index
    %c0_158 = arith.constant 0 : index
    %c0_159 = arith.constant 0 : index
    %371 = vector.load %arg19[%c4_157, %c0_158, %c0_159] : memref<8x2x32xf32, #tpu.memory_space<vmem>>, vector<1x2x32xf32>
    %372 = vector.shape_cast %371 : vector<1x2x32xf32> to vector<2x32xf32>
    %cst_160 = arith.constant dense<0.000000e+00> : vector<2x128xf32>
    %373 = tpu.matmul %372, %336, %cst_160 {dimension_numbers = #tpu.dot_dimension_numbers<[1], [0], [0], [1], [0, 0, 1, 1], [], []>} : vector<2x32xf32>, vector<32x128xf32>, vector<2x128xf32> -> vector<2x128xf32>
    %374 = arith.addf %373, %342 : vector<2x128xf32>
    %c4_161 = arith.constant 4 : index
    %c0_162 = arith.constant 0 : index
    %c0_163 = arith.constant 0 : index
    %375 = vector.load %arg21[%c4_161, %c0_162, %c0_163] : memref<8x2x128xf32, #tpu.memory_space<vmem>>, vector<1x2x128xf32>
    %376 = vector.shape_cast %375 : vector<1x2x128xf32> to vector<2x128xf32>
    %377 = vector.shape_cast %374 : vector<2x128xf32> to vector<1x2x128xf32>
    tpu.vector_store %arg21[%c4_161, %c0_162, %c0_163], %377 {strides = array<i32>} : memref<8x2x128xf32, #tpu.memory_space<vmem>>, vector<1x2x128xf32>,
    %c5_164 = arith.constant 5 : index
    %c0_165 = arith.constant 0 : index
    %c0_166 = arith.constant 0 : index
    %378 = vector.load %arg19[%c5_164, %c0_165, %c0_166] : memref<8x2x32xf32, #tpu.memory_space<vmem>>, vector<1x2x32xf32>
    %379 = vector.shape_cast %378 : vector<1x2x32xf32> to vector<2x32xf32>
    %cst_167 = arith.constant dense<0.000000e+00> : vector<2x128xf32>
    %380 = tpu.matmul %379, %336, %cst_167 {dimension_numbers = #tpu.dot_dimension_numbers<[1], [0], [0], [1], [0, 0, 1, 1], [], []>} : vector<2x32xf32>, vector<32x128xf32>, vector<2x128xf32> -> vector<2x128xf32>
    %381 = arith.addf %380, %342 : vector<2x128xf32>
    %c5_168 = arith.constant 5 : index
    %c0_169 = arith.constant 0 : index
    %c0_170 = arith.constant 0 : index
    %382 = vector.load %arg21[%c5_168, %c0_169, %c0_170] : memref<8x2x128xf32, #tpu.memory_space<vmem>>, vector<1x2x128xf32>
    %383 = vector.shape_cast %382 : vector<1x2x128xf32> to vector<2x128xf32>
    %384 = vector.shape_cast %381 : vector<2x128xf32> to vector<1x2x128xf32>
    tpu.vector_store %arg21[%c5_168, %c0_169, %c0_170], %384 {strides = array<i32>} : memref<8x2x128xf32, #tpu.memory_space<vmem>>, vector<1x2x128xf32>,
    %c6_171 = arith.constant 6 : index
    %c0_172 = arith.constant 0 : index
    %c0_173 = arith.constant 0 : index
    %385 = vector.load %arg19[%c6_171, %c0_172, %c0_173] : memref<8x2x32xf32, #tpu.memory_space<vmem>>, vector<1x2x32xf32>
    %386 = vector.shape_cast %385 : vector<1x2x32xf32> to vector<2x32xf32>
    %cst_174 = arith.constant dense<0.000000e+00> : vector<2x128xf32>
    %387 = tpu.matmul %386, %336, %cst_174 {dimension_numbers = #tpu.dot_dimension_numbers<[1], [0], [0], [1], [0, 0, 1, 1], [], []>} : vector<2x32xf32>, vector<32x128xf32>, vector<2x128xf32> -> vector<2x128xf32>
    %388 = arith.addf %387, %342 : vector<2x128xf32>
    %c6_175 = arith.constant 6 : index
    %c0_176 = arith.constant 0 : index
    %c0_177 = arith.constant 0 : index
    %389 = vector.load %arg21[%c6_175, %c0_176, %c0_177] : memref<8x2x128xf32, #tpu.memory_space<vmem>>, vector<1x2x128xf32>
    %390 = vector.shape_cast %389 : vector<1x2x128xf32> to vector<2x128xf32>
    %391 = vector.shape_cast %388 : vector<2x128xf32> to vector<1x2x128xf32>
    tpu.vector_store %arg21[%c6_175, %c0_176, %c0_177], %391 {strides = array<i32>} : memref<8x2x128xf32, #tpu.memory_space<vmem>>, vector<1x2x128xf32>,
    %c7_178 = arith.constant 7 : index
    %c0_179 = arith.constant 0 : index
    %c0_180 = arith.constant 0 : index
    %392 = vector.load %arg19[%c7_178, %c0_179, %c0_180] : memref<8x2x32xf32, #tpu.memory_space<vmem>>, vector<1x2x32xf32>
    %393 = vector.shape_cast %392 : vector<1x2x32xf32> to vector<2x32xf32>
    %cst_181 = arith.constant dense<0.000000e+00> : vector<2x128xf32>
    %394 = tpu.matmul %393, %336, %cst_181 {dimension_numbers = #tpu.dot_dimension_numbers<[1], [0], [0], [1], [0, 0, 1, 1], [], []>} : vector<2x32xf32>, vector<32x128xf32>, vector<2x128xf32> -> vector<2x128xf32>
    %395 = arith.addf %394, %342 : vector<2x128xf32>
    %c7_182 = arith.constant 7 : index
    %c0_183 = arith.constant 0 : index
    %c0_184 = arith.constant 0 : index
    %396 = vector.load %arg21[%c7_182, %c0_183, %c0_184] : memref<8x2x128xf32, #tpu.memory_space<vmem>>, vector<1x2x128xf32>
    %397 = vector.shape_cast %396 : vector<1x2x128xf32> to vector<2x128xf32>
    %398 = vector.shape_cast %395 : vector<2x128xf32> to vector<1x2x128xf32>
    tpu.vector_store %arg21[%c7_182, %c0_183, %c0_184], %398 {strides = array<i32>} : memref<8x2x128xf32, #tpu.memory_space<vmem>>, vector<1x2x128xf32>,
    %cst_185 = arith.constant 0.000000e+00 : f32
    %399 = vector.broadcast %cst_185 : f32 to vector<2x32xf32>
    %c0_i32_186 = arith.constant 0 : i32
    %400 = arith.index_cast %c0_i32_186 : i32 to index
    %c0_187 = arith.constant 0 : index
    %c0_188 = arith.constant 0 : index
    %401 = vector.load %arg21[%400, %c0_187, %c0_188] : memref<8x2x128xf32, #tpu.memory_space<vmem>>, vector<1x2x128xf32>
    %402 = vector.shape_cast %401 : vector<1x2x128xf32> to vector<2x128xf32>
    %cst_189 = arith.constant dense<0.000000e+00> : vector<2x128xf32>
    %403 = tpu.matmul %399, %338, %cst_189 {dimension_numbers = #tpu.dot_dimension_numbers<[1], [0], [0], [1], [0, 0, 1, 1], [], []>} : vector<2x32xf32>, vector<32x128xf32>, vector<2x128xf32> -> vector<2x128xf32>
    %404 = arith.addf %402, %403 : vector<2x128xf32>
    %405 = vector.extract_strided_slice %404 {offsets = [0, 0], sizes = [2, 32], strides = [1, 1]} : vector<2x128xf32> to vector<2x32xf32>
    %406 = arith.negf %405 : vector<2x32xf32>
    %407 = math.exp %406 : vector<2x32xf32>
    %cst_190 = arith.constant 1.000000e+00 : f32
    %408 = vector.broadcast %cst_190 : f32 to vector<2x32xf32>
    %409 = arith.addf %408, %407 : vector<2x32xf32>
    %410 = arith.divf %408, %409 : vector<2x32xf32>
    %411 = vector.extract_strided_slice %404 {offsets = [0, 32], sizes = [2, 32], strides = [1, 1]} : vector<2x128xf32> to vector<2x32xf32>
    %412 = arith.negf %411 : vector<2x32xf32>
    %413 = math.exp %412 : vector<2x32xf32>
    %cst_191 = arith.constant 1.000000e+00 : f32
    %414 = vector.broadcast %cst_191 : f32 to vector<2x32xf32>
    %415 = arith.addf %414, %413 : vector<2x32xf32>
    %416 = arith.divf %414, %415 : vector<2x32xf32>
    %417 = vector.extract_strided_slice %404 {offsets = [0, 64], sizes = [2, 32], strides = [1, 1]} : vector<2x128xf32> to vector<2x32xf32>
    %418 = math.tanh %417 : vector<2x32xf32>
    %419 = vector.extract_strided_slice %404 {offsets = [0, 96], sizes = [2, 32], strides = [1, 1]} : vector<2x128xf32> to vector<2x32xf32>
    %420 = arith.negf %419 : vector<2x32xf32>
    %421 = math.exp %420 : vector<2x32xf32>
    %cst_192 = arith.constant 1.000000e+00 : f32
    %422 = vector.broadcast %cst_192 : f32 to vector<2x32xf32>
    %423 = arith.addf %422, %421 : vector<2x32xf32>
    %424 = arith.divf %422, %423 : vector<2x32xf32>
    %425 = arith.mulf %416, %399 : vector<2x32xf32>
    %426 = arith.mulf %410, %418 : vector<2x32xf32>
    %427 = arith.addf %425, %426 : vector<2x32xf32>
    %428 = math.tanh %427 : vector<2x32xf32>
    %429 = arith.mulf %424, %428 : vector<2x32xf32>
    %430 = arith.index_cast %c0_i32_186 : i32 to index
    %c0_193 = arith.constant 0 : index
    %c0_194 = arith.constant 0 : index
    %431 = vector.load %arg20[%430, %c0_193, %c0_194] : memref<8x2x32xf32, #tpu.memory_space<vmem>>, vector<1x2x32xf32>
    %432 = vector.shape_cast %431 : vector<1x2x32xf32> to vector<2x32xf32>
    %433 = vector.shape_cast %429 : vector<2x32xf32> to vector<1x2x32xf32>
    tpu.vector_store %arg20[%430, %c0_193, %c0_194], %433 {strides = array<i32>} : memref<8x2x32xf32, #tpu.memory_space<vmem>>, vector<1x2x32xf32>,
    %c1_i32_195 = arith.constant 1 : i32
    %434 = arith.index_cast %c1_i32_195 : i32 to index
    %c0_196 = arith.constant 0 : index
    %c0_197 = arith.constant 0 : index
    %435 = vector.load %arg21[%434, %c0_196, %c0_197] : memref<8x2x128xf32, #tpu.memory_space<vmem>>, vector<1x2x128xf32>
    %436 = vector.shape_cast %435 : vector<1x2x128xf32> to vector<2x128xf32>
    %cst_198 = arith.constant dense<0.000000e+00> : vector<2x128xf32>
    %437 = tpu.matmul %429, %338, %cst_198 {dimension_numbers = #tpu.dot_dimension_numbers<[1], [0], [0], [1], [0, 0, 1, 1], [], []>} : vector<2x32xf32>, vector<32x128xf32>, vector<2x128xf32> -> vector<2x128xf32>
    %438 = arith.addf %436, %437 : vector<2x128xf32>
    %439 = vector.extract_strided_slice %438 {offsets = [0, 0], sizes = [2, 32], strides = [1, 1]} : vector<2x128xf32> to vector<2x32xf32>
    %440 = arith.negf %439 : vector<2x32xf32>
    %441 = math.exp %440 : vector<2x32xf32>
    %cst_199 = arith.constant 1.000000e+00 : f32
    %442 = vector.broadcast %cst_199 : f32 to vector<2x32xf32>
    %443 = arith.addf %442, %441 : vector<2x32xf32>
    %444 = arith.divf %442, %443 : vector<2x32xf32>
    %445 = vector.extract_strided_slice %438 {offsets = [0, 32], sizes = [2, 32], strides = [1, 1]} : vector<2x128xf32> to vector<2x32xf32>
    %446 = arith.negf %445 : vector<2x32xf32>
    %447 = math.exp %446 : vector<2x32xf32>
    %cst_200 = arith.constant 1.000000e+00 : f32
    %448 = vector.broadcast %cst_200 : f32 to vector<2x32xf32>
    %449 = arith.addf %448, %447 : vector<2x32xf32>
    %450 = arith.divf %448, %449 : vector<2x32xf32>
    %451 = vector.extract_strided_slice %438 {offsets = [0, 64], sizes = [2, 32], strides = [1, 1]} : vector<2x128xf32> to vector<2x32xf32>
    %452 = math.tanh %451 : vector<2x32xf32>
    %453 = vector.extract_strided_slice %438 {offsets = [0, 96], sizes = [2, 32], strides = [1, 1]} : vector<2x128xf32> to vector<2x32xf32>
    %454 = arith.negf %453 : vector<2x32xf32>
    %455 = math.exp %454 : vector<2x32xf32>
    %cst_201 = arith.constant 1.000000e+00 : f32
    %456 = vector.broadcast %cst_201 : f32 to vector<2x32xf32>
    %457 = arith.addf %456, %455 : vector<2x32xf32>
    %458 = arith.divf %456, %457 : vector<2x32xf32>
    %459 = arith.mulf %450, %427 : vector<2x32xf32>
    %460 = arith.mulf %444, %452 : vector<2x32xf32>
    %461 = arith.addf %459, %460 : vector<2x32xf32>
    %462 = math.tanh %461 : vector<2x32xf32>
    %463 = arith.mulf %458, %462 : vector<2x32xf32>
    %464 = arith.index_cast %c1_i32_195 : i32 to index
    %c0_202 = arith.constant 0 : index
    %c0_203 = arith.constant 0 : index
    %465 = vector.load %arg20[%464, %c0_202, %c0_203] : memref<8x2x32xf32, #tpu.memory_space<vmem>>, vector<1x2x32xf32>
    %466 = vector.shape_cast %465 : vector<1x2x32xf32> to vector<2x32xf32>
    %467 = vector.shape_cast %463 : vector<2x32xf32> to vector<1x2x32xf32>
    tpu.vector_store %arg20[%464, %c0_202, %c0_203], %467 {strides = array<i32>} : memref<8x2x32xf32, #tpu.memory_space<vmem>>, vector<1x2x32xf32>,
    %c2_i32_204 = arith.constant 2 : i32
    %468 = arith.index_cast %c2_i32_204 : i32 to index
    %c0_205 = arith.constant 0 : index
    %c0_206 = arith.constant 0 : index
    %469 = vector.load %arg21[%468, %c0_205, %c0_206] : memref<8x2x128xf32, #tpu.memory_space<vmem>>, vector<1x2x128xf32>
    %470 = vector.shape_cast %469 : vector<1x2x128xf32> to vector<2x128xf32>
    %cst_207 = arith.constant dense<0.000000e+00> : vector<2x128xf32>
    %471 = tpu.matmul %463, %338, %cst_207 {dimension_numbers = #tpu.dot_dimension_numbers<[1], [0], [0], [1], [0, 0, 1, 1], [], []>} : vector<2x32xf32>, vector<32x128xf32>, vector<2x128xf32> -> vector<2x128xf32>
    %472 = arith.addf %470, %471 : vector<2x128xf32>
    %473 = vector.extract_strided_slice %472 {offsets = [0, 0], sizes = [2, 32], strides = [1, 1]} : vector<2x128xf32> to vector<2x32xf32>
    %474 = arith.negf %473 : vector<2x32xf32>
    %475 = math.exp %474 : vector<2x32xf32>
    %cst_208 = arith.constant 1.000000e+00 : f32
    %476 = vector.broadcast %cst_208 : f32 to vector<2x32xf32>
    %477 = arith.addf %476, %475 : vector<2x32xf32>
    %478 = arith.divf %476, %477 : vector<2x32xf32>
    %479 = vector.extract_strided_slice %472 {offsets = [0, 32], sizes = [2, 32], strides = [1, 1]} : vector<2x128xf32> to vector<2x32xf32>
    %480 = arith.negf %479 : vector<2x32xf32>
    %481 = math.exp %480 : vector<2x32xf32>
    %cst_209 = arith.constant 1.000000e+00 : f32
    %482 = vector.broadcast %cst_209 : f32 to vector<2x32xf32>
    %483 = arith.addf %482, %481 : vector<2x32xf32>
    %484 = arith.divf %482, %483 : vector<2x32xf32>
    %485 = vector.extract_strided_slice %472 {offsets = [0, 64], sizes = [2, 32], strides = [1, 1]} : vector<2x128xf32> to vector<2x32xf32>
    %486 = math.tanh %485 : vector<2x32xf32>
    %487 = vector.extract_strided_slice %472 {offsets = [0, 96], sizes = [2, 32], strides = [1, 1]} : vector<2x128xf32> to vector<2x32xf32>
    %488 = arith.negf %487 : vector<2x32xf32>
    %489 = math.exp %488 : vector<2x32xf32>
    %cst_210 = arith.constant 1.000000e+00 : f32
    %490 = vector.broadcast %cst_210 : f32 to vector<2x32xf32>
    %491 = arith.addf %490, %489 : vector<2x32xf32>
    %492 = arith.divf %490, %491 : vector<2x32xf32>
    %493 = arith.mulf %484, %461 : vector<2x32xf32>
    %494 = arith.mulf %478, %486 : vector<2x32xf32>
    %495 = arith.addf %493, %494 : vector<2x32xf32>
    %496 = math.tanh %495 : vector<2x32xf32>
    %497 = arith.mulf %492, %496 : vector<2x32xf32>
    %498 = arith.index_cast %c2_i32_204 : i32 to index
    %c0_211 = arith.constant 0 : index
    %c0_212 = arith.constant 0 : index
    %499 = vector.load %arg20[%498, %c0_211, %c0_212] : memref<8x2x32xf32, #tpu.memory_space<vmem>>, vector<1x2x32xf32>
    %500 = vector.shape_cast %499 : vector<1x2x32xf32> to vector<2x32xf32>
    %501 = vector.shape_cast %497 : vector<2x32xf32> to vector<1x2x32xf32>
    tpu.vector_store %arg20[%498, %c0_211, %c0_212], %501 {strides = array<i32>} : memref<8x2x32xf32, #tpu.memory_space<vmem>>, vector<1x2x32xf32>,
    %c3_i32_213 = arith.constant 3 : i32
    %502 = arith.index_cast %c3_i32_213 : i32 to index
    %c0_214 = arith.constant 0 : index
    %c0_215 = arith.constant 0 : index
    %503 = vector.load %arg21[%502, %c0_214, %c0_215] : memref<8x2x128xf32, #tpu.memory_space<vmem>>, vector<1x2x128xf32>
    %504 = vector.shape_cast %503 : vector<1x2x128xf32> to vector<2x128xf32>
    %cst_216 = arith.constant dense<0.000000e+00> : vector<2x128xf32>
    %505 = tpu.matmul %497, %338, %cst_216 {dimension_numbers = #tpu.dot_dimension_numbers<[1], [0], [0], [1], [0, 0, 1, 1], [], []>} : vector<2x32xf32>, vector<32x128xf32>, vector<2x128xf32> -> vector<2x128xf32>
    %506 = arith.addf %504, %505 : vector<2x128xf32>
    %507 = vector.extract_strided_slice %506 {offsets = [0, 0], sizes = [2, 32], strides = [1, 1]} : vector<2x128xf32> to vector<2x32xf32>
    %508 = arith.negf %507 : vector<2x32xf32>
    %509 = math.exp %508 : vector<2x32xf32>
    %cst_217 = arith.constant 1.000000e+00 : f32
    %510 = vector.broadcast %cst_217 : f32 to vector<2x32xf32>
    %511 = arith.addf %510, %509 : vector<2x32xf32>
    %512 = arith.divf %510, %511 : vector<2x32xf32>
    %513 = vector.extract_strided_slice %506 {offsets = [0, 32], sizes = [2, 32], strides = [1, 1]} : vector<2x128xf32> to vector<2x32xf32>
    %514 = arith.negf %513 : vector<2x32xf32>
    %515 = math.exp %514 : vector<2x32xf32>
    %cst_218 = arith.constant 1.000000e+00 : f32
    %516 = vector.broadcast %cst_218 : f32 to vector<2x32xf32>
    %517 = arith.addf %516, %515 : vector<2x32xf32>
    %518 = arith.divf %516, %517 : vector<2x32xf32>
    %519 = vector.extract_strided_slice %506 {offsets = [0, 64], sizes = [2, 32], strides = [1, 1]} : vector<2x128xf32> to vector<2x32xf32>
    %520 = math.tanh %519 : vector<2x32xf32>
    %521 = vector.extract_strided_slice %506 {offsets = [0, 96], sizes = [2, 32], strides = [1, 1]} : vector<2x128xf32> to vector<2x32xf32>
    %522 = arith.negf %521 : vector<2x32xf32>
    %523 = math.exp %522 : vector<2x32xf32>
    %cst_219 = arith.constant 1.000000e+00 : f32
    %524 = vector.broadcast %cst_219 : f32 to vector<2x32xf32>
    %525 = arith.addf %524, %523 : vector<2x32xf32>
    %526 = arith.divf %524, %525 : vector<2x32xf32>
    %527 = arith.mulf %518, %495 : vector<2x32xf32>
    %528 = arith.mulf %512, %520 : vector<2x32xf32>
    %529 = arith.addf %527, %528 : vector<2x32xf32>
    %530 = math.tanh %529 : vector<2x32xf32>
    %531 = arith.mulf %526, %530 : vector<2x32xf32>
    %532 = arith.index_cast %c3_i32_213 : i32 to index
    %c0_220 = arith.constant 0 : index
    %c0_221 = arith.constant 0 : index
    %533 = vector.load %arg20[%532, %c0_220, %c0_221] : memref<8x2x32xf32, #tpu.memory_space<vmem>>, vector<1x2x32xf32>
    %534 = vector.shape_cast %533 : vector<1x2x32xf32> to vector<2x32xf32>
    %535 = vector.shape_cast %531 : vector<2x32xf32> to vector<1x2x32xf32>
    tpu.vector_store %arg20[%532, %c0_220, %c0_221], %535 {strides = array<i32>} : memref<8x2x32xf32, #tpu.memory_space<vmem>>, vector<1x2x32xf32>,
    %c4_i32_222 = arith.constant 4 : i32
    %536 = arith.index_cast %c4_i32_222 : i32 to index
    %c0_223 = arith.constant 0 : index
    %c0_224 = arith.constant 0 : index
    %537 = vector.load %arg21[%536, %c0_223, %c0_224] : memref<8x2x128xf32, #tpu.memory_space<vmem>>, vector<1x2x128xf32>
    %538 = vector.shape_cast %537 : vector<1x2x128xf32> to vector<2x128xf32>
    %cst_225 = arith.constant dense<0.000000e+00> : vector<2x128xf32>
    %539 = tpu.matmul %531, %338, %cst_225 {dimension_numbers = #tpu.dot_dimension_numbers<[1], [0], [0], [1], [0, 0, 1, 1], [], []>} : vector<2x32xf32>, vector<32x128xf32>, vector<2x128xf32> -> vector<2x128xf32>
    %540 = arith.addf %538, %539 : vector<2x128xf32>
    %541 = vector.extract_strided_slice %540 {offsets = [0, 0], sizes = [2, 32], strides = [1, 1]} : vector<2x128xf32> to vector<2x32xf32>
    %542 = arith.negf %541 : vector<2x32xf32>
    %543 = math.exp %542 : vector<2x32xf32>
    %cst_226 = arith.constant 1.000000e+00 : f32
    %544 = vector.broadcast %cst_226 : f32 to vector<2x32xf32>
    %545 = arith.addf %544, %543 : vector<2x32xf32>
    %546 = arith.divf %544, %545 : vector<2x32xf32>
    %547 = vector.extract_strided_slice %540 {offsets = [0, 32], sizes = [2, 32], strides = [1, 1]} : vector<2x128xf32> to vector<2x32xf32>
    %548 = arith.negf %547 : vector<2x32xf32>
    %549 = math.exp %548 : vector<2x32xf32>
    %cst_227 = arith.constant 1.000000e+00 : f32
    %550 = vector.broadcast %cst_227 : f32 to vector<2x32xf32>
    %551 = arith.addf %550, %549 : vector<2x32xf32>
    %552 = arith.divf %550, %551 : vector<2x32xf32>
    %553 = vector.extract_strided_slice %540 {offsets = [0, 64], sizes = [2, 32], strides = [1, 1]} : vector<2x128xf32> to vector<2x32xf32>
    %554 = math.tanh %553 : vector<2x32xf32>
    %555 = vector.extract_strided_slice %540 {offsets = [0, 96], sizes = [2, 32], strides = [1, 1]} : vector<2x128xf32> to vector<2x32xf32>
    %556 = arith.negf %555 : vector<2x32xf32>
    %557 = math.exp %556 : vector<2x32xf32>
    %cst_228 = arith.constant 1.000000e+00 : f32
    %558 = vector.broadcast %cst_228 : f32 to vector<2x32xf32>
    %559 = arith.addf %558, %557 : vector<2x32xf32>
    %560 = arith.divf %558, %559 : vector<2x32xf32>
    %561 = arith.mulf %552, %529 : vector<2x32xf32>
    %562 = arith.mulf %546, %554 : vector<2x32xf32>
    %563 = arith.addf %561, %562 : vector<2x32xf32>
    %564 = math.tanh %563 : vector<2x32xf32>
    %565 = arith.mulf %560, %564 : vector<2x32xf32>
    %566 = arith.index_cast %c4_i32_222 : i32 to index
    %c0_229 = arith.constant 0 : index
    %c0_230 = arith.constant 0 : index
    %567 = vector.load %arg20[%566, %c0_229, %c0_230] : memref<8x2x32xf32, #tpu.memory_space<vmem>>, vector<1x2x32xf32>
    %568 = vector.shape_cast %567 : vector<1x2x32xf32> to vector<2x32xf32>
    %569 = vector.shape_cast %565 : vector<2x32xf32> to vector<1x2x32xf32>
    tpu.vector_store %arg20[%566, %c0_229, %c0_230], %569 {strides = array<i32>} : memref<8x2x32xf32, #tpu.memory_space<vmem>>, vector<1x2x32xf32>,
    %c5_i32_231 = arith.constant 5 : i32
    %570 = arith.index_cast %c5_i32_231 : i32 to index
    %c0_232 = arith.constant 0 : index
    %c0_233 = arith.constant 0 : index
    %571 = vector.load %arg21[%570, %c0_232, %c0_233] : memref<8x2x128xf32, #tpu.memory_space<vmem>>, vector<1x2x128xf32>
    %572 = vector.shape_cast %571 : vector<1x2x128xf32> to vector<2x128xf32>
    %cst_234 = arith.constant dense<0.000000e+00> : vector<2x128xf32>
    %573 = tpu.matmul %565, %338, %cst_234 {dimension_numbers = #tpu.dot_dimension_numbers<[1], [0], [0], [1], [0, 0, 1, 1], [], []>} : vector<2x32xf32>, vector<32x128xf32>, vector<2x128xf32> -> vector<2x128xf32>
    %574 = arith.addf %572, %573 : vector<2x128xf32>
    %575 = vector.extract_strided_slice %574 {offsets = [0, 0], sizes = [2, 32], strides = [1, 1]} : vector<2x128xf32> to vector<2x32xf32>
    %576 = arith.negf %575 : vector<2x32xf32>
    %577 = math.exp %576 : vector<2x32xf32>
    %cst_235 = arith.constant 1.000000e+00 : f32
    %578 = vector.broadcast %cst_235 : f32 to vector<2x32xf32>
    %579 = arith.addf %578, %577 : vector<2x32xf32>
    %580 = arith.divf %578, %579 : vector<2x32xf32>
    %581 = vector.extract_strided_slice %574 {offsets = [0, 32], sizes = [2, 32], strides = [1, 1]} : vector<2x128xf32> to vector<2x32xf32>
    %582 = arith.negf %581 : vector<2x32xf32>
    %583 = math.exp %582 : vector<2x32xf32>
    %cst_236 = arith.constant 1.000000e+00 : f32
    %584 = vector.broadcast %cst_236 : f32 to vector<2x32xf32>
    %585 = arith.addf %584, %583 : vector<2x32xf32>
    %586 = arith.divf %584, %585 : vector<2x32xf32>
    %587 = vector.extract_strided_slice %574 {offsets = [0, 64], sizes = [2, 32], strides = [1, 1]} : vector<2x128xf32> to vector<2x32xf32>
    %588 = math.tanh %587 : vector<2x32xf32>
    %589 = vector.extract_strided_slice %574 {offsets = [0, 96], sizes = [2, 32], strides = [1, 1]} : vector<2x128xf32> to vector<2x32xf32>
    %590 = arith.negf %589 : vector<2x32xf32>
    %591 = math.exp %590 : vector<2x32xf32>
    %cst_237 = arith.constant 1.000000e+00 : f32
    %592 = vector.broadcast %cst_237 : f32 to vector<2x32xf32>
    %593 = arith.addf %592, %591 : vector<2x32xf32>
    %594 = arith.divf %592, %593 : vector<2x32xf32>
    %595 = arith.mulf %586, %563 : vector<2x32xf32>
    %596 = arith.mulf %580, %588 : vector<2x32xf32>
    %597 = arith.addf %595, %596 : vector<2x32xf32>
    %598 = math.tanh %597 : vector<2x32xf32>
    %599 = arith.mulf %594, %598 : vector<2x32xf32>
    %600 = arith.index_cast %c5_i32_231 : i32 to index
    %c0_238 = arith.constant 0 : index
    %c0_239 = arith.constant 0 : index
    %601 = vector.load %arg20[%600, %c0_238, %c0_239] : memref<8x2x32xf32, #tpu.memory_space<vmem>>, vector<1x2x32xf32>
    %602 = vector.shape_cast %601 : vector<1x2x32xf32> to vector<2x32xf32>
    %603 = vector.shape_cast %599 : vector<2x32xf32> to vector<1x2x32xf32>
    tpu.vector_store %arg20[%600, %c0_238, %c0_239], %603 {strides = array<i32>} : memref<8x2x32xf32, #tpu.memory_space<vmem>>, vector<1x2x32xf32>,
    %c6_i32_240 = arith.constant 6 : i32
    %604 = arith.index_cast %c6_i32_240 : i32 to index
    %c0_241 = arith.constant 0 : index
    %c0_242 = arith.constant 0 : index
    %605 = vector.load %arg21[%604, %c0_241, %c0_242] : memref<8x2x128xf32, #tpu.memory_space<vmem>>, vector<1x2x128xf32>
    %606 = vector.shape_cast %605 : vector<1x2x128xf32> to vector<2x128xf32>
    %cst_243 = arith.constant dense<0.000000e+00> : vector<2x128xf32>
    %607 = tpu.matmul %599, %338, %cst_243 {dimension_numbers = #tpu.dot_dimension_numbers<[1], [0], [0], [1], [0, 0, 1, 1], [], []>} : vector<2x32xf32>, vector<32x128xf32>, vector<2x128xf32> -> vector<2x128xf32>
    %608 = arith.addf %606, %607 : vector<2x128xf32>
    %609 = vector.extract_strided_slice %608 {offsets = [0, 0], sizes = [2, 32], strides = [1, 1]} : vector<2x128xf32> to vector<2x32xf32>
    %610 = arith.negf %609 : vector<2x32xf32>
    %611 = math.exp %610 : vector<2x32xf32>
    %cst_244 = arith.constant 1.000000e+00 : f32
    %612 = vector.broadcast %cst_244 : f32 to vector<2x32xf32>
    %613 = arith.addf %612, %611 : vector<2x32xf32>
    %614 = arith.divf %612, %613 : vector<2x32xf32>
    %615 = vector.extract_strided_slice %608 {offsets = [0, 32], sizes = [2, 32], strides = [1, 1]} : vector<2x128xf32> to vector<2x32xf32>
    %616 = arith.negf %615 : vector<2x32xf32>
    %617 = math.exp %616 : vector<2x32xf32>
    %cst_245 = arith.constant 1.000000e+00 : f32
    %618 = vector.broadcast %cst_245 : f32 to vector<2x32xf32>
    %619 = arith.addf %618, %617 : vector<2x32xf32>
    %620 = arith.divf %618, %619 : vector<2x32xf32>
    %621 = vector.extract_strided_slice %608 {offsets = [0, 64], sizes = [2, 32], strides = [1, 1]} : vector<2x128xf32> to vector<2x32xf32>
    %622 = math.tanh %621 : vector<2x32xf32>
    %623 = vector.extract_strided_slice %608 {offsets = [0, 96], sizes = [2, 32], strides = [1, 1]} : vector<2x128xf32> to vector<2x32xf32>
    %624 = arith.negf %623 : vector<2x32xf32>
    %625 = math.exp %624 : vector<2x32xf32>
    %cst_246 = arith.constant 1.000000e+00 : f32
    %626 = vector.broadcast %cst_246 : f32 to vector<2x32xf32>
    %627 = arith.addf %626, %625 : vector<2x32xf32>
    %628 = arith.divf %626, %627 : vector<2x32xf32>
    %629 = arith.mulf %620, %597 : vector<2x32xf32>
    %630 = arith.mulf %614, %622 : vector<2x32xf32>
    %631 = arith.addf %629, %630 : vector<2x32xf32>
    %632 = math.tanh %631 : vector<2x32xf32>
    %633 = arith.mulf %628, %632 : vector<2x32xf32>
    %634 = arith.index_cast %c6_i32_240 : i32 to index
    %c0_247 = arith.constant 0 : index
    %c0_248 = arith.constant 0 : index
    %635 = vector.load %arg20[%634, %c0_247, %c0_248] : memref<8x2x32xf32, #tpu.memory_space<vmem>>, vector<1x2x32xf32>
    %636 = vector.shape_cast %635 : vector<1x2x32xf32> to vector<2x32xf32>
    %637 = vector.shape_cast %633 : vector<2x32xf32> to vector<1x2x32xf32>
    tpu.vector_store %arg20[%634, %c0_247, %c0_248], %637 {strides = array<i32>} : memref<8x2x32xf32, #tpu.memory_space<vmem>>, vector<1x2x32xf32>,
    %c7_i32_249 = arith.constant 7 : i32
    %638 = arith.index_cast %c7_i32_249 : i32 to index
    %c0_250 = arith.constant 0 : index
    %c0_251 = arith.constant 0 : index
    %639 = vector.load %arg21[%638, %c0_250, %c0_251] : memref<8x2x128xf32, #tpu.memory_space<vmem>>, vector<1x2x128xf32>
    %640 = vector.shape_cast %639 : vector<1x2x128xf32> to vector<2x128xf32>
    %cst_252 = arith.constant dense<0.000000e+00> : vector<2x128xf32>
    %641 = tpu.matmul %633, %338, %cst_252 {dimension_numbers = #tpu.dot_dimension_numbers<[1], [0], [0], [1], [0, 0, 1, 1], [], []>} : vector<2x32xf32>, vector<32x128xf32>, vector<2x128xf32> -> vector<2x128xf32>
    %642 = arith.addf %640, %641 : vector<2x128xf32>
    %643 = vector.extract_strided_slice %642 {offsets = [0, 0], sizes = [2, 32], strides = [1, 1]} : vector<2x128xf32> to vector<2x32xf32>
    %644 = arith.negf %643 : vector<2x32xf32>
    %645 = math.exp %644 : vector<2x32xf32>
    %cst_253 = arith.constant 1.000000e+00 : f32
    %646 = vector.broadcast %cst_253 : f32 to vector<2x32xf32>
    %647 = arith.addf %646, %645 : vector<2x32xf32>
    %648 = arith.divf %646, %647 : vector<2x32xf32>
    %649 = vector.extract_strided_slice %642 {offsets = [0, 32], sizes = [2, 32], strides = [1, 1]} : vector<2x128xf32> to vector<2x32xf32>
    %650 = arith.negf %649 : vector<2x32xf32>
    %651 = math.exp %650 : vector<2x32xf32>
    %cst_254 = arith.constant 1.000000e+00 : f32
    %652 = vector.broadcast %cst_254 : f32 to vector<2x32xf32>
    %653 = arith.addf %652, %651 : vector<2x32xf32>
    %654 = arith.divf %652, %653 : vector<2x32xf32>
    %655 = vector.extract_strided_slice %642 {offsets = [0, 64], sizes = [2, 32], strides = [1, 1]} : vector<2x128xf32> to vector<2x32xf32>
    %656 = math.tanh %655 : vector<2x32xf32>
    %657 = vector.extract_strided_slice %642 {offsets = [0, 96], sizes = [2, 32], strides = [1, 1]} : vector<2x128xf32> to vector<2x32xf32>
    %658 = arith.negf %657 : vector<2x32xf32>
    %659 = math.exp %658 : vector<2x32xf32>
    %cst_255 = arith.constant 1.000000e+00 : f32
    %660 = vector.broadcast %cst_255 : f32 to vector<2x32xf32>
    %661 = arith.addf %660, %659 : vector<2x32xf32>
    %662 = arith.divf %660, %661 : vector<2x32xf32>
    %663 = arith.mulf %654, %631 : vector<2x32xf32>
    %664 = arith.mulf %648, %656 : vector<2x32xf32>
    %665 = arith.addf %663, %664 : vector<2x32xf32>
    %666 = math.tanh %665 : vector<2x32xf32>
    %667 = arith.mulf %662, %666 : vector<2x32xf32>
    %668 = arith.index_cast %c7_i32_249 : i32 to index
    %c0_256 = arith.constant 0 : index
    %c0_257 = arith.constant 0 : index
    %669 = vector.load %arg20[%668, %c0_256, %c0_257] : memref<8x2x32xf32, #tpu.memory_space<vmem>>, vector<1x2x32xf32>
    %670 = vector.shape_cast %669 : vector<1x2x32xf32> to vector<2x32xf32>
    %671 = vector.shape_cast %667 : vector<2x32xf32> to vector<1x2x32xf32>
    tpu.vector_store %arg20[%668, %c0_256, %c0_257], %671 {strides = array<i32>} : memref<8x2x32xf32, #tpu.memory_space<vmem>>, vector<1x2x32xf32>,
    %c8_i32_258 = arith.constant 8 : i32
    %c1_259 = arith.constant 1 : index
    %c0_260 = arith.constant 0 : index
    %c0_261 = arith.constant 0 : index
    %672 = vector.load %arg7[%c1_259, %c0_260, %c0_261] : memref<4x32x128xf32, #tpu.memory_space<vmem>>, vector<1x32x128xf32>
    %673 = vector.shape_cast %672 : vector<1x32x128xf32> to vector<32x128xf32>
    %c1_262 = arith.constant 1 : index
    %c0_263 = arith.constant 0 : index
    %c0_264 = arith.constant 0 : index
    %674 = vector.load %arg8[%c1_262, %c0_263, %c0_264] : memref<4x32x128xf32, #tpu.memory_space<vmem>>, vector<1x32x128xf32>
    %675 = vector.shape_cast %674 : vector<1x32x128xf32> to vector<32x128xf32>
    %c1_265 = arith.constant 1 : index
    %c0_266 = arith.constant 0 : index
    %c0_267 = arith.constant 0 : index
    %676 = vector.load %arg9[%c1_265, %c0_266, %c0_267] : memref<4x1x128xf32, #tpu.memory_space<vmem>>, vector<1x1x128xf32>
    %677 = vector.shape_cast %676 : vector<1x1x128xf32> to vector<1x128xf32>
    %678 = vector.shape_cast %677 : vector<1x128xf32> to vector<1x128xf32>
    %679 = vector.broadcast %678 : vector<1x128xf32> to vector<2x128xf32>
    %c0_268 = arith.constant 0 : index
    %c0_269 = arith.constant 0 : index
    %c0_270 = arith.constant 0 : index
    %680 = vector.load %arg20[%c0_268, %c0_269, %c0_270] : memref<8x2x32xf32, #tpu.memory_space<vmem>>, vector<1x2x32xf32>
    %681 = vector.shape_cast %680 : vector<1x2x32xf32> to vector<2x32xf32>
    %cst_271 = arith.constant dense<0.000000e+00> : vector<2x128xf32>
    %682 = tpu.matmul %681, %673, %cst_271 {dimension_numbers = #tpu.dot_dimension_numbers<[1], [0], [0], [1], [0, 0, 1, 1], [], []>} : vector<2x32xf32>, vector<32x128xf32>, vector<2x128xf32> -> vector<2x128xf32>
    %683 = arith.addf %682, %679 : vector<2x128xf32>
    %c0_272 = arith.constant 0 : index
    %c0_273 = arith.constant 0 : index
    %c0_274 = arith.constant 0 : index
    %684 = vector.load %arg21[%c0_272, %c0_273, %c0_274] : memref<8x2x128xf32, #tpu.memory_space<vmem>>, vector<1x2x128xf32>
    %685 = vector.shape_cast %684 : vector<1x2x128xf32> to vector<2x128xf32>
    %686 = vector.shape_cast %683 : vector<2x128xf32> to vector<1x2x128xf32>
    tpu.vector_store %arg21[%c0_272, %c0_273, %c0_274], %686 {strides = array<i32>} : memref<8x2x128xf32, #tpu.memory_space<vmem>>, vector<1x2x128xf32>,
    %c1_275 = arith.constant 1 : index
    %c0_276 = arith.constant 0 : index
    %c0_277 = arith.constant 0 : index
    %687 = vector.load %arg20[%c1_275, %c0_276, %c0_277] : memref<8x2x32xf32, #tpu.memory_space<vmem>>, vector<1x2x32xf32>
    %688 = vector.shape_cast %687 : vector<1x2x32xf32> to vector<2x32xf32>
    %cst_278 = arith.constant dense<0.000000e+00> : vector<2x128xf32>
    %689 = tpu.matmul %688, %673, %cst_278 {dimension_numbers = #tpu.dot_dimension_numbers<[1], [0], [0], [1], [0, 0, 1, 1], [], []>} : vector<2x32xf32>, vector<32x128xf32>, vector<2x128xf32> -> vector<2x128xf32>
    %690 = arith.addf %689, %679 : vector<2x128xf32>
    %c1_279 = arith.constant 1 : index
    %c0_280 = arith.constant 0 : index
    %c0_281 = arith.constant 0 : index
    %691 = vector.load %arg21[%c1_279, %c0_280, %c0_281] : memref<8x2x128xf32, #tpu.memory_space<vmem>>, vector<1x2x128xf32>
    %692 = vector.shape_cast %691 : vector<1x2x128xf32> to vector<2x128xf32>
    %693 = vector.shape_cast %690 : vector<2x128xf32> to vector<1x2x128xf32>
    tpu.vector_store %arg21[%c1_279, %c0_280, %c0_281], %693 {strides = array<i32>} : memref<8x2x128xf32, #tpu.memory_space<vmem>>, vector<1x2x128xf32>,
    %c2_282 = arith.constant 2 : index
    %c0_283 = arith.constant 0 : index
    %c0_284 = arith.constant 0 : index
    %694 = vector.load %arg20[%c2_282, %c0_283, %c0_284] : memref<8x2x32xf32, #tpu.memory_space<vmem>>, vector<1x2x32xf32>
    %695 = vector.shape_cast %694 : vector<1x2x32xf32> to vector<2x32xf32>
    %cst_285 = arith.constant dense<0.000000e+00> : vector<2x128xf32>
    %696 = tpu.matmul %695, %673, %cst_285 {dimension_numbers = #tpu.dot_dimension_numbers<[1], [0], [0], [1], [0, 0, 1, 1], [], []>} : vector<2x32xf32>, vector<32x128xf32>, vector<2x128xf32> -> vector<2x128xf32>
    %697 = arith.addf %696, %679 : vector<2x128xf32>
    %c2_286 = arith.constant 2 : index
    %c0_287 = arith.constant 0 : index
    %c0_288 = arith.constant 0 : index
    %698 = vector.load %arg21[%c2_286, %c0_287, %c0_288] : memref<8x2x128xf32, #tpu.memory_space<vmem>>, vector<1x2x128xf32>
    %699 = vector.shape_cast %698 : vector<1x2x128xf32> to vector<2x128xf32>
    %700 = vector.shape_cast %697 : vector<2x128xf32> to vector<1x2x128xf32>
    tpu.vector_store %arg21[%c2_286, %c0_287, %c0_288], %700 {strides = array<i32>} : memref<8x2x128xf32, #tpu.memory_space<vmem>>, vector<1x2x128xf32>,
    %c3_289 = arith.constant 3 : index
    %c0_290 = arith.constant 0 : index
    %c0_291 = arith.constant 0 : index
    %701 = vector.load %arg20[%c3_289, %c0_290, %c0_291] : memref<8x2x32xf32, #tpu.memory_space<vmem>>, vector<1x2x32xf32>
    %702 = vector.shape_cast %701 : vector<1x2x32xf32> to vector<2x32xf32>
    %cst_292 = arith.constant dense<0.000000e+00> : vector<2x128xf32>
    %703 = tpu.matmul %702, %673, %cst_292 {dimension_numbers = #tpu.dot_dimension_numbers<[1], [0], [0], [1], [0, 0, 1, 1], [], []>} : vector<2x32xf32>, vector<32x128xf32>, vector<2x128xf32> -> vector<2x128xf32>
    %704 = arith.addf %703, %679 : vector<2x128xf32>
    %c3_293 = arith.constant 3 : index
    %c0_294 = arith.constant 0 : index
    %c0_295 = arith.constant 0 : index
    %705 = vector.load %arg21[%c3_293, %c0_294, %c0_295] : memref<8x2x128xf32, #tpu.memory_space<vmem>>, vector<1x2x128xf32>
    %706 = vector.shape_cast %705 : vector<1x2x128xf32> to vector<2x128xf32>
    %707 = vector.shape_cast %704 : vector<2x128xf32> to vector<1x2x128xf32>
    tpu.vector_store %arg21[%c3_293, %c0_294, %c0_295], %707 {strides = array<i32>} : memref<8x2x128xf32, #tpu.memory_space<vmem>>, vector<1x2x128xf32>,
    %c4_296 = arith.constant 4 : index
    %c0_297 = arith.constant 0 : index
    %c0_298 = arith.constant 0 : index
    %708 = vector.load %arg20[%c4_296, %c0_297, %c0_298] : memref<8x2x32xf32, #tpu.memory_space<vmem>>, vector<1x2x32xf32>
    %709 = vector.shape_cast %708 : vector<1x2x32xf32> to vector<2x32xf32>
    %cst_299 = arith.constant dense<0.000000e+00> : vector<2x128xf32>
    %710 = tpu.matmul %709, %673, %cst_299 {dimension_numbers = #tpu.dot_dimension_numbers<[1], [0], [0], [1], [0, 0, 1, 1], [], []>} : vector<2x32xf32>, vector<32x128xf32>, vector<2x128xf32> -> vector<2x128xf32>
    %711 = arith.addf %710, %679 : vector<2x128xf32>
    %c4_300 = arith.constant 4 : index
    %c0_301 = arith.constant 0 : index
    %c0_302 = arith.constant 0 : index
    %712 = vector.load %arg21[%c4_300, %c0_301, %c0_302] : memref<8x2x128xf32, #tpu.memory_space<vmem>>, vector<1x2x128xf32>
    %713 = vector.shape_cast %712 : vector<1x2x128xf32> to vector<2x128xf32>
    %714 = vector.shape_cast %711 : vector<2x128xf32> to vector<1x2x128xf32>
    tpu.vector_store %arg21[%c4_300, %c0_301, %c0_302], %714 {strides = array<i32>} : memref<8x2x128xf32, #tpu.memory_space<vmem>>, vector<1x2x128xf32>,
    %c5_303 = arith.constant 5 : index
    %c0_304 = arith.constant 0 : index
    %c0_305 = arith.constant 0 : index
    %715 = vector.load %arg20[%c5_303, %c0_304, %c0_305] : memref<8x2x32xf32, #tpu.memory_space<vmem>>, vector<1x2x32xf32>
    %716 = vector.shape_cast %715 : vector<1x2x32xf32> to vector<2x32xf32>
    %cst_306 = arith.constant dense<0.000000e+00> : vector<2x128xf32>
    %717 = tpu.matmul %716, %673, %cst_306 {dimension_numbers = #tpu.dot_dimension_numbers<[1], [0], [0], [1], [0, 0, 1, 1], [], []>} : vector<2x32xf32>, vector<32x128xf32>, vector<2x128xf32> -> vector<2x128xf32>
    %718 = arith.addf %717, %679 : vector<2x128xf32>
    %c5_307 = arith.constant 5 : index
    %c0_308 = arith.constant 0 : index
    %c0_309 = arith.constant 0 : index
    %719 = vector.load %arg21[%c5_307, %c0_308, %c0_309] : memref<8x2x128xf32, #tpu.memory_space<vmem>>, vector<1x2x128xf32>
    %720 = vector.shape_cast %719 : vector<1x2x128xf32> to vector<2x128xf32>
    %721 = vector.shape_cast %718 : vector<2x128xf32> to vector<1x2x128xf32>
    tpu.vector_store %arg21[%c5_307, %c0_308, %c0_309], %721 {strides = array<i32>} : memref<8x2x128xf32, #tpu.memory_space<vmem>>, vector<1x2x128xf32>,
    %c6_310 = arith.constant 6 : index
    %c0_311 = arith.constant 0 : index
    %c0_312 = arith.constant 0 : index
    %722 = vector.load %arg20[%c6_310, %c0_311, %c0_312] : memref<8x2x32xf32, #tpu.memory_space<vmem>>, vector<1x2x32xf32>
    %723 = vector.shape_cast %722 : vector<1x2x32xf32> to vector<2x32xf32>
    %cst_313 = arith.constant dense<0.000000e+00> : vector<2x128xf32>
    %724 = tpu.matmul %723, %673, %cst_313 {dimension_numbers = #tpu.dot_dimension_numbers<[1], [0], [0], [1], [0, 0, 1, 1], [], []>} : vector<2x32xf32>, vector<32x128xf32>, vector<2x128xf32> -> vector<2x128xf32>
    %725 = arith.addf %724, %679 : vector<2x128xf32>
    %c6_314 = arith.constant 6 : index
    %c0_315 = arith.constant 0 : index
    %c0_316 = arith.constant 0 : index
    %726 = vector.load %arg21[%c6_314, %c0_315, %c0_316] : memref<8x2x128xf32, #tpu.memory_space<vmem>>, vector<1x2x128xf32>
    %727 = vector.shape_cast %726 : vector<1x2x128xf32> to vector<2x128xf32>
    %728 = vector.shape_cast %725 : vector<2x128xf32> to vector<1x2x128xf32>
    tpu.vector_store %arg21[%c6_314, %c0_315, %c0_316], %728 {strides = array<i32>} : memref<8x2x128xf32, #tpu.memory_space<vmem>>, vector<1x2x128xf32>,
    %c7_317 = arith.constant 7 : index
    %c0_318 = arith.constant 0 : index
    %c0_319 = arith.constant 0 : index
    %729 = vector.load %arg20[%c7_317, %c0_318, %c0_319] : memref<8x2x32xf32, #tpu.memory_space<vmem>>, vector<1x2x32xf32>
    %730 = vector.shape_cast %729 : vector<1x2x32xf32> to vector<2x32xf32>
    %cst_320 = arith.constant dense<0.000000e+00> : vector<2x128xf32>
    %731 = tpu.matmul %730, %673, %cst_320 {dimension_numbers = #tpu.dot_dimension_numbers<[1], [0], [0], [1], [0, 0, 1, 1], [], []>} : vector<2x32xf32>, vector<32x128xf32>, vector<2x128xf32> -> vector<2x128xf32>
    %732 = arith.addf %731, %679 : vector<2x128xf32>
    %c7_321 = arith.constant 7 : index
    %c0_322 = arith.constant 0 : index
    %c0_323 = arith.constant 0 : index
    %733 = vector.load %arg21[%c7_321, %c0_322, %c0_323] : memref<8x2x128xf32, #tpu.memory_space<vmem>>, vector<1x2x128xf32>
    %734 = vector.shape_cast %733 : vector<1x2x128xf32> to vector<2x128xf32>
    %735 = vector.shape_cast %732 : vector<2x128xf32> to vector<1x2x128xf32>
    tpu.vector_store %arg21[%c7_321, %c0_322, %c0_323], %735 {strides = array<i32>} : memref<8x2x128xf32, #tpu.memory_space<vmem>>, vector<1x2x128xf32>,
    %cst_324 = arith.constant 0.000000e+00 : f32
    %736 = vector.broadcast %cst_324 : f32 to vector<2x32xf32>
    %c0_i32_325 = arith.constant 0 : i32
    %737 = arith.index_cast %c0_i32_325 : i32 to index
    %c0_326 = arith.constant 0 : index
    %c0_327 = arith.constant 0 : index
    %738 = vector.load %arg21[%737, %c0_326, %c0_327] : memref<8x2x128xf32, #tpu.memory_space<vmem>>, vector<1x2x128xf32>
    %739 = vector.shape_cast %738 : vector<1x2x128xf32> to vector<2x128xf32>
    %cst_328 = arith.constant dense<0.000000e+00> : vector<2x128xf32>
    %740 = tpu.matmul %736, %675, %cst_328 {dimension_numbers = #tpu.dot_dimension_numbers<[1], [0], [0], [1], [0, 0, 1, 1], [], []>} : vector<2x32xf32>, vector<32x128xf32>, vector<2x128xf32> -> vector<2x128xf32>
    %741 = arith.addf %739, %740 : vector<2x128xf32>
    %742 = vector.extract_strided_slice %741 {offsets = [0, 0], sizes = [2, 32], strides = [1, 1]} : vector<2x128xf32> to vector<2x32xf32>
    %743 = arith.negf %742 : vector<2x32xf32>
    %744 = math.exp %743 : vector<2x32xf32>
    %cst_329 = arith.constant 1.000000e+00 : f32
    %745 = vector.broadcast %cst_329 : f32 to vector<2x32xf32>
    %746 = arith.addf %745, %744 : vector<2x32xf32>
    %747 = arith.divf %745, %746 : vector<2x32xf32>
    %748 = vector.extract_strided_slice %741 {offsets = [0, 32], sizes = [2, 32], strides = [1, 1]} : vector<2x128xf32> to vector<2x32xf32>
    %749 = arith.negf %748 : vector<2x32xf32>
    %750 = math.exp %749 : vector<2x32xf32>
    %cst_330 = arith.constant 1.000000e+00 : f32
    %751 = vector.broadcast %cst_330 : f32 to vector<2x32xf32>
    %752 = arith.addf %751, %750 : vector<2x32xf32>
    %753 = arith.divf %751, %752 : vector<2x32xf32>
    %754 = vector.extract_strided_slice %741 {offsets = [0, 64], sizes = [2, 32], strides = [1, 1]} : vector<2x128xf32> to vector<2x32xf32>
    %755 = math.tanh %754 : vector<2x32xf32>
    %756 = vector.extract_strided_slice %741 {offsets = [0, 96], sizes = [2, 32], strides = [1, 1]} : vector<2x128xf32> to vector<2x32xf32>
    %757 = arith.negf %756 : vector<2x32xf32>
    %758 = math.exp %757 : vector<2x32xf32>
    %cst_331 = arith.constant 1.000000e+00 : f32
    %759 = vector.broadcast %cst_331 : f32 to vector<2x32xf32>
    %760 = arith.addf %759, %758 : vector<2x32xf32>
    %761 = arith.divf %759, %760 : vector<2x32xf32>
    %762 = arith.mulf %753, %736 : vector<2x32xf32>
    %763 = arith.mulf %747, %755 : vector<2x32xf32>
    %764 = arith.addf %762, %763 : vector<2x32xf32>
    %765 = math.tanh %764 : vector<2x32xf32>
    %766 = arith.mulf %761, %765 : vector<2x32xf32>
    %767 = arith.index_cast %c0_i32_325 : i32 to index
    %c0_332 = arith.constant 0 : index
    %c0_333 = arith.constant 0 : index
    %768 = vector.load %arg19[%767, %c0_332, %c0_333] : memref<8x2x32xf32, #tpu.memory_space<vmem>>, vector<1x2x32xf32>
    %769 = vector.shape_cast %768 : vector<1x2x32xf32> to vector<2x32xf32>
    %770 = vector.shape_cast %766 : vector<2x32xf32> to vector<1x2x32xf32>
    tpu.vector_store %arg19[%767, %c0_332, %c0_333], %770 {strides = array<i32>} : memref<8x2x32xf32, #tpu.memory_space<vmem>>, vector<1x2x32xf32>,
    %c1_i32_334 = arith.constant 1 : i32
    %771 = arith.index_cast %c1_i32_334 : i32 to index
    %c0_335 = arith.constant 0 : index
    %c0_336 = arith.constant 0 : index
    %772 = vector.load %arg21[%771, %c0_335, %c0_336] : memref<8x2x128xf32, #tpu.memory_space<vmem>>, vector<1x2x128xf32>
    %773 = vector.shape_cast %772 : vector<1x2x128xf32> to vector<2x128xf32>
    %cst_337 = arith.constant dense<0.000000e+00> : vector<2x128xf32>
    %774 = tpu.matmul %766, %675, %cst_337 {dimension_numbers = #tpu.dot_dimension_numbers<[1], [0], [0], [1], [0, 0, 1, 1], [], []>} : vector<2x32xf32>, vector<32x128xf32>, vector<2x128xf32> -> vector<2x128xf32>
    %775 = arith.addf %773, %774 : vector<2x128xf32>
    %776 = vector.extract_strided_slice %775 {offsets = [0, 0], sizes = [2, 32], strides = [1, 1]} : vector<2x128xf32> to vector<2x32xf32>
    %777 = arith.negf %776 : vector<2x32xf32>
    %778 = math.exp %777 : vector<2x32xf32>
    %cst_338 = arith.constant 1.000000e+00 : f32
    %779 = vector.broadcast %cst_338 : f32 to vector<2x32xf32>
    %780 = arith.addf %779, %778 : vector<2x32xf32>
    %781 = arith.divf %779, %780 : vector<2x32xf32>
    %782 = vector.extract_strided_slice %775 {offsets = [0, 32], sizes = [2, 32], strides = [1, 1]} : vector<2x128xf32> to vector<2x32xf32>
    %783 = arith.negf %782 : vector<2x32xf32>
    %784 = math.exp %783 : vector<2x32xf32>
    %cst_339 = arith.constant 1.000000e+00 : f32
    %785 = vector.broadcast %cst_339 : f32 to vector<2x32xf32>
    %786 = arith.addf %785, %784 : vector<2x32xf32>
    %787 = arith.divf %785, %786 : vector<2x32xf32>
    %788 = vector.extract_strided_slice %775 {offsets = [0, 64], sizes = [2, 32], strides = [1, 1]} : vector<2x128xf32> to vector<2x32xf32>
    %789 = math.tanh %788 : vector<2x32xf32>
    %790 = vector.extract_strided_slice %775 {offsets = [0, 96], sizes = [2, 32], strides = [1, 1]} : vector<2x128xf32> to vector<2x32xf32>
    %791 = arith.negf %790 : vector<2x32xf32>
    %792 = math.exp %791 : vector<2x32xf32>
    %cst_340 = arith.constant 1.000000e+00 : f32
    %793 = vector.broadcast %cst_340 : f32 to vector<2x32xf32>
    %794 = arith.addf %793, %792 : vector<2x32xf32>
    %795 = arith.divf %793, %794 : vector<2x32xf32>
    %796 = arith.mulf %787, %764 : vector<2x32xf32>
    %797 = arith.mulf %781, %789 : vector<2x32xf32>
    %798 = arith.addf %796, %797 : vector<2x32xf32>
    %799 = math.tanh %798 : vector<2x32xf32>
    %800 = arith.mulf %795, %799 : vector<2x32xf32>
    %801 = arith.index_cast %c1_i32_334 : i32 to index
    %c0_341 = arith.constant 0 : index
    %c0_342 = arith.constant 0 : index
    %802 = vector.load %arg19[%801, %c0_341, %c0_342] : memref<8x2x32xf32, #tpu.memory_space<vmem>>, vector<1x2x32xf32>
    %803 = vector.shape_cast %802 : vector<1x2x32xf32> to vector<2x32xf32>
    %804 = vector.shape_cast %800 : vector<2x32xf32> to vector<1x2x32xf32>
    tpu.vector_store %arg19[%801, %c0_341, %c0_342], %804 {strides = array<i32>} : memref<8x2x32xf32, #tpu.memory_space<vmem>>, vector<1x2x32xf32>,
    %c2_i32_343 = arith.constant 2 : i32
    %805 = arith.index_cast %c2_i32_343 : i32 to index
    %c0_344 = arith.constant 0 : index
    %c0_345 = arith.constant 0 : index
    %806 = vector.load %arg21[%805, %c0_344, %c0_345] : memref<8x2x128xf32, #tpu.memory_space<vmem>>, vector<1x2x128xf32>
    %807 = vector.shape_cast %806 : vector<1x2x128xf32> to vector<2x128xf32>
    %cst_346 = arith.constant dense<0.000000e+00> : vector<2x128xf32>
    %808 = tpu.matmul %800, %675, %cst_346 {dimension_numbers = #tpu.dot_dimension_numbers<[1], [0], [0], [1], [0, 0, 1, 1], [], []>} : vector<2x32xf32>, vector<32x128xf32>, vector<2x128xf32> -> vector<2x128xf32>
    %809 = arith.addf %807, %808 : vector<2x128xf32>
    %810 = vector.extract_strided_slice %809 {offsets = [0, 0], sizes = [2, 32], strides = [1, 1]} : vector<2x128xf32> to vector<2x32xf32>
    %811 = arith.negf %810 : vector<2x32xf32>
    %812 = math.exp %811 : vector<2x32xf32>
    %cst_347 = arith.constant 1.000000e+00 : f32
    %813 = vector.broadcast %cst_347 : f32 to vector<2x32xf32>
    %814 = arith.addf %813, %812 : vector<2x32xf32>
    %815 = arith.divf %813, %814 : vector<2x32xf32>
    %816 = vector.extract_strided_slice %809 {offsets = [0, 32], sizes = [2, 32], strides = [1, 1]} : vector<2x128xf32> to vector<2x32xf32>
    %817 = arith.negf %816 : vector<2x32xf32>
    %818 = math.exp %817 : vector<2x32xf32>
    %cst_348 = arith.constant 1.000000e+00 : f32
    %819 = vector.broadcast %cst_348 : f32 to vector<2x32xf32>
    %820 = arith.addf %819, %818 : vector<2x32xf32>
    %821 = arith.divf %819, %820 : vector<2x32xf32>
    %822 = vector.extract_strided_slice %809 {offsets = [0, 64], sizes = [2, 32], strides = [1, 1]} : vector<2x128xf32> to vector<2x32xf32>
    %823 = math.tanh %822 : vector<2x32xf32>
    %824 = vector.extract_strided_slice %809 {offsets = [0, 96], sizes = [2, 32], strides = [1, 1]} : vector<2x128xf32> to vector<2x32xf32>
    %825 = arith.negf %824 : vector<2x32xf32>
    %826 = math.exp %825 : vector<2x32xf32>
    %cst_349 = arith.constant 1.000000e+00 : f32
    %827 = vector.broadcast %cst_349 : f32 to vector<2x32xf32>
    %828 = arith.addf %827, %826 : vector<2x32xf32>
    %829 = arith.divf %827, %828 : vector<2x32xf32>
    %830 = arith.mulf %821, %798 : vector<2x32xf32>
    %831 = arith.mulf %815, %823 : vector<2x32xf32>
    %832 = arith.addf %830, %831 : vector<2x32xf32>
    %833 = math.tanh %832 : vector<2x32xf32>
    %834 = arith.mulf %829, %833 : vector<2x32xf32>
    %835 = arith.index_cast %c2_i32_343 : i32 to index
    %c0_350 = arith.constant 0 : index
    %c0_351 = arith.constant 0 : index
    %836 = vector.load %arg19[%835, %c0_350, %c0_351] : memref<8x2x32xf32, #tpu.memory_space<vmem>>, vector<1x2x32xf32>
    %837 = vector.shape_cast %836 : vector<1x2x32xf32> to vector<2x32xf32>
    %838 = vector.shape_cast %834 : vector<2x32xf32> to vector<1x2x32xf32>
    tpu.vector_store %arg19[%835, %c0_350, %c0_351], %838 {strides = array<i32>} : memref<8x2x32xf32, #tpu.memory_space<vmem>>, vector<1x2x32xf32>,
    %c3_i32_352 = arith.constant 3 : i32
    %839 = arith.index_cast %c3_i32_352 : i32 to index
    %c0_353 = arith.constant 0 : index
    %c0_354 = arith.constant 0 : index
    %840 = vector.load %arg21[%839, %c0_353, %c0_354] : memref<8x2x128xf32, #tpu.memory_space<vmem>>, vector<1x2x128xf32>
    %841 = vector.shape_cast %840 : vector<1x2x128xf32> to vector<2x128xf32>
    %cst_355 = arith.constant dense<0.000000e+00> : vector<2x128xf32>
    %842 = tpu.matmul %834, %675, %cst_355 {dimension_numbers = #tpu.dot_dimension_numbers<[1], [0], [0], [1], [0, 0, 1, 1], [], []>} : vector<2x32xf32>, vector<32x128xf32>, vector<2x128xf32> -> vector<2x128xf32>
    %843 = arith.addf %841, %842 : vector<2x128xf32>
    %844 = vector.extract_strided_slice %843 {offsets = [0, 0], sizes = [2, 32], strides = [1, 1]} : vector<2x128xf32> to vector<2x32xf32>
    %845 = arith.negf %844 : vector<2x32xf32>
    %846 = math.exp %845 : vector<2x32xf32>
    %cst_356 = arith.constant 1.000000e+00 : f32
    %847 = vector.broadcast %cst_356 : f32 to vector<2x32xf32>
    %848 = arith.addf %847, %846 : vector<2x32xf32>
    %849 = arith.divf %847, %848 : vector<2x32xf32>
    %850 = vector.extract_strided_slice %843 {offsets = [0, 32], sizes = [2, 32], strides = [1, 1]} : vector<2x128xf32> to vector<2x32xf32>
    %851 = arith.negf %850 : vector<2x32xf32>
    %852 = math.exp %851 : vector<2x32xf32>
    %cst_357 = arith.constant 1.000000e+00 : f32
    %853 = vector.broadcast %cst_357 : f32 to vector<2x32xf32>
    %854 = arith.addf %853, %852 : vector<2x32xf32>
    %855 = arith.divf %853, %854 : vector<2x32xf32>
    %856 = vector.extract_strided_slice %843 {offsets = [0, 64], sizes = [2, 32], strides = [1, 1]} : vector<2x128xf32> to vector<2x32xf32>
    %857 = math.tanh %856 : vector<2x32xf32>
    %858 = vector.extract_strided_slice %843 {offsets = [0, 96], sizes = [2, 32], strides = [1, 1]} : vector<2x128xf32> to vector<2x32xf32>
    %859 = arith.negf %858 : vector<2x32xf32>
    %860 = math.exp %859 : vector<2x32xf32>
    %cst_358 = arith.constant 1.000000e+00 : f32
    %861 = vector.broadcast %cst_358 : f32 to vector<2x32xf32>
    %862 = arith.addf %861, %860 : vector<2x32xf32>
    %863 = arith.divf %861, %862 : vector<2x32xf32>
    %864 = arith.mulf %855, %832 : vector<2x32xf32>
    %865 = arith.mulf %849, %857 : vector<2x32xf32>
    %866 = arith.addf %864, %865 : vector<2x32xf32>
    %867 = math.tanh %866 : vector<2x32xf32>
    %868 = arith.mulf %863, %867 : vector<2x32xf32>
    %869 = arith.index_cast %c3_i32_352 : i32 to index
    %c0_359 = arith.constant 0 : index
    %c0_360 = arith.constant 0 : index
    %870 = vector.load %arg19[%869, %c0_359, %c0_360] : memref<8x2x32xf32, #tpu.memory_space<vmem>>, vector<1x2x32xf32>
    %871 = vector.shape_cast %870 : vector<1x2x32xf32> to vector<2x32xf32>
    %872 = vector.shape_cast %868 : vector<2x32xf32> to vector<1x2x32xf32>
    tpu.vector_store %arg19[%869, %c0_359, %c0_360], %872 {strides = array<i32>} : memref<8x2x32xf32, #tpu.memory_space<vmem>>, vector<1x2x32xf32>,
    %c4_i32_361 = arith.constant 4 : i32
    %873 = arith.index_cast %c4_i32_361 : i32 to index
    %c0_362 = arith.constant 0 : index
    %c0_363 = arith.constant 0 : index
    %874 = vector.load %arg21[%873, %c0_362, %c0_363] : memref<8x2x128xf32, #tpu.memory_space<vmem>>, vector<1x2x128xf32>
    %875 = vector.shape_cast %874 : vector<1x2x128xf32> to vector<2x128xf32>
    %cst_364 = arith.constant dense<0.000000e+00> : vector<2x128xf32>
    %876 = tpu.matmul %868, %675, %cst_364 {dimension_numbers = #tpu.dot_dimension_numbers<[1], [0], [0], [1], [0, 0, 1, 1], [], []>} : vector<2x32xf32>, vector<32x128xf32>, vector<2x128xf32> -> vector<2x128xf32>
    %877 = arith.addf %875, %876 : vector<2x128xf32>
    %878 = vector.extract_strided_slice %877 {offsets = [0, 0], sizes = [2, 32], strides = [1, 1]} : vector<2x128xf32> to vector<2x32xf32>
    %879 = arith.negf %878 : vector<2x32xf32>
    %880 = math.exp %879 : vector<2x32xf32>
    %cst_365 = arith.constant 1.000000e+00 : f32
    %881 = vector.broadcast %cst_365 : f32 to vector<2x32xf32>
    %882 = arith.addf %881, %880 : vector<2x32xf32>
    %883 = arith.divf %881, %882 : vector<2x32xf32>
    %884 = vector.extract_strided_slice %877 {offsets = [0, 32], sizes = [2, 32], strides = [1, 1]} : vector<2x128xf32> to vector<2x32xf32>
    %885 = arith.negf %884 : vector<2x32xf32>
    %886 = math.exp %885 : vector<2x32xf32>
    %cst_366 = arith.constant 1.000000e+00 : f32
    %887 = vector.broadcast %cst_366 : f32 to vector<2x32xf32>
    %888 = arith.addf %887, %886 : vector<2x32xf32>
    %889 = arith.divf %887, %888 : vector<2x32xf32>
    %890 = vector.extract_strided_slice %877 {offsets = [0, 64], sizes = [2, 32], strides = [1, 1]} : vector<2x128xf32> to vector<2x32xf32>
    %891 = math.tanh %890 : vector<2x32xf32>
    %892 = vector.extract_strided_slice %877 {offsets = [0, 96], sizes = [2, 32], strides = [1, 1]} : vector<2x128xf32> to vector<2x32xf32>
    %893 = arith.negf %892 : vector<2x32xf32>
    %894 = math.exp %893 : vector<2x32xf32>
    %cst_367 = arith.constant 1.000000e+00 : f32
    %895 = vector.broadcast %cst_367 : f32 to vector<2x32xf32>
    %896 = arith.addf %895, %894 : vector<2x32xf32>
    %897 = arith.divf %895, %896 : vector<2x32xf32>
    %898 = arith.mulf %889, %866 : vector<2x32xf32>
    %899 = arith.mulf %883, %891 : vector<2x32xf32>
    %900 = arith.addf %898, %899 : vector<2x32xf32>
    %901 = math.tanh %900 : vector<2x32xf32>
    %902 = arith.mulf %897, %901 : vector<2x32xf32>
    %903 = arith.index_cast %c4_i32_361 : i32 to index
    %c0_368 = arith.constant 0 : index
    %c0_369 = arith.constant 0 : index
    %904 = vector.load %arg19[%903, %c0_368, %c0_369] : memref<8x2x32xf32, #tpu.memory_space<vmem>>, vector<1x2x32xf32>
    %905 = vector.shape_cast %904 : vector<1x2x32xf32> to vector<2x32xf32>
    %906 = vector.shape_cast %902 : vector<2x32xf32> to vector<1x2x32xf32>
    tpu.vector_store %arg19[%903, %c0_368, %c0_369], %906 {strides = array<i32>} : memref<8x2x32xf32, #tpu.memory_space<vmem>>, vector<1x2x32xf32>,
    %c5_i32_370 = arith.constant 5 : i32
    %907 = arith.index_cast %c5_i32_370 : i32 to index
    %c0_371 = arith.constant 0 : index
    %c0_372 = arith.constant 0 : index
    %908 = vector.load %arg21[%907, %c0_371, %c0_372] : memref<8x2x128xf32, #tpu.memory_space<vmem>>, vector<1x2x128xf32>
    %909 = vector.shape_cast %908 : vector<1x2x128xf32> to vector<2x128xf32>
    %cst_373 = arith.constant dense<0.000000e+00> : vector<2x128xf32>
    %910 = tpu.matmul %902, %675, %cst_373 {dimension_numbers = #tpu.dot_dimension_numbers<[1], [0], [0], [1], [0, 0, 1, 1], [], []>} : vector<2x32xf32>, vector<32x128xf32>, vector<2x128xf32> -> vector<2x128xf32>
    %911 = arith.addf %909, %910 : vector<2x128xf32>
    %912 = vector.extract_strided_slice %911 {offsets = [0, 0], sizes = [2, 32], strides = [1, 1]} : vector<2x128xf32> to vector<2x32xf32>
    %913 = arith.negf %912 : vector<2x32xf32>
    %914 = math.exp %913 : vector<2x32xf32>
    %cst_374 = arith.constant 1.000000e+00 : f32
    %915 = vector.broadcast %cst_374 : f32 to vector<2x32xf32>
    %916 = arith.addf %915, %914 : vector<2x32xf32>
    %917 = arith.divf %915, %916 : vector<2x32xf32>
    %918 = vector.extract_strided_slice %911 {offsets = [0, 32], sizes = [2, 32], strides = [1, 1]} : vector<2x128xf32> to vector<2x32xf32>
    %919 = arith.negf %918 : vector<2x32xf32>
    %920 = math.exp %919 : vector<2x32xf32>
    %cst_375 = arith.constant 1.000000e+00 : f32
    %921 = vector.broadcast %cst_375 : f32 to vector<2x32xf32>
    %922 = arith.addf %921, %920 : vector<2x32xf32>
    %923 = arith.divf %921, %922 : vector<2x32xf32>
    %924 = vector.extract_strided_slice %911 {offsets = [0, 64], sizes = [2, 32], strides = [1, 1]} : vector<2x128xf32> to vector<2x32xf32>
    %925 = math.tanh %924 : vector<2x32xf32>
    %926 = vector.extract_strided_slice %911 {offsets = [0, 96], sizes = [2, 32], strides = [1, 1]} : vector<2x128xf32> to vector<2x32xf32>
    %927 = arith.negf %926 : vector<2x32xf32>
    %928 = math.exp %927 : vector<2x32xf32>
    %cst_376 = arith.constant 1.000000e+00 : f32
    %929 = vector.broadcast %cst_376 : f32 to vector<2x32xf32>
    %930 = arith.addf %929, %928 : vector<2x32xf32>
    %931 = arith.divf %929, %930 : vector<2x32xf32>
    %932 = arith.mulf %923, %900 : vector<2x32xf32>
    %933 = arith.mulf %917, %925 : vector<2x32xf32>
    %934 = arith.addf %932, %933 : vector<2x32xf32>
    %935 = math.tanh %934 : vector<2x32xf32>
    %936 = arith.mulf %931, %935 : vector<2x32xf32>
    %937 = arith.index_cast %c5_i32_370 : i32 to index
    %c0_377 = arith.constant 0 : index
    %c0_378 = arith.constant 0 : index
    %938 = vector.load %arg19[%937, %c0_377, %c0_378] : memref<8x2x32xf32, #tpu.memory_space<vmem>>, vector<1x2x32xf32>
    %939 = vector.shape_cast %938 : vector<1x2x32xf32> to vector<2x32xf32>
    %940 = vector.shape_cast %936 : vector<2x32xf32> to vector<1x2x32xf32>
    tpu.vector_store %arg19[%937, %c0_377, %c0_378], %940 {strides = array<i32>} : memref<8x2x32xf32, #tpu.memory_space<vmem>>, vector<1x2x32xf32>,
    %c6_i32_379 = arith.constant 6 : i32
    %941 = arith.index_cast %c6_i32_379 : i32 to index
    %c0_380 = arith.constant 0 : index
    %c0_381 = arith.constant 0 : index
    %942 = vector.load %arg21[%941, %c0_380, %c0_381] : memref<8x2x128xf32, #tpu.memory_space<vmem>>, vector<1x2x128xf32>
    %943 = vector.shape_cast %942 : vector<1x2x128xf32> to vector<2x128xf32>
    %cst_382 = arith.constant dense<0.000000e+00> : vector<2x128xf32>
    %944 = tpu.matmul %936, %675, %cst_382 {dimension_numbers = #tpu.dot_dimension_numbers<[1], [0], [0], [1], [0, 0, 1, 1], [], []>} : vector<2x32xf32>, vector<32x128xf32>, vector<2x128xf32> -> vector<2x128xf32>
    %945 = arith.addf %943, %944 : vector<2x128xf32>
    %946 = vector.extract_strided_slice %945 {offsets = [0, 0], sizes = [2, 32], strides = [1, 1]} : vector<2x128xf32> to vector<2x32xf32>
    %947 = arith.negf %946 : vector<2x32xf32>
    %948 = math.exp %947 : vector<2x32xf32>
    %cst_383 = arith.constant 1.000000e+00 : f32
    %949 = vector.broadcast %cst_383 : f32 to vector<2x32xf32>
    %950 = arith.addf %949, %948 : vector<2x32xf32>
    %951 = arith.divf %949, %950 : vector<2x32xf32>
    %952 = vector.extract_strided_slice %945 {offsets = [0, 32], sizes = [2, 32], strides = [1, 1]} : vector<2x128xf32> to vector<2x32xf32>
    %953 = arith.negf %952 : vector<2x32xf32>
    %954 = math.exp %953 : vector<2x32xf32>
    %cst_384 = arith.constant 1.000000e+00 : f32
    %955 = vector.broadcast %cst_384 : f32 to vector<2x32xf32>
    %956 = arith.addf %955, %954 : vector<2x32xf32>
    %957 = arith.divf %955, %956 : vector<2x32xf32>
    %958 = vector.extract_strided_slice %945 {offsets = [0, 64], sizes = [2, 32], strides = [1, 1]} : vector<2x128xf32> to vector<2x32xf32>
    %959 = math.tanh %958 : vector<2x32xf32>
    %960 = vector.extract_strided_slice %945 {offsets = [0, 96], sizes = [2, 32], strides = [1, 1]} : vector<2x128xf32> to vector<2x32xf32>
    %961 = arith.negf %960 : vector<2x32xf32>
    %962 = math.exp %961 : vector<2x32xf32>
    %cst_385 = arith.constant 1.000000e+00 : f32
    %963 = vector.broadcast %cst_385 : f32 to vector<2x32xf32>
    %964 = arith.addf %963, %962 : vector<2x32xf32>
    %965 = arith.divf %963, %964 : vector<2x32xf32>
    %966 = arith.mulf %957, %934 : vector<2x32xf32>
    %967 = arith.mulf %951, %959 : vector<2x32xf32>
    %968 = arith.addf %966, %967 : vector<2x32xf32>
    %969 = math.tanh %968 : vector<2x32xf32>
    %970 = arith.mulf %965, %969 : vector<2x32xf32>
    %971 = arith.index_cast %c6_i32_379 : i32 to index
    %c0_386 = arith.constant 0 : index
    %c0_387 = arith.constant 0 : index
    %972 = vector.load %arg19[%971, %c0_386, %c0_387] : memref<8x2x32xf32, #tpu.memory_space<vmem>>, vector<1x2x32xf32>
    %973 = vector.shape_cast %972 : vector<1x2x32xf32> to vector<2x32xf32>
    %974 = vector.shape_cast %970 : vector<2x32xf32> to vector<1x2x32xf32>
    tpu.vector_store %arg19[%971, %c0_386, %c0_387], %974 {strides = array<i32>} : memref<8x2x32xf32, #tpu.memory_space<vmem>>, vector<1x2x32xf32>,
    %c7_i32_388 = arith.constant 7 : i32
    %975 = arith.index_cast %c7_i32_388 : i32 to index
    %c0_389 = arith.constant 0 : index
    %c0_390 = arith.constant 0 : index
    %976 = vector.load %arg21[%975, %c0_389, %c0_390] : memref<8x2x128xf32, #tpu.memory_space<vmem>>, vector<1x2x128xf32>
    %977 = vector.shape_cast %976 : vector<1x2x128xf32> to vector<2x128xf32>
    %cst_391 = arith.constant dense<0.000000e+00> : vector<2x128xf32>
    %978 = tpu.matmul %970, %675, %cst_391 {dimension_numbers = #tpu.dot_dimension_numbers<[1], [0], [0], [1], [0, 0, 1, 1], [], []>} : vector<2x32xf32>, vector<32x128xf32>, vector<2x128xf32> -> vector<2x128xf32>
    %979 = arith.addf %977, %978 : vector<2x128xf32>
    %980 = vector.extract_strided_slice %979 {offsets = [0, 0], sizes = [2, 32], strides = [1, 1]} : vector<2x128xf32> to vector<2x32xf32>
    %981 = arith.negf %980 : vector<2x32xf32>
    %982 = math.exp %981 : vector<2x32xf32>
    %cst_392 = arith.constant 1.000000e+00 : f32
    %983 = vector.broadcast %cst_392 : f32 to vector<2x32xf32>
    %984 = arith.addf %983, %982 : vector<2x32xf32>
    %985 = arith.divf %983, %984 : vector<2x32xf32>
    %986 = vector.extract_strided_slice %979 {offsets = [0, 32], sizes = [2, 32], strides = [1, 1]} : vector<2x128xf32> to vector<2x32xf32>
    %987 = arith.negf %986 : vector<2x32xf32>
    %988 = math.exp %987 : vector<2x32xf32>
    %cst_393 = arith.constant 1.000000e+00 : f32
    %989 = vector.broadcast %cst_393 : f32 to vector<2x32xf32>
    %990 = arith.addf %989, %988 : vector<2x32xf32>
    %991 = arith.divf %989, %990 : vector<2x32xf32>
    %992 = vector.extract_strided_slice %979 {offsets = [0, 64], sizes = [2, 32], strides = [1, 1]} : vector<2x128xf32> to vector<2x32xf32>
    %993 = math.tanh %992 : vector<2x32xf32>
    %994 = vector.extract_strided_slice %979 {offsets = [0, 96], sizes = [2, 32], strides = [1, 1]} : vector<2x128xf32> to vector<2x32xf32>
    %995 = arith.negf %994 : vector<2x32xf32>
    %996 = math.exp %995 : vector<2x32xf32>
    %cst_394 = arith.constant 1.000000e+00 : f32
    %997 = vector.broadcast %cst_394 : f32 to vector<2x32xf32>
    %998 = arith.addf %997, %996 : vector<2x32xf32>
    %999 = arith.divf %997, %998 : vector<2x32xf32>
    %1000 = arith.mulf %991, %968 : vector<2x32xf32>
    %1001 = arith.mulf %985, %993 : vector<2x32xf32>
    %1002 = arith.addf %1000, %1001 : vector<2x32xf32>
    %1003 = math.tanh %1002 : vector<2x32xf32>
    %1004 = arith.mulf %999, %1003 : vector<2x32xf32>
    %1005 = arith.index_cast %c7_i32_388 : i32 to index
    %c0_395 = arith.constant 0 : index
    %c0_396 = arith.constant 0 : index
    %1006 = vector.load %arg19[%1005, %c0_395, %c0_396] : memref<8x2x32xf32, #tpu.memory_space<vmem>>, vector<1x2x32xf32>
    %1007 = vector.shape_cast %1006 : vector<1x2x32xf32> to vector<2x32xf32>
    %1008 = vector.shape_cast %1004 : vector<2x32xf32> to vector<1x2x32xf32>
    tpu.vector_store %arg19[%1005, %c0_395, %c0_396], %1008 {strides = array<i32>} : memref<8x2x32xf32, #tpu.memory_space<vmem>>, vector<1x2x32xf32>,
    %c8_i32_397 = arith.constant 8 : i32
    %c2_398 = arith.constant 2 : index
    %c0_399 = arith.constant 0 : index
    %c0_400 = arith.constant 0 : index
    %1009 = vector.load %arg7[%c2_398, %c0_399, %c0_400] : memref<4x32x128xf32, #tpu.memory_space<vmem>>, vector<1x32x128xf32>
    %1010 = vector.shape_cast %1009 : vector<1x32x128xf32> to vector<32x128xf32>
    %c2_401 = arith.constant 2 : index
    %c0_402 = arith.constant 0 : index
    %c0_403 = arith.constant 0 : index
    %1011 = vector.load %arg8[%c2_401, %c0_402, %c0_403] : memref<4x32x128xf32, #tpu.memory_space<vmem>>, vector<1x32x128xf32>
    %1012 = vector.shape_cast %1011 : vector<1x32x128xf32> to vector<32x128xf32>
    %c2_404 = arith.constant 2 : index
    %c0_405 = arith.constant 0 : index
    %c0_406 = arith.constant 0 : index
    %1013 = vector.load %arg9[%c2_404, %c0_405, %c0_406] : memref<4x1x128xf32, #tpu.memory_space<vmem>>, vector<1x1x128xf32>
    %1014 = vector.shape_cast %1013 : vector<1x1x128xf32> to vector<1x128xf32>
    %1015 = vector.shape_cast %1014 : vector<1x128xf32> to vector<1x128xf32>
    %1016 = vector.broadcast %1015 : vector<1x128xf32> to vector<2x128xf32>
    %c0_407 = arith.constant 0 : index
    %c0_408 = arith.constant 0 : index
    %c0_409 = arith.constant 0 : index
    %1017 = vector.load %arg19[%c0_407, %c0_408, %c0_409] : memref<8x2x32xf32, #tpu.memory_space<vmem>>, vector<1x2x32xf32>
    %1018 = vector.shape_cast %1017 : vector<1x2x32xf32> to vector<2x32xf32>
    %cst_410 = arith.constant dense<0.000000e+00> : vector<2x128xf32>
    %1019 = tpu.matmul %1018, %1010, %cst_410 {dimension_numbers = #tpu.dot_dimension_numbers<[1], [0], [0], [1], [0, 0, 1, 1], [], []>} : vector<2x32xf32>, vector<32x128xf32>, vector<2x128xf32> -> vector<2x128xf32>
    %1020 = arith.addf %1019, %1016 : vector<2x128xf32>
    %c0_411 = arith.constant 0 : index
    %c0_412 = arith.constant 0 : index
    %c0_413 = arith.constant 0 : index
    %1021 = vector.load %arg21[%c0_411, %c0_412, %c0_413] : memref<8x2x128xf32, #tpu.memory_space<vmem>>, vector<1x2x128xf32>
    %1022 = vector.shape_cast %1021 : vector<1x2x128xf32> to vector<2x128xf32>
    %1023 = vector.shape_cast %1020 : vector<2x128xf32> to vector<1x2x128xf32>
    tpu.vector_store %arg21[%c0_411, %c0_412, %c0_413], %1023 {strides = array<i32>} : memref<8x2x128xf32, #tpu.memory_space<vmem>>, vector<1x2x128xf32>,
    %c1_414 = arith.constant 1 : index
    %c0_415 = arith.constant 0 : index
    %c0_416 = arith.constant 0 : index
    %1024 = vector.load %arg19[%c1_414, %c0_415, %c0_416] : memref<8x2x32xf32, #tpu.memory_space<vmem>>, vector<1x2x32xf32>
    %1025 = vector.shape_cast %1024 : vector<1x2x32xf32> to vector<2x32xf32>
    %cst_417 = arith.constant dense<0.000000e+00> : vector<2x128xf32>
    %1026 = tpu.matmul %1025, %1010, %cst_417 {dimension_numbers = #tpu.dot_dimension_numbers<[1], [0], [0], [1], [0, 0, 1, 1], [], []>} : vector<2x32xf32>, vector<32x128xf32>, vector<2x128xf32> -> vector<2x128xf32>
    %1027 = arith.addf %1026, %1016 : vector<2x128xf32>
    %c1_418 = arith.constant 1 : index
    %c0_419 = arith.constant 0 : index
    %c0_420 = arith.constant 0 : index
    %1028 = vector.load %arg21[%c1_418, %c0_419, %c0_420] : memref<8x2x128xf32, #tpu.memory_space<vmem>>, vector<1x2x128xf32>
    %1029 = vector.shape_cast %1028 : vector<1x2x128xf32> to vector<2x128xf32>
    %1030 = vector.shape_cast %1027 : vector<2x128xf32> to vector<1x2x128xf32>
    tpu.vector_store %arg21[%c1_418, %c0_419, %c0_420], %1030 {strides = array<i32>} : memref<8x2x128xf32, #tpu.memory_space<vmem>>, vector<1x2x128xf32>,
    %c2_421 = arith.constant 2 : index
    %c0_422 = arith.constant 0 : index
    %c0_423 = arith.constant 0 : index
    %1031 = vector.load %arg19[%c2_421, %c0_422, %c0_423] : memref<8x2x32xf32, #tpu.memory_space<vmem>>, vector<1x2x32xf32>
    %1032 = vector.shape_cast %1031 : vector<1x2x32xf32> to vector<2x32xf32>
    %cst_424 = arith.constant dense<0.000000e+00> : vector<2x128xf32>
    %1033 = tpu.matmul %1032, %1010, %cst_424 {dimension_numbers = #tpu.dot_dimension_numbers<[1], [0], [0], [1], [0, 0, 1, 1], [], []>} : vector<2x32xf32>, vector<32x128xf32>, vector<2x128xf32> -> vector<2x128xf32>
    %1034 = arith.addf %1033, %1016 : vector<2x128xf32>
    %c2_425 = arith.constant 2 : index
    %c0_426 = arith.constant 0 : index
    %c0_427 = arith.constant 0 : index
    %1035 = vector.load %arg21[%c2_425, %c0_426, %c0_427] : memref<8x2x128xf32, #tpu.memory_space<vmem>>, vector<1x2x128xf32>
    %1036 = vector.shape_cast %1035 : vector<1x2x128xf32> to vector<2x128xf32>
    %1037 = vector.shape_cast %1034 : vector<2x128xf32> to vector<1x2x128xf32>
    tpu.vector_store %arg21[%c2_425, %c0_426, %c0_427], %1037 {strides = array<i32>} : memref<8x2x128xf32, #tpu.memory_space<vmem>>, vector<1x2x128xf32>,
    %c3_428 = arith.constant 3 : index
    %c0_429 = arith.constant 0 : index
    %c0_430 = arith.constant 0 : index
    %1038 = vector.load %arg19[%c3_428, %c0_429, %c0_430] : memref<8x2x32xf32, #tpu.memory_space<vmem>>, vector<1x2x32xf32>
    %1039 = vector.shape_cast %1038 : vector<1x2x32xf32> to vector<2x32xf32>
    %cst_431 = arith.constant dense<0.000000e+00> : vector<2x128xf32>
    %1040 = tpu.matmul %1039, %1010, %cst_431 {dimension_numbers = #tpu.dot_dimension_numbers<[1], [0], [0], [1], [0, 0, 1, 1], [], []>} : vector<2x32xf32>, vector<32x128xf32>, vector<2x128xf32> -> vector<2x128xf32>
    %1041 = arith.addf %1040, %1016 : vector<2x128xf32>
    %c3_432 = arith.constant 3 : index
    %c0_433 = arith.constant 0 : index
    %c0_434 = arith.constant 0 : index
    %1042 = vector.load %arg21[%c3_432, %c0_433, %c0_434] : memref<8x2x128xf32, #tpu.memory_space<vmem>>, vector<1x2x128xf32>
    %1043 = vector.shape_cast %1042 : vector<1x2x128xf32> to vector<2x128xf32>
    %1044 = vector.shape_cast %1041 : vector<2x128xf32> to vector<1x2x128xf32>
    tpu.vector_store %arg21[%c3_432, %c0_433, %c0_434], %1044 {strides = array<i32>} : memref<8x2x128xf32, #tpu.memory_space<vmem>>, vector<1x2x128xf32>,
    %c4_435 = arith.constant 4 : index
    %c0_436 = arith.constant 0 : index
    %c0_437 = arith.constant 0 : index
    %1045 = vector.load %arg19[%c4_435, %c0_436, %c0_437] : memref<8x2x32xf32, #tpu.memory_space<vmem>>, vector<1x2x32xf32>
    %1046 = vector.shape_cast %1045 : vector<1x2x32xf32> to vector<2x32xf32>
    %cst_438 = arith.constant dense<0.000000e+00> : vector<2x128xf32>
    %1047 = tpu.matmul %1046, %1010, %cst_438 {dimension_numbers = #tpu.dot_dimension_numbers<[1], [0], [0], [1], [0, 0, 1, 1], [], []>} : vector<2x32xf32>, vector<32x128xf32>, vector<2x128xf32> -> vector<2x128xf32>
    %1048 = arith.addf %1047, %1016 : vector<2x128xf32>
    %c4_439 = arith.constant 4 : index
    %c0_440 = arith.constant 0 : index
    %c0_441 = arith.constant 0 : index
    %1049 = vector.load %arg21[%c4_439, %c0_440, %c0_441] : memref<8x2x128xf32, #tpu.memory_space<vmem>>, vector<1x2x128xf32>
    %1050 = vector.shape_cast %1049 : vector<1x2x128xf32> to vector<2x128xf32>
    %1051 = vector.shape_cast %1048 : vector<2x128xf32> to vector<1x2x128xf32>
    tpu.vector_store %arg21[%c4_439, %c0_440, %c0_441], %1051 {strides = array<i32>} : memref<8x2x128xf32, #tpu.memory_space<vmem>>, vector<1x2x128xf32>,
    %c5_442 = arith.constant 5 : index
    %c0_443 = arith.constant 0 : index
    %c0_444 = arith.constant 0 : index
    %1052 = vector.load %arg19[%c5_442, %c0_443, %c0_444] : memref<8x2x32xf32, #tpu.memory_space<vmem>>, vector<1x2x32xf32>
    %1053 = vector.shape_cast %1052 : vector<1x2x32xf32> to vector<2x32xf32>
    %cst_445 = arith.constant dense<0.000000e+00> : vector<2x128xf32>
    %1054 = tpu.matmul %1053, %1010, %cst_445 {dimension_numbers = #tpu.dot_dimension_numbers<[1], [0], [0], [1], [0, 0, 1, 1], [], []>} : vector<2x32xf32>, vector<32x128xf32>, vector<2x128xf32> -> vector<2x128xf32>
    %1055 = arith.addf %1054, %1016 : vector<2x128xf32>
    %c5_446 = arith.constant 5 : index
    %c0_447 = arith.constant 0 : index
    %c0_448 = arith.constant 0 : index
    %1056 = vector.load %arg21[%c5_446, %c0_447, %c0_448] : memref<8x2x128xf32, #tpu.memory_space<vmem>>, vector<1x2x128xf32>
    %1057 = vector.shape_cast %1056 : vector<1x2x128xf32> to vector<2x128xf32>
    %1058 = vector.shape_cast %1055 : vector<2x128xf32> to vector<1x2x128xf32>
    tpu.vector_store %arg21[%c5_446, %c0_447, %c0_448], %1058 {strides = array<i32>} : memref<8x2x128xf32, #tpu.memory_space<vmem>>, vector<1x2x128xf32>,
    %c6_449 = arith.constant 6 : index
    %c0_450 = arith.constant 0 : index
    %c0_451 = arith.constant 0 : index
    %1059 = vector.load %arg19[%c6_449, %c0_450, %c0_451] : memref<8x2x32xf32, #tpu.memory_space<vmem>>, vector<1x2x32xf32>
    %1060 = vector.shape_cast %1059 : vector<1x2x32xf32> to vector<2x32xf32>
    %cst_452 = arith.constant dense<0.000000e+00> : vector<2x128xf32>
    %1061 = tpu.matmul %1060, %1010, %cst_452 {dimension_numbers = #tpu.dot_dimension_numbers<[1], [0], [0], [1], [0, 0, 1, 1], [], []>} : vector<2x32xf32>, vector<32x128xf32>, vector<2x128xf32> -> vector<2x128xf32>
    %1062 = arith.addf %1061, %1016 : vector<2x128xf32>
    %c6_453 = arith.constant 6 : index
    %c0_454 = arith.constant 0 : index
    %c0_455 = arith.constant 0 : index
    %1063 = vector.load %arg21[%c6_453, %c0_454, %c0_455] : memref<8x2x128xf32, #tpu.memory_space<vmem>>, vector<1x2x128xf32>
    %1064 = vector.shape_cast %1063 : vector<1x2x128xf32> to vector<2x128xf32>
    %1065 = vector.shape_cast %1062 : vector<2x128xf32> to vector<1x2x128xf32>
    tpu.vector_store %arg21[%c6_453, %c0_454, %c0_455], %1065 {strides = array<i32>} : memref<8x2x128xf32, #tpu.memory_space<vmem>>, vector<1x2x128xf32>,
    %c7_456 = arith.constant 7 : index
    %c0_457 = arith.constant 0 : index
    %c0_458 = arith.constant 0 : index
    %1066 = vector.load %arg19[%c7_456, %c0_457, %c0_458] : memref<8x2x32xf32, #tpu.memory_space<vmem>>, vector<1x2x32xf32>
    %1067 = vector.shape_cast %1066 : vector<1x2x32xf32> to vector<2x32xf32>
    %cst_459 = arith.constant dense<0.000000e+00> : vector<2x128xf32>
    %1068 = tpu.matmul %1067, %1010, %cst_459 {dimension_numbers = #tpu.dot_dimension_numbers<[1], [0], [0], [1], [0, 0, 1, 1], [], []>} : vector<2x32xf32>, vector<32x128xf32>, vector<2x128xf32> -> vector<2x128xf32>
    %1069 = arith.addf %1068, %1016 : vector<2x128xf32>
    %c7_460 = arith.constant 7 : index
    %c0_461 = arith.constant 0 : index
    %c0_462 = arith.constant 0 : index
    %1070 = vector.load %arg21[%c7_460, %c0_461, %c0_462] : memref<8x2x128xf32, #tpu.memory_space<vmem>>, vector<1x2x128xf32>
    %1071 = vector.shape_cast %1070 : vector<1x2x128xf32> to vector<2x128xf32>
    %1072 = vector.shape_cast %1069 : vector<2x128xf32> to vector<1x2x128xf32>
    tpu.vector_store %arg21[%c7_460, %c0_461, %c0_462], %1072 {strides = array<i32>} : memref<8x2x128xf32, #tpu.memory_space<vmem>>, vector<1x2x128xf32>,
    %cst_463 = arith.constant 0.000000e+00 : f32
    %1073 = vector.broadcast %cst_463 : f32 to vector<2x32xf32>
    %c0_i32_464 = arith.constant 0 : i32
    %1074 = arith.index_cast %c0_i32_464 : i32 to index
    %c0_465 = arith.constant 0 : index
    %c0_466 = arith.constant 0 : index
    %1075 = vector.load %arg21[%1074, %c0_465, %c0_466] : memref<8x2x128xf32, #tpu.memory_space<vmem>>, vector<1x2x128xf32>
    %1076 = vector.shape_cast %1075 : vector<1x2x128xf32> to vector<2x128xf32>
    %cst_467 = arith.constant dense<0.000000e+00> : vector<2x128xf32>
    %1077 = tpu.matmul %1073, %1012, %cst_467 {dimension_numbers = #tpu.dot_dimension_numbers<[1], [0], [0], [1], [0, 0, 1, 1], [], []>} : vector<2x32xf32>, vector<32x128xf32>, vector<2x128xf32> -> vector<2x128xf32>
    %1078 = arith.addf %1076, %1077 : vector<2x128xf32>
    %1079 = vector.extract_strided_slice %1078 {offsets = [0, 0], sizes = [2, 32], strides = [1, 1]} : vector<2x128xf32> to vector<2x32xf32>
    %1080 = arith.negf %1079 : vector<2x32xf32>
    %1081 = math.exp %1080 : vector<2x32xf32>
    %cst_468 = arith.constant 1.000000e+00 : f32
    %1082 = vector.broadcast %cst_468 : f32 to vector<2x32xf32>
    %1083 = arith.addf %1082, %1081 : vector<2x32xf32>
    %1084 = arith.divf %1082, %1083 : vector<2x32xf32>
    %1085 = vector.extract_strided_slice %1078 {offsets = [0, 32], sizes = [2, 32], strides = [1, 1]} : vector<2x128xf32> to vector<2x32xf32>
    %1086 = arith.negf %1085 : vector<2x32xf32>
    %1087 = math.exp %1086 : vector<2x32xf32>
    %cst_469 = arith.constant 1.000000e+00 : f32
    %1088 = vector.broadcast %cst_469 : f32 to vector<2x32xf32>
    %1089 = arith.addf %1088, %1087 : vector<2x32xf32>
    %1090 = arith.divf %1088, %1089 : vector<2x32xf32>
    %1091 = vector.extract_strided_slice %1078 {offsets = [0, 64], sizes = [2, 32], strides = [1, 1]} : vector<2x128xf32> to vector<2x32xf32>
    %1092 = math.tanh %1091 : vector<2x32xf32>
    %1093 = vector.extract_strided_slice %1078 {offsets = [0, 96], sizes = [2, 32], strides = [1, 1]} : vector<2x128xf32> to vector<2x32xf32>
    %1094 = arith.negf %1093 : vector<2x32xf32>
    %1095 = math.exp %1094 : vector<2x32xf32>
    %cst_470 = arith.constant 1.000000e+00 : f32
    %1096 = vector.broadcast %cst_470 : f32 to vector<2x32xf32>
    %1097 = arith.addf %1096, %1095 : vector<2x32xf32>
    %1098 = arith.divf %1096, %1097 : vector<2x32xf32>
    %1099 = arith.mulf %1090, %1073 : vector<2x32xf32>
    %1100 = arith.mulf %1084, %1092 : vector<2x32xf32>
    %1101 = arith.addf %1099, %1100 : vector<2x32xf32>
    %1102 = math.tanh %1101 : vector<2x32xf32>
    %1103 = arith.mulf %1098, %1102 : vector<2x32xf32>
    %1104 = arith.index_cast %c0_i32_464 : i32 to index
    %c0_471 = arith.constant 0 : index
    %c0_472 = arith.constant 0 : index
    %1105 = vector.load %arg20[%1104, %c0_471, %c0_472] : memref<8x2x32xf32, #tpu.memory_space<vmem>>, vector<1x2x32xf32>
    %1106 = vector.shape_cast %1105 : vector<1x2x32xf32> to vector<2x32xf32>
    %1107 = vector.shape_cast %1103 : vector<2x32xf32> to vector<1x2x32xf32>
    tpu.vector_store %arg20[%1104, %c0_471, %c0_472], %1107 {strides = array<i32>} : memref<8x2x32xf32, #tpu.memory_space<vmem>>, vector<1x2x32xf32>,
    %c1_i32_473 = arith.constant 1 : i32
    %1108 = arith.index_cast %c1_i32_473 : i32 to index
    %c0_474 = arith.constant 0 : index
    %c0_475 = arith.constant 0 : index
    %1109 = vector.load %arg21[%1108, %c0_474, %c0_475] : memref<8x2x128xf32, #tpu.memory_space<vmem>>, vector<1x2x128xf32>
    %1110 = vector.shape_cast %1109 : vector<1x2x128xf32> to vector<2x128xf32>
    %cst_476 = arith.constant dense<0.000000e+00> : vector<2x128xf32>
    %1111 = tpu.matmul %1103, %1012, %cst_476 {dimension_numbers = #tpu.dot_dimension_numbers<[1], [0], [0], [1], [0, 0, 1, 1], [], []>} : vector<2x32xf32>, vector<32x128xf32>, vector<2x128xf32> -> vector<2x128xf32>
    %1112 = arith.addf %1110, %1111 : vector<2x128xf32>
    %1113 = vector.extract_strided_slice %1112 {offsets = [0, 0], sizes = [2, 32], strides = [1, 1]} : vector<2x128xf32> to vector<2x32xf32>
    %1114 = arith.negf %1113 : vector<2x32xf32>
    %1115 = math.exp %1114 : vector<2x32xf32>
    %cst_477 = arith.constant 1.000000e+00 : f32
    %1116 = vector.broadcast %cst_477 : f32 to vector<2x32xf32>
    %1117 = arith.addf %1116, %1115 : vector<2x32xf32>
    %1118 = arith.divf %1116, %1117 : vector<2x32xf32>
    %1119 = vector.extract_strided_slice %1112 {offsets = [0, 32], sizes = [2, 32], strides = [1, 1]} : vector<2x128xf32> to vector<2x32xf32>
    %1120 = arith.negf %1119 : vector<2x32xf32>
    %1121 = math.exp %1120 : vector<2x32xf32>
    %cst_478 = arith.constant 1.000000e+00 : f32
    %1122 = vector.broadcast %cst_478 : f32 to vector<2x32xf32>
    %1123 = arith.addf %1122, %1121 : vector<2x32xf32>
    %1124 = arith.divf %1122, %1123 : vector<2x32xf32>
    %1125 = vector.extract_strided_slice %1112 {offsets = [0, 64], sizes = [2, 32], strides = [1, 1]} : vector<2x128xf32> to vector<2x32xf32>
    %1126 = math.tanh %1125 : vector<2x32xf32>
    %1127 = vector.extract_strided_slice %1112 {offsets = [0, 96], sizes = [2, 32], strides = [1, 1]} : vector<2x128xf32> to vector<2x32xf32>
    %1128 = arith.negf %1127 : vector<2x32xf32>
    %1129 = math.exp %1128 : vector<2x32xf32>
    %cst_479 = arith.constant 1.000000e+00 : f32
    %1130 = vector.broadcast %cst_479 : f32 to vector<2x32xf32>
    %1131 = arith.addf %1130, %1129 : vector<2x32xf32>
    %1132 = arith.divf %1130, %1131 : vector<2x32xf32>
    %1133 = arith.mulf %1124, %1101 : vector<2x32xf32>
    %1134 = arith.mulf %1118, %1126 : vector<2x32xf32>
    %1135 = arith.addf %1133, %1134 : vector<2x32xf32>
    %1136 = math.tanh %1135 : vector<2x32xf32>
    %1137 = arith.mulf %1132, %1136 : vector<2x32xf32>
    %1138 = arith.index_cast %c1_i32_473 : i32 to index
    %c0_480 = arith.constant 0 : index
    %c0_481 = arith.constant 0 : index
    %1139 = vector.load %arg20[%1138, %c0_480, %c0_481] : memref<8x2x32xf32, #tpu.memory_space<vmem>>, vector<1x2x32xf32>
    %1140 = vector.shape_cast %1139 : vector<1x2x32xf32> to vector<2x32xf32>
    %1141 = vector.shape_cast %1137 : vector<2x32xf32> to vector<1x2x32xf32>
    tpu.vector_store %arg20[%1138, %c0_480, %c0_481], %1141 {strides = array<i32>} : memref<8x2x32xf32, #tpu.memory_space<vmem>>, vector<1x2x32xf32>,
    %c2_i32_482 = arith.constant 2 : i32
    %1142 = arith.index_cast %c2_i32_482 : i32 to index
    %c0_483 = arith.constant 0 : index
    %c0_484 = arith.constant 0 : index
    %1143 = vector.load %arg21[%1142, %c0_483, %c0_484] : memref<8x2x128xf32, #tpu.memory_space<vmem>>, vector<1x2x128xf32>
    %1144 = vector.shape_cast %1143 : vector<1x2x128xf32> to vector<2x128xf32>
    %cst_485 = arith.constant dense<0.000000e+00> : vector<2x128xf32>
    %1145 = tpu.matmul %1137, %1012, %cst_485 {dimension_numbers = #tpu.dot_dimension_numbers<[1], [0], [0], [1], [0, 0, 1, 1], [], []>} : vector<2x32xf32>, vector<32x128xf32>, vector<2x128xf32> -> vector<2x128xf32>
    %1146 = arith.addf %1144, %1145 : vector<2x128xf32>
    %1147 = vector.extract_strided_slice %1146 {offsets = [0, 0], sizes = [2, 32], strides = [1, 1]} : vector<2x128xf32> to vector<2x32xf32>
    %1148 = arith.negf %1147 : vector<2x32xf32>
    %1149 = math.exp %1148 : vector<2x32xf32>
    %cst_486 = arith.constant 1.000000e+00 : f32
    %1150 = vector.broadcast %cst_486 : f32 to vector<2x32xf32>
    %1151 = arith.addf %1150, %1149 : vector<2x32xf32>
    %1152 = arith.divf %1150, %1151 : vector<2x32xf32>
    %1153 = vector.extract_strided_slice %1146 {offsets = [0, 32], sizes = [2, 32], strides = [1, 1]} : vector<2x128xf32> to vector<2x32xf32>
    %1154 = arith.negf %1153 : vector<2x32xf32>
    %1155 = math.exp %1154 : vector<2x32xf32>
    %cst_487 = arith.constant 1.000000e+00 : f32
    %1156 = vector.broadcast %cst_487 : f32 to vector<2x32xf32>
    %1157 = arith.addf %1156, %1155 : vector<2x32xf32>
    %1158 = arith.divf %1156, %1157 : vector<2x32xf32>
    %1159 = vector.extract_strided_slice %1146 {offsets = [0, 64], sizes = [2, 32], strides = [1, 1]} : vector<2x128xf32> to vector<2x32xf32>
    %1160 = math.tanh %1159 : vector<2x32xf32>
    %1161 = vector.extract_strided_slice %1146 {offsets = [0, 96], sizes = [2, 32], strides = [1, 1]} : vector<2x128xf32> to vector<2x32xf32>
    %1162 = arith.negf %1161 : vector<2x32xf32>
    %1163 = math.exp %1162 : vector<2x32xf32>
    %cst_488 = arith.constant 1.000000e+00 : f32
    %1164 = vector.broadcast %cst_488 : f32 to vector<2x32xf32>
    %1165 = arith.addf %1164, %1163 : vector<2x32xf32>
    %1166 = arith.divf %1164, %1165 : vector<2x32xf32>
    %1167 = arith.mulf %1158, %1135 : vector<2x32xf32>
    %1168 = arith.mulf %1152, %1160 : vector<2x32xf32>
    %1169 = arith.addf %1167, %1168 : vector<2x32xf32>
    %1170 = math.tanh %1169 : vector<2x32xf32>
    %1171 = arith.mulf %1166, %1170 : vector<2x32xf32>
    %1172 = arith.index_cast %c2_i32_482 : i32 to index
    %c0_489 = arith.constant 0 : index
    %c0_490 = arith.constant 0 : index
    %1173 = vector.load %arg20[%1172, %c0_489, %c0_490] : memref<8x2x32xf32, #tpu.memory_space<vmem>>, vector<1x2x32xf32>
    %1174 = vector.shape_cast %1173 : vector<1x2x32xf32> to vector<2x32xf32>
    %1175 = vector.shape_cast %1171 : vector<2x32xf32> to vector<1x2x32xf32>
    tpu.vector_store %arg20[%1172, %c0_489, %c0_490], %1175 {strides = array<i32>} : memref<8x2x32xf32, #tpu.memory_space<vmem>>, vector<1x2x32xf32>,
    %c3_i32_491 = arith.constant 3 : i32
    %1176 = arith.index_cast %c3_i32_491 : i32 to index
    %c0_492 = arith.constant 0 : index
    %c0_493 = arith.constant 0 : index
    %1177 = vector.load %arg21[%1176, %c0_492, %c0_493] : memref<8x2x128xf32, #tpu.memory_space<vmem>>, vector<1x2x128xf32>
    %1178 = vector.shape_cast %1177 : vector<1x2x128xf32> to vector<2x128xf32>
    %cst_494 = arith.constant dense<0.000000e+00> : vector<2x128xf32>
    %1179 = tpu.matmul %1171, %1012, %cst_494 {dimension_numbers = #tpu.dot_dimension_numbers<[1], [0], [0], [1], [0, 0, 1, 1], [], []>} : vector<2x32xf32>, vector<32x128xf32>, vector<2x128xf32> -> vector<2x128xf32>
    %1180 = arith.addf %1178, %1179 : vector<2x128xf32>
    %1181 = vector.extract_strided_slice %1180 {offsets = [0, 0], sizes = [2, 32], strides = [1, 1]} : vector<2x128xf32> to vector<2x32xf32>
    %1182 = arith.negf %1181 : vector<2x32xf32>
    %1183 = math.exp %1182 : vector<2x32xf32>
    %cst_495 = arith.constant 1.000000e+00 : f32
    %1184 = vector.broadcast %cst_495 : f32 to vector<2x32xf32>
    %1185 = arith.addf %1184, %1183 : vector<2x32xf32>
    %1186 = arith.divf %1184, %1185 : vector<2x32xf32>
    %1187 = vector.extract_strided_slice %1180 {offsets = [0, 32], sizes = [2, 32], strides = [1, 1]} : vector<2x128xf32> to vector<2x32xf32>
    %1188 = arith.negf %1187 : vector<2x32xf32>
    %1189 = math.exp %1188 : vector<2x32xf32>
    %cst_496 = arith.constant 1.000000e+00 : f32
    %1190 = vector.broadcast %cst_496 : f32 to vector<2x32xf32>
    %1191 = arith.addf %1190, %1189 : vector<2x32xf32>
    %1192 = arith.divf %1190, %1191 : vector<2x32xf32>
    %1193 = vector.extract_strided_slice %1180 {offsets = [0, 64], sizes = [2, 32], strides = [1, 1]} : vector<2x128xf32> to vector<2x32xf32>
    %1194 = math.tanh %1193 : vector<2x32xf32>
    %1195 = vector.extract_strided_slice %1180 {offsets = [0, 96], sizes = [2, 32], strides = [1, 1]} : vector<2x128xf32> to vector<2x32xf32>
    %1196 = arith.negf %1195 : vector<2x32xf32>
    %1197 = math.exp %1196 : vector<2x32xf32>
    %cst_497 = arith.constant 1.000000e+00 : f32
    %1198 = vector.broadcast %cst_497 : f32 to vector<2x32xf32>
    %1199 = arith.addf %1198, %1197 : vector<2x32xf32>
    %1200 = arith.divf %1198, %1199 : vector<2x32xf32>
    %1201 = arith.mulf %1192, %1169 : vector<2x32xf32>
    %1202 = arith.mulf %1186, %1194 : vector<2x32xf32>
    %1203 = arith.addf %1201, %1202 : vector<2x32xf32>
    %1204 = math.tanh %1203 : vector<2x32xf32>
    %1205 = arith.mulf %1200, %1204 : vector<2x32xf32>
    %1206 = arith.index_cast %c3_i32_491 : i32 to index
    %c0_498 = arith.constant 0 : index
    %c0_499 = arith.constant 0 : index
    %1207 = vector.load %arg20[%1206, %c0_498, %c0_499] : memref<8x2x32xf32, #tpu.memory_space<vmem>>, vector<1x2x32xf32>
    %1208 = vector.shape_cast %1207 : vector<1x2x32xf32> to vector<2x32xf32>
    %1209 = vector.shape_cast %1205 : vector<2x32xf32> to vector<1x2x32xf32>
    tpu.vector_store %arg20[%1206, %c0_498, %c0_499], %1209 {strides = array<i32>} : memref<8x2x32xf32, #tpu.memory_space<vmem>>, vector<1x2x32xf32>,
    %c4_i32_500 = arith.constant 4 : i32
    %1210 = arith.index_cast %c4_i32_500 : i32 to index
    %c0_501 = arith.constant 0 : index
    %c0_502 = arith.constant 0 : index
    %1211 = vector.load %arg21[%1210, %c0_501, %c0_502] : memref<8x2x128xf32, #tpu.memory_space<vmem>>, vector<1x2x128xf32>
    %1212 = vector.shape_cast %1211 : vector<1x2x128xf32> to vector<2x128xf32>
    %cst_503 = arith.constant dense<0.000000e+00> : vector<2x128xf32>
    %1213 = tpu.matmul %1205, %1012, %cst_503 {dimension_numbers = #tpu.dot_dimension_numbers<[1], [0], [0], [1], [0, 0, 1, 1], [], []>} : vector<2x32xf32>, vector<32x128xf32>, vector<2x128xf32> -> vector<2x128xf32>
    %1214 = arith.addf %1212, %1213 : vector<2x128xf32>
    %1215 = vector.extract_strided_slice %1214 {offsets = [0, 0], sizes = [2, 32], strides = [1, 1]} : vector<2x128xf32> to vector<2x32xf32>
    %1216 = arith.negf %1215 : vector<2x32xf32>
    %1217 = math.exp %1216 : vector<2x32xf32>
    %cst_504 = arith.constant 1.000000e+00 : f32
    %1218 = vector.broadcast %cst_504 : f32 to vector<2x32xf32>
    %1219 = arith.addf %1218, %1217 : vector<2x32xf32>
    %1220 = arith.divf %1218, %1219 : vector<2x32xf32>
    %1221 = vector.extract_strided_slice %1214 {offsets = [0, 32], sizes = [2, 32], strides = [1, 1]} : vector<2x128xf32> to vector<2x32xf32>
    %1222 = arith.negf %1221 : vector<2x32xf32>
    %1223 = math.exp %1222 : vector<2x32xf32>
    %cst_505 = arith.constant 1.000000e+00 : f32
    %1224 = vector.broadcast %cst_505 : f32 to vector<2x32xf32>
    %1225 = arith.addf %1224, %1223 : vector<2x32xf32>
    %1226 = arith.divf %1224, %1225 : vector<2x32xf32>
    %1227 = vector.extract_strided_slice %1214 {offsets = [0, 64], sizes = [2, 32], strides = [1, 1]} : vector<2x128xf32> to vector<2x32xf32>
    %1228 = math.tanh %1227 : vector<2x32xf32>
    %1229 = vector.extract_strided_slice %1214 {offsets = [0, 96], sizes = [2, 32], strides = [1, 1]} : vector<2x128xf32> to vector<2x32xf32>
    %1230 = arith.negf %1229 : vector<2x32xf32>
    %1231 = math.exp %1230 : vector<2x32xf32>
    %cst_506 = arith.constant 1.000000e+00 : f32
    %1232 = vector.broadcast %cst_506 : f32 to vector<2x32xf32>
    %1233 = arith.addf %1232, %1231 : vector<2x32xf32>
    %1234 = arith.divf %1232, %1233 : vector<2x32xf32>
    %1235 = arith.mulf %1226, %1203 : vector<2x32xf32>
    %1236 = arith.mulf %1220, %1228 : vector<2x32xf32>
    %1237 = arith.addf %1235, %1236 : vector<2x32xf32>
    %1238 = math.tanh %1237 : vector<2x32xf32>
    %1239 = arith.mulf %1234, %1238 : vector<2x32xf32>
    %1240 = arith.index_cast %c4_i32_500 : i32 to index
    %c0_507 = arith.constant 0 : index
    %c0_508 = arith.constant 0 : index
    %1241 = vector.load %arg20[%1240, %c0_507, %c0_508] : memref<8x2x32xf32, #tpu.memory_space<vmem>>, vector<1x2x32xf32>
    %1242 = vector.shape_cast %1241 : vector<1x2x32xf32> to vector<2x32xf32>
    %1243 = vector.shape_cast %1239 : vector<2x32xf32> to vector<1x2x32xf32>
    tpu.vector_store %arg20[%1240, %c0_507, %c0_508], %1243 {strides = array<i32>} : memref<8x2x32xf32, #tpu.memory_space<vmem>>, vector<1x2x32xf32>,
    %c5_i32_509 = arith.constant 5 : i32
    %1244 = arith.index_cast %c5_i32_509 : i32 to index
    %c0_510 = arith.constant 0 : index
    %c0_511 = arith.constant 0 : index
    %1245 = vector.load %arg21[%1244, %c0_510, %c0_511] : memref<8x2x128xf32, #tpu.memory_space<vmem>>, vector<1x2x128xf32>
    %1246 = vector.shape_cast %1245 : vector<1x2x128xf32> to vector<2x128xf32>
    %cst_512 = arith.constant dense<0.000000e+00> : vector<2x128xf32>
    %1247 = tpu.matmul %1239, %1012, %cst_512 {dimension_numbers = #tpu.dot_dimension_numbers<[1], [0], [0], [1], [0, 0, 1, 1], [], []>} : vector<2x32xf32>, vector<32x128xf32>, vector<2x128xf32> -> vector<2x128xf32>
    %1248 = arith.addf %1246, %1247 : vector<2x128xf32>
    %1249 = vector.extract_strided_slice %1248 {offsets = [0, 0], sizes = [2, 32], strides = [1, 1]} : vector<2x128xf32> to vector<2x32xf32>
    %1250 = arith.negf %1249 : vector<2x32xf32>
    %1251 = math.exp %1250 : vector<2x32xf32>
    %cst_513 = arith.constant 1.000000e+00 : f32
    %1252 = vector.broadcast %cst_513 : f32 to vector<2x32xf32>
    %1253 = arith.addf %1252, %1251 : vector<2x32xf32>
    %1254 = arith.divf %1252, %1253 : vector<2x32xf32>
    %1255 = vector.extract_strided_slice %1248 {offsets = [0, 32], sizes = [2, 32], strides = [1, 1]} : vector<2x128xf32> to vector<2x32xf32>
    %1256 = arith.negf %1255 : vector<2x32xf32>
    %1257 = math.exp %1256 : vector<2x32xf32>
    %cst_514 = arith.constant 1.000000e+00 : f32
    %1258 = vector.broadcast %cst_514 : f32 to vector<2x32xf32>
    %1259 = arith.addf %1258, %1257 : vector<2x32xf32>
    %1260 = arith.divf %1258, %1259 : vector<2x32xf32>
    %1261 = vector.extract_strided_slice %1248 {offsets = [0, 64], sizes = [2, 32], strides = [1, 1]} : vector<2x128xf32> to vector<2x32xf32>
    %1262 = math.tanh %1261 : vector<2x32xf32>
    %1263 = vector.extract_strided_slice %1248 {offsets = [0, 96], sizes = [2, 32], strides = [1, 1]} : vector<2x128xf32> to vector<2x32xf32>
    %1264 = arith.negf %1263 : vector<2x32xf32>
    %1265 = math.exp %1264 : vector<2x32xf32>
    %cst_515 = arith.constant 1.000000e+00 : f32
    %1266 = vector.broadcast %cst_515 : f32 to vector<2x32xf32>
    %1267 = arith.addf %1266, %1265 : vector<2x32xf32>
    %1268 = arith.divf %1266, %1267 : vector<2x32xf32>
    %1269 = arith.mulf %1260, %1237 : vector<2x32xf32>
    %1270 = arith.mulf %1254, %1262 : vector<2x32xf32>
    %1271 = arith.addf %1269, %1270 : vector<2x32xf32>
    %1272 = math.tanh %1271 : vector<2x32xf32>
    %1273 = arith.mulf %1268, %1272 : vector<2x32xf32>
    %1274 = arith.index_cast %c5_i32_509 : i32 to index
    %c0_516 = arith.constant 0 : index
    %c0_517 = arith.constant 0 : index
    %1275 = vector.load %arg20[%1274, %c0_516, %c0_517] : memref<8x2x32xf32, #tpu.memory_space<vmem>>, vector<1x2x32xf32>
    %1276 = vector.shape_cast %1275 : vector<1x2x32xf32> to vector<2x32xf32>
    %1277 = vector.shape_cast %1273 : vector<2x32xf32> to vector<1x2x32xf32>
    tpu.vector_store %arg20[%1274, %c0_516, %c0_517], %1277 {strides = array<i32>} : memref<8x2x32xf32, #tpu.memory_space<vmem>>, vector<1x2x32xf32>,
    %c6_i32_518 = arith.constant 6 : i32
    %1278 = arith.index_cast %c6_i32_518 : i32 to index
    %c0_519 = arith.constant 0 : index
    %c0_520 = arith.constant 0 : index
    %1279 = vector.load %arg21[%1278, %c0_519, %c0_520] : memref<8x2x128xf32, #tpu.memory_space<vmem>>, vector<1x2x128xf32>
    %1280 = vector.shape_cast %1279 : vector<1x2x128xf32> to vector<2x128xf32>
    %cst_521 = arith.constant dense<0.000000e+00> : vector<2x128xf32>
    %1281 = tpu.matmul %1273, %1012, %cst_521 {dimension_numbers = #tpu.dot_dimension_numbers<[1], [0], [0], [1], [0, 0, 1, 1], [], []>} : vector<2x32xf32>, vector<32x128xf32>, vector<2x128xf32> -> vector<2x128xf32>
    %1282 = arith.addf %1280, %1281 : vector<2x128xf32>
    %1283 = vector.extract_strided_slice %1282 {offsets = [0, 0], sizes = [2, 32], strides = [1, 1]} : vector<2x128xf32> to vector<2x32xf32>
    %1284 = arith.negf %1283 : vector<2x32xf32>
    %1285 = math.exp %1284 : vector<2x32xf32>
    %cst_522 = arith.constant 1.000000e+00 : f32
    %1286 = vector.broadcast %cst_522 : f32 to vector<2x32xf32>
    %1287 = arith.addf %1286, %1285 : vector<2x32xf32>
    %1288 = arith.divf %1286, %1287 : vector<2x32xf32>
    %1289 = vector.extract_strided_slice %1282 {offsets = [0, 32], sizes = [2, 32], strides = [1, 1]} : vector<2x128xf32> to vector<2x32xf32>
    %1290 = arith.negf %1289 : vector<2x32xf32>
    %1291 = math.exp %1290 : vector<2x32xf32>
    %cst_523 = arith.constant 1.000000e+00 : f32
    %1292 = vector.broadcast %cst_523 : f32 to vector<2x32xf32>
    %1293 = arith.addf %1292, %1291 : vector<2x32xf32>
    %1294 = arith.divf %1292, %1293 : vector<2x32xf32>
    %1295 = vector.extract_strided_slice %1282 {offsets = [0, 64], sizes = [2, 32], strides = [1, 1]} : vector<2x128xf32> to vector<2x32xf32>
    %1296 = math.tanh %1295 : vector<2x32xf32>
    %1297 = vector.extract_strided_slice %1282 {offsets = [0, 96], sizes = [2, 32], strides = [1, 1]} : vector<2x128xf32> to vector<2x32xf32>
    %1298 = arith.negf %1297 : vector<2x32xf32>
    %1299 = math.exp %1298 : vector<2x32xf32>
    %cst_524 = arith.constant 1.000000e+00 : f32
    %1300 = vector.broadcast %cst_524 : f32 to vector<2x32xf32>
    %1301 = arith.addf %1300, %1299 : vector<2x32xf32>
    %1302 = arith.divf %1300, %1301 : vector<2x32xf32>
    %1303 = arith.mulf %1294, %1271 : vector<2x32xf32>
    %1304 = arith.mulf %1288, %1296 : vector<2x32xf32>
    %1305 = arith.addf %1303, %1304 : vector<2x32xf32>
    %1306 = math.tanh %1305 : vector<2x32xf32>
    %1307 = arith.mulf %1302, %1306 : vector<2x32xf32>
    %1308 = arith.index_cast %c6_i32_518 : i32 to index
    %c0_525 = arith.constant 0 : index
    %c0_526 = arith.constant 0 : index
    %1309 = vector.load %arg20[%1308, %c0_525, %c0_526] : memref<8x2x32xf32, #tpu.memory_space<vmem>>, vector<1x2x32xf32>
    %1310 = vector.shape_cast %1309 : vector<1x2x32xf32> to vector<2x32xf32>
    %1311 = vector.shape_cast %1307 : vector<2x32xf32> to vector<1x2x32xf32>
    tpu.vector_store %arg20[%1308, %c0_525, %c0_526], %1311 {strides = array<i32>} : memref<8x2x32xf32, #tpu.memory_space<vmem>>, vector<1x2x32xf32>,
    %c7_i32_527 = arith.constant 7 : i32
    %1312 = arith.index_cast %c7_i32_527 : i32 to index
    %c0_528 = arith.constant 0 : index
    %c0_529 = arith.constant 0 : index
    %1313 = vector.load %arg21[%1312, %c0_528, %c0_529] : memref<8x2x128xf32, #tpu.memory_space<vmem>>, vector<1x2x128xf32>
    %1314 = vector.shape_cast %1313 : vector<1x2x128xf32> to vector<2x128xf32>
    %cst_530 = arith.constant dense<0.000000e+00> : vector<2x128xf32>
    %1315 = tpu.matmul %1307, %1012, %cst_530 {dimension_numbers = #tpu.dot_dimension_numbers<[1], [0], [0], [1], [0, 0, 1, 1], [], []>} : vector<2x32xf32>, vector<32x128xf32>, vector<2x128xf32> -> vector<2x128xf32>
    %1316 = arith.addf %1314, %1315 : vector<2x128xf32>
    %1317 = vector.extract_strided_slice %1316 {offsets = [0, 0], sizes = [2, 32], strides = [1, 1]} : vector<2x128xf32> to vector<2x32xf32>
    %1318 = arith.negf %1317 : vector<2x32xf32>
    %1319 = math.exp %1318 : vector<2x32xf32>
    %cst_531 = arith.constant 1.000000e+00 : f32
    %1320 = vector.broadcast %cst_531 : f32 to vector<2x32xf32>
    %1321 = arith.addf %1320, %1319 : vector<2x32xf32>
    %1322 = arith.divf %1320, %1321 : vector<2x32xf32>
    %1323 = vector.extract_strided_slice %1316 {offsets = [0, 32], sizes = [2, 32], strides = [1, 1]} : vector<2x128xf32> to vector<2x32xf32>
    %1324 = arith.negf %1323 : vector<2x32xf32>
    %1325 = math.exp %1324 : vector<2x32xf32>
    %cst_532 = arith.constant 1.000000e+00 : f32
    %1326 = vector.broadcast %cst_532 : f32 to vector<2x32xf32>
    %1327 = arith.addf %1326, %1325 : vector<2x32xf32>
    %1328 = arith.divf %1326, %1327 : vector<2x32xf32>
    %1329 = vector.extract_strided_slice %1316 {offsets = [0, 64], sizes = [2, 32], strides = [1, 1]} : vector<2x128xf32> to vector<2x32xf32>
    %1330 = math.tanh %1329 : vector<2x32xf32>
    %1331 = vector.extract_strided_slice %1316 {offsets = [0, 96], sizes = [2, 32], strides = [1, 1]} : vector<2x128xf32> to vector<2x32xf32>
    %1332 = arith.negf %1331 : vector<2x32xf32>
    %1333 = math.exp %1332 : vector<2x32xf32>
    %cst_533 = arith.constant 1.000000e+00 : f32
    %1334 = vector.broadcast %cst_533 : f32 to vector<2x32xf32>
    %1335 = arith.addf %1334, %1333 : vector<2x32xf32>
    %1336 = arith.divf %1334, %1335 : vector<2x32xf32>
    %1337 = arith.mulf %1328, %1305 : vector<2x32xf32>
    %1338 = arith.mulf %1322, %1330 : vector<2x32xf32>
    %1339 = arith.addf %1337, %1338 : vector<2x32xf32>
    %1340 = math.tanh %1339 : vector<2x32xf32>
    %1341 = arith.mulf %1336, %1340 : vector<2x32xf32>
    %1342 = arith.index_cast %c7_i32_527 : i32 to index
    %c0_534 = arith.constant 0 : index
    %c0_535 = arith.constant 0 : index
    %1343 = vector.load %arg20[%1342, %c0_534, %c0_535] : memref<8x2x32xf32, #tpu.memory_space<vmem>>, vector<1x2x32xf32>
    %1344 = vector.shape_cast %1343 : vector<1x2x32xf32> to vector<2x32xf32>
    %1345 = vector.shape_cast %1341 : vector<2x32xf32> to vector<1x2x32xf32>
    tpu.vector_store %arg20[%1342, %c0_534, %c0_535], %1345 {strides = array<i32>} : memref<8x2x32xf32, #tpu.memory_space<vmem>>, vector<1x2x32xf32>,
    %c8_i32_536 = arith.constant 8 : i32
    %c3_537 = arith.constant 3 : index
    %c0_538 = arith.constant 0 : index
    %c0_539 = arith.constant 0 : index
    %1346 = vector.load %arg7[%c3_537, %c0_538, %c0_539] : memref<4x32x128xf32, #tpu.memory_space<vmem>>, vector<1x32x128xf32>
    %1347 = vector.shape_cast %1346 : vector<1x32x128xf32> to vector<32x128xf32>
    %c3_540 = arith.constant 3 : index
    %c0_541 = arith.constant 0 : index
    %c0_542 = arith.constant 0 : index
    %1348 = vector.load %arg8[%c3_540, %c0_541, %c0_542] : memref<4x32x128xf32, #tpu.memory_space<vmem>>, vector<1x32x128xf32>
    %1349 = vector.shape_cast %1348 : vector<1x32x128xf32> to vector<32x128xf32>
    %c3_543 = arith.constant 3 : index
    %c0_544 = arith.constant 0 : index
    %c0_545 = arith.constant 0 : index
    %1350 = vector.load %arg9[%c3_543, %c0_544, %c0_545] : memref<4x1x128xf32, #tpu.memory_space<vmem>>, vector<1x1x128xf32>
    %1351 = vector.shape_cast %1350 : vector<1x1x128xf32> to vector<1x128xf32>
    %1352 = vector.shape_cast %1351 : vector<1x128xf32> to vector<1x128xf32>
    %1353 = vector.broadcast %1352 : vector<1x128xf32> to vector<2x128xf32>
    %c0_546 = arith.constant 0 : index
    %c0_547 = arith.constant 0 : index
    %c0_548 = arith.constant 0 : index
    %1354 = vector.load %arg20[%c0_546, %c0_547, %c0_548] : memref<8x2x32xf32, #tpu.memory_space<vmem>>, vector<1x2x32xf32>
    %1355 = vector.shape_cast %1354 : vector<1x2x32xf32> to vector<2x32xf32>
    %cst_549 = arith.constant dense<0.000000e+00> : vector<2x128xf32>
    %1356 = tpu.matmul %1355, %1347, %cst_549 {dimension_numbers = #tpu.dot_dimension_numbers<[1], [0], [0], [1], [0, 0, 1, 1], [], []>} : vector<2x32xf32>, vector<32x128xf32>, vector<2x128xf32> -> vector<2x128xf32>
    %1357 = arith.addf %1356, %1353 : vector<2x128xf32>
    %c0_550 = arith.constant 0 : index
    %c0_551 = arith.constant 0 : index
    %c0_552 = arith.constant 0 : index
    %1358 = vector.load %arg21[%c0_550, %c0_551, %c0_552] : memref<8x2x128xf32, #tpu.memory_space<vmem>>, vector<1x2x128xf32>
    %1359 = vector.shape_cast %1358 : vector<1x2x128xf32> to vector<2x128xf32>
    %1360 = vector.shape_cast %1357 : vector<2x128xf32> to vector<1x2x128xf32>
    tpu.vector_store %arg21[%c0_550, %c0_551, %c0_552], %1360 {strides = array<i32>} : memref<8x2x128xf32, #tpu.memory_space<vmem>>, vector<1x2x128xf32>,
    %c1_553 = arith.constant 1 : index
    %c0_554 = arith.constant 0 : index
    %c0_555 = arith.constant 0 : index
    %1361 = vector.load %arg20[%c1_553, %c0_554, %c0_555] : memref<8x2x32xf32, #tpu.memory_space<vmem>>, vector<1x2x32xf32>
    %1362 = vector.shape_cast %1361 : vector<1x2x32xf32> to vector<2x32xf32>
    %cst_556 = arith.constant dense<0.000000e+00> : vector<2x128xf32>
    %1363 = tpu.matmul %1362, %1347, %cst_556 {dimension_numbers = #tpu.dot_dimension_numbers<[1], [0], [0], [1], [0, 0, 1, 1], [], []>} : vector<2x32xf32>, vector<32x128xf32>, vector<2x128xf32> -> vector<2x128xf32>
    %1364 = arith.addf %1363, %1353 : vector<2x128xf32>
    %c1_557 = arith.constant 1 : index
    %c0_558 = arith.constant 0 : index
    %c0_559 = arith.constant 0 : index
    %1365 = vector.load %arg21[%c1_557, %c0_558, %c0_559] : memref<8x2x128xf32, #tpu.memory_space<vmem>>, vector<1x2x128xf32>
    %1366 = vector.shape_cast %1365 : vector<1x2x128xf32> to vector<2x128xf32>
    %1367 = vector.shape_cast %1364 : vector<2x128xf32> to vector<1x2x128xf32>
    tpu.vector_store %arg21[%c1_557, %c0_558, %c0_559], %1367 {strides = array<i32>} : memref<8x2x128xf32, #tpu.memory_space<vmem>>, vector<1x2x128xf32>,
    %c2_560 = arith.constant 2 : index
    %c0_561 = arith.constant 0 : index
    %c0_562 = arith.constant 0 : index
    %1368 = vector.load %arg20[%c2_560, %c0_561, %c0_562] : memref<8x2x32xf32, #tpu.memory_space<vmem>>, vector<1x2x32xf32>
    %1369 = vector.shape_cast %1368 : vector<1x2x32xf32> to vector<2x32xf32>
    %cst_563 = arith.constant dense<0.000000e+00> : vector<2x128xf32>
    %1370 = tpu.matmul %1369, %1347, %cst_563 {dimension_numbers = #tpu.dot_dimension_numbers<[1], [0], [0], [1], [0, 0, 1, 1], [], []>} : vector<2x32xf32>, vector<32x128xf32>, vector<2x128xf32> -> vector<2x128xf32>
    %1371 = arith.addf %1370, %1353 : vector<2x128xf32>
    %c2_564 = arith.constant 2 : index
    %c0_565 = arith.constant 0 : index
    %c0_566 = arith.constant 0 : index
    %1372 = vector.load %arg21[%c2_564, %c0_565, %c0_566] : memref<8x2x128xf32, #tpu.memory_space<vmem>>, vector<1x2x128xf32>
    %1373 = vector.shape_cast %1372 : vector<1x2x128xf32> to vector<2x128xf32>
    %1374 = vector.shape_cast %1371 : vector<2x128xf32> to vector<1x2x128xf32>
    tpu.vector_store %arg21[%c2_564, %c0_565, %c0_566], %1374 {strides = array<i32>} : memref<8x2x128xf32, #tpu.memory_space<vmem>>, vector<1x2x128xf32>,
    %c3_567 = arith.constant 3 : index
    %c0_568 = arith.constant 0 : index
    %c0_569 = arith.constant 0 : index
    %1375 = vector.load %arg20[%c3_567, %c0_568, %c0_569] : memref<8x2x32xf32, #tpu.memory_space<vmem>>, vector<1x2x32xf32>
    %1376 = vector.shape_cast %1375 : vector<1x2x32xf32> to vector<2x32xf32>
    %cst_570 = arith.constant dense<0.000000e+00> : vector<2x128xf32>
    %1377 = tpu.matmul %1376, %1347, %cst_570 {dimension_numbers = #tpu.dot_dimension_numbers<[1], [0], [0], [1], [0, 0, 1, 1], [], []>} : vector<2x32xf32>, vector<32x128xf32>, vector<2x128xf32> -> vector<2x128xf32>
    %1378 = arith.addf %1377, %1353 : vector<2x128xf32>
    %c3_571 = arith.constant 3 : index
    %c0_572 = arith.constant 0 : index
    %c0_573 = arith.constant 0 : index
    %1379 = vector.load %arg21[%c3_571, %c0_572, %c0_573] : memref<8x2x128xf32, #tpu.memory_space<vmem>>, vector<1x2x128xf32>
    %1380 = vector.shape_cast %1379 : vector<1x2x128xf32> to vector<2x128xf32>
    %1381 = vector.shape_cast %1378 : vector<2x128xf32> to vector<1x2x128xf32>
    tpu.vector_store %arg21[%c3_571, %c0_572, %c0_573], %1381 {strides = array<i32>} : memref<8x2x128xf32, #tpu.memory_space<vmem>>, vector<1x2x128xf32>,
    %c4_574 = arith.constant 4 : index
    %c0_575 = arith.constant 0 : index
    %c0_576 = arith.constant 0 : index
    %1382 = vector.load %arg20[%c4_574, %c0_575, %c0_576] : memref<8x2x32xf32, #tpu.memory_space<vmem>>, vector<1x2x32xf32>
    %1383 = vector.shape_cast %1382 : vector<1x2x32xf32> to vector<2x32xf32>
    %cst_577 = arith.constant dense<0.000000e+00> : vector<2x128xf32>
    %1384 = tpu.matmul %1383, %1347, %cst_577 {dimension_numbers = #tpu.dot_dimension_numbers<[1], [0], [0], [1], [0, 0, 1, 1], [], []>} : vector<2x32xf32>, vector<32x128xf32>, vector<2x128xf32> -> vector<2x128xf32>
    %1385 = arith.addf %1384, %1353 : vector<2x128xf32>
    %c4_578 = arith.constant 4 : index
    %c0_579 = arith.constant 0 : index
    %c0_580 = arith.constant 0 : index
    %1386 = vector.load %arg21[%c4_578, %c0_579, %c0_580] : memref<8x2x128xf32, #tpu.memory_space<vmem>>, vector<1x2x128xf32>
    %1387 = vector.shape_cast %1386 : vector<1x2x128xf32> to vector<2x128xf32>
    %1388 = vector.shape_cast %1385 : vector<2x128xf32> to vector<1x2x128xf32>
    tpu.vector_store %arg21[%c4_578, %c0_579, %c0_580], %1388 {strides = array<i32>} : memref<8x2x128xf32, #tpu.memory_space<vmem>>, vector<1x2x128xf32>,
    %c5_581 = arith.constant 5 : index
    %c0_582 = arith.constant 0 : index
    %c0_583 = arith.constant 0 : index
    %1389 = vector.load %arg20[%c5_581, %c0_582, %c0_583] : memref<8x2x32xf32, #tpu.memory_space<vmem>>, vector<1x2x32xf32>
    %1390 = vector.shape_cast %1389 : vector<1x2x32xf32> to vector<2x32xf32>
    %cst_584 = arith.constant dense<0.000000e+00> : vector<2x128xf32>
    %1391 = tpu.matmul %1390, %1347, %cst_584 {dimension_numbers = #tpu.dot_dimension_numbers<[1], [0], [0], [1], [0, 0, 1, 1], [], []>} : vector<2x32xf32>, vector<32x128xf32>, vector<2x128xf32> -> vector<2x128xf32>
    %1392 = arith.addf %1391, %1353 : vector<2x128xf32>
    %c5_585 = arith.constant 5 : index
    %c0_586 = arith.constant 0 : index
    %c0_587 = arith.constant 0 : index
    %1393 = vector.load %arg21[%c5_585, %c0_586, %c0_587] : memref<8x2x128xf32, #tpu.memory_space<vmem>>, vector<1x2x128xf32>
    %1394 = vector.shape_cast %1393 : vector<1x2x128xf32> to vector<2x128xf32>
    %1395 = vector.shape_cast %1392 : vector<2x128xf32> to vector<1x2x128xf32>
    tpu.vector_store %arg21[%c5_585, %c0_586, %c0_587], %1395 {strides = array<i32>} : memref<8x2x128xf32, #tpu.memory_space<vmem>>, vector<1x2x128xf32>,
    %c6_588 = arith.constant 6 : index
    %c0_589 = arith.constant 0 : index
    %c0_590 = arith.constant 0 : index
    %1396 = vector.load %arg20[%c6_588, %c0_589, %c0_590] : memref<8x2x32xf32, #tpu.memory_space<vmem>>, vector<1x2x32xf32>
    %1397 = vector.shape_cast %1396 : vector<1x2x32xf32> to vector<2x32xf32>
    %cst_591 = arith.constant dense<0.000000e+00> : vector<2x128xf32>
    %1398 = tpu.matmul %1397, %1347, %cst_591 {dimension_numbers = #tpu.dot_dimension_numbers<[1], [0], [0], [1], [0, 0, 1, 1], [], []>} : vector<2x32xf32>, vector<32x128xf32>, vector<2x128xf32> -> vector<2x128xf32>
    %1399 = arith.addf %1398, %1353 : vector<2x128xf32>
    %c6_592 = arith.constant 6 : index
    %c0_593 = arith.constant 0 : index
    %c0_594 = arith.constant 0 : index
    %1400 = vector.load %arg21[%c6_592, %c0_593, %c0_594] : memref<8x2x128xf32, #tpu.memory_space<vmem>>, vector<1x2x128xf32>
    %1401 = vector.shape_cast %1400 : vector<1x2x128xf32> to vector<2x128xf32>
    %1402 = vector.shape_cast %1399 : vector<2x128xf32> to vector<1x2x128xf32>
    tpu.vector_store %arg21[%c6_592, %c0_593, %c0_594], %1402 {strides = array<i32>} : memref<8x2x128xf32, #tpu.memory_space<vmem>>, vector<1x2x128xf32>,
    %c7_595 = arith.constant 7 : index
    %c0_596 = arith.constant 0 : index
    %c0_597 = arith.constant 0 : index
    %1403 = vector.load %arg20[%c7_595, %c0_596, %c0_597] : memref<8x2x32xf32, #tpu.memory_space<vmem>>, vector<1x2x32xf32>
    %1404 = vector.shape_cast %1403 : vector<1x2x32xf32> to vector<2x32xf32>
    %cst_598 = arith.constant dense<0.000000e+00> : vector<2x128xf32>
    %1405 = tpu.matmul %1404, %1347, %cst_598 {dimension_numbers = #tpu.dot_dimension_numbers<[1], [0], [0], [1], [0, 0, 1, 1], [], []>} : vector<2x32xf32>, vector<32x128xf32>, vector<2x128xf32> -> vector<2x128xf32>
    %1406 = arith.addf %1405, %1353 : vector<2x128xf32>
    %c7_599 = arith.constant 7 : index
    %c0_600 = arith.constant 0 : index
    %c0_601 = arith.constant 0 : index
    %1407 = vector.load %arg21[%c7_599, %c0_600, %c0_601] : memref<8x2x128xf32, #tpu.memory_space<vmem>>, vector<1x2x128xf32>
    %1408 = vector.shape_cast %1407 : vector<1x2x128xf32> to vector<2x128xf32>
    %1409 = vector.shape_cast %1406 : vector<2x128xf32> to vector<1x2x128xf32>
    tpu.vector_store %arg21[%c7_599, %c0_600, %c0_601], %1409 {strides = array<i32>} : memref<8x2x128xf32, #tpu.memory_space<vmem>>, vector<1x2x128xf32>,
    %cst_602 = arith.constant 0.000000e+00 : f32
    %1410 = vector.broadcast %cst_602 : f32 to vector<2x32xf32>
    %c0_i32_603 = arith.constant 0 : i32
    %1411 = arith.index_cast %c0_i32_603 : i32 to index
    %c0_604 = arith.constant 0 : index
    %c0_605 = arith.constant 0 : index
    %1412 = vector.load %arg21[%1411, %c0_604, %c0_605] : memref<8x2x128xf32, #tpu.memory_space<vmem>>, vector<1x2x128xf32>
    %1413 = vector.shape_cast %1412 : vector<1x2x128xf32> to vector<2x128xf32>
    %cst_606 = arith.constant dense<0.000000e+00> : vector<2x128xf32>
    %1414 = tpu.matmul %1410, %1349, %cst_606 {dimension_numbers = #tpu.dot_dimension_numbers<[1], [0], [0], [1], [0, 0, 1, 1], [], []>} : vector<2x32xf32>, vector<32x128xf32>, vector<2x128xf32> -> vector<2x128xf32>
    %1415 = arith.addf %1413, %1414 : vector<2x128xf32>
    %1416 = vector.extract_strided_slice %1415 {offsets = [0, 0], sizes = [2, 32], strides = [1, 1]} : vector<2x128xf32> to vector<2x32xf32>
    %1417 = arith.negf %1416 : vector<2x32xf32>
    %1418 = math.exp %1417 : vector<2x32xf32>
    %cst_607 = arith.constant 1.000000e+00 : f32
    %1419 = vector.broadcast %cst_607 : f32 to vector<2x32xf32>
    %1420 = arith.addf %1419, %1418 : vector<2x32xf32>
    %1421 = arith.divf %1419, %1420 : vector<2x32xf32>
    %1422 = vector.extract_strided_slice %1415 {offsets = [0, 32], sizes = [2, 32], strides = [1, 1]} : vector<2x128xf32> to vector<2x32xf32>
    %1423 = arith.negf %1422 : vector<2x32xf32>
    %1424 = math.exp %1423 : vector<2x32xf32>
    %cst_608 = arith.constant 1.000000e+00 : f32
    %1425 = vector.broadcast %cst_608 : f32 to vector<2x32xf32>
    %1426 = arith.addf %1425, %1424 : vector<2x32xf32>
    %1427 = arith.divf %1425, %1426 : vector<2x32xf32>
    %1428 = vector.extract_strided_slice %1415 {offsets = [0, 64], sizes = [2, 32], strides = [1, 1]} : vector<2x128xf32> to vector<2x32xf32>
    %1429 = math.tanh %1428 : vector<2x32xf32>
    %1430 = vector.extract_strided_slice %1415 {offsets = [0, 96], sizes = [2, 32], strides = [1, 1]} : vector<2x128xf32> to vector<2x32xf32>
    %1431 = arith.negf %1430 : vector<2x32xf32>
    %1432 = math.exp %1431 : vector<2x32xf32>
    %cst_609 = arith.constant 1.000000e+00 : f32
    %1433 = vector.broadcast %cst_609 : f32 to vector<2x32xf32>
    %1434 = arith.addf %1433, %1432 : vector<2x32xf32>
    %1435 = arith.divf %1433, %1434 : vector<2x32xf32>
    %1436 = arith.mulf %1427, %1410 : vector<2x32xf32>
    %1437 = arith.mulf %1421, %1429 : vector<2x32xf32>
    %1438 = arith.addf %1436, %1437 : vector<2x32xf32>
    %1439 = math.tanh %1438 : vector<2x32xf32>
    %1440 = arith.mulf %1435, %1439 : vector<2x32xf32>
    %1441 = vector.broadcast %c0_i32_603 : i32 to vector<2x1xi32>
    %1442 = arith.cmpi slt, %1441, %0 : vector<2x1xi32>
    %cst_610 = arith.constant 0.000000e+00 : f32
    %1443 = vector.shape_cast %1442 : vector<2x1xi1> to vector<2x1xi1>
    %1444 = vector.broadcast %1443 : vector<2x1xi1> to vector<2x32xi1>
    %1445 = vector.broadcast %cst_610 : f32 to vector<2x32xf32>
    %1446 = arith.select %1444, %1440, %1445 : vector<2x32xi1>, vector<2x32xf32>
    %1447 = arith.addf %1410, %1446 : vector<2x32xf32>
    %c1_i32_611 = arith.constant 1 : i32
    %1448 = arith.index_cast %c1_i32_611 : i32 to index
    %c0_612 = arith.constant 0 : index
    %c0_613 = arith.constant 0 : index
    %1449 = vector.load %arg21[%1448, %c0_612, %c0_613] : memref<8x2x128xf32, #tpu.memory_space<vmem>>, vector<1x2x128xf32>
    %1450 = vector.shape_cast %1449 : vector<1x2x128xf32> to vector<2x128xf32>
    %cst_614 = arith.constant dense<0.000000e+00> : vector<2x128xf32>
    %1451 = tpu.matmul %1440, %1349, %cst_614 {dimension_numbers = #tpu.dot_dimension_numbers<[1], [0], [0], [1], [0, 0, 1, 1], [], []>} : vector<2x32xf32>, vector<32x128xf32>, vector<2x128xf32> -> vector<2x128xf32>
    %1452 = arith.addf %1450, %1451 : vector<2x128xf32>
    %1453 = vector.extract_strided_slice %1452 {offsets = [0, 0], sizes = [2, 32], strides = [1, 1]} : vector<2x128xf32> to vector<2x32xf32>
    %1454 = arith.negf %1453 : vector<2x32xf32>
    %1455 = math.exp %1454 : vector<2x32xf32>
    %cst_615 = arith.constant 1.000000e+00 : f32
    %1456 = vector.broadcast %cst_615 : f32 to vector<2x32xf32>
    %1457 = arith.addf %1456, %1455 : vector<2x32xf32>
    %1458 = arith.divf %1456, %1457 : vector<2x32xf32>
    %1459 = vector.extract_strided_slice %1452 {offsets = [0, 32], sizes = [2, 32], strides = [1, 1]} : vector<2x128xf32> to vector<2x32xf32>
    %1460 = arith.negf %1459 : vector<2x32xf32>
    %1461 = math.exp %1460 : vector<2x32xf32>
    %cst_616 = arith.constant 1.000000e+00 : f32
    %1462 = vector.broadcast %cst_616 : f32 to vector<2x32xf32>
    %1463 = arith.addf %1462, %1461 : vector<2x32xf32>
    %1464 = arith.divf %1462, %1463 : vector<2x32xf32>
    %1465 = vector.extract_strided_slice %1452 {offsets = [0, 64], sizes = [2, 32], strides = [1, 1]} : vector<2x128xf32> to vector<2x32xf32>
    %1466 = math.tanh %1465 : vector<2x32xf32>
    %1467 = vector.extract_strided_slice %1452 {offsets = [0, 96], sizes = [2, 32], strides = [1, 1]} : vector<2x128xf32> to vector<2x32xf32>
    %1468 = arith.negf %1467 : vector<2x32xf32>
    %1469 = math.exp %1468 : vector<2x32xf32>
    %cst_617 = arith.constant 1.000000e+00 : f32
    %1470 = vector.broadcast %cst_617 : f32 to vector<2x32xf32>
    %1471 = arith.addf %1470, %1469 : vector<2x32xf32>
    %1472 = arith.divf %1470, %1471 : vector<2x32xf32>
    %1473 = arith.mulf %1464, %1438 : vector<2x32xf32>
    %1474 = arith.mulf %1458, %1466 : vector<2x32xf32>
    %1475 = arith.addf %1473, %1474 : vector<2x32xf32>
    %1476 = math.tanh %1475 : vector<2x32xf32>
    %1477 = arith.mulf %1472, %1476 : vector<2x32xf32>
    %1478 = vector.broadcast %c1_i32_611 : i32 to vector<2x1xi32>
    %1479 = arith.cmpi slt, %1478, %0 : vector<2x1xi32>
    %cst_618 = arith.constant 0.000000e+00 : f32
    %1480 = vector.shape_cast %1479 : vector<2x1xi1> to vector<2x1xi1>
    %1481 = vector.broadcast %1480 : vector<2x1xi1> to vector<2x32xi1>
    %1482 = vector.broadcast %cst_618 : f32 to vector<2x32xf32>
    %1483 = arith.select %1481, %1477, %1482 : vector<2x32xi1>, vector<2x32xf32>
    %1484 = arith.addf %1447, %1483 : vector<2x32xf32>
    %c2_i32_619 = arith.constant 2 : i32
    %1485 = arith.index_cast %c2_i32_619 : i32 to index
    %c0_620 = arith.constant 0 : index
    %c0_621 = arith.constant 0 : index
    %1486 = vector.load %arg21[%1485, %c0_620, %c0_621] : memref<8x2x128xf32, #tpu.memory_space<vmem>>, vector<1x2x128xf32>
    %1487 = vector.shape_cast %1486 : vector<1x2x128xf32> to vector<2x128xf32>
    %cst_622 = arith.constant dense<0.000000e+00> : vector<2x128xf32>
    %1488 = tpu.matmul %1477, %1349, %cst_622 {dimension_numbers = #tpu.dot_dimension_numbers<[1], [0], [0], [1], [0, 0, 1, 1], [], []>} : vector<2x32xf32>, vector<32x128xf32>, vector<2x128xf32> -> vector<2x128xf32>
    %1489 = arith.addf %1487, %1488 : vector<2x128xf32>
    %1490 = vector.extract_strided_slice %1489 {offsets = [0, 0], sizes = [2, 32], strides = [1, 1]} : vector<2x128xf32> to vector<2x32xf32>
    %1491 = arith.negf %1490 : vector<2x32xf32>
    %1492 = math.exp %1491 : vector<2x32xf32>
    %cst_623 = arith.constant 1.000000e+00 : f32
    %1493 = vector.broadcast %cst_623 : f32 to vector<2x32xf32>
    %1494 = arith.addf %1493, %1492 : vector<2x32xf32>
    %1495 = arith.divf %1493, %1494 : vector<2x32xf32>
    %1496 = vector.extract_strided_slice %1489 {offsets = [0, 32], sizes = [2, 32], strides = [1, 1]} : vector<2x128xf32> to vector<2x32xf32>
    %1497 = arith.negf %1496 : vector<2x32xf32>
    %1498 = math.exp %1497 : vector<2x32xf32>
    %cst_624 = arith.constant 1.000000e+00 : f32
    %1499 = vector.broadcast %cst_624 : f32 to vector<2x32xf32>
    %1500 = arith.addf %1499, %1498 : vector<2x32xf32>
    %1501 = arith.divf %1499, %1500 : vector<2x32xf32>
    %1502 = vector.extract_strided_slice %1489 {offsets = [0, 64], sizes = [2, 32], strides = [1, 1]} : vector<2x128xf32> to vector<2x32xf32>
    %1503 = math.tanh %1502 : vector<2x32xf32>
    %1504 = vector.extract_strided_slice %1489 {offsets = [0, 96], sizes = [2, 32], strides = [1, 1]} : vector<2x128xf32> to vector<2x32xf32>
    %1505 = arith.negf %1504 : vector<2x32xf32>
    %1506 = math.exp %1505 : vector<2x32xf32>
    %cst_625 = arith.constant 1.000000e+00 : f32
    %1507 = vector.broadcast %cst_625 : f32 to vector<2x32xf32>
    %1508 = arith.addf %1507, %1506 : vector<2x32xf32>
    %1509 = arith.divf %1507, %1508 : vector<2x32xf32>
    %1510 = arith.mulf %1501, %1475 : vector<2x32xf32>
    %1511 = arith.mulf %1495, %1503 : vector<2x32xf32>
    %1512 = arith.addf %1510, %1511 : vector<2x32xf32>
    %1513 = math.tanh %1512 : vector<2x32xf32>
    %1514 = arith.mulf %1509, %1513 : vector<2x32xf32>
    %1515 = vector.broadcast %c2_i32_619 : i32 to vector<2x1xi32>
    %1516 = arith.cmpi slt, %1515, %0 : vector<2x1xi32>
    %cst_626 = arith.constant 0.000000e+00 : f32
    %1517 = vector.shape_cast %1516 : vector<2x1xi1> to vector<2x1xi1>
    %1518 = vector.broadcast %1517 : vector<2x1xi1> to vector<2x32xi1>
    %1519 = vector.broadcast %cst_626 : f32 to vector<2x32xf32>
    %1520 = arith.select %1518, %1514, %1519 : vector<2x32xi1>, vector<2x32xf32>
    %1521 = arith.addf %1484, %1520 : vector<2x32xf32>
    %c3_i32_627 = arith.constant 3 : i32
    %1522 = arith.index_cast %c3_i32_627 : i32 to index
    %c0_628 = arith.constant 0 : index
    %c0_629 = arith.constant 0 : index
    %1523 = vector.load %arg21[%1522, %c0_628, %c0_629] : memref<8x2x128xf32, #tpu.memory_space<vmem>>, vector<1x2x128xf32>
    %1524 = vector.shape_cast %1523 : vector<1x2x128xf32> to vector<2x128xf32>
    %cst_630 = arith.constant dense<0.000000e+00> : vector<2x128xf32>
    %1525 = tpu.matmul %1514, %1349, %cst_630 {dimension_numbers = #tpu.dot_dimension_numbers<[1], [0], [0], [1], [0, 0, 1, 1], [], []>} : vector<2x32xf32>, vector<32x128xf32>, vector<2x128xf32> -> vector<2x128xf32>
    %1526 = arith.addf %1524, %1525 : vector<2x128xf32>
    %1527 = vector.extract_strided_slice %1526 {offsets = [0, 0], sizes = [2, 32], strides = [1, 1]} : vector<2x128xf32> to vector<2x32xf32>
    %1528 = arith.negf %1527 : vector<2x32xf32>
    %1529 = math.exp %1528 : vector<2x32xf32>
    %cst_631 = arith.constant 1.000000e+00 : f32
    %1530 = vector.broadcast %cst_631 : f32 to vector<2x32xf32>
    %1531 = arith.addf %1530, %1529 : vector<2x32xf32>
    %1532 = arith.divf %1530, %1531 : vector<2x32xf32>
    %1533 = vector.extract_strided_slice %1526 {offsets = [0, 32], sizes = [2, 32], strides = [1, 1]} : vector<2x128xf32> to vector<2x32xf32>
    %1534 = arith.negf %1533 : vector<2x32xf32>
    %1535 = math.exp %1534 : vector<2x32xf32>
    %cst_632 = arith.constant 1.000000e+00 : f32
    %1536 = vector.broadcast %cst_632 : f32 to vector<2x32xf32>
    %1537 = arith.addf %1536, %1535 : vector<2x32xf32>
    %1538 = arith.divf %1536, %1537 : vector<2x32xf32>
    %1539 = vector.extract_strided_slice %1526 {offsets = [0, 64], sizes = [2, 32], strides = [1, 1]} : vector<2x128xf32> to vector<2x32xf32>
    %1540 = math.tanh %1539 : vector<2x32xf32>
    %1541 = vector.extract_strided_slice %1526 {offsets = [0, 96], sizes = [2, 32], strides = [1, 1]} : vector<2x128xf32> to vector<2x32xf32>
    %1542 = arith.negf %1541 : vector<2x32xf32>
    %1543 = math.exp %1542 : vector<2x32xf32>
    %cst_633 = arith.constant 1.000000e+00 : f32
    %1544 = vector.broadcast %cst_633 : f32 to vector<2x32xf32>
    %1545 = arith.addf %1544, %1543 : vector<2x32xf32>
    %1546 = arith.divf %1544, %1545 : vector<2x32xf32>
    %1547 = arith.mulf %1538, %1512 : vector<2x32xf32>
    %1548 = arith.mulf %1532, %1540 : vector<2x32xf32>
    %1549 = arith.addf %1547, %1548 : vector<2x32xf32>
    %1550 = math.tanh %1549 : vector<2x32xf32>
    %1551 = arith.mulf %1546, %1550 : vector<2x32xf32>
    %1552 = vector.broadcast %c3_i32_627 : i32 to vector<2x1xi32>
    %1553 = arith.cmpi slt, %1552, %0 : vector<2x1xi32>
    %cst_634 = arith.constant 0.000000e+00 : f32
    %1554 = vector.shape_cast %1553 : vector<2x1xi1> to vector<2x1xi1>
    %1555 = vector.broadcast %1554 : vector<2x1xi1> to vector<2x32xi1>
    %1556 = vector.broadcast %cst_634 : f32 to vector<2x32xf32>
    %1557 = arith.select %1555, %1551, %1556 : vector<2x32xi1>, vector<2x32xf32>
    %1558 = arith.addf %1521, %1557 : vector<2x32xf32>
    %c4_i32_635 = arith.constant 4 : i32
    %1559 = arith.index_cast %c4_i32_635 : i32 to index
    %c0_636 = arith.constant 0 : index
    %c0_637 = arith.constant 0 : index
    %1560 = vector.load %arg21[%1559, %c0_636, %c0_637] : memref<8x2x128xf32, #tpu.memory_space<vmem>>, vector<1x2x128xf32>
    %1561 = vector.shape_cast %1560 : vector<1x2x128xf32> to vector<2x128xf32>
    %cst_638 = arith.constant dense<0.000000e+00> : vector<2x128xf32>
    %1562 = tpu.matmul %1551, %1349, %cst_638 {dimension_numbers = #tpu.dot_dimension_numbers<[1], [0], [0], [1], [0, 0, 1, 1], [], []>} : vector<2x32xf32>, vector<32x128xf32>, vector<2x128xf32> -> vector<2x128xf32>
    %1563 = arith.addf %1561, %1562 : vector<2x128xf32>
    %1564 = vector.extract_strided_slice %1563 {offsets = [0, 0], sizes = [2, 32], strides = [1, 1]} : vector<2x128xf32> to vector<2x32xf32>
    %1565 = arith.negf %1564 : vector<2x32xf32>
    %1566 = math.exp %1565 : vector<2x32xf32>
    %cst_639 = arith.constant 1.000000e+00 : f32
    %1567 = vector.broadcast %cst_639 : f32 to vector<2x32xf32>
    %1568 = arith.addf %1567, %1566 : vector<2x32xf32>
    %1569 = arith.divf %1567, %1568 : vector<2x32xf32>
    %1570 = vector.extract_strided_slice %1563 {offsets = [0, 32], sizes = [2, 32], strides = [1, 1]} : vector<2x128xf32> to vector<2x32xf32>
    %1571 = arith.negf %1570 : vector<2x32xf32>
    %1572 = math.exp %1571 : vector<2x32xf32>
    %cst_640 = arith.constant 1.000000e+00 : f32
    %1573 = vector.broadcast %cst_640 : f32 to vector<2x32xf32>
    %1574 = arith.addf %1573, %1572 : vector<2x32xf32>
    %1575 = arith.divf %1573, %1574 : vector<2x32xf32>
    %1576 = vector.extract_strided_slice %1563 {offsets = [0, 64], sizes = [2, 32], strides = [1, 1]} : vector<2x128xf32> to vector<2x32xf32>
    %1577 = math.tanh %1576 : vector<2x32xf32>
    %1578 = vector.extract_strided_slice %1563 {offsets = [0, 96], sizes = [2, 32], strides = [1, 1]} : vector<2x128xf32> to vector<2x32xf32>
    %1579 = arith.negf %1578 : vector<2x32xf32>
    %1580 = math.exp %1579 : vector<2x32xf32>
    %cst_641 = arith.constant 1.000000e+00 : f32
    %1581 = vector.broadcast %cst_641 : f32 to vector<2x32xf32>
    %1582 = arith.addf %1581, %1580 : vector<2x32xf32>
    %1583 = arith.divf %1581, %1582 : vector<2x32xf32>
    %1584 = arith.mulf %1575, %1549 : vector<2x32xf32>
    %1585 = arith.mulf %1569, %1577 : vector<2x32xf32>
    %1586 = arith.addf %1584, %1585 : vector<2x32xf32>
    %1587 = math.tanh %1586 : vector<2x32xf32>
    %1588 = arith.mulf %1583, %1587 : vector<2x32xf32>
    %1589 = vector.broadcast %c4_i32_635 : i32 to vector<2x1xi32>
    %1590 = arith.cmpi slt, %1589, %0 : vector<2x1xi32>
    %cst_642 = arith.constant 0.000000e+00 : f32
    %1591 = vector.shape_cast %1590 : vector<2x1xi1> to vector<2x1xi1>
    %1592 = vector.broadcast %1591 : vector<2x1xi1> to vector<2x32xi1>
    %1593 = vector.broadcast %cst_642 : f32 to vector<2x32xf32>
    %1594 = arith.select %1592, %1588, %1593 : vector<2x32xi1>, vector<2x32xf32>
    %1595 = arith.addf %1558, %1594 : vector<2x32xf32>
    %c5_i32_643 = arith.constant 5 : i32
    %1596 = arith.index_cast %c5_i32_643 : i32 to index
    %c0_644 = arith.constant 0 : index
    %c0_645 = arith.constant 0 : index
    %1597 = vector.load %arg21[%1596, %c0_644, %c0_645] : memref<8x2x128xf32, #tpu.memory_space<vmem>>, vector<1x2x128xf32>
    %1598 = vector.shape_cast %1597 : vector<1x2x128xf32> to vector<2x128xf32>
    %cst_646 = arith.constant dense<0.000000e+00> : vector<2x128xf32>
    %1599 = tpu.matmul %1588, %1349, %cst_646 {dimension_numbers = #tpu.dot_dimension_numbers<[1], [0], [0], [1], [0, 0, 1, 1], [], []>} : vector<2x32xf32>, vector<32x128xf32>, vector<2x128xf32> -> vector<2x128xf32>
    %1600 = arith.addf %1598, %1599 : vector<2x128xf32>
    %1601 = vector.extract_strided_slice %1600 {offsets = [0, 0], sizes = [2, 32], strides = [1, 1]} : vector<2x128xf32> to vector<2x32xf32>
    %1602 = arith.negf %1601 : vector<2x32xf32>
    %1603 = math.exp %1602 : vector<2x32xf32>
    %cst_647 = arith.constant 1.000000e+00 : f32
    %1604 = vector.broadcast %cst_647 : f32 to vector<2x32xf32>
    %1605 = arith.addf %1604, %1603 : vector<2x32xf32>
    %1606 = arith.divf %1604, %1605 : vector<2x32xf32>
    %1607 = vector.extract_strided_slice %1600 {offsets = [0, 32], sizes = [2, 32], strides = [1, 1]} : vector<2x128xf32> to vector<2x32xf32>
    %1608 = arith.negf %1607 : vector<2x32xf32>
    %1609 = math.exp %1608 : vector<2x32xf32>
    %cst_648 = arith.constant 1.000000e+00 : f32
    %1610 = vector.broadcast %cst_648 : f32 to vector<2x32xf32>
    %1611 = arith.addf %1610, %1609 : vector<2x32xf32>
    %1612 = arith.divf %1610, %1611 : vector<2x32xf32>
    %1613 = vector.extract_strided_slice %1600 {offsets = [0, 64], sizes = [2, 32], strides = [1, 1]} : vector<2x128xf32> to vector<2x32xf32>
    %1614 = math.tanh %1613 : vector<2x32xf32>
    %1615 = vector.extract_strided_slice %1600 {offsets = [0, 96], sizes = [2, 32], strides = [1, 1]} : vector<2x128xf32> to vector<2x32xf32>
    %1616 = arith.negf %1615 : vector<2x32xf32>
    %1617 = math.exp %1616 : vector<2x32xf32>
    %cst_649 = arith.constant 1.000000e+00 : f32
    %1618 = vector.broadcast %cst_649 : f32 to vector<2x32xf32>
    %1619 = arith.addf %1618, %1617 : vector<2x32xf32>
    %1620 = arith.divf %1618, %1619 : vector<2x32xf32>
    %1621 = arith.mulf %1612, %1586 : vector<2x32xf32>
    %1622 = arith.mulf %1606, %1614 : vector<2x32xf32>
    %1623 = arith.addf %1621, %1622 : vector<2x32xf32>
    %1624 = math.tanh %1623 : vector<2x32xf32>
    %1625 = arith.mulf %1620, %1624 : vector<2x32xf32>
    %1626 = vector.broadcast %c5_i32_643 : i32 to vector<2x1xi32>
    %1627 = arith.cmpi slt, %1626, %0 : vector<2x1xi32>
    %cst_650 = arith.constant 0.000000e+00 : f32
    %1628 = vector.shape_cast %1627 : vector<2x1xi1> to vector<2x1xi1>
    %1629 = vector.broadcast %1628 : vector<2x1xi1> to vector<2x32xi1>
    %1630 = vector.broadcast %cst_650 : f32 to vector<2x32xf32>
    %1631 = arith.select %1629, %1625, %1630 : vector<2x32xi1>, vector<2x32xf32>
    %1632 = arith.addf %1595, %1631 : vector<2x32xf32>
    %c6_i32_651 = arith.constant 6 : i32
    %1633 = arith.index_cast %c6_i32_651 : i32 to index
    %c0_652 = arith.constant 0 : index
    %c0_653 = arith.constant 0 : index
    %1634 = vector.load %arg21[%1633, %c0_652, %c0_653] : memref<8x2x128xf32, #tpu.memory_space<vmem>>, vector<1x2x128xf32>
    %1635 = vector.shape_cast %1634 : vector<1x2x128xf32> to vector<2x128xf32>
    %cst_654 = arith.constant dense<0.000000e+00> : vector<2x128xf32>
    %1636 = tpu.matmul %1625, %1349, %cst_654 {dimension_numbers = #tpu.dot_dimension_numbers<[1], [0], [0], [1], [0, 0, 1, 1], [], []>} : vector<2x32xf32>, vector<32x128xf32>, vector<2x128xf32> -> vector<2x128xf32>
    %1637 = arith.addf %1635, %1636 : vector<2x128xf32>
    %1638 = vector.extract_strided_slice %1637 {offsets = [0, 0], sizes = [2, 32], strides = [1, 1]} : vector<2x128xf32> to vector<2x32xf32>
    %1639 = arith.negf %1638 : vector<2x32xf32>
    %1640 = math.exp %1639 : vector<2x32xf32>
    %cst_655 = arith.constant 1.000000e+00 : f32
    %1641 = vector.broadcast %cst_655 : f32 to vector<2x32xf32>
    %1642 = arith.addf %1641, %1640 : vector<2x32xf32>
    %1643 = arith.divf %1641, %1642 : vector<2x32xf32>
    %1644 = vector.extract_strided_slice %1637 {offsets = [0, 32], sizes = [2, 32], strides = [1, 1]} : vector<2x128xf32> to vector<2x32xf32>
    %1645 = arith.negf %1644 : vector<2x32xf32>
    %1646 = math.exp %1645 : vector<2x32xf32>
    %cst_656 = arith.constant 1.000000e+00 : f32
    %1647 = vector.broadcast %cst_656 : f32 to vector<2x32xf32>
    %1648 = arith.addf %1647, %1646 : vector<2x32xf32>
    %1649 = arith.divf %1647, %1648 : vector<2x32xf32>
    %1650 = vector.extract_strided_slice %1637 {offsets = [0, 64], sizes = [2, 32], strides = [1, 1]} : vector<2x128xf32> to vector<2x32xf32>
    %1651 = math.tanh %1650 : vector<2x32xf32>
    %1652 = vector.extract_strided_slice %1637 {offsets = [0, 96], sizes = [2, 32], strides = [1, 1]} : vector<2x128xf32> to vector<2x32xf32>
    %1653 = arith.negf %1652 : vector<2x32xf32>
    %1654 = math.exp %1653 : vector<2x32xf32>
    %cst_657 = arith.constant 1.000000e+00 : f32
    %1655 = vector.broadcast %cst_657 : f32 to vector<2x32xf32>
    %1656 = arith.addf %1655, %1654 : vector<2x32xf32>
    %1657 = arith.divf %1655, %1656 : vector<2x32xf32>
    %1658 = arith.mulf %1649, %1623 : vector<2x32xf32>
    %1659 = arith.mulf %1643, %1651 : vector<2x32xf32>
    %1660 = arith.addf %1658, %1659 : vector<2x32xf32>
    %1661 = math.tanh %1660 : vector<2x32xf32>
    %1662 = arith.mulf %1657, %1661 : vector<2x32xf32>
    %1663 = vector.broadcast %c6_i32_651 : i32 to vector<2x1xi32>
    %1664 = arith.cmpi slt, %1663, %0 : vector<2x1xi32>
    %cst_658 = arith.constant 0.000000e+00 : f32
    %1665 = vector.shape_cast %1664 : vector<2x1xi1> to vector<2x1xi1>
    %1666 = vector.broadcast %1665 : vector<2x1xi1> to vector<2x32xi1>
    %1667 = vector.broadcast %cst_658 : f32 to vector<2x32xf32>
    %1668 = arith.select %1666, %1662, %1667 : vector<2x32xi1>, vector<2x32xf32>
    %1669 = arith.addf %1632, %1668 : vector<2x32xf32>
    %c7_i32_659 = arith.constant 7 : i32
    %1670 = arith.index_cast %c7_i32_659 : i32 to index
    %c0_660 = arith.constant 0 : index
    %c0_661 = arith.constant 0 : index
    %1671 = vector.load %arg21[%1670, %c0_660, %c0_661] : memref<8x2x128xf32, #tpu.memory_space<vmem>>, vector<1x2x128xf32>
    %1672 = vector.shape_cast %1671 : vector<1x2x128xf32> to vector<2x128xf32>
    %cst_662 = arith.constant dense<0.000000e+00> : vector<2x128xf32>
    %1673 = tpu.matmul %1662, %1349, %cst_662 {dimension_numbers = #tpu.dot_dimension_numbers<[1], [0], [0], [1], [0, 0, 1, 1], [], []>} : vector<2x32xf32>, vector<32x128xf32>, vector<2x128xf32> -> vector<2x128xf32>
    %1674 = arith.addf %1672, %1673 : vector<2x128xf32>
    %1675 = vector.extract_strided_slice %1674 {offsets = [0, 0], sizes = [2, 32], strides = [1, 1]} : vector<2x128xf32> to vector<2x32xf32>
    %1676 = arith.negf %1675 : vector<2x32xf32>
    %1677 = math.exp %1676 : vector<2x32xf32>
    %cst_663 = arith.constant 1.000000e+00 : f32
    %1678 = vector.broadcast %cst_663 : f32 to vector<2x32xf32>
    %1679 = arith.addf %1678, %1677 : vector<2x32xf32>
    %1680 = arith.divf %1678, %1679 : vector<2x32xf32>
    %1681 = vector.extract_strided_slice %1674 {offsets = [0, 32], sizes = [2, 32], strides = [1, 1]} : vector<2x128xf32> to vector<2x32xf32>
    %1682 = arith.negf %1681 : vector<2x32xf32>
    %1683 = math.exp %1682 : vector<2x32xf32>
    %cst_664 = arith.constant 1.000000e+00 : f32
    %1684 = vector.broadcast %cst_664 : f32 to vector<2x32xf32>
    %1685 = arith.addf %1684, %1683 : vector<2x32xf32>
    %1686 = arith.divf %1684, %1685 : vector<2x32xf32>
    %1687 = vector.extract_strided_slice %1674 {offsets = [0, 64], sizes = [2, 32], strides = [1, 1]} : vector<2x128xf32> to vector<2x32xf32>
    %1688 = math.tanh %1687 : vector<2x32xf32>
    %1689 = vector.extract_strided_slice %1674 {offsets = [0, 96], sizes = [2, 32], strides = [1, 1]} : vector<2x128xf32> to vector<2x32xf32>
    %1690 = arith.negf %1689 : vector<2x32xf32>
    %1691 = math.exp %1690 : vector<2x32xf32>
    %cst_665 = arith.constant 1.000000e+00 : f32
    %1692 = vector.broadcast %cst_665 : f32 to vector<2x32xf32>
    %1693 = arith.addf %1692, %1691 : vector<2x32xf32>
    %1694 = arith.divf %1692, %1693 : vector<2x32xf32>
    %1695 = arith.mulf %1686, %1660 : vector<2x32xf32>
    %1696 = arith.mulf %1680, %1688 : vector<2x32xf32>
    %1697 = arith.addf %1695, %1696 : vector<2x32xf32>
    %1698 = math.tanh %1697 : vector<2x32xf32>
    %1699 = arith.mulf %1694, %1698 : vector<2x32xf32>
    %1700 = vector.broadcast %c7_i32_659 : i32 to vector<2x1xi32>
    %1701 = arith.cmpi slt, %1700, %0 : vector<2x1xi32>
    %cst_666 = arith.constant 0.000000e+00 : f32
    %1702 = vector.shape_cast %1701 : vector<2x1xi1> to vector<2x1xi1>
    %1703 = vector.broadcast %1702 : vector<2x1xi1> to vector<2x32xi1>
    %1704 = vector.broadcast %cst_666 : f32 to vector<2x32xf32>
    %1705 = arith.select %1703, %1699, %1704 : vector<2x32xi1>, vector<2x32xf32>
    %1706 = arith.addf %1669, %1705 : vector<2x32xf32>
    %c8_i32_667 = arith.constant 8 : i32
    %c0_668 = arith.constant 0 : index
    %c0_669 = arith.constant 0 : index
    %1707 = vector.load %arg2[%c0_668, %c0_669] : memref<1x1xf32, #tpu.memory_space<vmem>>, vector<1x1xf32>
    %1708 = vector.broadcast %1707 : vector<1x1xf32> to vector<2x32xf32>
    %1709 = arith.mulf %1706, %1708 : vector<2x32xf32>
    %c0_670 = arith.constant 0 : index
    %c0_671 = arith.constant 0 : index
    %1710 = vector.load %arg10[%c0_670, %c0_671] : memref<32x32xf32, #tpu.memory_space<vmem>>, vector<32x32xf32>
    %cst_672 = arith.constant dense<0.000000e+00> : vector<2x32xf32>
    %1711 = tpu.matmul %1709, %1710, %cst_672 {dimension_numbers = #tpu.dot_dimension_numbers<[1], [0], [0], [1], [0, 0, 1, 1], [], []>} : vector<2x32xf32>, vector<32x32xf32>, vector<2x32xf32> -> vector<2x32xf32>
    %c0_673 = arith.constant 0 : index
    %c0_674 = arith.constant 0 : index
    %1712 = vector.load %arg11[%c0_673, %c0_674] : memref<1x32xf32, #tpu.memory_space<vmem>>, vector<1x32xf32>
    %1713 = vector.broadcast %1712 : vector<1x32xf32> to vector<2x32xf32>
    %1714 = arith.addf %1711, %1713 : vector<2x32xf32>
    %cst_675 = arith.constant 0.000000e+00 : f32
    %1715 = vector.broadcast %cst_675 : f32 to vector<2x32xf32>
    %1716 = arith.maximumf %1714, %1715 : vector<2x32xf32>
    %c0_676 = arith.constant 0 : index
    %c0_677 = arith.constant 0 : index
    %1717 = vector.load %arg12[%c0_676, %c0_677] : memref<32x32xf32, #tpu.memory_space<vmem>>, vector<32x32xf32>
    %cst_678 = arith.constant dense<0.000000e+00> : vector<2x32xf32>
    %1718 = tpu.matmul %1716, %1717, %cst_678 {dimension_numbers = #tpu.dot_dimension_numbers<[1], [0], [0], [1], [0, 0, 1, 1], [], []>} : vector<2x32xf32>, vector<32x32xf32>, vector<2x32xf32> -> vector<2x32xf32>
    %c0_679 = arith.constant 0 : index
    %c0_680 = arith.constant 0 : index
    %1719 = vector.load %arg13[%c0_679, %c0_680] : memref<1x32xf32, #tpu.memory_space<vmem>>, vector<1x32xf32>
    %1720 = vector.broadcast %1719 : vector<1x32xf32> to vector<2x32xf32>
    %1721 = arith.addf %1718, %1720 : vector<2x32xf32>
    %cst_681 = arith.constant 0.000000e+00 : f32
    %1722 = vector.broadcast %cst_681 : f32 to vector<2x32xf32>
    %1723 = arith.maximumf %1721, %1722 : vector<2x32xf32>
    %c0_682 = arith.constant 0 : index
    %c0_683 = arith.constant 0 : index
    %1724 = vector.load %arg14[%c0_682, %c0_683] : memref<32x32xf32, #tpu.memory_space<vmem>>, vector<32x32xf32>
    %cst_684 = arith.constant dense<0.000000e+00> : vector<2x32xf32>
    %1725 = tpu.matmul %1723, %1724, %cst_684 {dimension_numbers = #tpu.dot_dimension_numbers<[1], [0], [0], [1], [0, 0, 1, 1], [], []>} : vector<2x32xf32>, vector<32x32xf32>, vector<2x32xf32> -> vector<2x32xf32>
    %c0_685 = arith.constant 0 : index
    %c0_686 = arith.constant 0 : index
    %1726 = vector.load %arg15[%c0_685, %c0_686] : memref<1x32xf32, #tpu.memory_space<vmem>>, vector<1x32xf32>
    %1727 = vector.broadcast %1726 : vector<1x32xf32> to vector<2x32xf32>
    %1728 = arith.addf %1725, %1727 : vector<2x32xf32>
    %cst_687 = arith.constant 0.000000e+00 : f32
    %1729 = vector.broadcast %cst_687 : f32 to vector<2x32xf32>
    %1730 = arith.maximumf %1728, %1729 : vector<2x32xf32>
    %c0_688 = arith.constant 0 : index
    %c0_689 = arith.constant 0 : index
    %1731 = vector.load %arg16[%c0_688, %c0_689] : memref<32x32xf32, #tpu.memory_space<vmem>>, vector<32x32xf32>
    %cst_690 = arith.constant dense<0.000000e+00> : vector<2x32xf32>
    %1732 = tpu.matmul %1730, %1731, %cst_690 {dimension_numbers = #tpu.dot_dimension_numbers<[1], [0], [0], [1], [0, 0, 1, 1], [], []>} : vector<2x32xf32>, vector<32x32xf32>, vector<2x32xf32> -> vector<2x32xf32>
    %c0_691 = arith.constant 0 : index
    %c0_692 = arith.constant 0 : index
    %1733 = vector.load %arg17[%c0_691, %c0_692] : memref<1x32xf32, #tpu.memory_space<vmem>>, vector<1x32xf32>
    %1734 = vector.broadcast %1733 : vector<1x32xf32> to vector<2x32xf32>
    %1735 = arith.addf %1732, %1734 : vector<2x32xf32>
    %c0_693 = arith.constant 0 : index
    %c0_694 = arith.constant 0 : index
    %1736 = vector.load %arg18[%c0_693, %c0_694] : memref<2x32xf32, #tpu.memory_space<vmem>>, vector<2x32xf32>
    tpu.vector_store %arg18[%c0_693, %c0_694], %1735 {strides = array<i32>} : memref<2x32xf32, #tpu.memory_space<vmem>>, vector<2x32xf32>,
    return
  }
  func.func @transform_0(%arg0: i32) -> (i32, i32) {
    %c0_i32 = arith.constant 0 : i32
    %c0_i32_0 = arith.constant 0 : i32
    return %arg0, %c0_i32 : i32, i32
  }
  func.func @transform_1(%arg0: i32) -> (i32, i32) {
    %c0_i32 = arith.constant 0 : i32
    %c0_i32_0 = arith.constant 0 : i32
    %c0_i32_1 = arith.constant 0 : i32
    return %c0_i32, %c0_i32_0 : i32, i32
  }
  func.func @transform_2(%arg0: i32) -> (i32, i32, i32) {
    %c0_i32 = arith.constant 0 : i32
    %c0_i32_0 = arith.constant 0 : i32
    %c0_i32_1 = arith.constant 0 : i32
    return %c0_i32, %arg0, %c0_i32_0 : i32, i32, i32
  }
  func.func @transform_3(%arg0: i32) -> (i32, i32) {
    %c0_i32 = arith.constant 0 : i32
    %c0_i32_0 = arith.constant 0 : i32
    %c0_i32_1 = arith.constant 0 : i32
    return %c0_i32, %c0_i32_0 : i32, i32
  }
  func.func @transform_4(%arg0: i32) -> (i32, i32) {
    %c0_i32 = arith.constant 0 : i32
    %c0_i32_0 = arith.constant 0 : i32
    %c0_i32_1 = arith.constant 0 : i32
    return %c0_i32, %c0_i32_0 : i32, i32
  }
  func.func @transform_5(%arg0: i32) -> (i32, i32) {
    %c0_i32 = arith.constant 0 : i32
    %c0_i32_0 = arith.constant 0 : i32
    %c0_i32_1 = arith.constant 0 : i32
    return %c0_i32, %c0_i32_0 : i32, i32
  }
  func.func @transform_6(%arg0: i32) -> (i32, i32, i32) {
    %c0_i32 = arith.constant 0 : i32
    %c0_i32_0 = arith.constant 0 : i32
    %c0_i32_1 = arith.constant 0 : i32
    %c0_i32_2 = arith.constant 0 : i32
    return %c0_i32, %c0_i32_0, %c0_i32_1 : i32, i32, i32
  }
  func.func @transform_7(%arg0: i32) -> (i32, i32, i32) {
    %c0_i32 = arith.constant 0 : i32
    %c0_i32_0 = arith.constant 0 : i32
    %c0_i32_1 = arith.constant 0 : i32
    %c0_i32_2 = arith.constant 0 : i32
    return %c0_i32, %c0_i32_0, %c0_i32_1 : i32, i32, i32
  }
  func.func @transform_8(%arg0: i32) -> (i32, i32, i32) {
    %c0_i32 = arith.constant 0 : i32
    %c0_i32_0 = arith.constant 0 : i32
    %c0_i32_1 = arith.constant 0 : i32
    %c0_i32_2 = arith.constant 0 : i32
    return %c0_i32, %c0_i32_0, %c0_i32_1 : i32, i32, i32
  }
  func.func @transform_9(%arg0: i32) -> (i32, i32) {
    %c0_i32 = arith.constant 0 : i32
    %c0_i32_0 = arith.constant 0 : i32
    %c0_i32_1 = arith.constant 0 : i32
    return %c0_i32, %c0_i32_0 : i32, i32
  }
  func.func @transform_10(%arg0: i32) -> (i32, i32) {
    %c0_i32 = arith.constant 0 : i32
    %c0_i32_0 = arith.constant 0 : i32
    %c0_i32_1 = arith.constant 0 : i32
    return %c0_i32, %c0_i32_0 : i32, i32
  }
  func.func @transform_11(%arg0: i32) -> (i32, i32) {
    %c0_i32 = arith.constant 0 : i32
    %c0_i32_0 = arith.constant 0 : i32
    %c0_i32_1 = arith.constant 0 : i32
    return %c0_i32, %c0_i32_0 : i32, i32
  }
  func.func @transform_12(%arg0: i32) -> (i32, i32) {
    %c0_i32 = arith.constant 0 : i32
    %c0_i32_0 = arith.constant 0 : i32
    %c0_i32_1 = arith.constant 0 : i32
    return %c0_i32, %c0_i32_0 : i32, i32
  }
  func.func @transform_13(%arg0: i32) -> (i32, i32) {
    %c0_i32 = arith.constant 0 : i32
    %c0_i32_0 = arith.constant 0 : i32
    %c0_i32_1 = arith.constant 0 : i32
    return %c0_i32, %c0_i32_0 : i32, i32
  }
  func.func @transform_14(%arg0: i32) -> (i32, i32) {
    %c0_i32 = arith.constant 0 : i32
    %c0_i32_0 = arith.constant 0 : i32
    %c0_i32_1 = arith.constant 0 : i32
    return %c0_i32, %c0_i32_0 : i32, i32
  }
  func.func @transform_15(%arg0: i32) -> (i32, i32) {
    %c0_i32 = arith.constant 0 : i32
    %c0_i32_0 = arith.constant 0 : i32
    %c0_i32_1 = arith.constant 0 : i32
    return %c0_i32, %c0_i32_0 : i32, i32
  }
  func.func @transform_16(%arg0: i32) -> (i32, i32) {
    %c0_i32 = arith.constant 0 : i32
    %c0_i32_0 = arith.constant 0 : i32
    %c0_i32_1 = arith.constant 0 : i32
    return %c0_i32, %c0_i32_0 : i32, i32
  }
  func.func @transform_17(%arg0: i32) -> (i32, i32) {
    %c0_i32 = arith.constant 0 : i32
    %c0_i32_0 = arith.constant 0 : i32
    return %arg0, %c0_i32 : i32, i32
  }
}

</mosaic_0001>

<bundles_post_ra>
// kernel: tpu_custom_call.1
= control target key start
LH: loop header
LB: loop body
LE: loop exit
PB: predicated region body
PF: predicated region fallthrough
CT: control target
= control target key end

     0   :  { %s11351_s0 = inlined_call_operand.vmem [shape: s32[2,1], index: 0, kind: input, shape index: {}]   ;;  %s11352_s1 = inlined_call_operand.<no memory space> [shape: f32[1,1], index: 1, kind: input, shape index: {}]   ;;  %s11353_s2 = inlined_call_operand.hbm [shape: f32[8,2,32], index: 2, kind: input, shape index: {}]   ;;  %s11354_s3 = inlined_call_operand.hbm [shape: f32[32,128], index: 3, kind: input, shape index: {}]   ;;  %s11355_s4 = inlined_call_operand.hbm [shape: f32[32,128], index: 4, kind: input, shape index: {}]   ;;  %s11356_s5 = inlined_call_operand.vmem [shape: f32[1,128], index: 5, kind: input, shape index: {}]   ;;  %s11357_s6 = inlined_call_operand.hbm [shape: f32[4,32,128], index: 6, kind: input, shape index: {}]   ;;  %s11358_s7 = inlined_call_operand.hbm [shape: f32[4,32,128], index: 7, kind: input, shape index: {}]   ;;  %s11359_s8 = inlined_call_operand.vmem [shape: f32[4,1,128], index: 8, kind: input, shape index: {}]   ;;  %s11360_s9 = inlined_call_operand.hbm [shape: f32[32,32], index: 9, kind: input, shape index: {}]   ;;  %s11361_s10 = inlined_call_operand.vmem [shape: f32[1,32], index: 10, kind: input, shape index: {}]   ;;  %s11362_s11 = inlined_call_operand.hbm [shape: f32[32,32], index: 11, kind: input, shape index: {}]   ;;  %s11363_s12 = inlined_call_operand.vmem [shape: f32[1,32], index: 12, kind: input, shape index: {}]   ;;  %s11364_s13 = inlined_call_operand.hbm [shape: f32[32,32], index: 13, kind: input, shape index: {}]   ;;  %s11365_s14 = inlined_call_operand.vmem [shape: f32[1,32], index: 14, kind: input, shape index: {}]   ;;  %s11366_s15 = inlined_call_operand.hbm [shape: f32[32,32], index: 15, kind: input, shape index: {}]   ;;  %s11367_s16 = inlined_call_operand.vmem [shape: f32[1,32], index: 16, kind: input, shape index: {}]   ;;  %s11368_s17 = inlined_call_operand.hbm [shape: f32[2,32], index: 17, kind: output, shape index: {}]  }
   0x1   :  { %11369 = sst [smem:[#allocation28_spill]] %s11351_s0 }
   0x2   :  { %11370 = sst [smem:[#allocation29_spill]] %s11352_s1 }
   0x3   :  { %s11371_s26 = sld [smem:[#allocation29_spill]] }
   0x9   :  { %v22_v0 = vstv %s11371_s26 }
   0xa   :  { %23 = vst [vmem:[#allocation5] sm:$0x1] %v22_v0 }
   0xb   :  { %24 = vsyncpa [#allocation7], 0 }
   0xc   :  { %25 = vsyncpa [#allocation10], 0 }
   0xd   :  { %26 = vsyncpa [#allocation13], 0 }
   0xe   :  { %27 = vsyncpa [#allocation16], 0 }
   0xf   :  { %28 = vsyncpa [#allocation19], 0 }
  0x10   :  { %29 = vsyncpa [#allocation8], 0  ;;  %s9854_s27 = smov [#allocation9]  }
  0x11   :  { %s51_s28 = sshll.u32 %s9854_s27, 4  ;;  %s52_s28 = int_to_ptr.vmem [resolvable:$true] %s51_s28 }
  0x12   :  { %s9650_s29 = scalar_lea.vmem %s52_s28, 512  ;;  %p9655_p1 = scmp.lt.s32.totalorder %s52_s28, %s52_s28 }
  0x13   :  { %p9651_p0 = scmp.ne.s32.totalorder %s52_s28, %s9650_s29  ;;  %p9656_p2 = scmp.lt.s32.totalorder %s9650_s29, %s9650_s29 }
  0x15   :  { %p9657_p3 = por %p9656_p2, %p9655_p1 }
  0x17   :  { %p9658_p4 = pnand %p9657_p3, %p9651_p0 }
  0x19   :  { %9661 = shalt.err (!%p9658_p4)
}
  0x1a   :  { %s9855_s0 = smov 128   ;;  %s9856_s30 = smov 8  }
  0x1b   :  { %57 = dma.hbm_to_vmem [thread:$0]  %s11354_s3, 512, %s52_s28, [#allocation10], %s9855_s0, %s9855_s0, %s9856_s30  }
  0x1c   :  { %s9857_s1 = smov [#allocation12]   ;;  %s9858_s21 = smov [#allocation15]  }
  0x1d   :  { %s77_s20 = sshll.u32 %s9857_s1, 4  ;;  %s103_s22 = sshll.u32 %s9858_s21, 4  ;;  %s78_s20 = int_to_ptr.vmem [resolvable:$true] %s77_s20  ;;  %s104_s22 = int_to_ptr.vmem [resolvable:$true] %s103_s22 }
  0x1e   :  { %s9670_s23 = scalar_lea.vmem %s78_s20, 2048  ;;  %p9675_p6 = scmp.lt.s32.totalorder %s78_s20, %s78_s20 }
  0x1f   :  { %p9671_p5 = scmp.ne.s32.totalorder %s78_s20, %s9670_s23  ;;  %p9676_p7 = scmp.lt.s32.totalorder %s9670_s23, %s9670_s23 }
  0x21   :  { %p9677_p8 = por %p9676_p7, %p9675_p6 }
  0x23   :  { %p9678_p9 = pnand %p9677_p8, %p9671_p5 }
  0x25   :  { %9681 = shalt.err (!%p9678_p9)
}
  0x26   :  { %83 = dma.hbm_to_vmem [thread:$0]  %s11357_s6, 2048, %s78_s20, [#allocation13], %s9855_s0, %s9855_s0, %s9856_s30  }
  0x27   :  { %s9690_s3 = scalar_lea.vmem %s104_s22, 512  ;;  %p9695_p11 = scmp.lt.s32.totalorder %s104_s22, %s104_s22 }
  0x28   :  { %p9691_p10 = scmp.ne.s32.totalorder %s104_s22, %s9690_s3  ;;  %p9696_p12 = scmp.lt.s32.totalorder %s9690_s3, %s9690_s3 }
  0x2a   :  { %p9697_p13 = por %p9696_p12, %p9695_p11 }
  0x2c   :  { %p9698_p0 = pnand %p9697_p13, %p9691_p10 }
  0x2e   :  { %9701 = shalt.err (!%p9698_p0)
}
  0x2f   :  { %109 = dma.hbm_to_vmem [thread:$0]  %s11360_s9, 512, %s104_s22, [#allocation16], %s9855_s0, %s9855_s0, %s9856_s30  }
  0x30   :  { %s9859_s28 = smov [#allocation18]   ;;  %s9860_s18 = smov [#allocation6]  }
  0x31   :  { %s131_s29 = sshll.u32 %s9859_s28, 4  ;;  %s39_s6 = sshll.u32 %s9860_s18, 4  ;;  %s132_s29 = int_to_ptr.vmem [resolvable:$true] %s131_s29  ;;  %s40_s6 = int_to_ptr.vmem [resolvable:$true] %s39_s6 }
  0x32   :  { %s9710_s19 = scalar_lea.vmem %s132_s29, 512  ;;  %p9715_p2 = scmp.lt.s32.totalorder %s132_s29, %s132_s29 }
  0x33   :  { %p9711_p1 = scmp.ne.s32.totalorder %s132_s29, %s9710_s19  ;;  %p9716_p3 = scmp.lt.s32.totalorder %s9710_s19, %s9710_s19 }
  0x35   :  { %p9717_p4 = por %p9716_p3, %p9715_p2 }
  0x37   :  { %p9718_p5 = pnand %p9717_p4, %p9711_p1 }
  0x39   :  { %9721 = shalt.err (!%p9718_p5)
}
  0x3a   :  { %137 = dma.hbm_to_vmem [thread:$0]  %s11364_s13, 512, %s132_s29, [#allocation19], %s9855_s0, %s9855_s0, %s9856_s30  }
  0x3b   :  { %s9730_s9 = scalar_lea.vmem %s40_s6, 256  ;;  %p9735_p7 = scmp.lt.s32.totalorder %s40_s6, %s40_s6 }
  0x3c   :  { %p9731_p6 = scmp.ne.s32.totalorder %s40_s6, %s9730_s9  ;;  %p9736_p8 = scmp.lt.s32.totalorder %s9730_s9, %s9730_s9 }
  0x3e   :  { %p9737_p9 = por %p9736_p8, %p9735_p7 }
  0x40   :  { %p9738_p10 = pnand %p9737_p9, %p9731_p6 }
  0x42   :  { %9741 = shalt.err (!%p9738_p10)
}
  0x43   :  { %s9861_s21 = smov 32   ;;  %s9862_s22 = smov 2  }
  0x44   :  { %45 = dma.hbm_to_vmem [thread:$0]  %s11353_s2, 256, %s40_s6, [#allocation7], %s9861_s21, %s9861_s21, %s9862_s22  }
  0x45   :  { %s9863_s25 = smov [#allocation11]   ;;  %s9864_s13 = smov [#allocation14]  }
  0x46   :  { %s63_s3 = sshll.u32 %s9863_s25, 4  ;;  %s89_s26 = sshll.u32 %s9864_s13, 4  ;;  %s64_s3 = int_to_ptr.vmem [resolvable:$true] %s63_s3  ;;  %s90_s26 = int_to_ptr.vmem [resolvable:$true] %s89_s26 }
  0x47   :  { %s9750_s27 = scalar_lea.vmem %s64_s3, 512  ;;  %p9755_p12 = scmp.lt.s32.totalorder %s64_s3, %s64_s3 }
  0x48   :  { %p9751_p11 = scmp.ne.s32.totalorder %s64_s3, %s9750_s27  ;;  %p9756_p13 = scmp.lt.s32.totalorder %s9750_s27, %s9750_s27 }
  0x4a   :  { %p9757_p0 = por %p9756_p13, %p9755_p12 }
  0x4c   :  { %p9758_p1 = pnand %p9757_p0, %p9751_p11 }
  0x4e   :  { %9761 = shalt.err (!%p9758_p1)
}
  0x4f   :  { %69 = dma.hbm_to_vmem [thread:$0]  %s11355_s4, 512, %s64_s3, [#allocation10], %s9855_s0, %s9855_s0, %s9856_s30  }
  0x50   :  { %s9770_s2 = scalar_lea.vmem %s90_s26, 2048  ;;  %p9775_p3 = scmp.lt.s32.totalorder %s90_s26, %s90_s26 }
  0x51   :  { %p9771_p2 = scmp.ne.s32.totalorder %s90_s26, %s9770_s2  ;;  %p9776_p4 = scmp.lt.s32.totalorder %s9770_s2, %s9770_s2 }
  0x53   :  { %p9777_p5 = por %p9776_p4, %p9775_p3 }
  0x55   :  { %p9778_p6 = pnand %p9777_p5, %p9771_p2 }
  0x57   :  { %9781 = shalt.err (!%p9778_p6)
}
  0x58   :  { %95 = dma.hbm_to_vmem [thread:$0]  %s11358_s7, 2048, %s90_s26, [#allocation13], %s9855_s0, %s9855_s0, %s9856_s30  }
  0x59   :  { %s9865_s19 = smov [#allocation17]   ;;  %s9866_s20 = smov [#allocation20]  }
  0x5a   :  { %s117_s1 = sshll.u32 %s9865_s19, 4  ;;  %s145_s4 = sshll.u32 %s9866_s20, 4  ;;  %s118_s1 = int_to_ptr.vmem [resolvable:$true] %s117_s1  ;;  %s146_s4 = int_to_ptr.vmem [resolvable:$true] %s145_s4 }
  0x5b   :  { %s9790_s9 = scalar_lea.vmem %s118_s1, 512  ;;  %p9795_p8 = scmp.lt.s32.totalorder %s118_s1, %s118_s1 }
  0x5c   :  { %p9791_p7 = scmp.ne.s32.totalorder %s118_s1, %s9790_s9  ;;  %p9796_p9 = scmp.lt.s32.totalorder %s9790_s9, %s9790_s9 }
  0x5e   :  { %p9797_p10 = por %p9796_p9, %p9795_p8 }
  0x60   :  { %p9798_p11 = pnand %p9797_p10, %p9791_p7 }
  0x62   :  { %9801 = shalt.err (!%p9798_p11)
}
  0x63   :  { %123 = dma.hbm_to_vmem [thread:$0]  %s11362_s11, 512, %s118_s1, [#allocation16], %s9855_s0, %s9855_s0, %s9856_s30  }
  0x64   :  { %s9810_s7 = scalar_lea.vmem %s146_s4, 512  ;;  %p9815_p13 = scmp.lt.s32.totalorder %s146_s4, %s146_s4 }
  0x65   :  { %p9811_p12 = scmp.ne.s32.totalorder %s146_s4, %s9810_s7  ;;  %p9816_p0 = scmp.lt.s32.totalorder %s9810_s7, %s9810_s7 }
  0x67   :  { %p9817_p1 = por %p9816_p0, %p9815_p13 }
  0x69   :  { %p9818_p2 = pnand %p9817_p1, %p9811_p12 }
  0x6b   :  { %9821 = shalt.err (!%p9818_p2)
}
  0x6c   :  { %151 = dma.hbm_to_vmem [thread:$0]  %s11366_s15, 512, %s146_s4, [#allocation19], %s9855_s0, %s9855_s0, %s9856_s30  }
  0x6d   :  { %9842 = dma.done.wait [#allocation7], 256  }
  0x6e   :  { %9843 = vsyncadd [#allocation7], 4294967040 }
  0x6f   :  { %9844 = dma.done.wait [#allocation10], 1024  }
  0x70   :  { %9845 = vsyncadd [#allocation10], 4294966272 }
  0x71   :  { %9846 = dma.done.wait [#allocation13], 4096  }
  0x72   :  { %9847 = vsyncadd [#allocation13], 4294963200 }
  0x73   :  { %9848 = dma.done.wait [#allocation16], 1024  }
  0x74   :  { %9849 = vsyncadd [#allocation16], 4294966272 }
  0x75   :  { %9850 = dma.done.wait [#allocation19], 1024  }
  0x76   :  { %9851 = vsyncadd [#allocation19], 4294966272  ;;  %v9867_v1 = vmov 0.0   ;;  %vm9868_vm0 = vmmov 0   ;;  %v10024_v2 = vld [vmem:[#allocation9 + $0x18] sm:$0xff]  ;;  %v10026_v3 = vld [vmem:[#allocation9 + $0x10] sm:$0xff] }
  0x77   :  { %8378 = vmatprep.subr.mxu0 %v9867_v1  ;;  %8386 = vmatprep.mubr.msk.f32.mxu0 %vm9868_vm0, %v9867_v1  ;;  %v10031_v4 = vld [vmem:[#allocation9 + $0x8] sm:$0xff]  ;;  %v10037_v5 = vld [vmem:[#allocation9] sm:$0xff]  ;;  %v197_v6 = vld [vmem:[#allocation6] sm:$0x3]  ;;  %vm198_vm1 = vcmask 261120   ;;  %vm915_vm2 = vcmask 254976  }
  0x78   :  { %8389 = vmatprep.subr.mxu1 %v9867_v1  ;;  %8397 = vmatprep.mubr.msk.f32.mxu1 %vm9868_vm0, %v9867_v1  ;;  %v351_v7 = vld [vmem:[#allocation6 + $0x4] sm:$0x3]  ;;  %v505_v8 = vld [vmem:[#allocation6 + $0x8] sm:$0x3]  ;;  %v659_v9 = vld [vmem:[#allocation6 + $0xc] sm:$0x3] }
  0x79   :  { %8379 = vmatpush3.msra.mxu0 %v10024_v2  ;;  %8390 = vmatpush3.msra.mxu1 %v10024_v2  ;;  %v10079_v10 = vld [vmem:[#allocation11 + $0x18] sm:$0xff]  ;;  %v10084_v11 = vld [vmem:[#allocation11 + $0x10] sm:$0xff]  ;;  %v10090_v12 = vld [vmem:[#allocation11 + $0x8] sm:$0xff]  ;;  %s11372_s18 = sld [smem:[#allocation28_spill]]  ;;  %s9871_s9 = smov [#allocation21]  }
  0x7a   :  { %8380 = vmatprep.subr.mxu0 %v9867_v1  ;;  %8391 = vmatprep.subr.mxu1 %v9867_v1  ;;  %v10094_v13 = vld [vmem:[#allocation11] sm:$0xff]  ;;  %v10114_v14 = vld [vmem:[%s11356_s5] ss:$0 sm:$0xff]  ;;  %s9869_s5 = smov 64   ;;  %v274_v41 = vld [vmem:[#allocation6 + $0x2] sm:$0x3] }
  0x7b   :  { %8381 = vmatpush3.msra.mxu0 %v10026_v3  ;;  %8392 = vmatpush3.msra.mxu1 %v10026_v3  ;;  %v428_v42 = vld [vmem:[#allocation6 + $0x6] sm:$0x3]  ;;  %v582_v44 = vld [vmem:[#allocation6 + $0xa] sm:$0x3]  ;;  %v736_v45 = vld [vmem:[#allocation6 + $0xe] sm:$0x3] }
  0x7c   :  { %8382 = vmatprep.subr.mxu0 %v9867_v1  ;;  %8393 = vmatprep.subr.mxu1 %v9867_v1  ;;  %s7813_s22 = sshll.u32 %s9871_s9, 4  ;;  %s7814_s22 = int_to_ptr.vmem [resolvable:$true] %s7813_s22 }
  0x7d   :  { %8383 = vmatpush3.msra.mxu0 %v10031_v4  ;;  %8394 = vmatpush3.msra.mxu1 %v10031_v4  ;;  %s9822_s23 = scalar_lea.vmem %s7814_s22, 32  ;;  %p9827_p4 = scmp.lt.s32.totalorder %s7814_s22, %s7814_s22 }
  0x7e   :  { %8384 = vmatprep.subr.mxu0 %v9867_v1  ;;  %8395 = vmatprep.subr.mxu1 %v9867_v1  ;;  %p9823_p3 = scmp.ne.s32.totalorder %s7814_s22, %s9822_s23  ;;  %p9828_p5 = scmp.lt.s32.totalorder %s9822_s23, %s9822_s23 }
  0x7f   :  { %8385 = vmatpush3.msra.mxu0 %v10037_v5  ;;  %8396 = vmatpush3.msra.mxu1 %v10037_v5 }
  0x80   :  { %8387 = vmatmul.mubr.msk.f32.vlgmr.msra.gmra.mxu0 %vm198_vm1, %v197_v6  ;;  %8400 = vmatprep.subr.mxu0 %v9867_v1  ;;  %p9829_p6 = por %p9828_p5, %p9827_p4 }
  0x81   :  { %8401 = vmatpush3.msra.mxu0 %v10024_v2  ;;  %8408 = vmatprep.mubr.msk.f32.mxu0 %vm9868_vm0, %v9867_v1 }
  0x82   :  { %8402 = vmatprep.subr.mxu0 %v9867_v1  ;;  %8411 = vmatprep.subr.mxu1 %v9867_v1  ;;  %p9830_p7 = pnand %p9829_p6, %p9823_p3 }
  0x83   :  { %8403 = vmatpush3.msra.mxu0 %v10026_v3  ;;  %8398 = vmatmul.mubr.msk.f32.vlgmr.msra.gmra.mxu1 %vm198_vm1, %v274_v41 }
  0x84   :  { %8404 = vmatprep.subr.mxu0 %v9867_v1  ;;  %8412 = vmatpush3.msra.mxu1 %v10024_v2 }
  0x85   :  { %8405 = vmatpush3.msra.mxu0 %v10031_v4  ;;  %8419 = vmatprep.mubr.msk.f32.mxu1 %vm9868_vm0, %v9867_v1 }
  0x86   :  { %8406 = vmatprep.subr.mxu0 %v9867_v1  ;;  %8413 = vmatprep.subr.mxu1 %v9867_v1 }
  0x87   :  { %8407 = vmatpush3.msra.mxu0 %v10037_v5  ;;  %8414 = vmatpush3.msra.mxu1 %v10026_v3 }
  0x88   :  { %8409 = vmatmul.mubr.msk.f32.vlgmr.msra.gmra.mxu0 %vm198_vm1, %v351_v7  ;;  %8422 = vmatprep.subr.mxu0 %v9867_v1 }
  0x89   :  { %8423 = vmatpush3.msra.mxu0 %v10024_v2  ;;  %8430 = vmatprep.mubr.msk.f32.mxu0 %vm9868_vm0, %v9867_v1 }
  0x8a   :  { %8424 = vmatprep.subr.mxu0 %v9867_v1  ;;  %8415 = vmatprep.subr.mxu1 %v9867_v1 }
  0x8b   :  { %8425 = vmatpush3.msra.mxu0 %v10026_v3  ;;  %8416 = vmatpush3.msra.mxu1 %v10031_v4 }
  0x8c   :  { %8426 = vmatprep.subr.mxu0 %v9867_v1  ;;  %8417 = vmatprep.subr.mxu1 %v9867_v1 }
  0x8d   :  { %8427 = vmatpush3.msra.mxu0 %v10031_v4  ;;  %8418 = vmatpush3.msra.mxu1 %v10037_v5 }
  0x8e   :  { %8428 = vmatprep.subr.mxu0 %v9867_v1  ;;  %8420 = vmatmul.mubr.msk.f32.vlgmr.msra.gmra.mxu1 %vm198_vm1, %v428_v42 }
  0x8f   :  { %8429 = vmatpush3.msra.mxu0 %v10037_v5  ;;  %8433 = vmatprep.subr.mxu1 %v9867_v1 }
  0x90   :  { %8431 = vmatmul.mubr.msk.f32.vlgmr.msra.gmra.mxu0 %vm198_vm1, %v505_v8  ;;  %8444 = vmatprep.subr.mxu0 %v9867_v1 }
  0x91   :  { %8445 = vmatpush3.msra.mxu0 %v10024_v2  ;;  %8452 = vmatprep.mubr.msk.f32.mxu0 %vm9868_vm0, %v9867_v1 }
  0x92   :  { %8446 = vmatprep.subr.mxu0 %v9867_v1  ;;  %8434 = vmatpush3.msra.mxu1 %v10024_v2 }
  0x93   :  { %8447 = vmatpush3.msra.mxu0 %v10026_v3  ;;  %8441 = vmatprep.mubr.msk.f32.mxu1 %vm9868_vm0, %v9867_v1 }
  0x94   :  { %8448 = vmatprep.subr.mxu0 %v9867_v1  ;;  %8435 = vmatprep.subr.mxu1 %v9867_v1 }
  0x95   :  { %8449 = vmatpush3.msra.mxu0 %v10031_v4  ;;  %8436 = vmatpush3.msra.mxu1 %v10026_v3 }
  0x96   :  { %8450 = vmatprep.subr.mxu0 %v9867_v1  ;;  %8437 = vmatprep.subr.mxu1 %v9867_v1 }
  0x97   :  { %8451 = vmatpush3.msra.mxu0 %v10037_v5  ;;  %8438 = vmatpush3.msra.mxu1 %v10031_v4 }
  0x98   :  { %8453 = vmatmul.mubr.msk.f32.vlgmr.msra.gmra.mxu0 %vm198_vm1, %v659_v9  ;;  %8466 = vmatprep.subr.mxu0 %v9867_v1 }
  0x99   :  { %8467 = vmatpush3.msra.mxu0 %v10079_v10  ;;  %8474 = vmatprep.mubr.msk.f32.mxu0 %vm9868_vm0, %v9867_v1 }
  0x9a   :  { %8468 = vmatprep.subr.mxu0 %v9867_v1  ;;  %8439 = vmatprep.subr.mxu1 %v9867_v1 }
  0x9b   :  { %8469 = vmatpush3.msra.mxu0 %v10084_v11  ;;  %8440 = vmatpush3.msra.mxu1 %v10037_v5 }
  0x9c   :  { %8470 = vmatprep.subr.mxu0 %v9867_v1  ;;  %8442 = vmatmul.mubr.msk.f32.vlgmr.msra.gmra.mxu1 %vm198_vm1, %v582_v44 }
  0x9d   :  { %8471 = vmatpush3.msra.mxu0 %v10090_v12  ;;  %8455 = vmatprep.subr.mxu1 %v9867_v1 }
  0x9e   :  { %8472 = vmatprep.subr.mxu0 %v9867_v1  ;;  %8456 = vmatpush3.msra.mxu1 %v10024_v2 }
  0x9f   :  { %8473 = vmatpush3.msra.mxu0 %v10094_v13  ;;  %8463 = vmatprep.mubr.msk.f32.mxu1 %vm9868_vm0, %v9867_v1 }
  0xa0   :  { %8475 = vmatmul.mubr.f32.vlgmr.msra.gmra.mxu0 %v9867_v1  ;;  %8488 = vmatprep.subr.mxu0 %v9867_v1 }
  0xa1   :  { %8489 = vmatpush3.msra.mxu0 %v10079_v10  ;;  %8496 = vmatprep.mubr.msk.f32.mxu0 %vm9868_vm0, %v9867_v1 }
  0xa2   :  { %8490 = vmatprep.subr.mxu0 %v9867_v1  ;;  %8457 = vmatprep.subr.mxu1 %v9867_v1 }
  0xa3   :  { %8491 = vmatpush3.msra.mxu0 %v10084_v11  ;;  %8458 = vmatpush3.msra.mxu1 %v10026_v3 }
  0xa4   :  { %8492 = vmatprep.subr.mxu0 %v9867_v1  ;;  %8459 = vmatprep.subr.mxu1 %v9867_v1 }
  0xa5   :  { %8493 = vmatpush3.msra.mxu0 %v10090_v12  ;;  %8460 = vmatpush3.msra.mxu1 %v10031_v4 }
  0xa6   :  { %8494 = vmatprep.subr.mxu0 %v9867_v1  ;;  %8461 = vmatprep.subr.mxu1 %v9867_v1 }
  0xa7   :  { %8495 = vmatpush3.msra.mxu0 %v10094_v13  ;;  %8462 = vmatpush3.msra.mxu1 %v10037_v5 }
  0xa8   :  { %8510 = vmatprep.subr.mxu0 %v9867_v1  ;;  %8464 = vmatmul.mubr.msk.f32.vlgmr.msra.gmra.mxu1 %vm198_vm1, %v736_v45 }
  0xa9   :  { %8477 = vmatprep.subr.mxu1 %v9867_v1  ;;  %8485 = vmatprep.mubr.msk.f32.mxu1 %vm9868_vm0, %v9867_v1 }
  0xaa   :  { %8478 = vmatpush3.msra.mxu1 %v10079_v10 }
  0xab   :  { %8479 = vmatprep.subr.mxu1 %v9867_v1 }
  0xac   :  { %8480 = vmatpush3.msra.mxu1 %v10084_v11 }
  0xad   :  { %8481 = vmatprep.subr.mxu1 %v9867_v1 }
  0xae   :  { %8482 = vmatpush3.msra.mxu1 %v10090_v12 }
  0xaf   :  { %8483 = vmatprep.subr.mxu1 %v9867_v1 }
  0xb0   :  { %8484 = vmatpush3.msra.mxu1 %v10094_v13 }
  0xb1   :  { %8499 = vmatprep.subr.mxu1 %v9867_v1 }
 0x140   :  { %v268_v15 = vpop.f32.mrf.mxu0 }
 0x141   :  { %v269_v16 = vadd.f32 %v10114_v14, %v268_v15 }
 0x142   :  { %v8388_v17 = vpop.f32.mrf.mxu0 }
 0x143   :  { %272 = vst [vmem:[#allocation4] sm:$0x3] %v269_v16  ;;  %v344_v48 = vpop.f32.mrf.mxu1 }
 0x144   :  { %v345_v49 = vadd.f32 %v10114_v14, %v344_v48 }
 0x145   :  { %v8399_v50 = vpop.f32.mrf.mxu1 }
 0x146   :  { %349 = vst [vmem:[#allocation4 + $0x2] sm:$0x3] %v345_v49 }
 0x148   :  { %v421_v18 = vpop.f32.mrf.mxu0 }
 0x149   :  { %v422_v19 = vadd.f32 %v10114_v14, %v421_v18 }
 0x14a   :  { %v8410_v20 = vpop.f32.mrf.mxu0  ;;  %v812_v27 = vld [vmem:[#allocation4] sm:$0x3] }
 0x14b   :  { %426 = vst [vmem:[#allocation4 + $0x4] sm:$0x3] %v422_v19 }
 0x14d   :  { %v917_v61 = vld [vmem:[#allocation4 + $0x2] sm:$0x3] }
 0x14e   :  { %v498_v51 = vpop.f32.mrf.mxu1 }
 0x14f   :  { %v499_v52 = vadd.f32 %v10114_v14, %v498_v51 }
 0x150   :  { %v575_v21 = vpop.f32.mrf.mxu0  ;;  %v8421_v53 = vpop.f32.mrf.mxu1 }
 0x151   :  { %v576_v22 = vadd.f32 %v10114_v14, %v575_v21  ;;  %503 = vst [vmem:[#allocation4 + $0x6] sm:$0x3] %v499_v52 }
 0x152   :  { %v8432_v23 = vpop.f32.mrf.mxu0  ;;  %v1021_v20 = vld [vmem:[#allocation4 + $0x4] sm:$0x3] }
 0x153   :  { %580 = vst [vmem:[#allocation4 + $0x8] sm:$0x3] %v576_v22 }
 0x158   :  { %v729_v24 = vpop.f32.mrf.mxu0 }
 0x159   :  { %v730_v25 = vadd.f32 %v10114_v14, %v729_v24 }
 0x15a   :  { %v8454_v26 = vpop.f32.mrf.mxu0 }
 0x15b   :  { %734 = vst [vmem:[#allocation4 + $0xc] sm:$0x3] %v730_v25 }
 0x15c   :  { %v652_v54 = vpop.f32.mrf.mxu1 }
 0x15d   :  { %v653_v55 = vadd.f32 %v10114_v14, %v652_v54 }
 0x15e   :  { %v8443_v56 = vpop.f32.mrf.mxu1 }
 0x15f   :  { %657 = vst [vmem:[#allocation4 + $0xa] sm:$0x3] %v653_v55  ;;  %v1229_v56 = vld [vmem:[#allocation4 + $0x8] sm:$0x3] }
 0x160   :  { %v882_v28 = vpop.f32.mrf.mxu0 }
 0x161   :  { %v886_v29 = vadd.f32 %v882_v28, %v812_v27 }
 0x162   :  { %v8476_v30 = vpop.f32.mrf.mxu0 }
 0x163   :  { %9322 = vtanh.f32 %v886_v29  ;;  %v7835_v32 = vmul.f32 -1.442695, %v886_v29 }
 0x165   :  { %9324 = vpow2.f32 %v7835_v32 }
 0x168   :  { %v806_v57 = vpop.f32.mrf.mxu1 }
 0x169   :  { %v807_v58 = vadd.f32 %v10114_v14, %v806_v57 }
 0x16a   :  { %v8465_v59 = vpop.f32.mrf.mxu1 }
 0x16b   :  { %811 = vst [vmem:[#allocation4 + $0xe] sm:$0x3] %v807_v58 }
 0x170   :  { %v9323_v31 = vpop.eup %9322 }
 0x171   :  { %896 = vrot.lane.b32.xlu0 %v9323_v31, %s9869_s5 }
 0x172   :  { %v9325_v33 = vpop.eup %9324 }
 0x173   :  { %v890_v34 = vadd.f32 1.0, %v9325_v33 }
 0x175   :  { %9326 = vrcp.f32 %v890_v34 }
 0x182   :  { %v9327_v35 = vpop.eup %9326 }
 0x183   :  { %v894_v38 = vmul.f32 0.0, %v9327_v35 }
 0x1e3   :  { %v897_v36 = vpop.permute.xlu0 %896 }
 0x1e4   :  { %v899_v37 = vmul.f32 %v9327_v35, %v897_v36 }
 0x1e6   :  { %901 = vrot.lane.b32.xlu0 %v899_v37, %s9861_s21 }
 0x258   :  { %v902_v39 = vpop.permute.xlu0 %901 }
 0x259   :  { %v10122_v40 = vadd.f32 %v902_v39, %v894_v38  ;;  %v1125_v38 = vld [vmem:[#allocation4 + $0x6] sm:$0x3] }
 0x25b   :  { %9328 = vtanh.f32 %v10122_v40 }
 0x268   :  { %v9329_v43 = vpop.eup %9328 }
 0x269   :  { %907 = vrot.lane.b32.xlu1 %v9329_v43, %s9869_s5 }
 0x2db   :  { %v908_v46 = vpop.permute.xlu1 %907 }
 0x2dc   :  { %v910_v47 = vmul.f32 %v9327_v35, %v908_v46 }
 0x2de   :  { %912 = vrot.lane.b32.xlu1 %v910_v47, %s9861_s21 }
 0x350   :  { %v913_v60 = vpop.permute.xlu1 %912 }
 0x351   :  { %916 = vst.msk [vmem:[#allocation2] sm:$0x3] %vm915_vm2, %v913_v60  ;;  %8486 = vmatmul.mubr.msk.f32.vlgmr.msra.gmra.mxu1 %vm198_vm1, %v913_v60 }
 0x352   :  { %8500 = vmatpush3.msra.mxu1 %v10079_v10  ;;  %8507 = vmatprep.mubr.msk.f32.mxu1 %vm9868_vm0, %v9867_v1 }
 0x353   :  { %8501 = vmatprep.subr.mxu1 %v9867_v1 }
 0x354   :  { %8502 = vmatpush3.msra.mxu1 %v10084_v11 }
 0x355   :  { %8503 = vmatprep.subr.mxu1 %v9867_v1 }
 0x356   :  { %8504 = vmatpush3.msra.mxu1 %v10090_v12 }
 0x357   :  { %8505 = vmatprep.subr.mxu1 %v9867_v1 }
 0x358   :  { %8506 = vmatpush3.msra.mxu1 %v10094_v13 }
 0x359   :  { %8521 = vmatprep.subr.mxu1 %v9867_v1 }
 0x411   :  { %v986_v62 = vpop.f32.mrf.mxu1 }
 0x412   :  { %v990_v63 = vadd.f32 %v986_v62, %v917_v61 }
 0x413   :  { %v8487_v0 = vpop.f32.mrf.mxu1 }
 0x414   :  { %9330 = vtanh.f32 %v990_v63  ;;  %v7837_v3 = vmul.f32 -1.442695, %v990_v63 }
 0x416   :  { %9332 = vpow2.f32 %v7837_v3 }
 0x421   :  { %v9331_v2 = vpop.eup %9330 }
 0x422   :  { %1000 = vrot.lane.b32.xlu0 %v9331_v2, %s9869_s5 }
 0x423   :  { %v9333_v4 = vpop.eup %9332 }
 0x424   :  { %v994_v5 = vadd.f32 1.0, %v9333_v4 }
 0x426   :  { %9334 = vrcp.f32 %v994_v5 }
 0x433   :  { %v9335_v6 = vpop.eup %9334 }
 0x434   :  { %v998_v9 = vmul.f32 %v9335_v6, %v10122_v40 }
 0x494   :  { %v1001_v7 = vpop.permute.xlu0 %1000 }
 0x495   :  { %v1003_v8 = vmul.f32 %v9335_v6, %v1001_v7 }
 0x497   :  { %1005 = vrot.lane.b32.xlu1 %v1003_v8, %s9861_s21 }
 0x509   :  { %v1006_v14 = vpop.permute.xlu1 %1005 }
 0x50a   :  { %v1008_v15 = vadd.f32 %v1006_v14, %v998_v9 }
 0x50c   :  { %9336 = vtanh.f32 %v1008_v15 }
 0x519   :  { %v9337_v16 = vpop.eup %9336 }
 0x51a   :  { %1011 = vrot.lane.b32.xlu0 %v9337_v16, %s9869_s5 }
 0x58c   :  { %v1012_v17 = vpop.permute.xlu0 %1011 }
 0x58d   :  { %v1014_v18 = vmul.f32 %v9335_v6, %v1012_v17 }
 0x58f   :  { %1016 = vrot.lane.b32.xlu1 %v1014_v18, %s9861_s21 }
 0x601   :  { %v1017_v19 = vpop.permute.xlu1 %1016 }
 0x602   :  { %1020 = vst.msk [vmem:[#allocation2 + $0x2] sm:$0x3] %vm915_vm2, %v1017_v19  ;;  %8497 = vmatmul.mubr.msk.f32.vlgmr.msra.gmra.mxu0 %vm198_vm1, %v1017_v19 }
 0x603   :  { %8511 = vmatpush3.msra.mxu0 %v10079_v10  ;;  %8518 = vmatprep.mubr.msk.f32.mxu0 %vm9868_vm0, %v9867_v1 }
 0x604   :  { %8512 = vmatprep.subr.mxu0 %v9867_v1 }
 0x605   :  { %8513 = vmatpush3.msra.mxu0 %v10084_v11 }
 0x606   :  { %8514 = vmatprep.subr.mxu0 %v9867_v1 }
 0x607   :  { %8515 = vmatpush3.msra.mxu0 %v10090_v12 }
 0x608   :  { %8516 = vmatprep.subr.mxu0 %v9867_v1 }
 0x609   :  { %8517 = vmatpush3.msra.mxu0 %v10094_v13 }
 0x60a   :  { %8532 = vmatprep.subr.mxu0 %v9867_v1 }
 0x6c2   :  { %v1090_v21 = vpop.f32.mrf.mxu0 }
 0x6c3   :  { %v1094_v22 = vadd.f32 %v1090_v21, %v1021_v20 }
 0x6c4   :  { %v8498_v23 = vpop.f32.mrf.mxu0 }
 0x6c5   :  { %9338 = vtanh.f32 %v1094_v22  ;;  %v7839_v25 = vmul.f32 -1.442695, %v1094_v22 }
 0x6c7   :  { %9340 = vpow2.f32 %v7839_v25 }
 0x6d2   :  { %v9339_v24 = vpop.eup %9338 }
 0x6d3   :  { %1104 = vrot.lane.b32.xlu0 %v9339_v24, %s9869_s5 }
 0x6d4   :  { %v9341_v26 = vpop.eup %9340 }
 0x6d5   :  { %v1098_v27 = vadd.f32 1.0, %v9341_v26 }
 0x6d7   :  { %9342 = vrcp.f32 %v1098_v27 }
 0x6e4   :  { %v9343_v28 = vpop.eup %9342 }
 0x6e5   :  { %v1102_v31 = vmul.f32 %v9343_v28, %v1008_v15  ;;  %v1333_v15 = vld [vmem:[#allocation4 + $0xa] sm:$0x3] }
 0x745   :  { %v1105_v29 = vpop.permute.xlu0 %1104 }
 0x746   :  { %v1107_v30 = vmul.f32 %v9343_v28, %v1105_v29 }
 0x748   :  { %1109 = vrot.lane.b32.xlu1 %v1107_v30, %s9861_s21  ;;  %v10263_v30 = vld [vmem:[#allocation12 + $0x10] sm:$0xff] }
 0x7ba   :  { %v1110_v32 = vpop.permute.xlu1 %1109 }
 0x7bb   :  { %v1112_v33 = vadd.f32 %v1110_v32, %v1102_v31  ;;  %v10269_v31 = vld [vmem:[#allocation12 + $0x8] sm:$0xff]  ;;  %v10273_v32 = vld [vmem:[#allocation12] sm:$0xff] }
 0x7bd   :  { %9344 = vtanh.f32 %v1112_v33 }
 0x7ca   :  { %v9345_v34 = vpop.eup %9344 }
 0x7cb   :  { %1115 = vrot.lane.b32.xlu0 %v9345_v34, %s9869_s5 }
 0x83d   :  { %v1116_v35 = vpop.permute.xlu0 %1115 }
 0x83e   :  { %v1118_v36 = vmul.f32 %v9343_v28, %v1116_v35  ;;  %v10259_v28 = vld [vmem:[#allocation12 + $0x18] sm:$0xff] }
 0x840   :  { %1120 = vrot.lane.b32.xlu1 %v1118_v36, %s9861_s21  ;;  %v1437_v36 = vld [vmem:[#allocation4 + $0xc] sm:$0x3] }
 0x8b2   :  { %v1121_v37 = vpop.permute.xlu1 %1120 }
 0x8b3   :  { %1124 = vst.msk [vmem:[#allocation2 + $0x4] sm:$0x3] %vm915_vm2, %v1121_v37  ;;  %8508 = vmatmul.mubr.msk.f32.vlgmr.msra.gmra.mxu1 %vm198_vm1, %v1121_v37 }
 0x8b4   :  { %8522 = vmatpush3.msra.mxu1 %v10079_v10  ;;  %8529 = vmatprep.mubr.msk.f32.mxu1 %vm9868_vm0, %v9867_v1 }
 0x8b5   :  { %8523 = vmatprep.subr.mxu1 %v9867_v1 }
 0x8b6   :  { %8524 = vmatpush3.msra.mxu1 %v10084_v11 }
 0x8b7   :  { %8525 = vmatprep.subr.mxu1 %v9867_v1 }
 0x8b8   :  { %8526 = vmatpush3.msra.mxu1 %v10090_v12 }
 0x8b9   :  { %8527 = vmatprep.subr.mxu1 %v9867_v1 }
 0x8ba   :  { %8528 = vmatpush3.msra.mxu1 %v10094_v13  ;;  %v1810_v34 = vld [vmem:[#allocation2 + $0x4] sm:$0x3] }
 0x8bb   :  { %8543 = vmatprep.subr.mxu1 %v9867_v1 }
 0x973   :  { %v1194_v39 = vpop.f32.mrf.mxu1 }
 0x974   :  { %v1198_v40 = vadd.f32 %v1194_v39, %v1125_v38 }
 0x975   :  { %v8509_v41 = vpop.f32.mrf.mxu1 }
 0x976   :  { %9346 = vtanh.f32 %v1198_v40  ;;  %v7841_v43 = vmul.f32 -1.442695, %v1198_v40  ;;  %v10315_v40 = vld [vmem:[%s11359_s8] ss:$0 sm:$0xff] }
 0x978   :  { %9348 = vpow2.f32 %v7841_v43 }
 0x983   :  { %v9347_v42 = vpop.eup %9346 }
 0x984   :  { %1208 = vrot.lane.b32.xlu0 %v9347_v42, %s9869_s5 }
 0x985   :  { %v9349_v44 = vpop.eup %9348 }
 0x986   :  { %v1202_v45 = vadd.f32 1.0, %v9349_v44 }
 0x988   :  { %9350 = vrcp.f32 %v1202_v45 }
 0x995   :  { %v9351_v46 = vpop.eup %9350 }
 0x996   :  { %v1206_v49 = vmul.f32 %v9351_v46, %v1112_v33  ;;  %v1660_v33 = vld [vmem:[#allocation2] sm:$0x3] }
 0x9f6   :  { %v1209_v47 = vpop.permute.xlu0 %1208 }
 0x9f7   :  { %v1211_v48 = vmul.f32 %v9351_v46, %v1209_v47 }
 0x9f9   :  { %1213 = vrot.lane.b32.xlu1 %v1211_v48, %s9861_s21 }
 0xa6b   :  { %v1214_v50 = vpop.permute.xlu1 %1213 }
 0xa6c   :  { %v1216_v51 = vadd.f32 %v1214_v50, %v1206_v49 }
 0xa6e   :  { %9352 = vtanh.f32 %v1216_v51 }
 0xa7b   :  { %v9353_v52 = vpop.eup %9352 }
 0xa7c   :  { %1219 = vrot.lane.b32.xlu0 %v9353_v52, %s9869_s5 }
 0xaee   :  { %v1220_v53 = vpop.permute.xlu0 %1219 }
 0xaef   :  { %v1222_v54 = vmul.f32 %v9351_v46, %v1220_v53 }
 0xaf1   :  { %1224 = vrot.lane.b32.xlu1 %v1222_v54, %s9861_s21 }
 0xb63   :  { %v1225_v55 = vpop.permute.xlu1 %1224 }
 0xb64   :  { %1228 = vst.msk [vmem:[#allocation2 + $0x6] sm:$0x3] %vm915_vm2, %v1225_v55  ;;  %8519 = vmatmul.mubr.msk.f32.vlgmr.msra.gmra.mxu0 %vm198_vm1, %v1225_v55 }
 0xb65   :  { %8533 = vmatpush3.msra.mxu0 %v10079_v10  ;;  %8540 = vmatprep.mubr.msk.f32.mxu0 %vm9868_vm0, %v9867_v1 }
 0xb66   :  { %8534 = vmatprep.subr.mxu0 %v9867_v1 }
 0xb67   :  { %8535 = vmatpush3.msra.mxu0 %v10084_v11 }
 0xb68   :  { %8536 = vmatprep.subr.mxu0 %v9867_v1 }
 0xb69   :  { %8537 = vmatpush3.msra.mxu0 %v10090_v12 }
 0xb6a   :  { %8538 = vmatprep.subr.mxu0 %v9867_v1 }
 0xb6b   :  { %8539 = vmatpush3.msra.mxu0 %v10094_v13 }
 0xb6c   :  { %8554 = vmatprep.subr.mxu0 %v9867_v1 }
 0xc24   :  { %v1298_v57 = vpop.f32.mrf.mxu0 }
 0xc25   :  { %v1302_v58 = vadd.f32 %v1298_v57, %v1229_v56 }
 0xc26   :  { %v8520_v59 = vpop.f32.mrf.mxu0 }
 0xc27   :  { %9354 = vtanh.f32 %v1302_v58  ;;  %v7843_v61 = vmul.f32 -1.442695, %v1302_v58 }
 0xc29   :  { %9356 = vpow2.f32 %v7843_v61 }
 0xc34   :  { %v9355_v60 = vpop.eup %9354 }
 0xc35   :  { %1312 = vrot.lane.b32.xlu0 %v9355_v60, %s9869_s5 }
 0xc36   :  { %v9357_v62 = vpop.eup %9356 }
 0xc37   :  { %v1306_v63 = vadd.f32 1.0, %v9357_v62 }
 0xc39   :  { %9358 = vrcp.f32 %v1306_v63 }
 0xc46   :  { %v9359_v0 = vpop.eup %9358 }
 0xc47   :  { %v1310_v4 = vmul.f32 %v9359_v0, %v1216_v51 }
 0xca7   :  { %v1313_v2 = vpop.permute.xlu0 %1312 }
 0xca8   :  { %v1315_v3 = vmul.f32 %v9359_v0, %v1313_v2 }
 0xcaa   :  { %1317 = vrot.lane.b32.xlu1 %v1315_v3, %s9861_s21  ;;  %v10339_v3 = vld [vmem:[#allocation14 + $0x18] sm:$0xff] }
 0xd1c   :  { %v1318_v5 = vpop.permute.xlu1 %1317 }
 0xd1d   :  { %v1320_v6 = vadd.f32 %v1318_v5, %v1310_v4  ;;  %v10345_v4 = vld [vmem:[#allocation14 + $0x10] sm:$0xff]  ;;  %v10351_v5 = vld [vmem:[#allocation14 + $0x8] sm:$0xff] }
 0xd1f   :  { %9360 = vtanh.f32 %v1320_v6 }
 0xd2c   :  { %v9361_v7 = vpop.eup %9360 }
 0xd2d   :  { %1323 = vrot.lane.b32.xlu0 %v9361_v7, %s9869_s5  ;;  %v1885_v7 = vld [vmem:[#allocation2 + $0x6] sm:$0x3] }
 0xd9f   :  { %v1324_v8 = vpop.permute.xlu0 %1323 }
 0xda0   :  { %v1326_v9 = vmul.f32 %v9359_v0, %v1324_v8  ;;  %v1735_v0 = vld [vmem:[#allocation2 + $0x2] sm:$0x3] }
 0xda2   :  { %1328 = vrot.lane.b32.xlu1 %v1326_v9, %s9861_s21  ;;  %v1541_v9 = vld [vmem:[#allocation4 + $0xe] sm:$0x3] }
 0xe14   :  { %v1329_v14 = vpop.permute.xlu1 %1328 }
 0xe15   :  { %1332 = vst.msk [vmem:[#allocation2 + $0x8] sm:$0x3] %vm915_vm2, %v1329_v14  ;;  %8530 = vmatmul.mubr.msk.f32.vlgmr.msra.gmra.mxu1 %vm198_vm1, %v1329_v14 }
 0xe16   :  { %8544 = vmatpush3.msra.mxu1 %v10079_v10  ;;  %8551 = vmatprep.mubr.msk.f32.mxu1 %vm9868_vm0, %v9867_v1 }
 0xe17   :  { %8545 = vmatprep.subr.mxu1 %v9867_v1 }
 0xe18   :  { %8546 = vmatpush3.msra.mxu1 %v10084_v11 }
 0xe19   :  { %8547 = vmatprep.subr.mxu1 %v9867_v1 }
 0xe1a   :  { %8548 = vmatpush3.msra.mxu1 %v10090_v12 }
 0xe1b   :  { %8549 = vmatprep.subr.mxu1 %v9867_v1 }
 0xe1c   :  { %8550 = vmatpush3.msra.mxu1 %v10094_v13  ;;  %v1960_v35 = vld [vmem:[#allocation2 + $0x8] sm:$0x3] }
 0xe1d   :  { %8565 = vmatprep.subr.mxu1 %v9867_v1 }
 0xed5   :  { %v1402_v16 = vpop.f32.mrf.mxu1 }
 0xed6   :  { %v1406_v10 = vadd.f32 %v1402_v16, %v1333_v15 }
 0xed7   :  { %v8531_v17 = vpop.f32.mrf.mxu1 }
 0xed8   :  { %9362 = vtanh.f32 %v1406_v10  ;;  %v7845_v19 = vmul.f32 -1.442695, %v1406_v10 }
 0xeda   :  { %9364 = vpow2.f32 %v7845_v19 }
 0xee5   :  { %v9363_v18 = vpop.eup %9362 }
 0xee6   :  { %1416 = vrot.lane.b32.xlu0 %v9363_v18, %s9869_s5 }
 0xee7   :  { %v9365_v11 = vpop.eup %9364 }
 0xee8   :  { %v1410_v20 = vadd.f32 1.0, %v9365_v11 }
 0xeea   :  { %9366 = vrcp.f32 %v1410_v20 }
 0xef7   :  { %v9367_v12 = vpop.eup %9366 }
 0xef8   :  { %v1414_v13 = vmul.f32 %v9367_v12, %v1320_v6  ;;  %v10357_v6 = vld [vmem:[#allocation14] sm:$0xff] }
 0xf58   :  { %v1417_v21 = vpop.permute.xlu0 %1416 }
 0xf59   :  { %v1419_v22 = vmul.f32 %v9367_v12, %v1417_v21 }
 0xf5b   :  { %1421 = vrot.lane.b32.xlu1 %v1419_v22, %s9861_s21 }
 0xfcd   :  { %v1422_v23 = vpop.permute.xlu1 %1421 }
 0xfce   :  { %v10254_v24 = vadd.f32 %v1422_v23, %v1414_v13 }
 0xfd0   :  { %9368 = vtanh.f32 %v10254_v24 }
 0xfdd   :  { %v9369_v25 = vpop.eup %9368 }
 0xfde   :  { %1427 = vrot.lane.b32.xlu0 %v9369_v25, %s9869_s5 }
0x1050   :  { %v1428_v26 = vpop.permute.xlu0 %1427 }
0x1051   :  { %v1430_v27 = vmul.f32 %v9367_v12, %v1428_v26 }
0x1053   :  { %1432 = vrot.lane.b32.xlu1 %v1430_v27, %s9861_s21 }
0x10c5   :  { %v1433_v29 = vpop.permute.xlu1 %1432 }
0x10c6   :  { %1436 = vst.msk [vmem:[#allocation2 + $0xa] sm:$0x3] %vm915_vm2, %v1433_v29  ;;  %8541 = vmatmul.mubr.msk.f32.vlgmr.msra.gmra.mxu0 %vm198_vm1, %v1433_v29 }
0x10c7   :  { %8555 = vmatpush3.msra.mxu0 %v10259_v28  ;;  %8562 = vmatprep.mubr.msk.f32.mxu0 %vm9868_vm0, %v9867_v1 }
0x10c8   :  { %8556 = vmatprep.subr.mxu0 %v9867_v1 }
0x10c9   :  { %8557 = vmatpush3.msra.mxu0 %v10263_v30 }
0x10ca   :  { %8558 = vmatprep.subr.mxu0 %v9867_v1 }
0x10cb   :  { %8559 = vmatpush3.msra.mxu0 %v10269_v31 }
0x10cc   :  { %8560 = vmatprep.subr.mxu0 %v9867_v1 }
0x10cd   :  { %8561 = vmatpush3.msra.mxu0 %v10273_v32  ;;  %v2035_v8 = vld [vmem:[#allocation2 + $0xa] sm:$0x3] }
0x10ce   :  { %8563 = vmatmul.mubr.msk.f32.vlgmr.msra.gmra.mxu0 %vm198_vm1, %v1660_v33  ;;  %8576 = vmatprep.subr.mxu0 %v9867_v1 }
0x10cf   :  { %8577 = vmatpush3.msra.mxu0 %v10259_v28  ;;  %8584 = vmatprep.mubr.msk.f32.mxu0 %vm9868_vm0, %v9867_v1 }
0x10d0   :  { %8578 = vmatprep.subr.mxu0 %v9867_v1 }
0x10d1   :  { %8579 = vmatpush3.msra.mxu0 %v10263_v30 }
0x10d2   :  { %8580 = vmatprep.subr.mxu0 %v9867_v1 }
0x10d3   :  { %8581 = vmatpush3.msra.mxu0 %v10269_v31 }
0x10d4   :  { %8582 = vmatprep.subr.mxu0 %v9867_v1 }
0x10d5   :  { %8583 = vmatpush3.msra.mxu0 %v10273_v32 }
0x10d6   :  { %8585 = vmatmul.mubr.msk.f32.vlgmr.msra.gmra.mxu0 %vm198_vm1, %v1810_v34  ;;  %8598 = vmatprep.subr.mxu0 %v9867_v1 }
0x10d7   :  { %8599 = vmatpush3.msra.mxu0 %v10259_v28  ;;  %8606 = vmatprep.mubr.msk.f32.mxu0 %vm9868_vm0, %v9867_v1 }
0x10d8   :  { %8600 = vmatprep.subr.mxu0 %v9867_v1 }
0x10d9   :  { %8601 = vmatpush3.msra.mxu0 %v10263_v30 }
0x10da   :  { %8602 = vmatprep.subr.mxu0 %v9867_v1 }
0x10db   :  { %8603 = vmatpush3.msra.mxu0 %v10269_v31 }
0x10dc   :  { %8604 = vmatprep.subr.mxu0 %v9867_v1 }
0x10dd   :  { %8605 = vmatpush3.msra.mxu0 %v10273_v32 }
0x10de   :  { %8607 = vmatmul.mubr.msk.f32.vlgmr.msra.gmra.mxu0 %vm198_vm1, %v1960_v35  ;;  %8620 = vmatprep.subr.mxu0 %v9867_v1 }
0x10df   :  { %8621 = vmatpush3.msra.mxu0 %v10259_v28  ;;  %8628 = vmatprep.mubr.msk.f32.mxu0 %vm9868_vm0, %v9867_v1 }
0x10e0   :  { %8622 = vmatprep.subr.mxu0 %v9867_v1 }
0x10e1   :  { %8623 = vmatpush3.msra.mxu0 %v10263_v30 }
0x10e2   :  { %8624 = vmatprep.subr.mxu0 %v9867_v1 }
0x10e3   :  { %8625 = vmatpush3.msra.mxu0 %v10269_v31 }
0x10e4   :  { %8626 = vmatprep.subr.mxu0 %v9867_v1 }
0x10e5   :  { %8627 = vmatpush3.msra.mxu0 %v10273_v32 }
0x10e6   :  { %8642 = vmatprep.subr.mxu0 %v9867_v1 }
0x1186   :  { %v1506_v37 = vpop.f32.mrf.mxu0 }
0x1187   :  { %v1510_v38 = vadd.f32 %v1506_v37, %v1437_v36 }
0x1188   :  { %v8542_v39 = vpop.f32.mrf.mxu0 }
0x1189   :  { %9370 = vtanh.f32 %v1510_v38  ;;  %v7847_v51 = vmul.f32 -1.442695, %v1510_v38 }
0x118b   :  { %9372 = vpow2.f32 %v7847_v51 }
0x118e   :  { %v1730_v41 = vpop.f32.mrf.mxu0 }
0x118f   :  { %v1731_v42 = vadd.f32 %v10315_v40, %v1730_v41 }
0x1190   :  { %v8564_v43 = vpop.f32.mrf.mxu0 }
0x1191   :  { %1734 = vst [vmem:[#allocation4] sm:$0x3] %v1731_v42 }
0x1196   :  { %v9371_v44 = vpop.eup %9370  ;;  %v1880_v45 = vpop.f32.mrf.mxu0 }
0x1197   :  { %v1881_v46 = vadd.f32 %v10315_v40, %v1880_v45  ;;  %1520 = vrot.lane.b32.xlu0 %v9371_v44, %s9869_s5 }
0x1198   :  { %v8586_v47 = vpop.f32.mrf.mxu0  ;;  %v9373_v52 = vpop.eup %9372  ;;  %v2260_v13 = vld [vmem:[#allocation4] sm:$0x3] }
0x1199   :  { %1884 = vst [vmem:[#allocation4 + $0x4] sm:$0x3] %v1881_v46  ;;  %v1514_v53 = vadd.f32 1.0, %v9373_v52 }
0x119b   :  { %9374 = vrcp.f32 %v1514_v53 }
0x119e   :  { %v2030_v48 = vpop.f32.mrf.mxu0 }
0x119f   :  { %v2031_v49 = vadd.f32 %v10315_v40, %v2030_v48 }
0x11a0   :  { %v8608_v50 = vpop.f32.mrf.mxu0 }
0x11a1   :  { %2034 = vst [vmem:[#allocation4 + $0x8] sm:$0x3] %v2031_v49 }
0x11a8   :  { %v9375_v54 = vpop.eup %9374 }
0x11a9   :  { %v1518_v57 = vmul.f32 %v9375_v54, %v10254_v24 }
0x1209   :  { %v1521_v55 = vpop.permute.xlu0 %1520 }
0x120a   :  { %v1523_v56 = vmul.f32 %v9375_v54, %v1521_v55 }
0x120c   :  { %1525 = vrot.lane.b32.xlu1 %v1523_v56, %s9861_s21 }
0x127e   :  { %v1526_v58 = vpop.permute.xlu1 %1525 }
0x127f   :  { %v10323_v59 = vadd.f32 %v1526_v58, %v1518_v57 }
0x1281   :  { %9376 = vtanh.f32 %v10323_v59 }
0x128e   :  { %v9377_v60 = vpop.eup %9376 }
0x128f   :  { %1531 = vrot.lane.b32.xlu0 %v9377_v60, %s9869_s5 }
0x1301   :  { %v1532_v61 = vpop.permute.xlu0 %1531 }
0x1302   :  { %v1534_v62 = vmul.f32 %v9375_v54, %v1532_v61 }
0x1304   :  { %1536 = vrot.lane.b32.xlu1 %v1534_v62, %s9861_s21 }
0x1376   :  { %v1537_v63 = vpop.permute.xlu1 %1536 }
0x1377   :  { %1540 = vst.msk [vmem:[#allocation2 + $0xc] sm:$0x3] %vm915_vm2, %v1537_v63  ;;  %8552 = vmatmul.mubr.msk.f32.vlgmr.msra.gmra.mxu1 %vm198_vm1, %v1537_v63 }
0x1378   :  { %8566 = vmatpush3.msra.mxu1 %v10259_v28  ;;  %8573 = vmatprep.mubr.msk.f32.mxu1 %vm9868_vm0, %v9867_v1 }
0x1379   :  { %8567 = vmatprep.subr.mxu1 %v9867_v1 }
0x137a   :  { %8568 = vmatpush3.msra.mxu1 %v10263_v30 }
0x137b   :  { %8569 = vmatprep.subr.mxu1 %v9867_v1 }
0x137c   :  { %8570 = vmatpush3.msra.mxu1 %v10269_v31 }
0x137d   :  { %8571 = vmatprep.subr.mxu1 %v9867_v1 }
0x137e   :  { %8572 = vmatpush3.msra.mxu1 %v10273_v32  ;;  %v2110_v2 = vld [vmem:[#allocation2 + $0xc] sm:$0x3] }
0x137f   :  { %8574 = vmatmul.mubr.msk.f32.vlgmr.msra.gmra.mxu1 %vm198_vm1, %v1735_v0  ;;  %8587 = vmatprep.subr.mxu1 %v9867_v1 }
0x1380   :  { %8588 = vmatpush3.msra.mxu1 %v10259_v28  ;;  %8629 = vmatmul.mubr.msk.f32.vlgmr.msra.gmra.mxu0 %vm198_vm1, %v2110_v2 }
0x1381   :  { %8643 = vmatpush3.msra.mxu0 %v10339_v3  ;;  %8589 = vmatprep.subr.mxu1 %v9867_v1 }
0x1382   :  { %8644 = vmatprep.subr.mxu0 %v9867_v1  ;;  %8590 = vmatpush3.msra.mxu1 %v10263_v30 }
0x1383   :  { %8645 = vmatpush3.msra.mxu0 %v10345_v4  ;;  %8591 = vmatprep.subr.mxu1 %v9867_v1 }
0x1384   :  { %8646 = vmatprep.subr.mxu0 %v9867_v1  ;;  %8592 = vmatpush3.msra.mxu1 %v10269_v31 }
0x1385   :  { %8647 = vmatpush3.msra.mxu0 %v10351_v5  ;;  %8593 = vmatprep.subr.mxu1 %v9867_v1 }
0x1386   :  { %8648 = vmatprep.subr.mxu0 %v9867_v1  ;;  %8594 = vmatpush3.msra.mxu1 %v10273_v32 }
0x1387   :  { %8595 = vmatprep.mubr.msk.f32.mxu1 %vm9868_vm0, %v9867_v1  ;;  %8649 = vmatpush3.msra.mxu0 %v10357_v6 }
0x1388   :  { %8650 = vmatprep.mubr.msk.f32.mxu0 %vm9868_vm0, %v9867_v1  ;;  %8596 = vmatmul.mubr.msk.f32.vlgmr.msra.gmra.mxu1 %vm198_vm1, %v1885_v7 }
0x1389   :  { %8609 = vmatprep.subr.mxu1 %v9867_v1  ;;  %8651 = vmatmul.mubr.f32.vlgmr.msra.gmra.mxu0 %v9867_v1 }
0x138a   :  { %8610 = vmatpush3.msra.mxu1 %v10259_v28  ;;  %8617 = vmatprep.mubr.msk.f32.mxu1 %vm9868_vm0, %v9867_v1 }
0x138b   :  { %8611 = vmatprep.subr.mxu1 %v9867_v1  ;;  %8664 = vmatprep.subr.mxu0 %v9867_v1 }
0x138c   :  { %8612 = vmatpush3.msra.mxu1 %v10263_v30  ;;  %8665 = vmatpush3.msra.mxu0 %v10339_v3 }
0x138d   :  { %8613 = vmatprep.subr.mxu1 %v9867_v1  ;;  %8666 = vmatprep.subr.mxu0 %v9867_v1 }
0x138e   :  { %8614 = vmatpush3.msra.mxu1 %v10269_v31  ;;  %8667 = vmatpush3.msra.mxu0 %v10345_v4 }
0x138f   :  { %8615 = vmatprep.subr.mxu1 %v9867_v1  ;;  %8668 = vmatprep.subr.mxu0 %v9867_v1 }
0x1390   :  { %8616 = vmatpush3.msra.mxu1 %v10273_v32  ;;  %8669 = vmatpush3.msra.mxu0 %v10351_v5 }
0x1391   :  { %8618 = vmatmul.mubr.msk.f32.vlgmr.msra.gmra.mxu1 %vm198_vm1, %v2035_v8  ;;  %8631 = vmatprep.subr.mxu1 %v9867_v1 }
0x1392   :  { %8632 = vmatpush3.msra.mxu1 %v10259_v28  ;;  %8639 = vmatprep.mubr.msk.f32.mxu1 %vm9868_vm0, %v9867_v1 }
0x1393   :  { %8633 = vmatprep.subr.mxu1 %v9867_v1  ;;  %8670 = vmatprep.subr.mxu0 %v9867_v1 }
0x1394   :  { %8634 = vmatpush3.msra.mxu1 %v10263_v30  ;;  %8671 = vmatpush3.msra.mxu0 %v10357_v6 }
0x1395   :  { %8635 = vmatprep.subr.mxu1 %v9867_v1  ;;  %8672 = vmatprep.mubr.msk.f32.mxu0 %vm9868_vm0, %v9867_v1 }
0x1396   :  { %8636 = vmatpush3.msra.mxu1 %v10269_v31  ;;  %8686 = vmatprep.subr.mxu0 %v9867_v1 }
0x1397   :  { %8637 = vmatprep.subr.mxu1 %v9867_v1 }
0x1398   :  { %8638 = vmatpush3.msra.mxu1 %v10273_v32 }
0x1399   :  { %8653 = vmatprep.subr.mxu1 %v9867_v1 }
0x1437   :  { %v1610_v14 = vpop.f32.mrf.mxu1 }
0x1438   :  { %v1614_v15 = vadd.f32 %v1610_v14, %v1541_v9 }
0x1439   :  { %v8553_v16 = vpop.f32.mrf.mxu1 }
0x143a   :  { %9378 = vtanh.f32 %v1614_v15  ;;  %v7849_v31 = vmul.f32 -1.442695, %v1614_v15 }
0x143f   :  { %v1805_v10 = vpop.f32.mrf.mxu1 }
0x1440   :  { %v1806_v17 = vadd.f32 %v10315_v40, %v1805_v10  ;;  %v2180_v18 = vpop.f32.mrf.mxu0 }
0x1441   :  { %v2181_v19 = vadd.f32 %v10315_v40, %v2180_v18  ;;  %v8575_v11 = vpop.f32.mrf.mxu1 }
0x1442   :  { %1809 = vst [vmem:[#allocation4 + $0x2] sm:$0x3] %v1806_v17  ;;  %v8630_v20 = vpop.f32.mrf.mxu0 }
0x1443   :  { %2184 = vst [vmem:[#allocation4 + $0xc] sm:$0x3] %v2181_v19 }
0x1447   :  { %v9379_v12 = vpop.eup %9378 }
0x1448   :  { %v1955_v21 = vpop.f32.mrf.mxu1  ;;  %1624 = vrot.lane.b32.xlu0 %v9379_v12, %s9869_s5 }
0x1449   :  { %v1956_v22 = vadd.f32 %v10315_v40, %v1955_v21  ;;  %v2327_v23 = vpop.f32.mrf.mxu0  ;;  %v2361_v62 = vld [vmem:[#allocation4 + $0x2] sm:$0x3]  ;;  %v2465_v21 = vld [vmem:[#allocation4 + $0x4] sm:$0x3] }
0x144a   :  { %v2331_v24 = vadd.f32 %v2327_v23, %v2260_v13  ;;  %v8597_v25 = vpop.f32.mrf.mxu1 }
0x144b   :  { %1959 = vst [vmem:[#allocation4 + $0x6] sm:$0x3] %v1956_v22  ;;  %v8652_v26 = vpop.f32.mrf.mxu0 }
0x144c   :  { %9380 = vtanh.f32 %v2331_v24  ;;  %v7859_v33 = vmul.f32 -1.442695, %v2331_v24 }
0x144d   :  { %9382 = vpow2.f32 %v7849_v31 }
0x144e   :  { %9384 = vpow2.f32 %v7859_v33 }
0x1451   :  { %v2105_v27 = vpop.f32.mrf.mxu1 }
0x1452   :  { %v2106_v28 = vadd.f32 %v10315_v40, %v2105_v27 }
0x1453   :  { %v8619_v29 = vpop.f32.mrf.mxu1 }
0x1454   :  { %2109 = vst [vmem:[#allocation4 + $0xa] sm:$0x3] %v2106_v28 }
0x1459   :  { %v9381_v30 = vpop.eup %9380 }
0x145a   :  { %2341 = vrot.lane.b32.xlu1 %v9381_v30, %s9869_s5  ;;  %v9383_v32 = vpop.eup %9382 }
0x145b   :  { %v1618_v34 = vadd.f32 1.0, %v9383_v32  ;;  %v9385_v35 = vpop.eup %9384 }
0x145c   :  { %v2335_v39 = vadd.f32 1.0, %v9385_v35 }
0x145d   :  { %9386 = vrcp.f32 %v1618_v34 }
0x145e   :  { %9388 = vrcp.f32 %v2335_v39 }
0x146a   :  { %v9387_v36 = vpop.eup %9386 }
0x146b   :  { %v9389_v41 = vpop.eup %9388  ;;  %v1622_v44 = vmul.f32 %v9387_v36, %v10323_v59 }
0x146c   :  { %v2339_v48 = vmul.f32 0.0, %v9389_v41 }
0x14ba   :  { %v1625_v37 = vpop.permute.xlu0 %1624 }
0x14bb   :  { %v1627_v38 = vmul.f32 %v9387_v36, %v1625_v37 }
0x14bd   :  { %1629 = vrot.lane.b32.xlu0 %v1627_v38, %s9861_s21  ;;  %v2569_v38 = vld [vmem:[#allocation4 + $0x6] sm:$0x3] }
0x14cc   :  { %v2342_v42 = vpop.permute.xlu1 %2341 }
0x14cd   :  { %v2344_v43 = vmul.f32 %v9389_v41, %v2342_v42 }
0x14cf   :  { %2346 = vrot.lane.b32.xlu1 %v2344_v43, %s9861_s21 }
0x152f   :  { %v1630_v45 = vpop.permute.xlu0 %1629 }
0x1530   :  { %v1632_v46 = vadd.f32 %v1630_v45, %v1622_v44 }
0x1532   :  { %9390 = vtanh.f32 %v1632_v46 }
0x153f   :  { %v9391_v47 = vpop.eup %9390 }
0x1540   :  { %1635 = vrot.lane.b32.xlu0 %v9391_v47, %s9869_s5 }
0x1541   :  { %v2347_v49 = vpop.permute.xlu1 %2346 }
0x1542   :  { %v2349_v50 = vadd.f32 %v2347_v49, %v2339_v48 }
0x1544   :  { %9392 = vtanh.f32 %v2349_v50 }
0x1551   :  { %v9393_v51 = vpop.eup %9392 }
0x1552   :  { %2352 = vrot.lane.b32.xlu1 %v9393_v51, %s9869_s5 }
0x15b2   :  { %v1636_v52 = vpop.permute.xlu0 %1635 }
0x15b3   :  { %v1638_v53 = vmul.f32 %v9387_v36, %v1636_v52 }
0x15b5   :  { %1640 = vrot.lane.b32.xlu0 %v1638_v53, %s9861_s21 }
0x15c4   :  { %v2353_v54 = vpop.permute.xlu1 %2352 }
0x15c5   :  { %v2355_v55 = vmul.f32 %v9389_v41, %v2353_v54 }
0x15c7   :  { %2357 = vrot.lane.b32.xlu1 %v2355_v55, %s9861_s21 }
0x1627   :  { %v1641_v56 = vpop.permute.xlu0 %1640 }
0x1628   :  { %1644 = vst.msk [vmem:[#allocation2 + $0xe] sm:$0x3] %vm915_vm2, %v1641_v56 }
0x162f   :  { %v2185_v57 = vld [vmem:[#allocation2 + $0xe] sm:$0x3] }
0x1630   :  { %8640 = vmatmul.mubr.msk.f32.vlgmr.msra.gmra.mxu1 %vm198_vm1, %v2185_v57  ;;  %v2673_v57 = vld [vmem:[#allocation4 + $0x8] sm:$0x3] }
0x1631   :  { %8654 = vmatpush3.msra.mxu1 %v10339_v3  ;;  %8661 = vmatprep.mubr.msk.f32.mxu1 %vm9868_vm0, %v9867_v1 }
0x1632   :  { %8655 = vmatprep.subr.mxu1 %v9867_v1 }
0x1633   :  { %8656 = vmatpush3.msra.mxu1 %v10345_v4 }
0x1634   :  { %8657 = vmatprep.subr.mxu1 %v9867_v1 }
0x1635   :  { %8658 = vmatpush3.msra.mxu1 %v10351_v5 }
0x1636   :  { %8659 = vmatprep.subr.mxu1 %v9867_v1 }
0x1637   :  { %8660 = vmatpush3.msra.mxu1 %v10357_v6 }
0x1638   :  { %8675 = vmatprep.subr.mxu1 %v9867_v1 }
0x1639   :  { %v2358_v58 = vpop.permute.xlu1 %2357 }
0x163a   :  { %2360 = vst.msk [vmem:[#allocation3] sm:$0x3] %vm915_vm2, %v2358_v58  ;;  %8662 = vmatmul.mubr.msk.f32.vlgmr.msra.gmra.mxu1 %vm198_vm1, %v2358_v58 }
0x163b   :  { %8676 = vmatpush3.msra.mxu1 %v10339_v3  ;;  %8683 = vmatprep.mubr.msk.f32.mxu1 %vm9868_vm0, %v9867_v1 }
0x163c   :  { %8677 = vmatprep.subr.mxu1 %v9867_v1 }
0x163d   :  { %8678 = vmatpush3.msra.mxu1 %v10345_v4 }
0x163e   :  { %8679 = vmatprep.subr.mxu1 %v9867_v1 }
0x163f   :  { %8680 = vmatpush3.msra.mxu1 %v10351_v5 }
0x1640   :  { %8681 = vmatprep.subr.mxu1 %v9867_v1 }
0x1641   :  { %8682 = vmatpush3.msra.mxu1 %v10357_v6 }
0x1642   :  { %8697 = vmatprep.subr.mxu1 %v9867_v1 }
0x16f0   :  { %v2255_v59 = vpop.f32.mrf.mxu1 }
0x16f1   :  { %v2256_v60 = vadd.f32 %v10315_v40, %v2255_v59 }
0x16f2   :  { %v8641_v61 = vpop.f32.mrf.mxu1 }
0x16f3   :  { %2259 = vst [vmem:[#allocation4 + $0xe] sm:$0x3] %v2256_v60 }
0x16fa   :  { %v2430_v63 = vpop.f32.mrf.mxu1 }
0x16fb   :  { %v2434_v0 = vadd.f32 %v2430_v63, %v2361_v62 }
0x16fc   :  { %v8663_v2 = vpop.f32.mrf.mxu1 }
0x16fd   :  { %9394 = vtanh.f32 %v2434_v0  ;;  %v7861_v8 = vmul.f32 -1.442695, %v2434_v0 }
0x16ff   :  { %9396 = vpow2.f32 %v7861_v8 }
0x170a   :  { %v9395_v7 = vpop.eup %9394 }
0x170b   :  { %2444 = vrot.lane.b32.xlu0 %v9395_v7, %s9869_s5 }
0x170c   :  { %v9397_v9 = vpop.eup %9396 }
0x170d   :  { %v2438_v14 = vadd.f32 1.0, %v9397_v9 }
0x170f   :  { %9398 = vrcp.f32 %v2438_v14 }
0x171c   :  { %v9399_v15 = vpop.eup %9398 }
0x171d   :  { %v2442_v40 = vmul.f32 %v9399_v15, %v2349_v50 }
0x177d   :  { %v2445_v16 = vpop.permute.xlu0 %2444 }
0x177e   :  { %v2447_v10 = vmul.f32 %v9399_v15, %v2445_v16 }
0x1780   :  { %2449 = vrot.lane.b32.xlu1 %v2447_v10, %s9861_s21 }
0x17f2   :  { %v2450_v17 = vpop.permute.xlu1 %2449 }
0x17f3   :  { %v2452_v18 = vadd.f32 %v2450_v17, %v2442_v40 }
0x17f5   :  { %9400 = vtanh.f32 %v2452_v18 }
0x1802   :  { %v9401_v19 = vpop.eup %9400 }
0x1803   :  { %2455 = vrot.lane.b32.xlu0 %v9401_v19, %s9869_s5 }
0x1875   :  { %v2456_v11 = vpop.permute.xlu0 %2455 }
0x1876   :  { %v2458_v20 = vmul.f32 %v9399_v15, %v2456_v11 }
0x1878   :  { %2460 = vrot.lane.b32.xlu1 %v2458_v20, %s9861_s21 }
0x18ea   :  { %v2461_v12 = vpop.permute.xlu1 %2460 }
0x18eb   :  { %2464 = vst.msk [vmem:[#allocation3 + $0x2] sm:$0x3] %vm915_vm2, %v2461_v12  ;;  %8673 = vmatmul.mubr.msk.f32.vlgmr.msra.gmra.mxu0 %vm198_vm1, %v2461_v12 }
0x18ec   :  { %8687 = vmatpush3.msra.mxu0 %v10339_v3  ;;  %8694 = vmatprep.mubr.msk.f32.mxu0 %vm9868_vm0, %v9867_v1 }
0x18ed   :  { %8688 = vmatprep.subr.mxu0 %v9867_v1 }
0x18ee   :  { %8689 = vmatpush3.msra.mxu0 %v10345_v4 }
0x18ef   :  { %8690 = vmatprep.subr.mxu0 %v9867_v1 }
0x18f0   :  { %8691 = vmatpush3.msra.mxu0 %v10351_v5 }
0x18f1   :  { %8692 = vmatprep.subr.mxu0 %v9867_v1 }
0x18f2   :  { %8693 = vmatpush3.msra.mxu0 %v10357_v6 }
0x18f3   :  { %8708 = vmatprep.subr.mxu0 %v9867_v1 }
0x19ab   :  { %v2534_v22 = vpop.f32.mrf.mxu0 }
0x19ac   :  { %v2538_v13 = vadd.f32 %v2534_v22, %v2465_v21 }
0x19ad   :  { %v8674_v23 = vpop.f32.mrf.mxu0 }
0x19ae   :  { %9402 = vtanh.f32 %v2538_v13  ;;  %v7863_v25 = vmul.f32 -1.442695, %v2538_v13 }
0x19b0   :  { %9404 = vpow2.f32 %v7863_v25 }
0x19bb   :  { %v9403_v24 = vpop.eup %9402 }
0x19bc   :  { %2548 = vrot.lane.b32.xlu0 %v9403_v24, %s9869_s5 }
0x19bd   :  { %v9405_v26 = vpop.eup %9404 }
0x19be   :  { %v2542_v27 = vadd.f32 1.0, %v9405_v26 }
0x19c0   :  { %9406 = vrcp.f32 %v2542_v27 }
0x19cd   :  { %v9407_v28 = vpop.eup %9406 }
0x19ce   :  { %v2546_v31 = vmul.f32 %v9407_v28, %v2452_v18  ;;  %v2777_v18 = vld [vmem:[#allocation4 + $0xa] sm:$0x3] }
0x1a2e   :  { %v2549_v29 = vpop.permute.xlu0 %2548 }
0x1a2f   :  { %v2551_v30 = vmul.f32 %v9407_v28, %v2549_v29 }
0x1a31   :  { %2553 = vrot.lane.b32.xlu1 %v2551_v30, %s9861_s21  ;;  %v10516_v30 = vld [vmem:[#allocation12 + $0x30] sm:$0xff] }
0x1aa3   :  { %v2554_v32 = vpop.permute.xlu1 %2553 }
0x1aa4   :  { %v2556_v33 = vadd.f32 %v2554_v32, %v2546_v31  ;;  %v10522_v31 = vld [vmem:[#allocation12 + $0x28] sm:$0xff]  ;;  %v10526_v32 = vld [vmem:[#allocation12 + $0x20] sm:$0xff] }
0x1aa6   :  { %9408 = vtanh.f32 %v2556_v33 }
0x1ab3   :  { %v9409_v34 = vpop.eup %9408 }
0x1ab4   :  { %2559 = vrot.lane.b32.xlu0 %v9409_v34, %s9869_s5 }
0x1b26   :  { %v2560_v35 = vpop.permute.xlu0 %2559 }
0x1b27   :  { %v2562_v36 = vmul.f32 %v9407_v28, %v2560_v35  ;;  %v10512_v28 = vld [vmem:[#allocation12 + $0x38] sm:$0xff] }
0x1b29   :  { %2564 = vrot.lane.b32.xlu1 %v2562_v36, %s9861_s21  ;;  %v2881_v36 = vld [vmem:[#allocation4 + $0xc] sm:$0x3] }
0x1b9b   :  { %v2565_v37 = vpop.permute.xlu1 %2564 }
0x1b9c   :  { %2568 = vst.msk [vmem:[#allocation3 + $0x4] sm:$0x3] %vm915_vm2, %v2565_v37  ;;  %8684 = vmatmul.mubr.msk.f32.vlgmr.msra.gmra.mxu1 %vm198_vm1, %v2565_v37 }
0x1b9d   :  { %8698 = vmatpush3.msra.mxu1 %v10339_v3  ;;  %8705 = vmatprep.mubr.msk.f32.mxu1 %vm9868_vm0, %v9867_v1 }
0x1b9e   :  { %8699 = vmatprep.subr.mxu1 %v9867_v1 }
0x1b9f   :  { %8700 = vmatpush3.msra.mxu1 %v10345_v4 }
0x1ba0   :  { %8701 = vmatprep.subr.mxu1 %v9867_v1 }
0x1ba1   :  { %8702 = vmatpush3.msra.mxu1 %v10351_v5 }
0x1ba2   :  { %8703 = vmatprep.subr.mxu1 %v9867_v1 }
0x1ba3   :  { %8704 = vmatpush3.msra.mxu1 %v10357_v6  ;;  %v3257_v34 = vld [vmem:[#allocation3 + $0x4] sm:$0x3] }
0x1ba4   :  { %8719 = vmatprep.subr.mxu1 %v9867_v1 }
0x1c5c   :  { %v2638_v39 = vpop.f32.mrf.mxu1 }
0x1c5d   :  { %v2642_v41 = vadd.f32 %v2638_v39, %v2569_v38 }
0x1c5e   :  { %v8685_v42 = vpop.f32.mrf.mxu1 }
0x1c5f   :  { %9410 = vtanh.f32 %v2642_v41  ;;  %v7865_v44 = vmul.f32 -1.442695, %v2642_v41  ;;  %v10568_v41 = vld [vmem:[%s11359_s8 + $0x1] ss:$0 sm:$0xff] }
0x1c61   :  { %9412 = vpow2.f32 %v7865_v44 }
0x1c6c   :  { %v9411_v43 = vpop.eup %9410 }
0x1c6d   :  { %2652 = vrot.lane.b32.xlu0 %v9411_v43, %s9869_s5 }
0x1c6e   :  { %v9413_v45 = vpop.eup %9412 }
0x1c6f   :  { %v2646_v46 = vadd.f32 1.0, %v9413_v45 }
0x1c71   :  { %9414 = vrcp.f32 %v2646_v46 }
0x1c7e   :  { %v9415_v47 = vpop.eup %9414 }
0x1c7f   :  { %v2650_v50 = vmul.f32 %v9415_v47, %v2556_v33  ;;  %v3107_v33 = vld [vmem:[#allocation3] sm:$0x3] }
0x1cdf   :  { %v2653_v48 = vpop.permute.xlu0 %2652 }
0x1ce0   :  { %v2655_v49 = vmul.f32 %v9415_v47, %v2653_v48 }
0x1ce2   :  { %2657 = vrot.lane.b32.xlu1 %v2655_v49, %s9861_s21 }
0x1d54   :  { %v2658_v51 = vpop.permute.xlu1 %2657 }
0x1d55   :  { %v2660_v52 = vadd.f32 %v2658_v51, %v2650_v50 }
0x1d57   :  { %9416 = vtanh.f32 %v2660_v52 }
0x1d64   :  { %v9417_v53 = vpop.eup %9416 }
0x1d65   :  { %2663 = vrot.lane.b32.xlu0 %v9417_v53, %s9869_s5 }
0x1dd7   :  { %v2664_v54 = vpop.permute.xlu0 %2663 }
0x1dd8   :  { %v2666_v55 = vmul.f32 %v9415_v47, %v2664_v54 }
0x1dda   :  { %2668 = vrot.lane.b32.xlu1 %v2666_v55, %s9861_s21 }
0x1e4c   :  { %v2669_v56 = vpop.permute.xlu1 %2668 }
0x1e4d   :  { %2672 = vst.msk [vmem:[#allocation3 + $0x6] sm:$0x3] %vm915_vm2, %v2669_v56  ;;  %8695 = vmatmul.mubr.msk.f32.vlgmr.msra.gmra.mxu0 %vm198_vm1, %v2669_v56 }
0x1e4e   :  { %8709 = vmatpush3.msra.mxu0 %v10339_v3  ;;  %8716 = vmatprep.mubr.msk.f32.mxu0 %vm9868_vm0, %v9867_v1 }
0x1e4f   :  { %8710 = vmatprep.subr.mxu0 %v9867_v1 }
0x1e50   :  { %8711 = vmatpush3.msra.mxu0 %v10345_v4 }
0x1e51   :  { %8712 = vmatprep.subr.mxu0 %v9867_v1 }
0x1e52   :  { %8713 = vmatpush3.msra.mxu0 %v10351_v5 }
0x1e53   :  { %8714 = vmatprep.subr.mxu0 %v9867_v1 }
0x1e54   :  { %8715 = vmatpush3.msra.mxu0 %v10357_v6 }
0x1e55   :  { %8730 = vmatprep.subr.mxu0 %v9867_v1 }
0x1f0d   :  { %v2742_v58 = vpop.f32.mrf.mxu0 }
0x1f0e   :  { %v2746_v59 = vadd.f32 %v2742_v58, %v2673_v57 }
0x1f0f   :  { %v8696_v60 = vpop.f32.mrf.mxu0 }
0x1f10   :  { %9418 = vtanh.f32 %v2746_v59  ;;  %v7867_v62 = vmul.f32 -1.442695, %v2746_v59 }
0x1f12   :  { %9420 = vpow2.f32 %v7867_v62 }
0x1f1d   :  { %v9419_v61 = vpop.eup %9418 }
0x1f1e   :  { %2756 = vrot.lane.b32.xlu0 %v9419_v61, %s9869_s5 }
0x1f1f   :  { %v9421_v63 = vpop.eup %9420 }
0x1f20   :  { %v2750_v0 = vadd.f32 1.0, %v9421_v63 }
0x1f22   :  { %9422 = vrcp.f32 %v2750_v0 }
0x1f2f   :  { %v9423_v2 = vpop.eup %9422 }
0x1f30   :  { %v2754_v9 = vmul.f32 %v9423_v2, %v2660_v52 }
0x1f90   :  { %v2757_v7 = vpop.permute.xlu0 %2756 }
0x1f91   :  { %v2759_v8 = vmul.f32 %v9423_v2, %v2757_v7 }
0x1f93   :  { %2761 = vrot.lane.b32.xlu1 %v2759_v8, %s9861_s21  ;;  %v10592_v8 = vld [vmem:[#allocation14 + $0x38] sm:$0xff] }
0x2005   :  { %v2762_v14 = vpop.permute.xlu1 %2761 }
0x2006   :  { %v2764_v15 = vadd.f32 %v2762_v14, %v2754_v9  ;;  %v10598_v9 = vld [vmem:[#allocation14 + $0x30] sm:$0xff]  ;;  %v10604_v14 = vld [vmem:[#allocation14 + $0x28] sm:$0xff] }
0x2008   :  { %9424 = vtanh.f32 %v2764_v15 }
0x2015   :  { %v9425_v16 = vpop.eup %9424 }
0x2016   :  { %2767 = vrot.lane.b32.xlu0 %v9425_v16, %s9869_s5  ;;  %v3332_v16 = vld [vmem:[#allocation3 + $0x6] sm:$0x3] }
0x2088   :  { %v2768_v10 = vpop.permute.xlu0 %2767 }
0x2089   :  { %v2770_v40 = vmul.f32 %v9423_v2, %v2768_v10  ;;  %v3182_v2 = vld [vmem:[#allocation3 + $0x2] sm:$0x3] }
0x208b   :  { %2772 = vrot.lane.b32.xlu1 %v2770_v40, %s9861_s21  ;;  %v2985_v40 = vld [vmem:[#allocation4 + $0xe] sm:$0x3] }
0x20fd   :  { %v2773_v17 = vpop.permute.xlu1 %2772 }
0x20fe   :  { %2776 = vst.msk [vmem:[#allocation3 + $0x8] sm:$0x3] %vm915_vm2, %v2773_v17  ;;  %8706 = vmatmul.mubr.msk.f32.vlgmr.msra.gmra.mxu1 %vm198_vm1, %v2773_v17 }
0x20ff   :  { %8720 = vmatpush3.msra.mxu1 %v10339_v3  ;;  %8727 = vmatprep.mubr.msk.f32.mxu1 %vm9868_vm0, %v9867_v1 }
0x2100   :  { %8721 = vmatprep.subr.mxu1 %v9867_v1 }
0x2101   :  { %8722 = vmatpush3.msra.mxu1 %v10345_v4 }
0x2102   :  { %8723 = vmatprep.subr.mxu1 %v9867_v1 }
0x2103   :  { %8724 = vmatpush3.msra.mxu1 %v10351_v5 }
0x2104   :  { %8725 = vmatprep.subr.mxu1 %v9867_v1 }
0x2105   :  { %8726 = vmatpush3.msra.mxu1 %v10357_v6  ;;  %v3407_v35 = vld [vmem:[#allocation3 + $0x8] sm:$0x3] }
0x2106   :  { %8741 = vmatprep.subr.mxu1 %v9867_v1 }
0x21be   :  { %v2846_v19 = vpop.f32.mrf.mxu1 }
0x21bf   :  { %v2850_v3 = vadd.f32 %v2846_v19, %v2777_v18 }
0x21c0   :  { %v8707_v11 = vpop.f32.mrf.mxu1 }
0x21c1   :  { %9426 = vtanh.f32 %v2850_v3  ;;  %v7869_v12 = vmul.f32 -1.442695, %v2850_v3 }
0x21c3   :  { %9428 = vpow2.f32 %v7869_v12 }
0x21ce   :  { %v9427_v20 = vpop.eup %9426 }
0x21cf   :  { %2860 = vrot.lane.b32.xlu0 %v9427_v20, %s9869_s5 }
0x21d0   :  { %v9429_v4 = vpop.eup %9428 }
0x21d1   :  { %v2854_v21 = vadd.f32 1.0, %v9429_v4 }
0x21d3   :  { %9430 = vrcp.f32 %v2854_v21 }
0x21e0   :  { %v9431_v5 = vpop.eup %9430 }
0x21e1   :  { %v2858_v6 = vmul.f32 %v9431_v5, %v2764_v15  ;;  %v10610_v15 = vld [vmem:[#allocation14 + $0x20] sm:$0xff] }
0x2241   :  { %v2861_v22 = vpop.permute.xlu0 %2860 }
0x2242   :  { %v2863_v13 = vmul.f32 %v9431_v5, %v2861_v22 }
0x2244   :  { %2865 = vrot.lane.b32.xlu1 %v2863_v13, %s9861_s21 }
0x22b6   :  { %v2866_v23 = vpop.permute.xlu1 %2865 }
0x22b7   :  { %v10507_v24 = vadd.f32 %v2866_v23, %v2858_v6 }
0x22b9   :  { %9432 = vtanh.f32 %v10507_v24 }
0x22c6   :  { %v9433_v25 = vpop.eup %9432 }
0x22c7   :  { %2871 = vrot.lane.b32.xlu0 %v9433_v25, %s9869_s5 }
0x2339   :  { %v2872_v26 = vpop.permute.xlu0 %2871 }
0x233a   :  { %v2874_v27 = vmul.f32 %v9431_v5, %v2872_v26 }
0x233c   :  { %2876 = vrot.lane.b32.xlu1 %v2874_v27, %s9861_s21 }
0x23ae   :  { %v2877_v29 = vpop.permute.xlu1 %2876 }
0x23af   :  { %2880 = vst.msk [vmem:[#allocation3 + $0xa] sm:$0x3] %vm915_vm2, %v2877_v29  ;;  %8717 = vmatmul.mubr.msk.f32.vlgmr.msra.gmra.mxu0 %vm198_vm1, %v2877_v29 }
0x23b0   :  { %8731 = vmatpush3.msra.mxu0 %v10512_v28  ;;  %8738 = vmatprep.mubr.msk.f32.mxu0 %vm9868_vm0, %v9867_v1 }
0x23b1   :  { %8732 = vmatprep.subr.mxu0 %v9867_v1 }
0x23b2   :  { %8733 = vmatpush3.msra.mxu0 %v10516_v30 }
0x23b3   :  { %8734 = vmatprep.subr.mxu0 %v9867_v1 }
0x23b4   :  { %8735 = vmatpush3.msra.mxu0 %v10522_v31 }
0x23b5   :  { %8736 = vmatprep.subr.mxu0 %v9867_v1 }
0x23b6   :  { %8737 = vmatpush3.msra.mxu0 %v10526_v32  ;;  %v3482_v10 = vld [vmem:[#allocation3 + $0xa] sm:$0x3] }
0x23b7   :  { %8739 = vmatmul.mubr.msk.f32.vlgmr.msra.gmra.mxu0 %vm198_vm1, %v3107_v33  ;;  %8752 = vmatprep.subr.mxu0 %v9867_v1 }
0x23b8   :  { %8753 = vmatpush3.msra.mxu0 %v10512_v28  ;;  %8760 = vmatprep.mubr.msk.f32.mxu0 %vm9868_vm0, %v9867_v1 }
0x23b9   :  { %8754 = vmatprep.subr.mxu0 %v9867_v1 }
0x23ba   :  { %8755 = vmatpush3.msra.mxu0 %v10516_v30 }
0x23bb   :  { %8756 = vmatprep.subr.mxu0 %v9867_v1 }
0x23bc   :  { %8757 = vmatpush3.msra.mxu0 %v10522_v31 }
0x23bd   :  { %8758 = vmatprep.subr.mxu0 %v9867_v1 }
0x23be   :  { %8759 = vmatpush3.msra.mxu0 %v10526_v32 }
0x23bf   :  { %8761 = vmatmul.mubr.msk.f32.vlgmr.msra.gmra.mxu0 %vm198_vm1, %v3257_v34  ;;  %8774 = vmatprep.subr.mxu0 %v9867_v1 }
0x23c0   :  { %8775 = vmatpush3.msra.mxu0 %v10512_v28  ;;  %8782 = vmatprep.mubr.msk.f32.mxu0 %vm9868_vm0, %v9867_v1 }
0x23c1   :  { %8776 = vmatprep.subr.mxu0 %v9867_v1 }
0x23c2   :  { %8777 = vmatpush3.msra.mxu0 %v10516_v30 }
0x23c3   :  { %8778 = vmatprep.subr.mxu0 %v9867_v1 }
0x23c4   :  { %8779 = vmatpush3.msra.mxu0 %v10522_v31 }
0x23c5   :  { %8780 = vmatprep.subr.mxu0 %v9867_v1 }
0x23c6   :  { %8781 = vmatpush3.msra.mxu0 %v10526_v32 }
0x23c7   :  { %8783 = vmatmul.mubr.msk.f32.vlgmr.msra.gmra.mxu0 %vm198_vm1, %v3407_v35  ;;  %8796 = vmatprep.subr.mxu0 %v9867_v1 }
0x23c8   :  { %8797 = vmatpush3.msra.mxu0 %v10512_v28  ;;  %8804 = vmatprep.mubr.msk.f32.mxu0 %vm9868_vm0, %v9867_v1 }
0x23c9   :  { %8798 = vmatprep.subr.mxu0 %v9867_v1 }
0x23ca   :  { %8799 = vmatpush3.msra.mxu0 %v10516_v30 }
0x23cb   :  { %8800 = vmatprep.subr.mxu0 %v9867_v1 }
0x23cc   :  { %8801 = vmatpush3.msra.mxu0 %v10522_v31 }
0x23cd   :  { %8802 = vmatprep.subr.mxu0 %v9867_v1 }
0x23ce   :  { %8803 = vmatpush3.msra.mxu0 %v10526_v32 }
0x23cf   :  { %8818 = vmatprep.subr.mxu0 %v9867_v1 }
0x246f   :  { %v2950_v37 = vpop.f32.mrf.mxu0 }
0x2470   :  { %v2954_v38 = vadd.f32 %v2950_v37, %v2881_v36 }
0x2471   :  { %v8718_v39 = vpop.f32.mrf.mxu0 }
0x2472   :  { %9434 = vtanh.f32 %v2954_v38  ;;  %v7871_v52 = vmul.f32 -1.442695, %v2954_v38 }
0x2474   :  { %9436 = vpow2.f32 %v7871_v52 }
0x2477   :  { %v3177_v42 = vpop.f32.mrf.mxu0 }
0x2478   :  { %v3178_v43 = vadd.f32 %v10568_v41, %v3177_v42 }
0x2479   :  { %v8740_v44 = vpop.f32.mrf.mxu0 }
0x247a   :  { %3181 = vst [vmem:[#allocation4] sm:$0x3] %v3178_v43 }
0x247f   :  { %v9435_v45 = vpop.eup %9434  ;;  %v3327_v46 = vpop.f32.mrf.mxu0 }
0x2480   :  { %v3328_v47 = vadd.f32 %v10568_v41, %v3327_v46  ;;  %2964 = vrot.lane.b32.xlu0 %v9435_v45, %s9869_s5 }
0x2481   :  { %v8762_v48 = vpop.f32.mrf.mxu0  ;;  %v9437_v53 = vpop.eup %9436  ;;  %v3707_v6 = vld [vmem:[#allocation4] sm:$0x3] }
0x2482   :  { %3331 = vst [vmem:[#allocation4 + $0x4] sm:$0x3] %v3328_v47  ;;  %v2958_v54 = vadd.f32 1.0, %v9437_v53 }
0x2484   :  { %9438 = vrcp.f32 %v2958_v54 }
0x2487   :  { %v3477_v49 = vpop.f32.mrf.mxu0 }
0x2488   :  { %v3478_v50 = vadd.f32 %v10568_v41, %v3477_v49 }
0x2489   :  { %v8784_v51 = vpop.f32.mrf.mxu0 }
0x248a   :  { %3481 = vst [vmem:[#allocation4 + $0x8] sm:$0x3] %v3478_v50 }
0x2491   :  { %v9439_v55 = vpop.eup %9438 }
0x2492   :  { %v2962_v58 = vmul.f32 %v9439_v55, %v10507_v24 }
0x24f2   :  { %v2965_v56 = vpop.permute.xlu0 %2964 }
0x24f3   :  { %v2967_v57 = vmul.f32 %v9439_v55, %v2965_v56 }
0x24f5   :  { %2969 = vrot.lane.b32.xlu1 %v2967_v57, %s9861_s21 }
0x2567   :  { %v2970_v59 = vpop.permute.xlu1 %2969 }
0x2568   :  { %v10576_v60 = vadd.f32 %v2970_v59, %v2962_v58 }
0x256a   :  { %9440 = vtanh.f32 %v10576_v60 }
0x2577   :  { %v9441_v61 = vpop.eup %9440 }
0x2578   :  { %2975 = vrot.lane.b32.xlu0 %v9441_v61, %s9869_s5 }
0x25ea   :  { %v2976_v62 = vpop.permute.xlu0 %2975 }
0x25eb   :  { %v2978_v63 = vmul.f32 %v9439_v55, %v2976_v62 }
0x25ed   :  { %2980 = vrot.lane.b32.xlu1 %v2978_v63, %s9861_s21 }
0x265f   :  { %v2981_v0 = vpop.permute.xlu1 %2980 }
0x2660   :  { %2984 = vst.msk [vmem:[#allocation3 + $0xc] sm:$0x3] %vm915_vm2, %v2981_v0  ;;  %8728 = vmatmul.mubr.msk.f32.vlgmr.msra.gmra.mxu1 %vm198_vm1, %v2981_v0 }
0x2661   :  { %8742 = vmatpush3.msra.mxu1 %v10512_v28  ;;  %8749 = vmatprep.mubr.msk.f32.mxu1 %vm9868_vm0, %v9867_v1 }
0x2662   :  { %8743 = vmatprep.subr.mxu1 %v9867_v1 }
0x2663   :  { %8744 = vmatpush3.msra.mxu1 %v10516_v30 }
0x2664   :  { %8745 = vmatprep.subr.mxu1 %v9867_v1 }
0x2665   :  { %8746 = vmatpush3.msra.mxu1 %v10522_v31 }
0x2666   :  { %8747 = vmatprep.subr.mxu1 %v9867_v1 }
0x2667   :  { %8748 = vmatpush3.msra.mxu1 %v10526_v32  ;;  %v3557_v7 = vld [vmem:[#allocation3 + $0xc] sm:$0x3] }
0x2668   :  { %8750 = vmatmul.mubr.msk.f32.vlgmr.msra.gmra.mxu1 %vm198_vm1, %v3182_v2  ;;  %8763 = vmatprep.subr.mxu1 %v9867_v1 }
0x2669   :  { %8764 = vmatpush3.msra.mxu1 %v10512_v28  ;;  %8805 = vmatmul.mubr.msk.f32.vlgmr.msra.gmra.mxu0 %vm198_vm1, %v3557_v7 }
0x266a   :  { %8819 = vmatpush3.msra.mxu0 %v10592_v8  ;;  %8765 = vmatprep.subr.mxu1 %v9867_v1 }
0x266b   :  { %8820 = vmatprep.subr.mxu0 %v9867_v1  ;;  %8766 = vmatpush3.msra.mxu1 %v10516_v30 }
0x266c   :  { %8821 = vmatpush3.msra.mxu0 %v10598_v9  ;;  %8767 = vmatprep.subr.mxu1 %v9867_v1 }
0x266d   :  { %8822 = vmatprep.subr.mxu0 %v9867_v1  ;;  %8768 = vmatpush3.msra.mxu1 %v10522_v31 }
0x266e   :  { %8823 = vmatpush3.msra.mxu0 %v10604_v14  ;;  %8769 = vmatprep.subr.mxu1 %v9867_v1 }
0x266f   :  { %8824 = vmatprep.subr.mxu0 %v9867_v1  ;;  %8770 = vmatpush3.msra.mxu1 %v10526_v32 }
0x2670   :  { %8771 = vmatprep.mubr.msk.f32.mxu1 %vm9868_vm0, %v9867_v1  ;;  %8825 = vmatpush3.msra.mxu0 %v10610_v15 }
0x2671   :  { %8826 = vmatprep.mubr.msk.f32.mxu0 %vm9868_vm0, %v9867_v1  ;;  %8772 = vmatmul.mubr.msk.f32.vlgmr.msra.gmra.mxu1 %vm198_vm1, %v3332_v16 }
0x2672   :  { %8785 = vmatprep.subr.mxu1 %v9867_v1  ;;  %8827 = vmatmul.mubr.f32.vlgmr.msra.gmra.mxu0 %v9867_v1 }
0x2673   :  { %8786 = vmatpush3.msra.mxu1 %v10512_v28  ;;  %8793 = vmatprep.mubr.msk.f32.mxu1 %vm9868_vm0, %v9867_v1 }
0x2674   :  { %8787 = vmatprep.subr.mxu1 %v9867_v1  ;;  %8840 = vmatprep.subr.mxu0 %v9867_v1 }
0x2675   :  { %8788 = vmatpush3.msra.mxu1 %v10516_v30  ;;  %8841 = vmatpush3.msra.mxu0 %v10592_v8 }
0x2676   :  { %8789 = vmatprep.subr.mxu1 %v9867_v1  ;;  %8842 = vmatprep.subr.mxu0 %v9867_v1 }
0x2677   :  { %8790 = vmatpush3.msra.mxu1 %v10522_v31  ;;  %8843 = vmatpush3.msra.mxu0 %v10598_v9 }
0x2678   :  { %8791 = vmatprep.subr.mxu1 %v9867_v1  ;;  %8844 = vmatprep.subr.mxu0 %v9867_v1 }
0x2679   :  { %8792 = vmatpush3.msra.mxu1 %v10526_v32  ;;  %8845 = vmatpush3.msra.mxu0 %v10604_v14 }
0x267a   :  { %8794 = vmatmul.mubr.msk.f32.vlgmr.msra.gmra.mxu1 %vm198_vm1, %v3482_v10  ;;  %8807 = vmatprep.subr.mxu1 %v9867_v1 }
0x267b   :  { %8808 = vmatpush3.msra.mxu1 %v10512_v28  ;;  %8815 = vmatprep.mubr.msk.f32.mxu1 %vm9868_vm0, %v9867_v1 }
0x267c   :  { %8809 = vmatprep.subr.mxu1 %v9867_v1  ;;  %8846 = vmatprep.subr.mxu0 %v9867_v1 }
0x267d   :  { %8810 = vmatpush3.msra.mxu1 %v10516_v30  ;;  %8847 = vmatpush3.msra.mxu0 %v10610_v15 }
0x267e   :  { %8811 = vmatprep.subr.mxu1 %v9867_v1  ;;  %8848 = vmatprep.mubr.msk.f32.mxu0 %vm9868_vm0, %v9867_v1 }
0x267f   :  { %8812 = vmatpush3.msra.mxu1 %v10522_v31  ;;  %8862 = vmatprep.subr.mxu0 %v9867_v1 }
0x2680   :  { %8813 = vmatprep.subr.mxu1 %v9867_v1 }
0x2681   :  { %8814 = vmatpush3.msra.mxu1 %v10526_v32 }
0x2682   :  { %8829 = vmatprep.subr.mxu1 %v9867_v1 }
0x2720   :  { %v3054_v17 = vpop.f32.mrf.mxu1 }
0x2721   :  { %v3058_v18 = vadd.f32 %v3054_v17, %v2985_v40 }
0x2722   :  { %v8729_v19 = vpop.f32.mrf.mxu1 }
0x2723   :  { %9442 = vtanh.f32 %v3058_v18  ;;  %v7873_v31 = vmul.f32 -1.442695, %v3058_v18 }
0x2728   :  { %v3252_v3 = vpop.f32.mrf.mxu1 }
0x2729   :  { %v3253_v11 = vadd.f32 %v10568_v41, %v3252_v3  ;;  %v3627_v20 = vpop.f32.mrf.mxu0 }
0x272a   :  { %v3628_v12 = vadd.f32 %v10568_v41, %v3627_v20  ;;  %v8751_v4 = vpop.f32.mrf.mxu1 }
0x272b   :  { %3256 = vst [vmem:[#allocation4 + $0x2] sm:$0x3] %v3253_v11  ;;  %v8806_v21 = vpop.f32.mrf.mxu0 }
0x272c   :  { %3631 = vst [vmem:[#allocation4 + $0xc] sm:$0x3] %v3628_v12 }
0x2730   :  { %v9443_v5 = vpop.eup %9442 }
0x2731   :  { %v3402_v22 = vpop.f32.mrf.mxu1  ;;  %3068 = vrot.lane.b32.xlu0 %v9443_v5, %s9869_s5 }
0x2732   :  { %v3403_v13 = vadd.f32 %v10568_v41, %v3402_v22  ;;  %v3774_v23 = vpop.f32.mrf.mxu0  ;;  %v3808_v63 = vld [vmem:[#allocation4 + $0x2] sm:$0x3]  ;;  %v3911_v22 = vld [vmem:[#allocation4 + $0x4] sm:$0x3] }
0x2733   :  { %v3778_v24 = vadd.f32 %v3774_v23, %v3707_v6  ;;  %v8773_v25 = vpop.f32.mrf.mxu1 }
0x2734   :  { %3406 = vst [vmem:[#allocation4 + $0x6] sm:$0x3] %v3403_v13  ;;  %v8828_v26 = vpop.f32.mrf.mxu0 }
0x2735   :  { %9444 = vtanh.f32 %v3778_v24  ;;  %v7884_v33 = vmul.f32 -1.442695, %v3778_v24 }
0x2736   :  { %9446 = vpow2.f32 %v7873_v31 }
0x2737   :  { %9448 = vpow2.f32 %v7884_v33 }
0x273a   :  { %v3552_v27 = vpop.f32.mrf.mxu1 }
0x273b   :  { %v3553_v28 = vadd.f32 %v10568_v41, %v3552_v27 }
0x273c   :  { %v8795_v29 = vpop.f32.mrf.mxu1 }
0x273d   :  { %3556 = vst [vmem:[#allocation4 + $0xa] sm:$0x3] %v3553_v28 }
0x2742   :  { %v9445_v30 = vpop.eup %9444 }
0x2743   :  { %3788 = vrot.lane.b32.xlu1 %v9445_v30, %s9869_s5  ;;  %v9447_v32 = vpop.eup %9446 }
0x2744   :  { %v3062_v34 = vadd.f32 1.0, %v9447_v32  ;;  %v9449_v35 = vpop.eup %9448 }
0x2745   :  { %v3782_v39 = vadd.f32 1.0, %v9449_v35 }
0x2746   :  { %9450 = vrcp.f32 %v3062_v34 }
0x2747   :  { %9452 = vrcp.f32 %v3782_v39 }
0x2753   :  { %v9451_v36 = vpop.eup %9450 }
0x2754   :  { %v9453_v42 = vpop.eup %9452  ;;  %v3066_v45 = vmul.f32 %v9451_v36, %v10576_v60 }
0x2755   :  { %v3786_v49 = vmul.f32 0.0, %v9453_v42 }
0x27a3   :  { %v3069_v37 = vpop.permute.xlu0 %3068 }
0x27a4   :  { %v3071_v38 = vmul.f32 %v9451_v36, %v3069_v37 }
0x27a6   :  { %3073 = vrot.lane.b32.xlu0 %v3071_v38, %s9861_s21  ;;  %v4014_v38 = vld [vmem:[#allocation4 + $0x6] sm:$0x3] }
0x27b5   :  { %v3789_v43 = vpop.permute.xlu1 %3788 }
0x27b6   :  { %v3791_v44 = vmul.f32 %v9453_v42, %v3789_v43 }
0x27b8   :  { %3793 = vrot.lane.b32.xlu1 %v3791_v44, %s9861_s21 }
0x2818   :  { %v3074_v46 = vpop.permute.xlu0 %3073 }
0x2819   :  { %v3076_v47 = vadd.f32 %v3074_v46, %v3066_v45 }
0x281b   :  { %9454 = vtanh.f32 %v3076_v47 }
0x2828   :  { %v9455_v48 = vpop.eup %9454 }
0x2829   :  { %3079 = vrot.lane.b32.xlu0 %v9455_v48, %s9869_s5 }
0x282a   :  { %v3794_v50 = vpop.permute.xlu1 %3793 }
0x282b   :  { %v3796_v51 = vadd.f32 %v3794_v50, %v3786_v49 }
0x282d   :  { %9456 = vtanh.f32 %v3796_v51 }
0x283a   :  { %v9457_v52 = vpop.eup %9456 }
0x283b   :  { %3799 = vrot.lane.b32.xlu1 %v9457_v52, %s9869_s5 }
0x289b   :  { %v3080_v53 = vpop.permute.xlu0 %3079 }
0x289c   :  { %v3082_v54 = vmul.f32 %v9451_v36, %v3080_v53 }
0x289e   :  { %3084 = vrot.lane.b32.xlu0 %v3082_v54, %s9861_s21 }
0x28ad   :  { %v3800_v55 = vpop.permute.xlu1 %3799 }
0x28ae   :  { %v3802_v56 = vmul.f32 %v9453_v42, %v3800_v55 }
0x28b0   :  { %3804 = vrot.lane.b32.xlu1 %v3802_v56, %s9861_s21 }
0x2910   :  { %v3085_v57 = vpop.permute.xlu0 %3084 }
0x2911   :  { %3088 = vst.msk [vmem:[#allocation3 + $0xe] sm:$0x3] %vm915_vm2, %v3085_v57 }
0x2918   :  { %v3632_v58 = vld [vmem:[#allocation3 + $0xe] sm:$0x3] }
0x2919   :  { %8816 = vmatmul.mubr.msk.f32.vlgmr.msra.gmra.mxu1 %vm198_vm1, %v3632_v58  ;;  %v4117_v58 = vld [vmem:[#allocation4 + $0x8] sm:$0x3] }
0x291a   :  { %8830 = vmatpush3.msra.mxu1 %v10592_v8  ;;  %8837 = vmatprep.mubr.msk.f32.mxu1 %vm9868_vm0, %v9867_v1 }
0x291b   :  { %8831 = vmatprep.subr.mxu1 %v9867_v1 }
0x291c   :  { %8832 = vmatpush3.msra.mxu1 %v10598_v9 }
0x291d   :  { %8833 = vmatprep.subr.mxu1 %v9867_v1 }
0x291e   :  { %8834 = vmatpush3.msra.mxu1 %v10604_v14 }
0x291f   :  { %8835 = vmatprep.subr.mxu1 %v9867_v1 }
0x2920   :  { %8836 = vmatpush3.msra.mxu1 %v10610_v15 }
0x2921   :  { %8851 = vmatprep.subr.mxu1 %v9867_v1 }
0x2922   :  { %v3805_v59 = vpop.permute.xlu1 %3804 }
0x2923   :  { %3807 = vst.msk [vmem:[#allocation2] sm:$0x3] %vm915_vm2, %v3805_v59  ;;  %8838 = vmatmul.mubr.msk.f32.vlgmr.msra.gmra.mxu1 %vm198_vm1, %v3805_v59 }
0x2924   :  { %8852 = vmatpush3.msra.mxu1 %v10592_v8  ;;  %8859 = vmatprep.mubr.msk.f32.mxu1 %vm9868_vm0, %v9867_v1 }
0x2925   :  { %8853 = vmatprep.subr.mxu1 %v9867_v1 }
0x2926   :  { %8854 = vmatpush3.msra.mxu1 %v10598_v9 }
0x2927   :  { %8855 = vmatprep.subr.mxu1 %v9867_v1 }
0x2928   :  { %8856 = vmatpush3.msra.mxu1 %v10604_v14 }
0x2929   :  { %8857 = vmatprep.subr.mxu1 %v9867_v1 }
0x292a   :  { %8858 = vmatpush3.msra.mxu1 %v10610_v15 }
0x292b   :  { %8873 = vmatprep.subr.mxu1 %v9867_v1 }
0x29d9   :  { %v3702_v60 = vpop.f32.mrf.mxu1 }
0x29da   :  { %v3703_v61 = vadd.f32 %v10568_v41, %v3702_v60 }
0x29db   :  { %v8817_v62 = vpop.f32.mrf.mxu1 }
0x29dc   :  { %3706 = vst [vmem:[#allocation4 + $0xe] sm:$0x3] %v3703_v61 }
0x29e3   :  { %v3877_v0 = vpop.f32.mrf.mxu1 }
0x29e4   :  { %v3881_v2 = vadd.f32 %v3877_v0, %v3808_v63 }
0x29e5   :  { %v8839_v7 = vpop.f32.mrf.mxu1 }
0x29e6   :  { %9458 = vtanh.f32 %v3881_v2  ;;  %v7886_v10 = vmul.f32 -1.442695, %v3881_v2 }
0x29e8   :  { %9460 = vpow2.f32 %v7886_v10 }
0x29f3   :  { %v9459_v16 = vpop.eup %9458 }
0x29f4   :  { %3891 = vrot.lane.b32.xlu0 %v9459_v16, %s9869_s5 }
0x29f5   :  { %v9461_v40 = vpop.eup %9460 }
0x29f6   :  { %v3885_v17 = vadd.f32 1.0, %v9461_v40 }
0x29f8   :  { %9462 = vrcp.f32 %v3885_v17 }
0x2a05   :  { %v9463_v18 = vpop.eup %9462 }
0x2a06   :  { %v3889_v41 = vmul.f32 %v9463_v18, %v3796_v51 }
0x2a66   :  { %v3892_v19 = vpop.permute.xlu0 %3891 }
0x2a67   :  { %v3894_v3 = vmul.f32 %v9463_v18, %v3892_v19 }
0x2a69   :  { %3896 = vrot.lane.b32.xlu1 %v3894_v3, %s9861_s21 }
0x2adb   :  { %v3897_v11 = vpop.permute.xlu1 %3896 }
0x2adc   :  { %v3899_v20 = vadd.f32 %v3897_v11, %v3889_v41 }
0x2ade   :  { %9464 = vtanh.f32 %v3899_v20 }
0x2aeb   :  { %v9465_v12 = vpop.eup %9464 }
0x2aec   :  { %3902 = vrot.lane.b32.xlu0 %v9465_v12, %s9869_s5 }
0x2b5e   :  { %v3903_v4 = vpop.permute.xlu0 %3902 }
0x2b5f   :  { %v3905_v21 = vmul.f32 %v9463_v18, %v3903_v4 }
0x2b61   :  { %3907 = vrot.lane.b32.xlu1 %v3905_v21, %s9861_s21 }
0x2bd3   :  { %v3908_v5 = vpop.permute.xlu1 %3907 }
0x2bd4   :  { %3910 = vst.msk [vmem:[#allocation2 + $0x2] sm:$0x3] %vm915_vm2, %v3908_v5  ;;  %8849 = vmatmul.mubr.msk.f32.vlgmr.msra.gmra.mxu0 %vm198_vm1, %v3908_v5 }
0x2bd5   :  { %8863 = vmatpush3.msra.mxu0 %v10592_v8  ;;  %8870 = vmatprep.mubr.msk.f32.mxu0 %vm9868_vm0, %v9867_v1 }
0x2bd6   :  { %8864 = vmatprep.subr.mxu0 %v9867_v1 }
0x2bd7   :  { %8865 = vmatpush3.msra.mxu0 %v10598_v9 }
0x2bd8   :  { %8866 = vmatprep.subr.mxu0 %v9867_v1 }
0x2bd9   :  { %8867 = vmatpush3.msra.mxu0 %v10604_v14 }
0x2bda   :  { %8868 = vmatprep.subr.mxu0 %v9867_v1 }
0x2bdb   :  { %8869 = vmatpush3.msra.mxu0 %v10610_v15 }
0x2bdc   :  { %8884 = vmatprep.subr.mxu0 %v9867_v1 }
0x2c94   :  { %v3980_v13 = vpop.f32.mrf.mxu0 }
0x2c95   :  { %v3984_v6 = vadd.f32 %v3980_v13, %v3911_v22 }
0x2c96   :  { %v8850_v23 = vpop.f32.mrf.mxu0 }
0x2c97   :  { %9466 = vtanh.f32 %v3984_v6  ;;  %v7888_v25 = vmul.f32 -1.442695, %v3984_v6 }
0x2c99   :  { %9468 = vpow2.f32 %v7888_v25 }
0x2ca4   :  { %v9467_v24 = vpop.eup %9466 }
0x2ca5   :  { %3994 = vrot.lane.b32.xlu0 %v9467_v24, %s9869_s5 }
0x2ca6   :  { %v9469_v26 = vpop.eup %9468 }
0x2ca7   :  { %v3988_v27 = vadd.f32 1.0, %v9469_v26 }
0x2ca9   :  { %9470 = vrcp.f32 %v3988_v27 }
0x2cb6   :  { %v9471_v28 = vpop.eup %9470 }
0x2cb7   :  { %v3992_v31 = vmul.f32 %v9471_v28, %v3899_v20  ;;  %v4220_v20 = vld [vmem:[#allocation4 + $0xa] sm:$0x3] }
0x2d17   :  { %v3995_v29 = vpop.permute.xlu0 %3994 }
0x2d18   :  { %v3997_v30 = vmul.f32 %v9471_v28, %v3995_v29 }
0x2d1a   :  { %3999 = vrot.lane.b32.xlu1 %v3997_v30, %s9861_s21  ;;  %v10769_v30 = vld [vmem:[#allocation12 + $0x50] sm:$0xff] }
0x2d8c   :  { %v4000_v32 = vpop.permute.xlu1 %3999 }
0x2d8d   :  { %v4002_v33 = vadd.f32 %v4000_v32, %v3992_v31  ;;  %v10775_v31 = vld [vmem:[#allocation12 + $0x48] sm:$0xff]  ;;  %v10779_v32 = vld [vmem:[#allocation12 + $0x40] sm:$0xff] }
0x2d8f   :  { %9472 = vtanh.f32 %v4002_v33 }
0x2d9c   :  { %v9473_v34 = vpop.eup %9472 }
0x2d9d   :  { %4005 = vrot.lane.b32.xlu0 %v9473_v34, %s9869_s5 }
0x2e0f   :  { %v4006_v35 = vpop.permute.xlu0 %4005 }
0x2e10   :  { %v4008_v36 = vmul.f32 %v9471_v28, %v4006_v35  ;;  %v10765_v28 = vld [vmem:[#allocation12 + $0x58] sm:$0xff] }
0x2e12   :  { %4010 = vrot.lane.b32.xlu1 %v4008_v36, %s9861_s21  ;;  %v4323_v36 = vld [vmem:[#allocation4 + $0xc] sm:$0x3] }
0x2e84   :  { %v4011_v37 = vpop.permute.xlu1 %4010 }
0x2e85   :  { %4013 = vst.msk [vmem:[#allocation2 + $0x4] sm:$0x3] %vm915_vm2, %v4011_v37  ;;  %8860 = vmatmul.mubr.msk.f32.vlgmr.msra.gmra.mxu1 %vm198_vm1, %v4011_v37 }
0x2e86   :  { %8874 = vmatpush3.msra.mxu1 %v10592_v8  ;;  %8881 = vmatprep.mubr.msk.f32.mxu1 %vm9868_vm0, %v9867_v1 }
0x2e87   :  { %8875 = vmatprep.subr.mxu1 %v9867_v1 }
0x2e88   :  { %8876 = vmatpush3.msra.mxu1 %v10598_v9 }
0x2e89   :  { %8877 = vmatprep.subr.mxu1 %v9867_v1 }
0x2e8a   :  { %8878 = vmatpush3.msra.mxu1 %v10604_v14 }
0x2e8b   :  { %8879 = vmatprep.subr.mxu1 %v9867_v1 }
0x2e8c   :  { %8880 = vmatpush3.msra.mxu1 %v10610_v15  ;;  %v4697_v34 = vld [vmem:[#allocation2 + $0x4] sm:$0x3] }
0x2e8d   :  { %8895 = vmatprep.subr.mxu1 %v9867_v1 }
0x2f45   :  { %v4083_v39 = vpop.f32.mrf.mxu1 }
0x2f46   :  { %v4087_v42 = vadd.f32 %v4083_v39, %v4014_v38 }
0x2f47   :  { %v8861_v43 = vpop.f32.mrf.mxu1 }
0x2f48   :  { %9474 = vtanh.f32 %v4087_v42  ;;  %v7890_v45 = vmul.f32 -1.442695, %v4087_v42  ;;  %v10821_v42 = vld [vmem:[%s11359_s8 + $0x2] ss:$0 sm:$0xff] }
0x2f4a   :  { %9476 = vpow2.f32 %v7890_v45 }
0x2f55   :  { %v9475_v44 = vpop.eup %9474 }
0x2f56   :  { %4097 = vrot.lane.b32.xlu0 %v9475_v44, %s9869_s5 }
0x2f57   :  { %v9477_v46 = vpop.eup %9476 }
0x2f58   :  { %v4091_v47 = vadd.f32 1.0, %v9477_v46 }
0x2f5a   :  { %9478 = vrcp.f32 %v4091_v47 }
0x2f67   :  { %v9479_v48 = vpop.eup %9478 }
0x2f68   :  { %v4095_v51 = vmul.f32 %v9479_v48, %v4002_v33  ;;  %v4547_v33 = vld [vmem:[#allocation2] sm:$0x3] }
0x2fc8   :  { %v4098_v49 = vpop.permute.xlu0 %4097 }
0x2fc9   :  { %v4100_v50 = vmul.f32 %v9479_v48, %v4098_v49 }
0x2fcb   :  { %4102 = vrot.lane.b32.xlu1 %v4100_v50, %s9861_s21 }
0x303d   :  { %v4103_v52 = vpop.permute.xlu1 %4102 }
0x303e   :  { %v4105_v53 = vadd.f32 %v4103_v52, %v4095_v51 }
0x3040   :  { %9480 = vtanh.f32 %v4105_v53 }
0x304d   :  { %v9481_v54 = vpop.eup %9480 }
0x304e   :  { %4108 = vrot.lane.b32.xlu0 %v9481_v54, %s9869_s5 }
0x30c0   :  { %v4109_v55 = vpop.permute.xlu0 %4108 }
0x30c1   :  { %v4111_v56 = vmul.f32 %v9479_v48, %v4109_v55 }
0x30c3   :  { %4113 = vrot.lane.b32.xlu1 %v4111_v56, %s9861_s21 }
0x3135   :  { %v4114_v57 = vpop.permute.xlu1 %4113 }
0x3136   :  { %4116 = vst.msk [vmem:[#allocation2 + $0x6] sm:$0x3] %vm915_vm2, %v4114_v57  ;;  %8871 = vmatmul.mubr.msk.f32.vlgmr.msra.gmra.mxu0 %vm198_vm1, %v4114_v57 }
0x3137   :  { %8885 = vmatpush3.msra.mxu0 %v10592_v8  ;;  %8892 = vmatprep.mubr.msk.f32.mxu0 %vm9868_vm0, %v9867_v1 }
0x3138   :  { %8886 = vmatprep.subr.mxu0 %v9867_v1 }
0x3139   :  { %8887 = vmatpush3.msra.mxu0 %v10598_v9 }
0x313a   :  { %8888 = vmatprep.subr.mxu0 %v9867_v1 }
0x313b   :  { %8889 = vmatpush3.msra.mxu0 %v10604_v14 }
0x313c   :  { %8890 = vmatprep.subr.mxu0 %v9867_v1 }
0x313d   :  { %8891 = vmatpush3.msra.mxu0 %v10610_v15 }
0x313e   :  { %8906 = vmatprep.subr.mxu0 %v9867_v1 }
0x31f6   :  { %v4186_v59 = vpop.f32.mrf.mxu0 }
0x31f7   :  { %v4190_v60 = vadd.f32 %v4186_v59, %v4117_v58 }
0x31f8   :  { %v8872_v61 = vpop.f32.mrf.mxu0 }
0x31f9   :  { %9482 = vtanh.f32 %v4190_v60  ;;  %v7892_v63 = vmul.f32 -1.442695, %v4190_v60 }
0x31fb   :  { %9484 = vpow2.f32 %v7892_v63 }
0x3206   :  { %v9483_v62 = vpop.eup %9482 }
0x3207   :  { %4200 = vrot.lane.b32.xlu0 %v9483_v62, %s9869_s5 }
0x3208   :  { %v9485_v0 = vpop.eup %9484 }
0x3209   :  { %v4194_v2 = vadd.f32 1.0, %v9485_v0 }
0x320b   :  { %9486 = vrcp.f32 %v4194_v2 }
0x3218   :  { %v9487_v7 = vpop.eup %9486 }
0x3219   :  { %v4198_v40 = vmul.f32 %v9487_v7, %v4105_v53 }
0x3279   :  { %v4201_v16 = vpop.permute.xlu0 %4200 }
0x327a   :  { %v4203_v10 = vmul.f32 %v9487_v7, %v4201_v16 }
0x327c   :  { %4205 = vrot.lane.b32.xlu1 %v4203_v10, %s9861_s21  ;;  %v10845_v10 = vld [vmem:[#allocation14 + $0x58] sm:$0xff] }
0x32ee   :  { %v4206_v17 = vpop.permute.xlu1 %4205 }
0x32ef   :  { %v4208_v18 = vadd.f32 %v4206_v17, %v4198_v40  ;;  %v10851_v40 = vld [vmem:[#allocation14 + $0x50] sm:$0xff]  ;;  %v10857_v17 = vld [vmem:[#allocation14 + $0x48] sm:$0xff] }
0x32f1   :  { %9488 = vtanh.f32 %v4208_v18 }
0x32fe   :  { %v9489_v19 = vpop.eup %9488 }
0x32ff   :  { %4211 = vrot.lane.b32.xlu0 %v9489_v19, %s9869_s5  ;;  %v4772_v19 = vld [vmem:[#allocation2 + $0x6] sm:$0x3] }
0x3371   :  { %v4212_v3 = vpop.permute.xlu0 %4211 }
0x3372   :  { %v4214_v41 = vmul.f32 %v9487_v7, %v4212_v3  ;;  %v4622_v7 = vld [vmem:[#allocation2 + $0x2] sm:$0x3] }
0x3374   :  { %4216 = vrot.lane.b32.xlu1 %v4214_v41, %s9861_s21  ;;  %v4426_v41 = vld [vmem:[#allocation4 + $0xe] sm:$0x3] }
0x33e6   :  { %v4217_v11 = vpop.permute.xlu1 %4216 }
0x33e7   :  { %4219 = vst.msk [vmem:[#allocation2 + $0x8] sm:$0x3] %vm915_vm2, %v4217_v11  ;;  %8882 = vmatmul.mubr.msk.f32.vlgmr.msra.gmra.mxu1 %vm198_vm1, %v4217_v11 }
0x33e8   :  { %8896 = vmatpush3.msra.mxu1 %v10592_v8  ;;  %8903 = vmatprep.mubr.msk.f32.mxu1 %vm9868_vm0, %v9867_v1 }
0x33e9   :  { %8897 = vmatprep.subr.mxu1 %v9867_v1 }
0x33ea   :  { %8898 = vmatpush3.msra.mxu1 %v10598_v9 }
0x33eb   :  { %8899 = vmatprep.subr.mxu1 %v9867_v1 }
0x33ec   :  { %8900 = vmatpush3.msra.mxu1 %v10604_v14 }
0x33ed   :  { %8901 = vmatprep.subr.mxu1 %v9867_v1 }
0x33ee   :  { %8902 = vmatpush3.msra.mxu1 %v10610_v15  ;;  %v4847_v35 = vld [vmem:[#allocation2 + $0x8] sm:$0x3] }
0x33ef   :  { %8917 = vmatprep.subr.mxu1 %v9867_v1 }
0x34a7   :  { %v4289_v12 = vpop.f32.mrf.mxu1 }
0x34a8   :  { %v4293_v8 = vadd.f32 %v4289_v12, %v4220_v20 }
0x34a9   :  { %v8883_v4 = vpop.f32.mrf.mxu1 }
0x34aa   :  { %9490 = vtanh.f32 %v4293_v8  ;;  %v7894_v5 = vmul.f32 -1.442695, %v4293_v8 }
0x34ac   :  { %9492 = vpow2.f32 %v7894_v5 }
0x34b7   :  { %v9491_v21 = vpop.eup %9490 }
0x34b8   :  { %4303 = vrot.lane.b32.xlu0 %v9491_v21, %s9869_s5 }
0x34b9   :  { %v9493_v9 = vpop.eup %9492 }
0x34ba   :  { %v4297_v22 = vadd.f32 1.0, %v9493_v9 }
0x34bc   :  { %9494 = vrcp.f32 %v4297_v22 }
0x34c9   :  { %v9495_v14 = vpop.eup %9494 }
0x34ca   :  { %v4301_v15 = vmul.f32 %v9495_v14, %v4208_v18  ;;  %v10863_v18 = vld [vmem:[#allocation14 + $0x40] sm:$0xff] }
0x352a   :  { %v4304_v13 = vpop.permute.xlu0 %4303 }
0x352b   :  { %v4306_v6 = vmul.f32 %v9495_v14, %v4304_v13 }
0x352d   :  { %4308 = vrot.lane.b32.xlu1 %v4306_v6, %s9861_s21 }
0x359f   :  { %v4309_v23 = vpop.permute.xlu1 %4308 }
0x35a0   :  { %v10760_v24 = vadd.f32 %v4309_v23, %v4301_v15 }
0x35a2   :  { %9496 = vtanh.f32 %v10760_v24 }
0x35af   :  { %v9497_v25 = vpop.eup %9496 }
0x35b0   :  { %4314 = vrot.lane.b32.xlu0 %v9497_v25, %s9869_s5 }
0x3622   :  { %v4315_v26 = vpop.permute.xlu0 %4314 }
0x3623   :  { %v4317_v27 = vmul.f32 %v9495_v14, %v4315_v26 }
0x3625   :  { %4319 = vrot.lane.b32.xlu1 %v4317_v27, %s9861_s21 }
0x3697   :  { %v4320_v29 = vpop.permute.xlu1 %4319 }
0x3698   :  { %4322 = vst.msk [vmem:[#allocation2 + $0xa] sm:$0x3] %vm915_vm2, %v4320_v29  ;;  %8893 = vmatmul.mubr.msk.f32.vlgmr.msra.gmra.mxu0 %vm198_vm1, %v4320_v29 }
0x3699   :  { %8907 = vmatpush3.msra.mxu0 %v10765_v28  ;;  %8914 = vmatprep.mubr.msk.f32.mxu0 %vm9868_vm0, %v9867_v1 }
0x369a   :  { %8908 = vmatprep.subr.mxu0 %v9867_v1 }
0x369b   :  { %8909 = vmatpush3.msra.mxu0 %v10769_v30 }
0x369c   :  { %8910 = vmatprep.subr.mxu0 %v9867_v1 }
0x369d   :  { %8911 = vmatpush3.msra.mxu0 %v10775_v31 }
0x369e   :  { %8912 = vmatprep.subr.mxu0 %v9867_v1 }
0x369f   :  { %8913 = vmatpush3.msra.mxu0 %v10779_v32  ;;  %v4922_v3 = vld [vmem:[#allocation2 + $0xa] sm:$0x3] }
0x36a0   :  { %8915 = vmatmul.mubr.msk.f32.vlgmr.msra.gmra.mxu0 %vm198_vm1, %v4547_v33  ;;  %8928 = vmatprep.subr.mxu0 %v9867_v1 }
0x36a1   :  { %8929 = vmatpush3.msra.mxu0 %v10765_v28  ;;  %8936 = vmatprep.mubr.msk.f32.mxu0 %vm9868_vm0, %v9867_v1 }
0x36a2   :  { %8930 = vmatprep.subr.mxu0 %v9867_v1 }
0x36a3   :  { %8931 = vmatpush3.msra.mxu0 %v10769_v30 }
0x36a4   :  { %8932 = vmatprep.subr.mxu0 %v9867_v1 }
0x36a5   :  { %8933 = vmatpush3.msra.mxu0 %v10775_v31 }
0x36a6   :  { %8934 = vmatprep.subr.mxu0 %v9867_v1 }
0x36a7   :  { %8935 = vmatpush3.msra.mxu0 %v10779_v32 }
0x36a8   :  { %8937 = vmatmul.mubr.msk.f32.vlgmr.msra.gmra.mxu0 %vm198_vm1, %v4697_v34  ;;  %8950 = vmatprep.subr.mxu0 %v9867_v1 }
0x36a9   :  { %8951 = vmatpush3.msra.mxu0 %v10765_v28  ;;  %8958 = vmatprep.mubr.msk.f32.mxu0 %vm9868_vm0, %v9867_v1 }
0x36aa   :  { %8952 = vmatprep.subr.mxu0 %v9867_v1 }
0x36ab   :  { %8953 = vmatpush3.msra.mxu0 %v10769_v30 }
0x36ac   :  { %8954 = vmatprep.subr.mxu0 %v9867_v1 }
0x36ad   :  { %8955 = vmatpush3.msra.mxu0 %v10775_v31 }
0x36ae   :  { %8956 = vmatprep.subr.mxu0 %v9867_v1 }
0x36af   :  { %8957 = vmatpush3.msra.mxu0 %v10779_v32 }
0x36b0   :  { %8959 = vmatmul.mubr.msk.f32.vlgmr.msra.gmra.mxu0 %vm198_vm1, %v4847_v35  ;;  %8972 = vmatprep.subr.mxu0 %v9867_v1 }
0x36b1   :  { %8973 = vmatpush3.msra.mxu0 %v10765_v28  ;;  %8980 = vmatprep.mubr.msk.f32.mxu0 %vm9868_vm0, %v9867_v1 }
0x36b2   :  { %8974 = vmatprep.subr.mxu0 %v9867_v1 }
0x36b3   :  { %8975 = vmatpush3.msra.mxu0 %v10769_v30 }
0x36b4   :  { %8976 = vmatprep.subr.mxu0 %v9867_v1 }
0x36b5   :  { %8977 = vmatpush3.msra.mxu0 %v10775_v31 }
0x36b6   :  { %8978 = vmatprep.subr.mxu0 %v9867_v1 }
0x36b7   :  { %8979 = vmatpush3.msra.mxu0 %v10779_v32 }
0x36b8   :  { %8994 = vmatprep.subr.mxu0 %v9867_v1 }
0x3758   :  { %v4392_v37 = vpop.f32.mrf.mxu0 }
0x3759   :  { %v4396_v38 = vadd.f32 %v4392_v37, %v4323_v36 }
0x375a   :  { %v8894_v39 = vpop.f32.mrf.mxu0 }
0x375b   :  { %9498 = vtanh.f32 %v4396_v38  ;;  %v7896_v53 = vmul.f32 -1.442695, %v4396_v38 }
0x375d   :  { %9500 = vpow2.f32 %v7896_v53 }
0x3760   :  { %v4617_v43 = vpop.f32.mrf.mxu0 }
0x3761   :  { %v4618_v44 = vadd.f32 %v10821_v42, %v4617_v43 }
0x3762   :  { %v8916_v45 = vpop.f32.mrf.mxu0 }
0x3763   :  { %4621 = vst [vmem:[#allocation4] sm:$0x3] %v4618_v44 }
0x3768   :  { %v9499_v46 = vpop.eup %9498  ;;  %v4767_v47 = vpop.f32.mrf.mxu0 }
0x3769   :  { %v4768_v48 = vadd.f32 %v10821_v42, %v4767_v47  ;;  %4406 = vrot.lane.b32.xlu0 %v9499_v46, %s9869_s5 }
0x376a   :  { %v8938_v49 = vpop.f32.mrf.mxu0  ;;  %v9501_v54 = vpop.eup %9500  ;;  %v5147_v15 = vld [vmem:[#allocation4] sm:$0x3] }
0x376b   :  { %4771 = vst [vmem:[#allocation4 + $0x4] sm:$0x3] %v4768_v48  ;;  %v4400_v55 = vadd.f32 1.0, %v9501_v54 }
0x376d   :  { %9502 = vrcp.f32 %v4400_v55 }
0x3770   :  { %v4917_v50 = vpop.f32.mrf.mxu0 }
0x3771   :  { %v4918_v51 = vadd.f32 %v10821_v42, %v4917_v50 }
0x3772   :  { %v8960_v52 = vpop.f32.mrf.mxu0 }
0x3773   :  { %4921 = vst [vmem:[#allocation4 + $0x8] sm:$0x3] %v4918_v51 }
0x377a   :  { %v9503_v56 = vpop.eup %9502 }
0x377b   :  { %v4404_v59 = vmul.f32 %v9503_v56, %v10760_v24 }
0x37db   :  { %v4407_v57 = vpop.permute.xlu0 %4406 }
0x37dc   :  { %v4409_v58 = vmul.f32 %v9503_v56, %v4407_v57 }
0x37de   :  { %4411 = vrot.lane.b32.xlu1 %v4409_v58, %s9861_s21 }
0x3850   :  { %v4412_v60 = vpop.permute.xlu1 %4411 }
0x3851   :  { %v10829_v61 = vadd.f32 %v4412_v60, %v4404_v59 }
0x3853   :  { %9504 = vtanh.f32 %v10829_v61 }
0x3860   :  { %v9505_v62 = vpop.eup %9504 }
0x3861   :  { %4417 = vrot.lane.b32.xlu0 %v9505_v62, %s9869_s5 }
0x38d3   :  { %v4418_v63 = vpop.permute.xlu0 %4417 }
0x38d4   :  { %v4420_v0 = vmul.f32 %v9503_v56, %v4418_v63 }
0x38d6   :  { %4422 = vrot.lane.b32.xlu1 %v4420_v0, %s9861_s21 }
0x3948   :  { %v4423_v2 = vpop.permute.xlu1 %4422 }
0x3949   :  { %4425 = vst.msk [vmem:[#allocation2 + $0xc] sm:$0x3] %vm915_vm2, %v4423_v2  ;;  %8904 = vmatmul.mubr.msk.f32.vlgmr.msra.gmra.mxu1 %vm198_vm1, %v4423_v2 }
0x394a   :  { %8918 = vmatpush3.msra.mxu1 %v10765_v28  ;;  %8925 = vmatprep.mubr.msk.f32.mxu1 %vm9868_vm0, %v9867_v1 }
0x394b   :  { %8919 = vmatprep.subr.mxu1 %v9867_v1 }
0x394c   :  { %8920 = vmatpush3.msra.mxu1 %v10769_v30 }
0x394d   :  { %8921 = vmatprep.subr.mxu1 %v9867_v1 }
0x394e   :  { %8922 = vmatpush3.msra.mxu1 %v10775_v31 }
0x394f   :  { %8923 = vmatprep.subr.mxu1 %v9867_v1 }
0x3950   :  { %8924 = vmatpush3.msra.mxu1 %v10779_v32  ;;  %v4997_v16 = vld [vmem:[#allocation2 + $0xc] sm:$0x3] }
0x3951   :  { %8926 = vmatmul.mubr.msk.f32.vlgmr.msra.gmra.mxu1 %vm198_vm1, %v4622_v7  ;;  %8939 = vmatprep.subr.mxu1 %v9867_v1 }
0x3952   :  { %8940 = vmatpush3.msra.mxu1 %v10765_v28  ;;  %8981 = vmatmul.mubr.msk.f32.vlgmr.msra.gmra.mxu0 %vm198_vm1, %v4997_v16 }
0x3953   :  { %8995 = vmatpush3.msra.mxu0 %v10845_v10  ;;  %8941 = vmatprep.subr.mxu1 %v9867_v1 }
0x3954   :  { %8996 = vmatprep.subr.mxu0 %v9867_v1  ;;  %8942 = vmatpush3.msra.mxu1 %v10769_v30 }
0x3955   :  { %8997 = vmatpush3.msra.mxu0 %v10851_v40  ;;  %8943 = vmatprep.subr.mxu1 %v9867_v1 }
0x3956   :  { %8998 = vmatprep.subr.mxu0 %v9867_v1  ;;  %8944 = vmatpush3.msra.mxu1 %v10775_v31 }
0x3957   :  { %8999 = vmatpush3.msra.mxu0 %v10857_v17  ;;  %8945 = vmatprep.subr.mxu1 %v9867_v1 }
0x3958   :  { %9000 = vmatprep.subr.mxu0 %v9867_v1  ;;  %8946 = vmatpush3.msra.mxu1 %v10779_v32 }
0x3959   :  { %8947 = vmatprep.mubr.msk.f32.mxu1 %vm9868_vm0, %v9867_v1  ;;  %9001 = vmatpush3.msra.mxu0 %v10863_v18 }
0x395a   :  { %9002 = vmatprep.mubr.msk.f32.mxu0 %vm9868_vm0, %v9867_v1  ;;  %8948 = vmatmul.mubr.msk.f32.vlgmr.msra.gmra.mxu1 %vm198_vm1, %v4772_v19 }
0x395b   :  { %8961 = vmatprep.subr.mxu1 %v9867_v1  ;;  %9003 = vmatmul.mubr.f32.vlgmr.msra.gmra.mxu0 %v9867_v1 }
0x395c   :  { %8962 = vmatpush3.msra.mxu1 %v10765_v28  ;;  %8969 = vmatprep.mubr.msk.f32.mxu1 %vm9868_vm0, %v9867_v1 }
0x395d   :  { %8963 = vmatprep.subr.mxu1 %v9867_v1  ;;  %9016 = vmatprep.subr.mxu0 %v9867_v1 }
0x395e   :  { %8964 = vmatpush3.msra.mxu1 %v10769_v30  ;;  %9017 = vmatpush3.msra.mxu0 %v10845_v10 }
0x395f   :  { %8965 = vmatprep.subr.mxu1 %v9867_v1  ;;  %9018 = vmatprep.subr.mxu0 %v9867_v1 }
0x3960   :  { %8966 = vmatpush3.msra.mxu1 %v10775_v31  ;;  %9019 = vmatpush3.msra.mxu0 %v10851_v40 }
0x3961   :  { %8967 = vmatprep.subr.mxu1 %v9867_v1  ;;  %9020 = vmatprep.subr.mxu0 %v9867_v1 }
0x3962   :  { %8968 = vmatpush3.msra.mxu1 %v10779_v32  ;;  %9021 = vmatpush3.msra.mxu0 %v10857_v17 }
0x3963   :  { %8970 = vmatmul.mubr.msk.f32.vlgmr.msra.gmra.mxu1 %vm198_vm1, %v4922_v3  ;;  %8983 = vmatprep.subr.mxu1 %v9867_v1 }
0x3964   :  { %8984 = vmatpush3.msra.mxu1 %v10765_v28  ;;  %8991 = vmatprep.mubr.msk.f32.mxu1 %vm9868_vm0, %v9867_v1 }
0x3965   :  { %8985 = vmatprep.subr.mxu1 %v9867_v1  ;;  %9022 = vmatprep.subr.mxu0 %v9867_v1 }
0x3966   :  { %8986 = vmatpush3.msra.mxu1 %v10769_v30  ;;  %9023 = vmatpush3.msra.mxu0 %v10863_v18 }
0x3967   :  { %8987 = vmatprep.subr.mxu1 %v9867_v1  ;;  %9024 = vmatprep.mubr.msk.f32.mxu0 %vm9868_vm0, %v9867_v1 }
0x3968   :  { %8988 = vmatpush3.msra.mxu1 %v10775_v31  ;;  %9038 = vmatprep.subr.mxu0 %v9867_v1 }
0x3969   :  { %8989 = vmatprep.subr.mxu1 %v9867_v1 }
0x396a   :  { %8990 = vmatpush3.msra.mxu1 %v10779_v32 }
0x396b   :  { %9005 = vmatprep.subr.mxu1 %v9867_v1 }
0x3a09   :  { %v4495_v11 = vpop.f32.mrf.mxu1 }
0x3a0a   :  { %v4499_v20 = vadd.f32 %v4495_v11, %v4426_v41 }
0x3a0b   :  { %v8905_v12 = vpop.f32.mrf.mxu1 }
0x3a0c   :  { %9506 = vtanh.f32 %v4499_v20  ;;  %v7898_v31 = vmul.f32 -1.442695, %v4499_v20 }
0x3a11   :  { %v4692_v8 = vpop.f32.mrf.mxu1 }
0x3a12   :  { %v4693_v4 = vadd.f32 %v10821_v42, %v4692_v8  ;;  %v5067_v21 = vpop.f32.mrf.mxu0 }
0x3a13   :  { %v5068_v5 = vadd.f32 %v10821_v42, %v5067_v21  ;;  %v8927_v9 = vpop.f32.mrf.mxu1 }
0x3a14   :  { %4696 = vst [vmem:[#allocation4 + $0x2] sm:$0x3] %v4693_v4  ;;  %v8982_v22 = vpop.f32.mrf.mxu0 }
0x3a15   :  { %5071 = vst [vmem:[#allocation4 + $0xc] sm:$0x3] %v5068_v5 }
0x3a19   :  { %v9507_v14 = vpop.eup %9506 }
0x3a1a   :  { %v4842_v13 = vpop.f32.mrf.mxu1  ;;  %4509 = vrot.lane.b32.xlu0 %v9507_v14, %s9869_s5 }
0x3a1b   :  { %v4843_v6 = vadd.f32 %v10821_v42, %v4842_v13  ;;  %v5214_v23 = vpop.f32.mrf.mxu0  ;;  %v5248_v0 = vld [vmem:[#allocation4 + $0x2] sm:$0x3]  ;;  %v5351_v13 = vld [vmem:[#allocation4 + $0x4] sm:$0x3] }
0x3a1c   :  { %v5218_v24 = vadd.f32 %v5214_v23, %v5147_v15  ;;  %v8949_v25 = vpop.f32.mrf.mxu1 }
0x3a1d   :  { %4846 = vst [vmem:[#allocation4 + $0x6] sm:$0x3] %v4843_v6  ;;  %v9004_v26 = vpop.f32.mrf.mxu0 }
0x3a1e   :  { %9508 = vtanh.f32 %v5218_v24  ;;  %v7909_v33 = vmul.f32 -1.442695, %v5218_v24 }
0x3a1f   :  { %9510 = vpow2.f32 %v7898_v31 }
0x3a20   :  { %9512 = vpow2.f32 %v7909_v33 }
0x3a23   :  { %v4992_v27 = vpop.f32.mrf.mxu1 }
0x3a24   :  { %v4993_v28 = vadd.f32 %v10821_v42, %v4992_v27 }
0x3a25   :  { %v8971_v29 = vpop.f32.mrf.mxu1 }
0x3a26   :  { %4996 = vst [vmem:[#allocation4 + $0xa] sm:$0x3] %v4993_v28 }
0x3a2b   :  { %v9509_v30 = vpop.eup %9508 }
0x3a2c   :  { %5228 = vrot.lane.b32.xlu1 %v9509_v30, %s9869_s5  ;;  %v9511_v32 = vpop.eup %9510 }
0x3a2d   :  { %v4503_v34 = vadd.f32 1.0, %v9511_v32  ;;  %v9513_v35 = vpop.eup %9512 }
0x3a2e   :  { %v5222_v39 = vadd.f32 1.0, %v9513_v35 }
0x3a2f   :  { %9514 = vrcp.f32 %v4503_v34 }
0x3a30   :  { %9516 = vrcp.f32 %v5222_v39 }
0x3a3c   :  { %v9515_v36 = vpop.eup %9514 }
0x3a3d   :  { %v9517_v43 = vpop.eup %9516  ;;  %v4507_v46 = vmul.f32 %v9515_v36, %v10829_v61 }
0x3a3e   :  { %v5226_v50 = vmul.f32 0.0, %v9517_v43 }
0x3a8c   :  { %v4510_v37 = vpop.permute.xlu0 %4509 }
0x3a8d   :  { %v4512_v38 = vmul.f32 %v9515_v36, %v4510_v37 }
0x3a8f   :  { %4514 = vrot.lane.b32.xlu0 %v4512_v38, %s9861_s21  ;;  %v5454_v38 = vld [vmem:[#allocation4 + $0x6] sm:$0x3] }
0x3a9e   :  { %v5229_v44 = vpop.permute.xlu1 %5228 }
0x3a9f   :  { %v5231_v45 = vmul.f32 %v9517_v43, %v5229_v44 }
0x3aa1   :  { %5233 = vrot.lane.b32.xlu1 %v5231_v45, %s9861_s21 }
0x3b01   :  { %v4515_v47 = vpop.permute.xlu0 %4514 }
0x3b02   :  { %v4517_v48 = vadd.f32 %v4515_v47, %v4507_v46 }
0x3b04   :  { %9518 = vtanh.f32 %v4517_v48 }
0x3b11   :  { %v9519_v49 = vpop.eup %9518 }
0x3b12   :  { %4520 = vrot.lane.b32.xlu0 %v9519_v49, %s9869_s5 }
0x3b13   :  { %v5234_v51 = vpop.permute.xlu1 %5233 }
0x3b14   :  { %v5236_v52 = vadd.f32 %v5234_v51, %v5226_v50 }
0x3b16   :  { %9520 = vtanh.f32 %v5236_v52 }
0x3b23   :  { %v9521_v53 = vpop.eup %9520 }
0x3b24   :  { %5239 = vrot.lane.b32.xlu1 %v9521_v53, %s9869_s5 }
0x3b84   :  { %v4521_v54 = vpop.permute.xlu0 %4520 }
0x3b85   :  { %v4523_v55 = vmul.f32 %v9515_v36, %v4521_v54 }
0x3b87   :  { %4525 = vrot.lane.b32.xlu0 %v4523_v55, %s9861_s21 }
0x3b96   :  { %v5240_v56 = vpop.permute.xlu1 %5239 }
0x3b97   :  { %v5242_v57 = vmul.f32 %v9517_v43, %v5240_v56 }
0x3b99   :  { %5244 = vrot.lane.b32.xlu1 %v5242_v57, %s9861_s21 }
0x3bf9   :  { %v4526_v58 = vpop.permute.xlu0 %4525 }
0x3bfa   :  { %4528 = vst.msk [vmem:[#allocation2 + $0xe] sm:$0x3] %vm915_vm2, %v4526_v58 }
0x3c01   :  { %v5072_v59 = vld [vmem:[#allocation2 + $0xe] sm:$0x3] }
0x3c02   :  { %8992 = vmatmul.mubr.msk.f32.vlgmr.msra.gmra.mxu1 %vm198_vm1, %v5072_v59  ;;  %v5557_v59 = vld [vmem:[#allocation4 + $0x8] sm:$0x3] }
0x3c03   :  { %9006 = vmatpush3.msra.mxu1 %v10845_v10  ;;  %9013 = vmatprep.mubr.msk.f32.mxu1 %vm9868_vm0, %v9867_v1 }
0x3c04   :  { %9007 = vmatprep.subr.mxu1 %v9867_v1 }
0x3c05   :  { %9008 = vmatpush3.msra.mxu1 %v10851_v40 }
0x3c06   :  { %9009 = vmatprep.subr.mxu1 %v9867_v1 }
0x3c07   :  { %9010 = vmatpush3.msra.mxu1 %v10857_v17 }
0x3c08   :  { %9011 = vmatprep.subr.mxu1 %v9867_v1 }
0x3c09   :  { %9012 = vmatpush3.msra.mxu1 %v10863_v18 }
0x3c0a   :  { %9027 = vmatprep.subr.mxu1 %v9867_v1 }
0x3c0b   :  { %v5245_v60 = vpop.permute.xlu1 %5244 }
0x3c0c   :  { %5247 = vst.msk [vmem:[#allocation3] sm:$0x3] %vm915_vm2, %v5245_v60  ;;  %9014 = vmatmul.mubr.msk.f32.vlgmr.msra.gmra.mxu1 %vm198_vm1, %v5245_v60 }
0x3c0d   :  { %9028 = vmatpush3.msra.mxu1 %v10845_v10  ;;  %9035 = vmatprep.mubr.msk.f32.mxu1 %vm9868_vm0, %v9867_v1 }
0x3c0e   :  { %9029 = vmatprep.subr.mxu1 %v9867_v1 }
0x3c0f   :  { %9030 = vmatpush3.msra.mxu1 %v10851_v40 }
0x3c10   :  { %9031 = vmatprep.subr.mxu1 %v9867_v1 }
0x3c11   :  { %9032 = vmatpush3.msra.mxu1 %v10857_v17 }
0x3c12   :  { %9033 = vmatprep.subr.mxu1 %v9867_v1 }
0x3c13   :  { %9034 = vmatpush3.msra.mxu1 %v10863_v18 }
0x3c14   :  { %9049 = vmatprep.subr.mxu1 %v9867_v1 }
0x3cc2   :  { %v5142_v61 = vpop.f32.mrf.mxu1 }
0x3cc3   :  { %v5143_v62 = vadd.f32 %v10821_v42, %v5142_v61 }
0x3cc4   :  { %v8993_v63 = vpop.f32.mrf.mxu1 }
0x3cc5   :  { %5146 = vst [vmem:[#allocation4 + $0xe] sm:$0x3] %v5143_v62 }
0x3ccc   :  { %v5317_v2 = vpop.f32.mrf.mxu1 }
0x3ccd   :  { %v5321_v7 = vadd.f32 %v5317_v2, %v5248_v0 }
0x3cce   :  { %v9015_v16 = vpop.f32.mrf.mxu1 }
0x3ccf   :  { %9522 = vtanh.f32 %v5321_v7  ;;  %v7911_v3 = vmul.f32 -1.442695, %v5321_v7 }
0x3cd1   :  { %9524 = vpow2.f32 %v7911_v3 }
0x3cdc   :  { %v9523_v19 = vpop.eup %9522 }
0x3cdd   :  { %5331 = vrot.lane.b32.xlu0 %v9523_v19, %s9869_s5 }
0x3cde   :  { %v9525_v41 = vpop.eup %9524 }
0x3cdf   :  { %v5325_v11 = vadd.f32 1.0, %v9525_v41 }
0x3ce1   :  { %9526 = vrcp.f32 %v5325_v11 }
0x3cee   :  { %v9527_v20 = vpop.eup %9526 }
0x3cef   :  { %v5329_v42 = vmul.f32 %v9527_v20, %v5236_v52 }
0x3d4f   :  { %v5332_v12 = vpop.permute.xlu0 %5331 }
0x3d50   :  { %v5334_v8 = vmul.f32 %v9527_v20, %v5332_v12 }
0x3d52   :  { %5336 = vrot.lane.b32.xlu1 %v5334_v8, %s9861_s21 }
0x3dc4   :  { %v5337_v4 = vpop.permute.xlu1 %5336 }
0x3dc5   :  { %v5339_v21 = vadd.f32 %v5337_v4, %v5329_v42 }
0x3dc7   :  { %9528 = vtanh.f32 %v5339_v21 }
0x3dd4   :  { %v9529_v5 = vpop.eup %9528 }
0x3dd5   :  { %5342 = vrot.lane.b32.xlu0 %v9529_v5, %s9869_s5 }
0x3e47   :  { %v5343_v9 = vpop.permute.xlu0 %5342 }
0x3e48   :  { %v5345_v22 = vmul.f32 %v9527_v20, %v5343_v9 }
0x3e4a   :  { %5347 = vrot.lane.b32.xlu1 %v5345_v22, %s9861_s21 }
0x3ebc   :  { %v5348_v14 = vpop.permute.xlu1 %5347 }
0x3ebd   :  { %5350 = vst.msk [vmem:[#allocation3 + $0x2] sm:$0x3] %vm915_vm2, %v5348_v14  ;;  %9025 = vmatmul.mubr.msk.f32.vlgmr.msra.gmra.mxu0 %vm198_vm1, %v5348_v14 }
0x3ebe   :  { %9039 = vmatpush3.msra.mxu0 %v10845_v10  ;;  %9046 = vmatprep.mubr.msk.f32.mxu0 %vm9868_vm0, %v9867_v1 }
0x3ebf   :  { %9040 = vmatprep.subr.mxu0 %v9867_v1 }
0x3ec0   :  { %9041 = vmatpush3.msra.mxu0 %v10851_v40 }
0x3ec1   :  { %9042 = vmatprep.subr.mxu0 %v9867_v1 }
0x3ec2   :  { %9043 = vmatpush3.msra.mxu0 %v10857_v17 }
0x3ec3   :  { %9044 = vmatprep.subr.mxu0 %v9867_v1 }
0x3ec4   :  { %9045 = vmatpush3.msra.mxu0 %v10863_v18 }
0x3ec5   :  { %9060 = vmatprep.subr.mxu0 %v9867_v1 }
0x3f7d   :  { %v5420_v6 = vpop.f32.mrf.mxu0 }
0x3f7e   :  { %v5424_v15 = vadd.f32 %v5420_v6, %v5351_v13 }
0x3f7f   :  { %v9026_v23 = vpop.f32.mrf.mxu0 }
0x3f80   :  { %9530 = vtanh.f32 %v5424_v15  ;;  %v7913_v25 = vmul.f32 -1.442695, %v5424_v15 }
0x3f82   :  { %9532 = vpow2.f32 %v7913_v25 }
0x3f8d   :  { %v9531_v24 = vpop.eup %9530 }
0x3f8e   :  { %5434 = vrot.lane.b32.xlu0 %v9531_v24, %s9869_s5 }
0x3f8f   :  { %v9533_v26 = vpop.eup %9532 }
0x3f90   :  { %v5428_v27 = vadd.f32 1.0, %v9533_v26 }
0x3f92   :  { %9534 = vrcp.f32 %v5428_v27 }
0x3f9f   :  { %v9535_v28 = vpop.eup %9534 }
0x3fa0   :  { %v5432_v31 = vmul.f32 %v9535_v28, %v5339_v21  ;;  %v5660_v21 = vld [vmem:[#allocation4 + $0xa] sm:$0x3] }
0x4000   :  { %v5435_v29 = vpop.permute.xlu0 %5434 }
0x4001   :  { %v5437_v30 = vmul.f32 %v9535_v28, %v5435_v29 }
0x4003   :  { %5439 = vrot.lane.b32.xlu1 %v5437_v30, %s9861_s21  ;;  %v11022_v30 = vld [vmem:[#allocation12 + $0x70] sm:$0xff] }
0x4075   :  { %v5440_v32 = vpop.permute.xlu1 %5439 }
0x4076   :  { %v5442_v33 = vadd.f32 %v5440_v32, %v5432_v31  ;;  %v11028_v31 = vld [vmem:[#allocation12 + $0x68] sm:$0xff]  ;;  %v11032_v32 = vld [vmem:[#allocation12 + $0x60] sm:$0xff] }
0x4078   :  { %9536 = vtanh.f32 %v5442_v33 }
0x4085   :  { %v9537_v34 = vpop.eup %9536 }
0x4086   :  { %5445 = vrot.lane.b32.xlu0 %v9537_v34, %s9869_s5 }
0x40f8   :  { %v5446_v35 = vpop.permute.xlu0 %5445 }
0x40f9   :  { %v5448_v36 = vmul.f32 %v9535_v28, %v5446_v35  ;;  %v11018_v28 = vld [vmem:[#allocation12 + $0x78] sm:$0xff] }
0x40fb   :  { %5450 = vrot.lane.b32.xlu1 %v5448_v36, %s9861_s21  ;;  %v5763_v36 = vld [vmem:[#allocation4 + $0xc] sm:$0x3] }
0x416d   :  { %v5451_v37 = vpop.permute.xlu1 %5450 }
0x416e   :  { %5453 = vst.msk [vmem:[#allocation3 + $0x4] sm:$0x3] %vm915_vm2, %v5451_v37  ;;  %9036 = vmatmul.mubr.msk.f32.vlgmr.msra.gmra.mxu1 %vm198_vm1, %v5451_v37 }
0x416f   :  { %9050 = vmatpush3.msra.mxu1 %v10845_v10  ;;  %9057 = vmatprep.mubr.msk.f32.mxu1 %vm9868_vm0, %v9867_v1 }
0x4170   :  { %9051 = vmatprep.subr.mxu1 %v9867_v1 }
0x4171   :  { %9052 = vmatpush3.msra.mxu1 %v10851_v40 }
0x4172   :  { %9053 = vmatprep.subr.mxu1 %v9867_v1 }
0x4173   :  { %9054 = vmatpush3.msra.mxu1 %v10857_v17 }
0x4174   :  { %9055 = vmatprep.subr.mxu1 %v9867_v1 }
0x4175   :  { %9056 = vmatpush3.msra.mxu1 %v10863_v18  ;;  %v6137_v34 = vld [vmem:[#allocation3 + $0x4] sm:$0x3] }
0x4176   :  { %9071 = vmatprep.subr.mxu1 %v9867_v1 }
0x422e   :  { %v5523_v39 = vpop.f32.mrf.mxu1 }
0x422f   :  { %v5527_v43 = vadd.f32 %v5523_v39, %v5454_v38 }
0x4230   :  { %v9037_v44 = vpop.f32.mrf.mxu1 }
0x4231   :  { %9538 = vtanh.f32 %v5527_v43  ;;  %v7915_v46 = vmul.f32 -1.442695, %v5527_v43  ;;  %v11074_v43 = vld [vmem:[%s11359_s8 + $0x3] ss:$0 sm:$0xff] }
0x4233   :  { %9540 = vpow2.f32 %v7915_v46 }
0x423e   :  { %v9539_v45 = vpop.eup %9538 }
0x423f   :  { %5537 = vrot.lane.b32.xlu0 %v9539_v45, %s9869_s5 }
0x4240   :  { %v9541_v47 = vpop.eup %9540 }
0x4241   :  { %v5531_v48 = vadd.f32 1.0, %v9541_v47 }
0x4243   :  { %9542 = vrcp.f32 %v5531_v48 }
0x4250   :  { %v9543_v49 = vpop.eup %9542 }
0x4251   :  { %v5535_v52 = vmul.f32 %v9543_v49, %v5442_v33  ;;  %v5987_v33 = vld [vmem:[#allocation3] sm:$0x3] }
0x42b1   :  { %v5538_v50 = vpop.permute.xlu0 %5537 }
0x42b2   :  { %v5540_v51 = vmul.f32 %v9543_v49, %v5538_v50 }
0x42b4   :  { %5542 = vrot.lane.b32.xlu1 %v5540_v51, %s9861_s21 }
0x4326   :  { %v5543_v53 = vpop.permute.xlu1 %5542 }
0x4327   :  { %v5545_v54 = vadd.f32 %v5543_v53, %v5535_v52 }
0x4329   :  { %9544 = vtanh.f32 %v5545_v54 }
0x4336   :  { %v9545_v55 = vpop.eup %9544 }
0x4337   :  { %5548 = vrot.lane.b32.xlu0 %v9545_v55, %s9869_s5 }
0x43a9   :  { %v5549_v56 = vpop.permute.xlu0 %5548 }
0x43aa   :  { %v5551_v57 = vmul.f32 %v9543_v49, %v5549_v56 }
0x43ac   :  { %5553 = vrot.lane.b32.xlu1 %v5551_v57, %s9861_s21 }
0x441e   :  { %v5554_v58 = vpop.permute.xlu1 %5553 }
0x441f   :  { %5556 = vst.msk [vmem:[#allocation3 + $0x6] sm:$0x3] %vm915_vm2, %v5554_v58  ;;  %9047 = vmatmul.mubr.msk.f32.vlgmr.msra.gmra.mxu0 %vm198_vm1, %v5554_v58 }
0x4420   :  { %9061 = vmatpush3.msra.mxu0 %v10845_v10  ;;  %9068 = vmatprep.mubr.msk.f32.mxu0 %vm9868_vm0, %v9867_v1 }
0x4421   :  { %9062 = vmatprep.subr.mxu0 %v9867_v1 }
0x4422   :  { %9063 = vmatpush3.msra.mxu0 %v10851_v40 }
0x4423   :  { %9064 = vmatprep.subr.mxu0 %v9867_v1 }
0x4424   :  { %9065 = vmatpush3.msra.mxu0 %v10857_v17 }
0x4425   :  { %9066 = vmatprep.subr.mxu0 %v9867_v1 }
0x4426   :  { %9067 = vmatpush3.msra.mxu0 %v10863_v18 }
0x4427   :  { %9082 = vmatprep.subr.mxu0 %v9867_v1 }
0x44df   :  { %v5626_v60 = vpop.f32.mrf.mxu0 }
0x44e0   :  { %v5630_v61 = vadd.f32 %v5626_v60, %v5557_v59 }
0x44e1   :  { %v9048_v62 = vpop.f32.mrf.mxu0 }
0x44e2   :  { %9546 = vtanh.f32 %v5630_v61  ;;  %v7917_v0 = vmul.f32 -1.442695, %v5630_v61 }
0x44e4   :  { %9548 = vpow2.f32 %v7917_v0 }
0x44ef   :  { %v9547_v63 = vpop.eup %9546 }
0x44f0   :  { %5640 = vrot.lane.b32.xlu0 %v9547_v63, %s9869_s5 }
0x44f1   :  { %v9549_v2 = vpop.eup %9548 }
0x44f2   :  { %v5634_v7 = vadd.f32 1.0, %v9549_v2 }
0x44f4   :  { %9550 = vrcp.f32 %v5634_v7 }
0x4501   :  { %v9551_v16 = vpop.eup %9550 }
0x4502   :  { %v5638_v41 = vmul.f32 %v9551_v16, %v5545_v54 }
0x4562   :  { %v5641_v19 = vpop.permute.xlu0 %5640 }
0x4563   :  { %v5643_v3 = vmul.f32 %v9551_v16, %v5641_v19 }
0x4565   :  { %5645 = vrot.lane.b32.xlu1 %v5643_v3, %s9861_s21  ;;  %v11098_v3 = vld [vmem:[#allocation14 + $0x78] sm:$0xff] }
0x45d7   :  { %v5646_v11 = vpop.permute.xlu1 %5645 }
0x45d8   :  { %v5648_v20 = vadd.f32 %v5646_v11, %v5638_v41  ;;  %v11104_v41 = vld [vmem:[#allocation14 + $0x70] sm:$0xff]  ;;  %v11110_v11 = vld [vmem:[#allocation14 + $0x68] sm:$0xff] }
0x45da   :  { %9552 = vtanh.f32 %v5648_v20 }
0x45e7   :  { %v9553_v12 = vpop.eup %9552 }
0x45e8   :  { %5651 = vrot.lane.b32.xlu0 %v9553_v12, %s9869_s5  ;;  %v6212_v12 = vld [vmem:[#allocation3 + $0x6] sm:$0x3] }
0x465a   :  { %v5652_v8 = vpop.permute.xlu0 %5651 }
0x465b   :  { %v5654_v42 = vmul.f32 %v9551_v16, %v5652_v8  ;;  %v6062_v16 = vld [vmem:[#allocation3 + $0x2] sm:$0x3] }
0x465d   :  { %5656 = vrot.lane.b32.xlu1 %v5654_v42, %s9861_s21  ;;  %v5866_v42 = vld [vmem:[#allocation4 + $0xe] sm:$0x3] }
0x46cf   :  { %v5657_v4 = vpop.permute.xlu1 %5656 }
0x46d0   :  { %5659 = vst.msk [vmem:[#allocation3 + $0x8] sm:$0x3] %vm915_vm2, %v5657_v4  ;;  %9058 = vmatmul.mubr.msk.f32.vlgmr.msra.gmra.mxu1 %vm198_vm1, %v5657_v4 }
0x46d1   :  { %9072 = vmatpush3.msra.mxu1 %v10845_v10  ;;  %9079 = vmatprep.mubr.msk.f32.mxu1 %vm9868_vm0, %v9867_v1 }
0x46d2   :  { %9073 = vmatprep.subr.mxu1 %v9867_v1 }
0x46d3   :  { %9074 = vmatpush3.msra.mxu1 %v10851_v40 }
0x46d4   :  { %9075 = vmatprep.subr.mxu1 %v9867_v1 }
0x46d5   :  { %9076 = vmatpush3.msra.mxu1 %v10857_v17 }
0x46d6   :  { %9077 = vmatprep.subr.mxu1 %v9867_v1 }
0x46d7   :  { %9078 = vmatpush3.msra.mxu1 %v10863_v18  ;;  %v6287_v35 = vld [vmem:[#allocation3 + $0x8] sm:$0x3] }
0x46d8   :  { %9093 = vmatprep.subr.mxu1 %v9867_v1 }
0x4790   :  { %v5729_v5 = vpop.f32.mrf.mxu1 }
0x4791   :  { %v5733_v10 = vadd.f32 %v5729_v5, %v5660_v21 }
0x4792   :  { %v9059_v9 = vpop.f32.mrf.mxu1 }
0x4793   :  { %9554 = vtanh.f32 %v5733_v10  ;;  %v7919_v14 = vmul.f32 -1.442695, %v5733_v10 }
0x4795   :  { %9556 = vpow2.f32 %v7919_v14 }
0x47a0   :  { %v9555_v22 = vpop.eup %9554 }
0x47a1   :  { %5743 = vrot.lane.b32.xlu0 %v9555_v22, %s9869_s5 }
0x47a2   :  { %v9557_v40 = vpop.eup %9556 }
0x47a3   :  { %v5737_v13 = vadd.f32 1.0, %v9557_v40 }
0x47a5   :  { %9558 = vrcp.f32 %v5737_v13 }
0x47b2   :  { %v9559_v17 = vpop.eup %9558 }
0x47b3   :  { %v5741_v18 = vmul.f32 %v9559_v17, %v5648_v20  ;;  %v11116_v20 = vld [vmem:[#allocation14 + $0x60] sm:$0xff] }
0x4813   :  { %v5744_v6 = vpop.permute.xlu0 %5743 }
0x4814   :  { %v5746_v15 = vmul.f32 %v9559_v17, %v5744_v6 }
0x4816   :  { %5748 = vrot.lane.b32.xlu1 %v5746_v15, %s9861_s21 }
0x4888   :  { %v5749_v23 = vpop.permute.xlu1 %5748 }
0x4889   :  { %v11013_v24 = vadd.f32 %v5749_v23, %v5741_v18 }
0x488b   :  { %9560 = vtanh.f32 %v11013_v24 }
0x4898   :  { %v9561_v25 = vpop.eup %9560 }
0x4899   :  { %5754 = vrot.lane.b32.xlu0 %v9561_v25, %s9869_s5 }
0x490b   :  { %v5755_v26 = vpop.permute.xlu0 %5754 }
0x490c   :  { %v5757_v27 = vmul.f32 %v9559_v17, %v5755_v26 }
0x490e   :  { %5759 = vrot.lane.b32.xlu1 %v5757_v27, %s9861_s21 }
0x4980   :  { %v5760_v29 = vpop.permute.xlu1 %5759 }
0x4981   :  { %5762 = vst.msk [vmem:[#allocation3 + $0xa] sm:$0x3] %vm915_vm2, %v5760_v29  ;;  %9069 = vmatmul.mubr.msk.f32.vlgmr.msra.gmra.mxu0 %vm198_vm1, %v5760_v29 }
0x4982   :  { %9083 = vmatpush3.msra.mxu0 %v11018_v28  ;;  %9090 = vmatprep.mubr.msk.f32.mxu0 %vm9868_vm0, %v9867_v1 }
0x4983   :  { %9084 = vmatprep.subr.mxu0 %v9867_v1 }
0x4984   :  { %9085 = vmatpush3.msra.mxu0 %v11022_v30 }
0x4985   :  { %9086 = vmatprep.subr.mxu0 %v9867_v1 }
0x4986   :  { %9087 = vmatpush3.msra.mxu0 %v11028_v31 }
0x4987   :  { %9088 = vmatprep.subr.mxu0 %v9867_v1 }
0x4988   :  { %9089 = vmatpush3.msra.mxu0 %v11032_v32  ;;  %v6362_v8 = vld [vmem:[#allocation3 + $0xa] sm:$0x3] }
0x4989   :  { %9091 = vmatmul.mubr.msk.f32.vlgmr.msra.gmra.mxu0 %vm198_vm1, %v5987_v33  ;;  %9104 = vmatprep.subr.mxu0 %v9867_v1 }
0x498a   :  { %9105 = vmatpush3.msra.mxu0 %v11018_v28  ;;  %9112 = vmatprep.mubr.msk.f32.mxu0 %vm9868_vm0, %v9867_v1 }
0x498b   :  { %9106 = vmatprep.subr.mxu0 %v9867_v1 }
0x498c   :  { %9107 = vmatpush3.msra.mxu0 %v11022_v30 }
0x498d   :  { %9108 = vmatprep.subr.mxu0 %v9867_v1 }
0x498e   :  { %9109 = vmatpush3.msra.mxu0 %v11028_v31 }
0x498f   :  { %9110 = vmatprep.subr.mxu0 %v9867_v1 }
0x4990   :  { %9111 = vmatpush3.msra.mxu0 %v11032_v32 }
0x4991   :  { %9113 = vmatmul.mubr.msk.f32.vlgmr.msra.gmra.mxu0 %vm198_vm1, %v6137_v34  ;;  %9126 = vmatprep.subr.mxu0 %v9867_v1 }
0x4992   :  { %9127 = vmatpush3.msra.mxu0 %v11018_v28  ;;  %9134 = vmatprep.mubr.msk.f32.mxu0 %vm9868_vm0, %v9867_v1 }
0x4993   :  { %9128 = vmatprep.subr.mxu0 %v9867_v1 }
0x4994   :  { %9129 = vmatpush3.msra.mxu0 %v11022_v30 }
0x4995   :  { %9130 = vmatprep.subr.mxu0 %v9867_v1 }
0x4996   :  { %9131 = vmatpush3.msra.mxu0 %v11028_v31 }
0x4997   :  { %9132 = vmatprep.subr.mxu0 %v9867_v1 }
0x4998   :  { %9133 = vmatpush3.msra.mxu0 %v11032_v32 }
0x4999   :  { %9135 = vmatmul.mubr.msk.f32.vlgmr.msra.gmra.mxu0 %vm198_vm1, %v6287_v35  ;;  %9148 = vmatprep.subr.mxu0 %v9867_v1 }
0x499a   :  { %9149 = vmatpush3.msra.mxu0 %v11018_v28  ;;  %9156 = vmatprep.mubr.msk.f32.mxu0 %vm9868_vm0, %v9867_v1 }
0x499b   :  { %9150 = vmatprep.subr.mxu0 %v9867_v1 }
0x499c   :  { %9151 = vmatpush3.msra.mxu0 %v11022_v30 }
0x499d   :  { %9152 = vmatprep.subr.mxu0 %v9867_v1 }
0x499e   :  { %9153 = vmatpush3.msra.mxu0 %v11028_v31 }
0x499f   :  { %9154 = vmatprep.subr.mxu0 %v9867_v1 }
0x49a0   :  { %9155 = vmatpush3.msra.mxu0 %v11032_v32 }
0x49a1   :  { %9170 = vmatprep.subr.mxu0 %v9867_v1 }
0x4a41   :  { %v5832_v37 = vpop.f32.mrf.mxu0 }
0x4a42   :  { %v5836_v38 = vadd.f32 %v5832_v37, %v5763_v36 }
0x4a43   :  { %v9070_v39 = vpop.f32.mrf.mxu0 }
0x4a44   :  { %9562 = vtanh.f32 %v5836_v38  ;;  %v7921_v54 = vmul.f32 -1.442695, %v5836_v38 }
0x4a46   :  { %9564 = vpow2.f32 %v7921_v54 }
0x4a49   :  { %v6057_v44 = vpop.f32.mrf.mxu0 }
0x4a4a   :  { %v6058_v45 = vadd.f32 %v11074_v43, %v6057_v44 }
0x4a4b   :  { %v9092_v46 = vpop.f32.mrf.mxu0 }
0x4a4c   :  { %6061 = vst [vmem:[#allocation4] sm:$0x3] %v6058_v45 }
0x4a51   :  { %v9563_v47 = vpop.eup %9562  ;;  %v6207_v48 = vpop.f32.mrf.mxu0 }
0x4a52   :  { %v6208_v49 = vadd.f32 %v11074_v43, %v6207_v48  ;;  %5846 = vrot.lane.b32.xlu0 %v9563_v47, %s9869_s5 }
0x4a53   :  { %v9114_v50 = vpop.f32.mrf.mxu0  ;;  %v9565_v55 = vpop.eup %9564  ;;  %v6587_v18 = vld [vmem:[#allocation4] sm:$0x3] }
0x4a54   :  { %6211 = vst [vmem:[#allocation4 + $0x4] sm:$0x3] %v6208_v49  ;;  %v5840_v56 = vadd.f32 1.0, %v9565_v55 }
0x4a56   :  { %9566 = vrcp.f32 %v5840_v56 }
0x4a59   :  { %v6357_v51 = vpop.f32.mrf.mxu0 }
0x4a5a   :  { %v6358_v52 = vadd.f32 %v11074_v43, %v6357_v51 }
0x4a5b   :  { %v9136_v53 = vpop.f32.mrf.mxu0 }
0x4a5c   :  { %6361 = vst [vmem:[#allocation4 + $0x8] sm:$0x3] %v6358_v52 }
0x4a63   :  { %v9567_v57 = vpop.eup %9566 }
0x4a64   :  { %v5844_v60 = vmul.f32 %v9567_v57, %v11013_v24 }
0x4ac4   :  { %v5847_v58 = vpop.permute.xlu0 %5846 }
0x4ac5   :  { %v5849_v59 = vmul.f32 %v9567_v57, %v5847_v58 }
0x4ac7   :  { %5851 = vrot.lane.b32.xlu1 %v5849_v59, %s9861_s21 }
0x4b39   :  { %v5852_v61 = vpop.permute.xlu1 %5851 }
0x4b3a   :  { %v11082_v62 = vadd.f32 %v5852_v61, %v5844_v60 }
0x4b3c   :  { %9568 = vtanh.f32 %v11082_v62 }
0x4b49   :  { %v9569_v63 = vpop.eup %9568 }
0x4b4a   :  { %5857 = vrot.lane.b32.xlu0 %v9569_v63, %s9869_s5 }
0x4bbc   :  { %v5858_v0 = vpop.permute.xlu0 %5857 }
0x4bbd   :  { %v5860_v2 = vmul.f32 %v9567_v57, %v5858_v0 }
0x4bbf   :  { %5862 = vrot.lane.b32.xlu1 %v5860_v2, %s9861_s21 }
0x4c31   :  { %v5863_v7 = vpop.permute.xlu1 %5862 }
0x4c32   :  { %5865 = vst.msk [vmem:[#allocation3 + $0xc] sm:$0x3] %vm915_vm2, %v5863_v7  ;;  %9080 = vmatmul.mubr.msk.f32.vlgmr.msra.gmra.mxu1 %vm198_vm1, %v5863_v7 }
0x4c33   :  { %9094 = vmatpush3.msra.mxu1 %v11018_v28  ;;  %9101 = vmatprep.mubr.msk.f32.mxu1 %vm9868_vm0, %v9867_v1 }
0x4c34   :  { %9095 = vmatprep.subr.mxu1 %v9867_v1 }
0x4c35   :  { %9096 = vmatpush3.msra.mxu1 %v11022_v30 }
0x4c36   :  { %9097 = vmatprep.subr.mxu1 %v9867_v1 }
0x4c37   :  { %9098 = vmatpush3.msra.mxu1 %v11028_v31 }
0x4c38   :  { %9099 = vmatprep.subr.mxu1 %v9867_v1 }
0x4c39   :  { %9100 = vmatpush3.msra.mxu1 %v11032_v32  ;;  %v6437_v19 = vld [vmem:[#allocation3 + $0xc] sm:$0x3] }
0x4c3a   :  { %9102 = vmatmul.mubr.msk.f32.vlgmr.msra.gmra.mxu1 %vm198_vm1, %v6062_v16  ;;  %9115 = vmatprep.subr.mxu1 %v9867_v1 }
0x4c3b   :  { %9116 = vmatpush3.msra.mxu1 %v11018_v28  ;;  %9157 = vmatmul.mubr.msk.f32.vlgmr.msra.gmra.mxu0 %vm198_vm1, %v6437_v19 }
0x4c3c   :  { %9171 = vmatpush3.msra.mxu0 %v11098_v3  ;;  %9117 = vmatprep.subr.mxu1 %v9867_v1 }
0x4c3d   :  { %9172 = vmatprep.subr.mxu0 %v9867_v1  ;;  %9118 = vmatpush3.msra.mxu1 %v11022_v30 }
0x4c3e   :  { %9173 = vmatpush3.msra.mxu0 %v11104_v41  ;;  %9119 = vmatprep.subr.mxu1 %v9867_v1 }
0x4c3f   :  { %9174 = vmatprep.subr.mxu0 %v9867_v1  ;;  %9120 = vmatpush3.msra.mxu1 %v11028_v31 }
0x4c40   :  { %9175 = vmatpush3.msra.mxu0 %v11110_v11  ;;  %9121 = vmatprep.subr.mxu1 %v9867_v1 }
0x4c41   :  { %9176 = vmatprep.subr.mxu0 %v9867_v1  ;;  %9122 = vmatpush3.msra.mxu1 %v11032_v32 }
0x4c42   :  { %9123 = vmatprep.mubr.msk.f32.mxu1 %vm9868_vm0, %v9867_v1  ;;  %9177 = vmatpush3.msra.mxu0 %v11116_v20 }
0x4c43   :  { %9178 = vmatprep.mubr.msk.f32.mxu0 %vm9868_vm0, %v9867_v1  ;;  %9124 = vmatmul.mubr.msk.f32.vlgmr.msra.gmra.mxu1 %vm198_vm1, %v6212_v12 }
0x4c44   :  { %9137 = vmatprep.subr.mxu1 %v9867_v1  ;;  %9179 = vmatmul.mubr.f32.vlgmr.msra.gmra.mxu0 %v9867_v1 }
0x4c45   :  { %9138 = vmatpush3.msra.mxu1 %v11018_v28  ;;  %9145 = vmatprep.mubr.msk.f32.mxu1 %vm9868_vm0, %v9867_v1 }
0x4c46   :  { %9139 = vmatprep.subr.mxu1 %v9867_v1  ;;  %9192 = vmatprep.subr.mxu0 %v9867_v1 }
0x4c47   :  { %9140 = vmatpush3.msra.mxu1 %v11022_v30  ;;  %9193 = vmatpush3.msra.mxu0 %v11098_v3 }
0x4c48   :  { %9141 = vmatprep.subr.mxu1 %v9867_v1  ;;  %9194 = vmatprep.subr.mxu0 %v9867_v1 }
0x4c49   :  { %9142 = vmatpush3.msra.mxu1 %v11028_v31  ;;  %9195 = vmatpush3.msra.mxu0 %v11104_v41 }
0x4c4a   :  { %9143 = vmatprep.subr.mxu1 %v9867_v1  ;;  %9196 = vmatprep.subr.mxu0 %v9867_v1 }
0x4c4b   :  { %9144 = vmatpush3.msra.mxu1 %v11032_v32  ;;  %9197 = vmatpush3.msra.mxu0 %v11110_v11 }
0x4c4c   :  { %9146 = vmatmul.mubr.msk.f32.vlgmr.msra.gmra.mxu1 %vm198_vm1, %v6362_v8  ;;  %9159 = vmatprep.subr.mxu1 %v9867_v1 }
0x4c4d   :  { %9160 = vmatpush3.msra.mxu1 %v11018_v28  ;;  %9167 = vmatprep.mubr.msk.f32.mxu1 %vm9868_vm0, %v9867_v1 }
0x4c4e   :  { %9161 = vmatprep.subr.mxu1 %v9867_v1  ;;  %9198 = vmatprep.subr.mxu0 %v9867_v1 }
0x4c4f   :  { %9162 = vmatpush3.msra.mxu1 %v11022_v30  ;;  %9199 = vmatpush3.msra.mxu0 %v11116_v20 }
0x4c50   :  { %9163 = vmatprep.subr.mxu1 %v9867_v1  ;;  %9200 = vmatprep.mubr.msk.f32.mxu0 %vm9868_vm0, %v9867_v1 }
0x4c51   :  { %9164 = vmatpush3.msra.mxu1 %v11028_v31  ;;  %9214 = vmatprep.subr.mxu0 %v9867_v1 }
0x4c52   :  { %9165 = vmatprep.subr.mxu1 %v9867_v1 }
0x4c53   :  { %9166 = vmatpush3.msra.mxu1 %v11032_v32 }
0x4c54   :  { %9181 = vmatprep.subr.mxu1 %v9867_v1 }
0x4cf2   :  { %v5935_v4 = vpop.f32.mrf.mxu1 }
0x4cf3   :  { %v5939_v21 = vadd.f32 %v5935_v4, %v5866_v42 }
0x4cf4   :  { %v9081_v5 = vpop.f32.mrf.mxu1 }
0x4cf5   :  { %9570 = vtanh.f32 %v5939_v21  ;;  %v7923_v31 = vmul.f32 -1.442695, %v5939_v21 }
0x4cfa   :  { %v6132_v10 = vpop.f32.mrf.mxu1 }
0x4cfb   :  { %v6133_v9 = vadd.f32 %v11074_v43, %v6132_v10  ;;  %v6507_v22 = vpop.f32.mrf.mxu0 }
0x4cfc   :  { %v6508_v14 = vadd.f32 %v11074_v43, %v6507_v22  ;;  %v9103_v40 = vpop.f32.mrf.mxu1 }
0x4cfd   :  { %6136 = vst [vmem:[#allocation4 + $0x2] sm:$0x3] %v6133_v9  ;;  %v9158_v13 = vpop.f32.mrf.mxu0 }
0x4cfe   :  { %6511 = vst [vmem:[#allocation4 + $0xc] sm:$0x3] %v6508_v14 }
0x4d02   :  { %v9571_v17 = vpop.eup %9570 }
0x4d03   :  { %v6282_v6 = vpop.f32.mrf.mxu1  ;;  %5949 = vrot.lane.b32.xlu0 %v9571_v17, %s9869_s5 }
0x4d04   :  { %v6283_v15 = vadd.f32 %v11074_v43, %v6282_v6  ;;  %v6654_v23 = vpop.f32.mrf.mxu0  ;;  %v6691_v2 = vld [vmem:[#allocation4 + $0x2] sm:$0x3]  ;;  %v6800_v6 = vld [vmem:[#allocation4 + $0x4] sm:$0x3] }
0x4d05   :  { %v6658_v24 = vadd.f32 %v6654_v23, %v6587_v18  ;;  %v9125_v25 = vpop.f32.mrf.mxu1 }
0x4d06   :  { %6286 = vst [vmem:[#allocation4 + $0x6] sm:$0x3] %v6283_v15  ;;  %v9180_v26 = vpop.f32.mrf.mxu0 }
0x4d07   :  { %9572 = vtanh.f32 %v6658_v24  ;;  %v7934_v33 = vmul.f32 -1.442695, %v6658_v24 }
0x4d08   :  { %9574 = vpow2.f32 %v7923_v31 }
0x4d09   :  { %9576 = vpow2.f32 %v7934_v33 }
0x4d0c   :  { %v6432_v27 = vpop.f32.mrf.mxu1 }
0x4d0d   :  { %v6433_v28 = vadd.f32 %v11074_v43, %v6432_v27 }
0x4d0e   :  { %v9147_v29 = vpop.f32.mrf.mxu1 }
0x4d0f   :  { %6436 = vst [vmem:[#allocation4 + $0xa] sm:$0x3] %v6433_v28 }
0x4d14   :  { %v9573_v30 = vpop.eup %9572 }
0x4d15   :  { %6668 = vrot.lane.b32.xlu1 %v9573_v30, %s9869_s5  ;;  %v9575_v32 = vpop.eup %9574 }
0x4d16   :  { %v5943_v34 = vadd.f32 1.0, %v9575_v32  ;;  %v9577_v35 = vpop.eup %9576 }
0x4d17   :  { %v6662_v39 = vadd.f32 1.0, %v9577_v35 }
0x4d18   :  { %9578 = vrcp.f32 %v5943_v34 }
0x4d19   :  { %9580 = vrcp.f32 %v6662_v39 }
0x4d25   :  { %v9579_v36 = vpop.eup %9578 }
0x4d26   :  { %v9581_v44 = vpop.eup %9580  ;;  %v5947_v47 = vmul.f32 %v9579_v36, %v11082_v62 }
0x4d27   :  { %v6666_v51 = vmul.f32 0.0, %v9581_v44 }
0x4d75   :  { %v5950_v37 = vpop.permute.xlu0 %5949 }
0x4d76   :  { %v5952_v38 = vmul.f32 %v9579_v36, %v5950_v37 }
0x4d78   :  { %5954 = vrot.lane.b32.xlu0 %v5952_v38, %s9861_s21  ;;  %v6909_v38 = vld [vmem:[#allocation4 + $0x6] sm:$0x3] }
0x4d87   :  { %v6669_v45 = vpop.permute.xlu1 %6668 }
0x4d88   :  { %v6671_v46 = vmul.f32 %v9581_v44, %v6669_v45 }
0x4d8a   :  { %6673 = vrot.lane.b32.xlu1 %v6671_v46, %s9861_s21 }
0x4dea   :  { %v5955_v48 = vpop.permute.xlu0 %5954 }
0x4deb   :  { %v5957_v49 = vadd.f32 %v5955_v48, %v5947_v47 }
0x4ded   :  { %9582 = vtanh.f32 %v5957_v49 }
0x4dfa   :  { %v9583_v50 = vpop.eup %9582 }
0x4dfb   :  { %5960 = vrot.lane.b32.xlu0 %v9583_v50, %s9869_s5 }
0x4dfc   :  { %v6674_v52 = vpop.permute.xlu1 %6673 }
0x4dfd   :  { %v6676_v53 = vadd.f32 %v6674_v52, %v6666_v51 }
0x4dff   :  { %9584 = vtanh.f32 %v6676_v53 }
0x4e0c   :  { %v9585_v54 = vpop.eup %9584 }
0x4e0d   :  { %6679 = vrot.lane.b32.xlu1 %v9585_v54, %s9869_s5 }
0x4e6d   :  { %v5961_v55 = vpop.permute.xlu0 %5960 }
0x4e6e   :  { %v5963_v56 = vmul.f32 %v9579_v36, %v5961_v55 }
0x4e70   :  { %5965 = vrot.lane.b32.xlu0 %v5963_v56, %s9861_s21 }
0x4e7f   :  { %v6680_v57 = vpop.permute.xlu1 %6679 }
0x4e80   :  { %v11174_v58 = vmul.f32 %v9581_v44, %v6680_v57 }
0x4e82   :  { %6693 = vrot.lane.b32.xlu1 %v11174_v58, %s9861_s21 }
0x4ee2   :  { %v5966_v59 = vpop.permute.xlu0 %5965 }
0x4ee3   :  { %5968 = vst.msk [vmem:[#allocation3 + $0xe] sm:$0x3] %vm915_vm2, %v5966_v59 }
0x4eea   :  { %v6512_v60 = vld [vmem:[#allocation3 + $0xe] sm:$0x3] }
0x4eeb   :  { %9168 = vmatmul.mubr.msk.f32.vlgmr.msra.gmra.mxu1 %vm198_vm1, %v6512_v60 }
0x4eec   :  { %9182 = vmatpush3.msra.mxu1 %v11098_v3  ;;  %9189 = vmatprep.mubr.msk.f32.mxu1 %vm9868_vm0, %v9867_v1 }
0x4eed   :  { %9183 = vmatprep.subr.mxu1 %v9867_v1 }
0x4eee   :  { %9184 = vmatpush3.msra.mxu1 %v11104_v41 }
0x4eef   :  { %9185 = vmatprep.subr.mxu1 %v9867_v1 }
0x4ef0   :  { %9186 = vmatpush3.msra.mxu1 %v11110_v11 }
0x4ef1   :  { %9187 = vmatprep.subr.mxu1 %v9867_v1 }
0x4ef2   :  { %9188 = vmatpush3.msra.mxu1 %v11116_v20 }
0x4ef3   :  { %9203 = vmatprep.subr.mxu1 %v9867_v1 }
0x4ef4   :  { %v6694_v61 = vpop.permute.xlu1 %6693 }
0x4ef5   :  { %9190 = vmatmul.mubr.msk.f32.vlgmr.msra.gmra.mxu1 %vm198_vm1, %v6694_v61  ;;  %v7018_v61 = vld [vmem:[#allocation4 + $0x8] sm:$0x3] }
0x4ef6   :  { %9204 = vmatpush3.msra.mxu1 %v11098_v3  ;;  %9211 = vmatprep.mubr.msk.f32.mxu1 %vm9868_vm0, %v9867_v1 }
0x4ef7   :  { %9205 = vmatprep.subr.mxu1 %v9867_v1 }
0x4ef8   :  { %9206 = vmatpush3.msra.mxu1 %v11104_v41 }
0x4ef9   :  { %9207 = vmatprep.subr.mxu1 %v9867_v1 }
0x4efa   :  { %9208 = vmatpush3.msra.mxu1 %v11110_v11 }
0x4efb   :  { %9209 = vmatprep.subr.mxu1 %v9867_v1 }
0x4efc   :  { %9210 = vmatpush3.msra.mxu1 %v11116_v20 }
0x4efd   :  { %9225 = vmatprep.subr.mxu1 %v9867_v1 }
0x4fab   :  { %v6582_v62 = vpop.f32.mrf.mxu1 }
0x4fac   :  { %v6583_v63 = vadd.f32 %v11074_v43, %v6582_v62 }
0x4fad   :  { %v9169_v0 = vpop.f32.mrf.mxu1 }
0x4fae   :  { %6586 = vst [vmem:[#allocation4 + $0xe] sm:$0x3] %v6583_v63 }
0x4fb5   :  { %v6763_v7 = vpop.f32.mrf.mxu1 }
0x4fb6   :  { %v6767_v16 = vadd.f32 %v6763_v7, %v6691_v2 }
0x4fb7   :  { %v9191_v19 = vpop.f32.mrf.mxu1 }
0x4fb8   :  { %9586 = vtanh.f32 %v6767_v16  ;;  %v7936_v8 = vmul.f32 -1.442695, %v6767_v16 }
0x4fba   :  { %9588 = vpow2.f32 %v7936_v8 }
0x4fc5   :  { %v9587_v12 = vpop.eup %9586 }
0x4fc6   :  { %6777 = vrot.lane.b32.xlu0 %v9587_v12, %s9869_s5 }
0x4fc7   :  { %v9589_v42 = vpop.eup %9588 }
0x4fc8   :  { %v6771_v4 = vadd.f32 1.0, %v9589_v42 }
0x4fca   :  { %9590 = vrcp.f32 %v6771_v4 }
0x4fd7   :  { %v9591_v21 = vpop.eup %9590 }
0x4fd8   :  { %v6775_v43 = vmul.f32 %v9591_v21, %v6676_v53 }
0x5038   :  { %v6778_v5 = vpop.permute.xlu0 %6777 }
0x5039   :  { %v6780_v10 = vmul.f32 %v9591_v21, %v6778_v5 }
0x503b   :  { %6782 = vrot.lane.b32.xlu1 %v6780_v10, %s9861_s21 }
0x50ad   :  { %v6783_v9 = vpop.permute.xlu1 %6782 }
0x50ae   :  { %v6785_v22 = vadd.f32 %v6783_v9, %v6775_v43 }
0x50b0   :  { %9592 = vtanh.f32 %v6785_v22 }
0x50bd   :  { %v9593_v14 = vpop.eup %9592 }
0x50be   :  { %6788 = vrot.lane.b32.xlu0 %v9593_v14, %s9869_s5  ;;  %v7127_v14 = vld [vmem:[#allocation4 + $0xa] sm:$0x3] }
0x5130   :  { %v6789_v40 = vpop.permute.xlu0 %6788 }
0x5131   :  { %v11205_v13 = vmul.f32 %v9591_v21, %v6789_v40 }
0x5133   :  { %6802 = vrot.lane.b32.xlu1 %v11205_v13, %s9861_s21 }
0x51a5   :  { %v6803_v17 = vpop.permute.xlu1 %6802 }
0x51a6   :  { %9201 = vmatmul.mubr.msk.f32.vlgmr.msra.gmra.mxu0 %vm198_vm1, %v6803_v17 }
0x51a7   :  { %9215 = vmatpush3.msra.mxu0 %v11098_v3  ;;  %9222 = vmatprep.mubr.msk.f32.mxu0 %vm9868_vm0, %v9867_v1 }
0x51a8   :  { %9216 = vmatprep.subr.mxu0 %v9867_v1 }
0x51a9   :  { %9217 = vmatpush3.msra.mxu0 %v11104_v41 }
0x51aa   :  { %9218 = vmatprep.subr.mxu0 %v9867_v1 }
0x51ab   :  { %9219 = vmatpush3.msra.mxu0 %v11110_v11 }
0x51ac   :  { %9220 = vmatprep.subr.mxu0 %v9867_v1 }
0x51ad   :  { %9221 = vmatpush3.msra.mxu0 %v11116_v20 }
0x51ae   :  { %9236 = vmatprep.subr.mxu0 %v9867_v1 }
0x5266   :  { %v6872_v15 = vpop.f32.mrf.mxu0 }
0x5267   :  { %v6876_v18 = vadd.f32 %v6872_v15, %v6800_v6 }
0x5268   :  { %v9202_v23 = vpop.f32.mrf.mxu0 }
0x5269   :  { %9594 = vtanh.f32 %v6876_v18  ;;  %v7938_v25 = vmul.f32 -1.442695, %v6876_v18 }
0x526b   :  { %9596 = vpow2.f32 %v7938_v25 }
0x5276   :  { %v9595_v24 = vpop.eup %9594 }
0x5277   :  { %6886 = vrot.lane.b32.xlu0 %v9595_v24, %s9869_s5 }
0x5278   :  { %v9597_v26 = vpop.eup %9596 }
0x5279   :  { %v6880_v27 = vadd.f32 1.0, %v9597_v26 }
0x527b   :  { %9598 = vrcp.f32 %v6880_v27 }
0x5288   :  { %v9599_v28 = vpop.eup %9598 }
0x5289   :  { %v6884_v31 = vmul.f32 %v9599_v28, %v6785_v22 }
0x52e9   :  { %v6887_v29 = vpop.permute.xlu0 %6886 }
0x52ea   :  { %v6889_v30 = vmul.f32 %v9599_v28, %v6887_v29 }
0x52ec   :  { %6891 = vrot.lane.b32.xlu1 %v6889_v30, %s9861_s21 }
0x535e   :  { %v6892_v32 = vpop.permute.xlu1 %6891 }
0x535f   :  { %v6894_v33 = vadd.f32 %v6892_v32, %v6884_v31  ;;  %v7236_v31 = vld [vmem:[#allocation4 + $0xc] sm:$0x3] }
0x5361   :  { %9600 = vtanh.f32 %v6894_v33 }
0x536e   :  { %v9601_v34 = vpop.eup %9600 }
0x536f   :  { %6897 = vrot.lane.b32.xlu0 %v9601_v34, %s9869_s5 }
0x53e1   :  { %v6898_v35 = vpop.permute.xlu0 %6897 }
0x53e2   :  { %v11223_v36 = vmul.f32 %v9599_v28, %v6898_v35 }
0x53e4   :  { %6911 = vrot.lane.b32.xlu1 %v11223_v36, %s9861_s21 }
0x5456   :  { %v6912_v37 = vpop.permute.xlu1 %6911 }
0x5457   :  { %9212 = vmatmul.mubr.msk.f32.vlgmr.msra.gmra.mxu1 %vm198_vm1, %v6912_v37 }
0x5458   :  { %9226 = vmatpush3.msra.mxu1 %v11098_v3  ;;  %9233 = vmatprep.mubr.msk.f32.mxu1 %vm9868_vm0, %v9867_v1 }
0x5459   :  { %9227 = vmatprep.subr.mxu1 %v9867_v1 }
0x545a   :  { %9228 = vmatpush3.msra.mxu1 %v11104_v41 }
0x545b   :  { %9229 = vmatprep.subr.mxu1 %v9867_v1 }
0x545c   :  { %9230 = vmatpush3.msra.mxu1 %v11110_v11 }
0x545d   :  { %9231 = vmatprep.subr.mxu1 %v9867_v1 }
0x545e   :  { %9232 = vmatpush3.msra.mxu1 %v11116_v20 }
0x545f   :  { %9247 = vmatprep.subr.mxu1 %v9867_v1 }
0x5517   :  { %v6981_v39 = vpop.f32.mrf.mxu1 }
0x5518   :  { %v6985_v44 = vadd.f32 %v6981_v39, %v6909_v38 }
0x5519   :  { %v9213_v45 = vpop.f32.mrf.mxu1 }
0x551a   :  { %9602 = vtanh.f32 %v6985_v44  ;;  %v7940_v47 = vmul.f32 -1.442695, %v6985_v44 }
0x551c   :  { %9604 = vpow2.f32 %v7940_v47 }
0x5527   :  { %v9603_v46 = vpop.eup %9602 }
0x5528   :  { %6995 = vrot.lane.b32.xlu0 %v9603_v46, %s9869_s5 }
0x5529   :  { %v9605_v48 = vpop.eup %9604 }
0x552a   :  { %v6989_v49 = vadd.f32 1.0, %v9605_v48 }
0x552c   :  { %9606 = vrcp.f32 %v6989_v49 }
0x5539   :  { %v9607_v50 = vpop.eup %9606 }
0x553a   :  { %v6993_v53 = vmul.f32 %v9607_v50, %v6894_v33 }
0x559a   :  { %v6996_v51 = vpop.permute.xlu0 %6995 }
0x559b   :  { %v6998_v52 = vmul.f32 %v9607_v50, %v6996_v51 }
0x559d   :  { %7000 = vrot.lane.b32.xlu1 %v6998_v52, %s9861_s21 }
0x560f   :  { %v7001_v54 = vpop.permute.xlu1 %7000 }
0x5610   :  { %v7003_v55 = vadd.f32 %v7001_v54, %v6993_v53  ;;  %v9870_v54 = vmov 0  }
0x5611   :  { %9320 = vset.pattern.permute.xlu0 %v9870_v54  ;;  %9321 = vset.pattern.permute.xlu1 %v9870_v54 }
0x5612   :  { %9608 = vtanh.f32 %v7003_v55 }
0x561f   :  { %v9609_v56 = vpop.eup %9608 }
0x5620   :  { %7006 = vrot.lane.b32.xlu0 %v9609_v56, %s9869_s5 }
0x5692   :  { %v7007_v57 = vpop.permute.xlu0 %7006 }
0x5693   :  { %v11241_v59 = vmul.f32 %v9607_v50, %v7007_v57 }
0x5695   :  { %7020 = vrot.lane.b32.xlu1 %v11241_v59, %s9861_s21 }
0x5707   :  { %v7021_v60 = vpop.permute.xlu1 %7020 }
0x5708   :  { %9223 = vmatmul.mubr.msk.f32.vlgmr.msra.gmra.mxu0 %vm198_vm1, %v7021_v60 }
0x5709   :  { %9237 = vmatpush3.msra.mxu0 %v11098_v3  ;;  %9244 = vmatprep.mubr.msk.f32.mxu0 %vm9868_vm0, %v9867_v1 }
0x570a   :  { %9238 = vmatprep.subr.mxu0 %v9867_v1 }
0x570b   :  { %9239 = vmatpush3.msra.mxu0 %v11104_v41 }
0x570c   :  { %9240 = vmatprep.subr.mxu0 %v9867_v1 }
0x570d   :  { %9241 = vmatpush3.msra.mxu0 %v11110_v11 }
0x570e   :  { %9242 = vmatprep.subr.mxu0 %v9867_v1 }
0x570f   :  { %9243 = vmatpush3.msra.mxu0 %v11116_v20 }
0x5710   :  { %9258 = vmatprep.subr.mxu0 %v9867_v1 }
0x57c8   :  { %v7090_v62 = vpop.f32.mrf.mxu0 }
0x57c9   :  { %v7094_v63 = vadd.f32 %v7090_v62, %v7018_v61  ;;  %v181_v61 = vld [vmem:[%s11372_s18] sm:$0x3] }
0x57ca   :  { %v9224_v0 = vpop.f32.mrf.mxu0  ;;  %vm6683_vm3 = vcmp.gt.s32.totalorder %v181_v61, 0  ;;  %vm7010_vm4 = vcmp.gt.s32.totalorder %v181_v61, 3  ;;  %vm7228_vm5 = vcmp.gt.s32.totalorder %v181_v61, 5  ;;  %vm7446_vm6 = vcmp.gt.s32.totalorder %v181_v61, 7 }
0x57cb   :  { %9610 = vtanh.f32 %v7094_v63  ;;  %v7942_v7 = vmul.f32 -1.442695, %v7094_v63  ;;  %v6684_v63 = vsel %vm6683_vm3, 1, %v9870_v54  ;;  %v7011_v0 = vsel %vm7010_vm4, 1, %v9870_v54 }
0x57cc   :  { %vm6792_vm7 = vcmp.gt.s32.totalorder %v181_v61, 1  ;;  %vm6901_vm8 = vcmp.gt.s32.totalorder %v181_v61, 2  ;;  %vm7119_vm9 = vcmp.gt.s32.totalorder %v181_v61, 4  ;;  %vm7337_vm10 = vcmp.gt.s32.totalorder %v181_v61, 6  ;;  %v7639_v61 = vld [vmem:[#allocation18 + $0x10] sm:$0xff] }
0x57cd   :  { %9612 = vpow2.f32 %v7942_v7  ;;  %v7447_v7 = vsel %vm7446_vm6, 1, %v9870_v54 }
0x57d8   :  { %v9611_v2 = vpop.eup %9610 }
0x57d9   :  { %7104 = vrot.lane.b32.xlu0 %v9611_v2, %s9869_s5  ;;  %v7229_v2 = vsel %vm7228_vm5, 1, %v9870_v54 }
0x57da   :  { %v9613_v16 = vpop.eup %9612 }
0x57db   :  { %v7098_v19 = vadd.f32 1.0, %v9613_v16  ;;  %v7949_v16 = vld [vmem:[#allocation5] ss:$0 sm:$0xff] }
0x57dd   :  { %9614 = vrcp.f32 %v7098_v19 }
0x57ea   :  { %v9615_v12 = vpop.eup %9614 }
0x57eb   :  { %v7102_v4 = vmul.f32 %v9615_v12, %v7003_v55  ;;  %v7345_v55 = vld [vmem:[#allocation4 + $0xe] sm:$0x3] }
0x584b   :  { %v7105_v8 = vpop.permute.xlu0 %7104 }
0x584c   :  { %v7107_v42 = vmul.f32 %v9615_v12, %v7105_v8 }
0x584e   :  { %7109 = vrot.lane.b32.xlu1 %v7107_v42, %s9861_s21 }
0x58c0   :  { %v7110_v21 = vpop.permute.xlu1 %7109 }
0x58c1   :  { %v7112_v5 = vadd.f32 %v7110_v21, %v7102_v4 }
0x58c3   :  { %9616 = vtanh.f32 %v7112_v5 }
0x58d0   :  { %v9617_v10 = vpop.eup %9616 }
0x58d1   :  { %7115 = vrot.lane.b32.xlu0 %v9617_v10, %s9869_s5  ;;  %v6902_v10 = vsel %vm6901_vm8, 1, %v9870_v54 }
0x5943   :  { %v7116_v43 = vpop.permute.xlu0 %7115 }
0x5944   :  { %v11259_v9 = vmul.f32 %v9615_v12, %v7116_v43  ;;  %v7120_v43 = vsel %vm7119_vm9, 1, %v9870_v54 }
0x5946   :  { %7129 = vrot.lane.b32.xlu1 %v11259_v9, %s9861_s21 }
0x59b8   :  { %v7130_v22 = vpop.permute.xlu1 %7129 }
0x59b9   :  { %9234 = vmatmul.mubr.msk.f32.vlgmr.msra.gmra.mxu1 %vm198_vm1, %v7130_v22  ;;  %v7338_v22 = vsel %vm7337_vm10, 1, %v9870_v54 }
0x59ba   :  { %9248 = vmatpush3.msra.mxu1 %v11098_v3  ;;  %9255 = vmatprep.mubr.msk.f32.mxu1 %vm9868_vm0, %v9867_v1 }
0x59bb   :  { %9249 = vmatprep.subr.mxu1 %v9867_v1 }
0x59bc   :  { %9250 = vmatpush3.msra.mxu1 %v11104_v41 }
0x59bd   :  { %9251 = vmatprep.subr.mxu1 %v9867_v1 }
0x59be   :  { %9252 = vmatpush3.msra.mxu1 %v11110_v11 }
0x59bf   :  { %9253 = vmatprep.subr.mxu1 %v9867_v1 }
0x59c0   :  { %9254 = vmatpush3.msra.mxu1 %v11116_v20 }
0x59c1   :  { %9269 = vmatprep.subr.mxu1 %v9867_v1 }
0x5a79   :  { %v7199_v40 = vpop.f32.mrf.mxu1 }
0x5a7a   :  { %v7203_v3 = vadd.f32 %v7199_v40, %v7127_v14 }
0x5a7b   :  { %v9235_v17 = vpop.f32.mrf.mxu1 }
0x5a7c   :  { %9618 = vtanh.f32 %v7203_v3  ;;  %v7944_v15 = vmul.f32 -1.442695, %v7203_v3  ;;  %v7468_v17 = vld [vmem:[#allocation15 + $0x18] sm:$0xff] }
0x5a7e   :  { %9620 = vpow2.f32 %v7944_v15  ;;  %v7466_v15 = vld [vmem:[#allocation15 + $0x8] sm:$0xff] }
0x5a89   :  { %v9619_v6 = vpop.eup %9618 }
0x5a8a   :  { %7213 = vrot.lane.b32.xlu0 %v9619_v6, %s9869_s5  ;;  %v7467_v6 = vld [vmem:[#allocation15 + $0x10] sm:$0xff] }
0x5a8b   :  { %v9621_v41 = vpop.eup %9620 }
0x5a8c   :  { %v7207_v18 = vadd.f32 1.0, %v9621_v41  ;;  %v7465_v41 = vld [vmem:[#allocation15] sm:$0xff] }
0x5a8e   :  { %9622 = vrcp.f32 %v7207_v18 }
0x5a9b   :  { %v9623_v11 = vpop.eup %9622 }
0x5a9c   :  { %v7211_v20 = vmul.f32 %v9623_v11, %v7112_v5  ;;  %v6793_v5 = vsel %vm6792_vm7, 1, %v9870_v54  ;;  %v7950_v54 = vld [vmem:[%s11361_s10] ss:$0 sm:$0xff] }
0x5afc   :  { %v7214_v23 = vpop.permute.xlu0 %7213 }
0x5afd   :  { %v7216_v24 = vmul.f32 %v9623_v11, %v7214_v23 }
0x5aff   :  { %7218 = vrot.lane.b32.xlu1 %v7216_v24, %s9861_s21 }
0x5b71   :  { %v7219_v25 = vpop.permute.xlu1 %7218 }
0x5b72   :  { %v7221_v26 = vadd.f32 %v7219_v25, %v7211_v20 }
0x5b74   :  { %9624 = vtanh.f32 %v7221_v26 }
0x5b81   :  { %v9625_v27 = vpop.eup %9624 }
0x5b82   :  { %7224 = vrot.lane.b32.xlu0 %v9625_v27, %s9869_s5 }
0x5bf4   :  { %v7225_v28 = vpop.permute.xlu0 %7224 }
0x5bf5   :  { %v11277_v29 = vmul.f32 %v9623_v11, %v7225_v28 }
0x5bf7   :  { %7238 = vrot.lane.b32.xlu1 %v11277_v29, %s9861_s21 }
0x5c69   :  { %v7239_v30 = vpop.permute.xlu1 %7238 }
0x5c6a   :  { %9245 = vmatmul.mubr.msk.f32.vlgmr.msra.gmra.mxu0 %vm198_vm1, %v7239_v30 }
0x5c6b   :  { %9266 = vmatprep.mubr.msk.f32.mxu0 %vm9868_vm0, %v9867_v1  ;;  %9259 = vmatpush3.msra.mxu0 %v7468_v17 }
0x5c6c   :  { %9260 = vmatprep.subr.mxu0 %v9867_v1 }
0x5c6d   :  { %9261 = vmatpush3.msra.mxu0 %v7467_v6 }
0x5c6e   :  { %9262 = vmatprep.subr.mxu0 %v9867_v1 }
0x5c6f   :  { %9263 = vmatpush3.msra.mxu0 %v7466_v15 }
0x5c70   :  { %9264 = vmatprep.subr.mxu0 %v9867_v1 }
0x5c71   :  { %9265 = vmatpush3.msra.mxu0 %v7465_v41 }
0x5c72   :  { %9280 = vmatprep.subr.mxu0 %v9867_v1 }
0x5d2a   :  { %v7308_v32 = vpop.f32.mrf.mxu0 }
0x5d2b   :  { %v7312_v33 = vadd.f32 %v7308_v32, %v7236_v31 }
0x5d2c   :  { %v9246_v34 = vpop.f32.mrf.mxu0 }
0x5d2d   :  { %9626 = vtanh.f32 %v7312_v33  ;;  %v7946_v37 = vmul.f32 -1.442695, %v7312_v33 }
0x5d2f   :  { %9628 = vpow2.f32 %v7946_v37 }
0x5d3a   :  { %v9627_v35 = vpop.eup %9626 }
0x5d3b   :  { %7322 = vrot.lane.b32.xlu0 %v9627_v35, %s9869_s5 }
0x5d3c   :  { %v9629_v38 = vpop.eup %9628 }
0x5d3d   :  { %v7316_v39 = vadd.f32 1.0, %v9629_v38 }
0x5d3f   :  { %9630 = vrcp.f32 %v7316_v39 }
0x5d4c   :  { %v9631_v44 = vpop.eup %9630 }
0x5d4d   :  { %v7320_v47 = vmul.f32 %v9631_v44, %v7221_v26 }
0x5dad   :  { %v7323_v45 = vpop.permute.xlu0 %7322 }
0x5dae   :  { %v7325_v46 = vmul.f32 %v9631_v44, %v7323_v45 }
0x5db0   :  { %7327 = vrot.lane.b32.xlu1 %v7325_v46, %s9861_s21 }
0x5e22   :  { %v7328_v48 = vpop.permute.xlu1 %7327 }
0x5e23   :  { %v7330_v49 = vadd.f32 %v7328_v48, %v7320_v47 }
0x5e25   :  { %9632 = vtanh.f32 %v7330_v49 }
0x5e32   :  { %v9633_v50 = vpop.eup %9632 }
0x5e33   :  { %7333 = vrot.lane.b32.xlu0 %v9633_v50, %s9869_s5 }
0x5ea5   :  { %v7334_v51 = vpop.permute.xlu0 %7333 }
0x5ea6   :  { %v11287_v52 = vmul.f32 %v9631_v44, %v7334_v51  ;;  %v7553_v51 = vld [vmem:[#allocation17 + $0x8] sm:$0xff] }
0x5ea8   :  { %7347 = vrot.lane.b32.xlu1 %v11287_v52, %s9861_s21 }
0x5f1a   :  { %v7348_v53 = vpop.permute.xlu1 %7347 }
0x5f1b   :  { %9256 = vmatmul.mubr.msk.f32.vlgmr.msra.gmra.mxu1 %vm198_vm1, %v7348_v53  ;;  %v7640_v53 = vld [vmem:[#allocation18 + $0x18] sm:$0xff] }
0x5f1c   :  { %9277 = vmatprep.mubr.msk.f32.mxu1 %vm9868_vm0, %v9867_v1 }
0x5fdb   :  { %v7417_v56 = vpop.f32.mrf.mxu1 }
0x5fdc   :  { %v7421_v57 = vadd.f32 %v7417_v56, %v7345_v55 }
0x5fdd   :  { %v9257_v60 = vpop.f32.mrf.mxu1 }
0x5fde   :  { %9634 = vtanh.f32 %v7421_v57  ;;  %v7948_v19 = vmul.f32 -1.442695, %v7421_v57 }
0x5fe0   :  { %9636 = vpow2.f32 %v7948_v19 }
0x5feb   :  { %v9635_v62 = vpop.eup %9634 }
0x5fec   :  { %7431 = vrot.lane.b32.xlu0 %v9635_v62, %s9869_s5  ;;  %v7638_v62 = vld [vmem:[#allocation18 + $0x8] sm:$0xff] }
0x5fed   :  { %v9637_v12 = vpop.eup %9636 }
0x5fee   :  { %v7425_v8 = vadd.f32 1.0, %v9637_v12 }
0x5ff0   :  { %6686 = vperm.xlu0 %9320, %v6684_v63   ;;  %9638 = vrcp.f32 %v7425_v8  ;;  %v7637_v63 = vld [vmem:[#allocation18] sm:$0xff]  ;;  %v7724_v8 = vld [vmem:[#allocation20 + $0x10] sm:$0xff] }
0x5ff4   :  { %7013 = vperm.xlu0 %9320, %v7011_v0   ;;  %v7725_v0 = vld [vmem:[#allocation20 + $0x18] sm:$0xff] }
0x5ff8   :  { %7231 = vperm.xlu0 %9320, %v7229_v2   ;;  %v7952_v2 = vld [vmem:[%s11363_s12] ss:$0 sm:$0xff] }
0x5ffc   :  { %7449 = vperm.xlu0 %9320, %v7447_v7  }
0x5ffd   :  { %v11298_v42 = vpop.eup %9638 }
0x5ffe   :  { %v7429_v14 = vmul.f32 %v11298_v42, %v7330_v49 }
0x6000   :  { %7461 = vperm.xlu0 %9320, %v7949_v16  }
0x605e   :  { %v7432_v4 = vpop.permute.xlu0 %7431 }
0x605f   :  { %v7434_v21 = vmul.f32 %v11298_v42, %v7432_v4  ;;  %v7722_v4 = vld [vmem:[#allocation20] sm:$0xff] }
0x6061   :  { %7436 = vrot.lane.b32.xlu1 %v7434_v21, %s9861_s21  ;;  %v7954_v21 = vld [vmem:[%s11365_s14] ss:$0 sm:$0xff] }
0x6065   :  { %6795 = vperm.xlu1 %9321, %v6793_v5  }
0x6069   :  { %6904 = vperm.xlu1 %9321, %v6902_v10  }
0x606b   :  { %v6687_v23 = vpop.permute.xlu0 %6686 }
0x606c   :  { %vm6688_vm12 = vcmp.eq.s32.totalorder %v6687_v23, 1 }
0x606d   :  { %7122 = vperm.xlu1 %9321, %v7120_v43   ;;  %v6689_v25 = vsel %vm6688_vm12, %v11174_v58, 0.0 }
0x606f   :  { %v7014_v26 = vpop.permute.xlu0 %7013 }
0x6070   :  { %vm7015_vm14 = vcmp.eq.s32.totalorder %v7014_v26, 1 }
0x6071   :  { %7340 = vperm.xlu1 %9321, %v7338_v22   ;;  %v7016_v32 = vsel %vm7015_vm14, %v11241_v59, 0.0 }
0x6073   :  { %v7232_v34 = vpop.permute.xlu0 %7231 }
0x6074   :  { %vm7233_vm3 = vcmp.eq.s32.totalorder %v7232_v34, 1 }
0x6075   :  { %v7234_v58 = vsel %vm7233_vm3, %v11277_v29, 0.0  ;;  %v7554_v29 = vld [vmem:[#allocation17 + $0x10] sm:$0xff] }
0x6077   :  { %v7450_v44 = vpop.permute.xlu0 %7449 }
0x6078   :  { %vm7451_vm5 = vcmp.eq.s32.totalorder %v7450_v44, 1 }
0x607b   :  { %v7462_v48 = vpop.permute.xlu0 %7461 }
0x60d3   :  { %v7437_v40 = vpop.permute.xlu1 %7436 }
0x60d4   :  { %v7439_v3 = vadd.f32 %v7437_v40, %v7429_v14  ;;  %v7956_v14 = vld [vmem:[%s11367_s16] ss:$0 sm:$0xff] }
0x60d6   :  { %9640 = vtanh.f32 %v7439_v3 }
0x60e0   :  { %v6796_v11 = vpop.permute.xlu1 %6795 }
0x60e1   :  { %vm6797_vm11 = vcmp.eq.s32.totalorder %v6796_v11, 1 }
0x60e2   :  { %v6798_v20 = vsel %vm6797_vm11, %v11205_v13, 0.0  ;;  %v7555_v13 = vld [vmem:[#allocation17 + $0x18] sm:$0xff] }
0x60e3   :  { %v9641_v18 = vpop.eup %9640  ;;  %v6799_v28 = vadd.f32 %v6798_v20, %v6689_v25  ;;  %9270 = vmatpush3.msra.mxu1 %v7555_v13 }
0x60e4   :  { %7442 = vrot.lane.b32.xlu1 %v9641_v18, %s9869_s5  ;;  %v6905_v24 = vpop.permute.xlu1 %6904  ;;  %9271 = vmatprep.subr.mxu1 %v9867_v1 }
0x60e5   :  { %vm6906_vm13 = vcmp.eq.s32.totalorder %v6905_v24, 1  ;;  %9272 = vmatpush3.msra.mxu1 %v7554_v29 }
0x60e6   :  { %v6907_v27 = vsel %vm6906_vm13, %v11223_v36, 0.0  ;;  %9273 = vmatprep.subr.mxu1 %v9867_v1 }
0x60e7   :  { %v6908_v31 = vadd.f32 %v6907_v27, %v6799_v28  ;;  %9274 = vmatpush3.msra.mxu1 %v7553_v51 }
0x60e8   :  { %v7123_v30 = vpop.permute.xlu1 %7122  ;;  %9275 = vmatprep.subr.mxu1 %v9867_v1 }
0x60e9   :  { %vm7124_vm15 = vcmp.eq.s32.totalorder %v7123_v30, 1  ;;  %v7017_v33 = vadd.f32 %v7016_v32, %v6908_v31 }
0x60ea   :  { %v7125_v35 = vsel %vm7124_vm15, %v11259_v9, 0.0 }
0x60eb   :  { %v7126_v38 = vadd.f32 %v7125_v35, %v7017_v33 }
0x60ec   :  { %v7341_v37 = vpop.permute.xlu1 %7340 }
0x60ed   :  { %vm7342_vm4 = vcmp.eq.s32.totalorder %v7341_v37, 1  ;;  %v7235_v36 = vadd.f32 %v7234_v58, %v7126_v38 }
0x60ee   :  { %v7343_v39 = vsel %vm7342_vm4, %v11287_v52, 0.0  ;;  %v7552_v52 = vld [vmem:[#allocation17] sm:$0xff] }
0x60ef   :  { %v7344_v46 = vadd.f32 %v7343_v39, %v7235_v36  ;;  %9276 = vmatpush3.msra.mxu1 %v7552_v52 }
0x60f0   :  { %9291 = vmatprep.subr.mxu1 %v9867_v1 }
0x6156   :  { %v7443_v45 = vpop.permute.xlu1 %7442 }
0x6157   :  { %v7445_v59 = vmul.f32 %v11298_v42, %v7443_v45  ;;  %v7723_v42 = vld [vmem:[#allocation20 + $0x8] sm:$0xff] }
0x6159   :  { %v7452_v9 = vsel %vm7451_vm5, %v7445_v59, 0.0 }
0x615a   :  { %v7453_v47 = vadd.f32 %v7452_v9, %v7344_v46 }
0x615c   :  { %v7464_v49 = vmul.f32 %v7462_v48, %v7453_v47 }
0x615e   :  { %7477 = vrot.lane.b32.xlu1 %v7464_v49, %s9861_s21 }
0x61d0   :  { %v7478_v50 = vpop.permute.xlu1 %7477 }
0x61d1   :  { %9267 = vmatmul.mubr.msk.f32.vlgmr.msra.gmra.mxu0 %vm198_vm1, %v7478_v50 }
0x61d2   :  { %9288 = vmatprep.mubr.msk.f32.mxu0 %vm9868_vm0, %v9867_v1  ;;  %9281 = vmatpush3.msra.mxu0 %v7640_v53 }
0x61d3   :  { %9282 = vmatprep.subr.mxu0 %v9867_v1 }
0x61d4   :  { %9283 = vmatpush3.msra.mxu0 %v7639_v61 }
0x61d5   :  { %9284 = vmatprep.subr.mxu0 %v9867_v1 }
0x61d6   :  { %9285 = vmatpush3.msra.mxu0 %v7638_v62 }
0x61d7   :  { %9286 = vmatprep.subr.mxu0 %v9867_v1 }
0x61d8   :  { %9287 = vmatpush3.msra.mxu0 %v7637_v63 }
0x6291   :  { %v7547_v55 = vpop.f32.mrf.mxu0 }
0x6292   :  { %v7548_v56 = vadd.f32 %v7950_v54, %v7547_v55 }
0x6293   :  { %v9268_v57 = vpop.f32.mrf.mxu0 }
0x6294   :  { %v7551_v60 = vmax.f32 %v7548_v56, 0.0 }
0x6296   :  { %9278 = vmatmul.mubr.msk.f32.vlgmr.msra.gmra.mxu1 %vm198_vm1, %v7551_v60 }
0x6297   :  { %9299 = vmatprep.mubr.msk.f32.mxu1 %vm9868_vm0, %v9867_v1  ;;  %9292 = vmatpush3.msra.mxu1 %v7725_v0 }
0x6298   :  { %9293 = vmatprep.subr.mxu1 %v9867_v1 }
0x6299   :  { %9294 = vmatpush3.msra.mxu1 %v7724_v8 }
0x629a   :  { %9295 = vmatprep.subr.mxu1 %v9867_v1 }
0x629b   :  { %9296 = vmatpush3.msra.mxu1 %v7723_v42 }
0x629c   :  { %9297 = vmatprep.subr.mxu1 %v9867_v1 }
0x629d   :  { %9298 = vmatpush3.msra.mxu1 %v7722_v4 }
0x6356   :  { %v7632_v7 = vpop.f32.mrf.mxu1 }
0x6357   :  { %v7633_v16 = vadd.f32 %v7952_v2, %v7632_v7 }
0x6358   :  { %v9279_v19 = vpop.f32.mrf.mxu1 }
0x6359   :  { %v7636_v12 = vmax.f32 %v7633_v16, 0.0 }
0x635b   :  { %9289 = vmatmul.mubr.msk.f32.vlgmr.msra.gmra.mxu0 %vm198_vm1, %v7636_v12 }
0x641b   :  { %v7717_v5 = vpop.f32.mrf.mxu0 }
0x641c   :  { %v7718_v10 = vadd.f32 %v7954_v21, %v7717_v5 }
0x641d   :  { %v9290_v43 = vpop.f32.mrf.mxu0 }
0x641e   :  { %v7721_v22 = vmax.f32 %v7718_v10, 0.0 }
0x6420   :  { %9300 = vmatmul.mubr.msk.f32.vlgmr.msra.gmra.mxu1 %vm198_vm1, %v7721_v22 }
0x64e0   :  { %v7802_v40 = vpop.f32.mrf.mxu1 }
0x64e1   :  { %v7803_v1 = vadd.f32 %v7956_v14, %v7802_v40 }
0x64e2   :  { %v9301_v3 = vpop.f32.mrf.mxu1 }
0x64e3   :  { %7806 = vst.msk [vmem:[#allocation21] sm:$0x3] %vm915_vm2, %v7803_v1 }
0x64e4   :  { %9833 = shalt.err (!%p9830_p7)
}
0x64e5   :  { %7816 = dma.vmem_to_hbm [thread:$0]  %s7814_s22, 32, %s11368_s17, [#allocation8]  }
0x64e6   :  { %9852 = dma.done.wait [#allocation8], 32  }
0x64e7   :  { %9853 = vsyncadd [#allocation8], 4294967264 }
0x64e8   :  { %7820 = vsyncpa [#allocation7], 1 }
0x64e9   :  { %7821 = vsyncpa [#allocation10], 1 }
0x64ea   :  { %7822 = vsyncpa [#allocation13], 1 }
0x64eb   :  { %7823 = vsyncpa [#allocation16], 1 }
0x64ec   :  { %7824 = vsyncpa [#allocation19], 1 }
0x64ed   :  { %7825 = vsyncpa [#allocation8], 1 }

</bundles_post_ra>
